<compile_context>
chip_gen: v7x
topology: tpu7x:2x2x1
jax: 0.10.0
libtpu: 0.0.40
codegen_flags: <defaults>
</compile_context>

<pallas_src>
import functools

import jax
import jax.numpy as jnp
from jax import lax
from jax.experimental import pallas as pl
from jax.experimental.pallas import tpu as pltpu


def _round_up(x, m):
    return (x + m - 1) // m * m


# ----------------------------- Pallas kernels ------------------------------

def _matmul_bias_act_kernel(x_ref, w_ref, b_ref, o_ref, *, relu, relu_cols, tn):
    # Single K block: one MXU matmul, bias + activation fused, direct store.
    y = jnp.dot(x_ref[...], w_ref[...], preferred_element_type=jnp.float32)
    y = y + b_ref[...]
    if relu:
        y = jnp.maximum(y, 0.0)
    elif relu_cols is not None:
        col = lax.broadcasted_iota(jnp.int32, y.shape, 1) + pl.program_id(1) * tn
        y = jnp.where(col < relu_cols, jnp.maximum(y, 0.0), y)
    o_ref[...] = y.astype(o_ref.dtype)


def matmul_bias_act(x, w, b, relu=False, relu_cols=None):
    """O = act(x @ w + b). bf16 MXU inputs, f32 accumulation, fused bias and
    (optionally column-masked) ReLU. K is a single full-extent block."""
    M, K = x.shape
    K2, N = w.shape
    assert K == K2
    # M tiling: at most ~512 rows per block; exact-fit blocks where possible.
    nblk_m = max(1, pl.cdiv(M, 512))
    tm = _round_up(pl.cdiv(M, nblk_m), 8)
    Mp = tm * nblk_m
    Kp = _round_up(K, 8)          # no padding up to 128 along K
    Np = _round_up(N, 128)        # lane-dense output
    tn = 128

    xp = jnp.pad(x, ((0, Mp - M), (0, Kp - K))).astype(jnp.bfloat16)
    wp = jnp.pad(w, ((0, Kp - K), (0, Np - N))).astype(jnp.bfloat16)
    bp = jnp.pad(b.astype(jnp.float32), ((0, Np - N),)).reshape(1, Np)

    out = pl.pallas_call(
        functools.partial(_matmul_bias_act_kernel, relu=relu,
                          relu_cols=relu_cols, tn=tn),
        out_shape=jax.ShapeDtypeStruct((Mp, Np), jnp.float32),
        grid_spec=pltpu.PrefetchScalarGridSpec(
            num_scalar_prefetch=0,
            grid=(Mp // tm, Np // tn),
            in_specs=[pl.BlockSpec((tm, Kp), lambda i, j: (i, 0)),
                      pl.BlockSpec((Kp, tn), lambda i, j: (0, j)),
                      pl.BlockSpec((1, tn), lambda i, j: (0, j))],
            out_specs=pl.BlockSpec((tm, tn), lambda i, j: (i, j))),
        compiler_params=pltpu.CompilerParams(
            dimension_semantics=("parallel", "parallel")),
    )(xp, wp, bp)
    return out[:M, :N]


def _classifier_kernel(x_ref, w1_ref, b1_ref, w2_ref, b2_ref, o_ref):
    h = jnp.dot(x_ref[...], w1_ref[...], preferred_element_type=jnp.float32)
    h = jnp.maximum(h + b1_ref[...], 0.0)
    # TODO(synk): Dropout(0.4) is stochastic in training mode; inference-mode
    # identity is used here.
    o = jnp.dot(h, w2_ref[...], preferred_element_type=jnp.float32)
    o_ref[...] = o + b2_ref[...]


def classifier_fused(x, w1, b1, w2, b2):
    """logits = (relu(x @ w1 + b1)) @ w2 + b2 in a single Pallas call."""
    M, K = x.shape
    N1 = w1.shape[1]
    N2 = w2.shape[1]
    Mp = _round_up(M, 8)
    Kp = _round_up(K, 8)
    N1p = _round_up(N1, 128)
    N2p = _round_up(N2, 128)
    xp = jnp.pad(x, ((0, Mp - M), (0, Kp - K))).astype(jnp.bfloat16)
    w1p = jnp.pad(w1, ((0, Kp - K), (0, N1p - N1))).astype(jnp.bfloat16)
    b1p = jnp.pad(b1.astype(jnp.float32), ((0, N1p - N1),)).reshape(1, N1p)
    w2p = jnp.pad(w2.astype(jnp.float32), ((0, N1p - N1), (0, N2p - N2)))
    b2p = jnp.pad(b2.astype(jnp.float32), ((0, N2p - N2),)).reshape(1, N2p)
    out = pl.pallas_call(
        _classifier_kernel,
        out_shape=jax.ShapeDtypeStruct((Mp, N2p), jnp.float32),
    )(xp, w1p, b1p, w2p, b2p)
    return out[:M, :N2]


def _max_kernel(*refs):
    o_ref = refs[-1]
    acc = refs[0][...]
    for r in refs[1:-1]:
        acc = jnp.maximum(acc, r[...])
    o_ref[...] = acc


def pallas_max(views):
    """Elementwise max over a list of same-shape 2-D arrays (one fused call,
    no stacking, no channel padding)."""
    return pl.pallas_call(
        _max_kernel,
        out_shape=jax.ShapeDtypeStruct(views[0].shape, views[0].dtype),
    )(*views)


# --------------------------- conv / pool helpers ----------------------------

def _im2col(x, kh, kw, pad):
    # x: NHWC, stride 1
    N, H, W, C = x.shape
    xp = jnp.pad(x, ((0, 0), (pad, pad), (pad, pad), (0, 0)))
    cols = []
    for i in range(kh):
        for j in range(kw):
            cols.append(xp[:, i:i + H, j:j + W, :])
    return jnp.concatenate(cols, axis=-1)  # (N, H, W, kh*kw*C)


def conv2d(x, w, b, pad, relu=False):
    # x: NHWC; w: PyTorch layout (Cout, Cin, kh, kw); stride 1
    Cout, Cin, kh, kw = w.shape
    N, H, W, C = x.shape
    assert C == Cin
    patches = _im2col(x, kh, kw, pad).reshape(N * H * W, kh * kw * Cin)
    wmat = jnp.transpose(w, (2, 3, 1, 0)).reshape(kh * kw * Cin, Cout)
    y = matmul_bias_act(patches, wmat, b, relu=relu)
    return y.reshape(N, H, W, Cout)


def maxpool2x2(x):  # NHWC, kernel 2, stride 2
    N, H, W, C = x.shape
    Ho, Wo = H // 2, W // 2
    views = [x[:, i::2, j::2, :].reshape(N * Ho * Wo, C)
             for i in range(2) for j in range(2)]
    return pallas_max(views).reshape(N, Ho, Wo, C)


def maxpool3x3_s1_p1(x):  # NHWC, kernel 3, stride 1, padding 1
    N, H, W, C = x.shape
    xp = jnp.pad(x, ((0, 0), (1, 1), (1, 1), (0, 0)),
                 constant_values=-jnp.inf)
    views = [xp[:, i:i + H, j:j + W, :].reshape(N * H * W, C)
             for i in range(3) for j in range(3)]
    return pallas_max(views).reshape(N, H, W, C)


def fold_bn(w, b, gamma, beta, mean, var, eps=1e-5):
    """Fold an inference-mode BatchNorm into the preceding conv's (w, b)."""
    scale = gamma / jnp.sqrt(var + eps)
    wf = w * scale[:, None, None, None]
    bf = (b - mean) * scale + beta
    return wf, bf


# ------------------------------- parameters --------------------------------

def init_params(key, num_classes=36):
    keys = jax.random.split(key, 32)
    ki = iter(keys)

    def conv_w(cout, cin, k):
        fan_in = cin * k * k
        return jax.random.normal(next(ki), (cout, cin, k, k),
                                 jnp.float32) / jnp.sqrt(fan_in)

    def bias(n):
        return jax.random.normal(next(ki), (n,), jnp.float32) * 0.01

    p = {}
    p['conv1_w'], p['conv1_b'] = conv_w(32, 3, 5), bias(32)
    p['bn1_gamma'], p['bn1_beta'] = jnp.ones(32), jnp.zeros(32)
    p['bn1_mean'], p['bn1_var'] = jnp.zeros(32), jnp.ones(32)
    # InceptionMiniBlock(32)
    p['b1_w'], p['b1_b'] = conv_w(16, 32, 1), bias(16)
    p['b2a_w'], p['b2a_b'] = conv_w(16, 32, 1), bias(16)
    p['b2b_w'], p['b2b_b'] = conv_w(24, 16, 3), bias(24)
    p['b3a_w'], p['b3a_b'] = conv_w(8, 32, 1), bias(8)
    p['b3b_w'], p['b3b_b'] = conv_w(16, 8, 5), bias(16)
    p['b4_w'], p['b4_b'] = conv_w(16, 32, 1), bias(16)
    p['bn2_gamma'], p['bn2_beta'] = jnp.ones(72), jnp.zeros(72)
    p['bn2_mean'], p['bn2_var'] = jnp.zeros(72), jnp.ones(72)
    # classifier
    p['fc1_w'] = jax.random.normal(next(ki), (128, 72 * 7 * 7),
                                   jnp.float32) / jnp.sqrt(72 * 7 * 7)
    p['fc1_b'] = bias(128)
    p['fc2_w'] = jax.random.normal(next(ki), (num_classes, 128),
                                   jnp.float32) / jnp.sqrt(128)
    p['fc2_b'] = bias(num_classes)
    return p


# --------------------------------- forward ---------------------------------

def sesame_forward(params, x_nchw):
    x = jnp.transpose(x_nchw, (0, 2, 3, 1)).astype(jnp.float32)  # NHWC

    # Conv(3->32, 5x5, p=2) + BN1 (folded) + ReLU (fused)
    w1, b1 = fold_bn(params['conv1_w'], params['conv1_b'],
                     params['bn1_gamma'], params['bn1_beta'],
                     params['bn1_mean'], params['bn1_var'])
    x = conv2d(x, w1, b1, pad=2, relu=True)       # (N, 28, 28, 32)
    x = maxpool2x2(x)                             # (N, 14, 14, 32)

    # InceptionMiniBlock(32): BN2 channel-slices folded into each branch's
    # final conv; the ReLU that follows BN2 is fused into those convs.
    g, bt = params['bn2_gamma'], params['bn2_beta']
    mu, vr = params['bn2_mean'], params['bn2_var']
    sl = [slice(0, 16), slice(16, 40), slice(40, 56), slice(56, 72)]

    N, H, W, C = x.shape

    # --- Fused 1x1 entry convs: b1 (BN-folded + ReLU), b2a, b3a -------------
    w_b1, b_b1 = fold_bn(params['b1_w'], params['b1_b'],
                         g[sl[0]], bt[sl[0]], mu[sl[0]], vr[sl[0]])
    w1x1 = jnp.concatenate([w_b1.reshape(16, C),
                            params['b2a_w'].reshape(16, C),
                            params['b3a_w'].reshape(8, C)], axis=0).T  # (C, 40)
    b1x1 = jnp.concatenate([b_b1, params['b2a_b'], params['b3a_b']])
    y = matmul_bias_act(x.reshape(N * H * W, C), w1x1, b1x1, relu_cols=16)
    br1 = y[:, 0:16].reshape(N, H, W, 16)
    t2 = y[:, 16:32].reshape(N, H, W, 16)
    t3 = y[:, 32:40].reshape(N, H, W, 8)

    # --- branch3x3 tail ------------------------------------------------------
    w_b2, b_b2 = fold_bn(params['b2b_w'], params['b2b_b'],
                         g[sl[1]], bt[sl[1]], mu[sl[1]], vr[sl[1]])
    br2 = conv2d(t2, w_b2, b_b2, pad=1, relu=True)                 # 24 ch

    # --- branch5x5 tail ------------------------------------------------------
    w_b3, b_b3 = fold_bn(params['b3b_w'], params['b3b_b'],
                         g[sl[2]], bt[sl[2]], mu[sl[2]], vr[sl[2]])
    br3 = conv2d(t3, w_b3, b_b3, pad=2, relu=True)                 # 16 ch

    # --- branch_pool ----------------------------------------------------------
    t4 = maxpool3x3_s1_p1(x)
    w_b4, b_b4 = fold_bn(params['b4_w'], params['b4_b'],
                         g[sl[3]], bt[sl[3]], mu[sl[3]], vr[sl[3]])
    br4 = conv2d(t4, w_b4, b_b4, pad=0, relu=True)                 # 16 ch

    x = jnp.concatenate([br1, br2, br3, br4], axis=-1)  # (N, 14, 14, 72)
    x = maxpool2x2(x)                                   # (N, 7, 7, 72)

    # Flatten in PyTorch NCHW order
    n = x.shape[0]
    x = jnp.transpose(x, (0, 3, 1, 2)).reshape(n, 72 * 7 * 7)

    # Classifier: Linear -> ReLU -> Dropout(identity) -> Linear, one fused call
    return classifier_fused(x, params['fc1_w'].T, params['fc1_b'],
                            params['fc2_w'].T, params['fc2_b'])


if __name__ == "__main__":
    key = jax.random.PRNGKey(0)
    kx, kp = jax.random.split(key)
    # 28x28 spatial input is required by the classifier (72 * 7 * 7).
    x = jax.random.normal(kx, (2, 3, 28, 28), jnp.float32)
    params = init_params(kp, num_classes=36)

    fwd = jax.jit(sesame_forward)
    out = fwd(params, x)
    out = jax.block_until_ready(out)
    assert out.shape == (2, 36), out.shape
    assert bool(jnp.all(jnp.isfinite(out)))
    print("KERNEL_OK")
</pallas_src>

<mosaic_0001>
module attributes {stable_mosaic.version = 11 : i64} {
  func.func @_matmul_bias_act_kernel(%arg0: i32, %arg1: i32, %arg2: memref<392x80xbf16, #tpu.memory_space<vmem>>, %arg3: memref<80x128xbf16, #tpu.memory_space<vmem>>, %arg4: memref<1x128xf32, #tpu.memory_space<vmem>>, %arg5: memref<392x128xf32, #tpu.memory_space<vmem>>) attributes {dimension_semantics = [#tpu.dimension_semantics<parallel>, #tpu.dimension_semantics<parallel>], iteration_bounds = array<i64: 4, 1>, scalar_prefetch = 0 : i64, scratch_operands = 0 : i64, tpu.core_type = #tpu.core_type<tc>, window_params = [{transform_indices = @transform_0, window_bounds = array<i64: 392, 80>}, {transform_indices = @transform_1, window_bounds = array<i64: 80, 128>}, {transform_indices = @transform_2, window_bounds = array<i64: 1, 128>}, {transform_indices = @transform_3, window_bounds = array<i64: 392, 128>}]} {
    %c0 = arith.constant 0 : index
    %c0_0 = arith.constant 0 : index
    %0 = vector.load %arg2[%c0, %c0_0] : memref<392x80xbf16, #tpu.memory_space<vmem>>, vector<392x80xbf16>
    %c0_1 = arith.constant 0 : index
    %c0_2 = arith.constant 0 : index
    %1 = vector.load %arg3[%c0_1, %c0_2] : memref<80x128xbf16, #tpu.memory_space<vmem>>, vector<80x128xbf16>
    %cst = arith.constant dense<0.000000e+00> : vector<392x128xf32>
    %2 = tpu.matmul %0, %1, %cst {dimension_numbers = #tpu.dot_dimension_numbers<[1], [0], [0], [1], [0, 0, 1, 1], [], []>} : vector<392x80xbf16>, vector<80x128xbf16>, vector<392x128xf32> -> vector<392x128xf32>
    %c0_3 = arith.constant 0 : index
    %c0_4 = arith.constant 0 : index
    %3 = vector.load %arg4[%c0_3, %c0_4] : memref<1x128xf32, #tpu.memory_space<vmem>>, vector<1x128xf32>
    %4 = vector.broadcast %3 : vector<1x128xf32> to vector<392x128xf32>
    %5 = arith.addf %2, %4 : vector<392x128xf32>
    %cst_5 = arith.constant 0.000000e+00 : f32
    %6 = vector.broadcast %cst_5 : f32 to vector<392x128xf32>
    %7 = arith.maximumf %5, %6 : vector<392x128xf32>
    %c0_6 = arith.constant 0 : index
    %c0_7 = arith.constant 0 : index
    %8 = vector.load %arg5[%c0_6, %c0_7] : memref<392x128xf32, #tpu.memory_space<vmem>>, vector<392x128xf32>
    tpu.vector_store %arg5[%c0_6, %c0_7], %7 {strides = array<i32>} : memref<392x128xf32, #tpu.memory_space<vmem>>, vector<392x128xf32>,
    return
  }
  func.func @transform_0(%arg0: i32, %arg1: i32) -> (i32, i32) {
    %c0_i32 = arith.constant 0 : i32
    %c0_i32_0 = arith.constant 0 : i32
    return %arg0, %c0_i32 : i32, i32
  }
  func.func @transform_1(%arg0: i32, %arg1: i32) -> (i32, i32) {
    %c0_i32 = arith.constant 0 : i32
    %c0_i32_0 = arith.constant 0 : i32
    return %c0_i32, %arg1 : i32, i32
  }
  func.func @transform_2(%arg0: i32, %arg1: i32) -> (i32, i32) {
    %c0_i32 = arith.constant 0 : i32
    %c0_i32_0 = arith.constant 0 : i32
    return %c0_i32, %arg1 : i32, i32
  }
  func.func @transform_3(%arg0: i32, %arg1: i32) -> (i32, i32) {
    %c0_i32 = arith.constant 0 : i32
    return %arg0, %arg1 : i32, i32
  }
}

module attributes {stable_mosaic.version = 11 : i64} {
  func.func @_max_kernel(%arg0: memref<392x32xf32, #tpu.memory_space<vmem>>, %arg1: memref<392x32xf32, #tpu.memory_space<vmem>>, %arg2: memref<392x32xf32, #tpu.memory_space<vmem>>, %arg3: memref<392x32xf32, #tpu.memory_space<vmem>>, %arg4: memref<392x32xf32, #tpu.memory_space<vmem>>) attributes {dimension_semantics = [], scalar_prefetch = 0 : i64, scratch_operands = 0 : i64, tpu.core_type = #tpu.core_type<tc>} {
    %c0 = arith.constant 0 : index
    %c0_0 = arith.constant 0 : index
    %0 = vector.load %arg0[%c0, %c0_0] : memref<392x32xf32, #tpu.memory_space<vmem>>, vector<392x32xf32>
    %c0_1 = arith.constant 0 : index
    %c0_2 = arith.constant 0 : index
    %1 = vector.load %arg1[%c0_1, %c0_2] : memref<392x32xf32, #tpu.memory_space<vmem>>, vector<392x32xf32>
    %2 = arith.maximumf %0, %1 : vector<392x32xf32>
    %c0_3 = arith.constant 0 : index
    %c0_4 = arith.constant 0 : index
    %3 = vector.load %arg2[%c0_3, %c0_4] : memref<392x32xf32, #tpu.memory_space<vmem>>, vector<392x32xf32>
    %4 = arith.maximumf %2, %3 : vector<392x32xf32>
    %c0_5 = arith.constant 0 : index
    %c0_6 = arith.constant 0 : index
    %5 = vector.load %arg3[%c0_5, %c0_6] : memref<392x32xf32, #tpu.memory_space<vmem>>, vector<392x32xf32>
    %6 = arith.maximumf %4, %5 : vector<392x32xf32>
    %c0_7 = arith.constant 0 : index
    %c0_8 = arith.constant 0 : index
    %7 = vector.load %arg4[%c0_7, %c0_8] : memref<392x32xf32, #tpu.memory_space<vmem>>, vector<392x32xf32>
    tpu.vector_store %arg4[%c0_7, %c0_8], %6 {strides = array<i32>} : memref<392x32xf32, #tpu.memory_space<vmem>>, vector<392x32xf32>,
    return
  }
}

module attributes {stable_mosaic.version = 11 : i64} {
  func.func @_matmul_bias_act_kernel(%arg0: i32, %arg1: i32, %arg2: memref<392x32xbf16, #tpu.memory_space<vmem>>, %arg3: memref<32x128xbf16, #tpu.memory_space<vmem>>, %arg4: memref<1x128xf32, #tpu.memory_space<vmem>>, %arg5: memref<392x128xf32, #tpu.memory_space<vmem>>) attributes {dimension_semantics = [#tpu.dimension_semantics<parallel>, #tpu.dimension_semantics<parallel>], iteration_bounds = array<i64: 1, 1>, scalar_prefetch = 0 : i64, scratch_operands = 0 : i64, tpu.core_type = #tpu.core_type<tc>, window_params = [{transform_indices = @transform_0, window_bounds = array<i64: 392, 32>}, {transform_indices = @transform_1, window_bounds = array<i64: 32, 128>}, {transform_indices = @transform_2, window_bounds = array<i64: 1, 128>}, {transform_indices = @transform_3, window_bounds = array<i64: 392, 128>}]} {
    %c0 = arith.constant 0 : index
    %c0_0 = arith.constant 0 : index
    %0 = vector.load %arg2[%c0, %c0_0] : memref<392x32xbf16, #tpu.memory_space<vmem>>, vector<392x32xbf16>
    %c0_1 = arith.constant 0 : index
    %c0_2 = arith.constant 0 : index
    %1 = vector.load %arg3[%c0_1, %c0_2] : memref<32x128xbf16, #tpu.memory_space<vmem>>, vector<32x128xbf16>
    %cst = arith.constant dense<0.000000e+00> : vector<392x128xf32>
    %2 = tpu.matmul %0, %1, %cst {dimension_numbers = #tpu.dot_dimension_numbers<[1], [0], [0], [1], [0, 0, 1, 1], [], []>} : vector<392x32xbf16>, vector<32x128xbf16>, vector<392x128xf32> -> vector<392x128xf32>
    %c0_3 = arith.constant 0 : index
    %c0_4 = arith.constant 0 : index
    %3 = vector.load %arg4[%c0_3, %c0_4] : memref<1x128xf32, #tpu.memory_space<vmem>>, vector<1x128xf32>
    %4 = vector.broadcast %3 : vector<1x128xf32> to vector<392x128xf32>
    %5 = arith.addf %2, %4 : vector<392x128xf32>
    %6 = tpu.iota {dimensions = array<i32: 1>} : vector<392x128xi32>
    %c128_i32 = arith.constant 128 : i32
    %7 = arith.muli %arg1, %c128_i32 : i32
    %8 = vector.broadcast %7 : i32 to vector<392x128xi32>
    %9 = arith.addi %6, %8 : vector<392x128xi32>
    %c16_i32 = arith.constant 16 : i32
    %10 = vector.broadcast %c16_i32 : i32 to vector<392x128xi32>
    %11 = arith.cmpi slt, %9, %10 : vector<392x128xi32>
    %cst_5 = arith.constant 0.000000e+00 : f32
    %12 = vector.broadcast %cst_5 : f32 to vector<392x128xf32>
    %13 = arith.maximumf %5, %12 : vector<392x128xf32>
    %14 = arith.select %11, %13, %5 : vector<392x128xi1>, vector<392x128xf32>
    %c0_6 = arith.constant 0 : index
    %c0_7 = arith.constant 0 : index
    %15 = vector.load %arg5[%c0_6, %c0_7] : memref<392x128xf32, #tpu.memory_space<vmem>>, vector<392x128xf32>
    tpu.vector_store %arg5[%c0_6, %c0_7], %14 {strides = array<i32>} : memref<392x128xf32, #tpu.memory_space<vmem>>, vector<392x128xf32>,
    return
  }
  func.func @transform_0(%arg0: i32, %arg1: i32) -> (i32, i32) {
    %c0_i32 = arith.constant 0 : i32
    %c0_i32_0 = arith.constant 0 : i32
    return %arg0, %c0_i32 : i32, i32
  }
  func.func @transform_1(%arg0: i32, %arg1: i32) -> (i32, i32) {
    %c0_i32 = arith.constant 0 : i32
    %c0_i32_0 = arith.constant 0 : i32
    return %c0_i32, %arg1 : i32, i32
  }
  func.func @transform_2(%arg0: i32, %arg1: i32) -> (i32, i32) {
    %c0_i32 = arith.constant 0 : i32
    %c0_i32_0 = arith.constant 0 : i32
    return %c0_i32, %arg1 : i32, i32
  }
  func.func @transform_3(%arg0: i32, %arg1: i32) -> (i32, i32) {
    %c0_i32 = arith.constant 0 : i32
    return %arg0, %arg1 : i32, i32
  }
}

module attributes {stable_mosaic.version = 11 : i64} {
  func.func @_matmul_bias_act_kernel(%arg0: i32, %arg1: i32, %arg2: memref<392x144xbf16, #tpu.memory_space<vmem>>, %arg3: memref<144x128xbf16, #tpu.memory_space<vmem>>, %arg4: memref<1x128xf32, #tpu.memory_space<vmem>>, %arg5: memref<392x128xf32, #tpu.memory_space<vmem>>) attributes {dimension_semantics = [#tpu.dimension_semantics<parallel>, #tpu.dimension_semantics<parallel>], iteration_bounds = array<i64: 1, 1>, scalar_prefetch = 0 : i64, scratch_operands = 0 : i64, tpu.core_type = #tpu.core_type<tc>, window_params = [{transform_indices = @transform_0, window_bounds = array<i64: 392, 144>}, {transform_indices = @transform_1, window_bounds = array<i64: 144, 128>}, {transform_indices = @transform_2, window_bounds = array<i64: 1, 128>}, {transform_indices = @transform_3, window_bounds = array<i64: 392, 128>}]} {
    %c0 = arith.constant 0 : index
    %c0_0 = arith.constant 0 : index
    %0 = vector.load %arg2[%c0, %c0_0] : memref<392x144xbf16, #tpu.memory_space<vmem>>, vector<392x144xbf16>
    %c0_1 = arith.constant 0 : index
    %c0_2 = arith.constant 0 : index
    %1 = vector.load %arg3[%c0_1, %c0_2] : memref<144x128xbf16, #tpu.memory_space<vmem>>, vector<144x128xbf16>
    %cst = arith.constant dense<0.000000e+00> : vector<392x128xf32>
    %2 = tpu.matmul %0, %1, %cst {dimension_numbers = #tpu.dot_dimension_numbers<[1], [0], [0], [1], [0, 0, 1, 1], [], []>} : vector<392x144xbf16>, vector<144x128xbf16>, vector<392x128xf32> -> vector<392x128xf32>
    %c0_3 = arith.constant 0 : index
    %c0_4 = arith.constant 0 : index
    %3 = vector.load %arg4[%c0_3, %c0_4] : memref<1x128xf32, #tpu.memory_space<vmem>>, vector<1x128xf32>
    %4 = vector.broadcast %3 : vector<1x128xf32> to vector<392x128xf32>
    %5 = arith.addf %2, %4 : vector<392x128xf32>
    %cst_5 = arith.constant 0.000000e+00 : f32
    %6 = vector.broadcast %cst_5 : f32 to vector<392x128xf32>
    %7 = arith.maximumf %5, %6 : vector<392x128xf32>
    %c0_6 = arith.constant 0 : index
    %c0_7 = arith.constant 0 : index
    %8 = vector.load %arg5[%c0_6, %c0_7] : memref<392x128xf32, #tpu.memory_space<vmem>>, vector<392x128xf32>
    tpu.vector_store %arg5[%c0_6, %c0_7], %7 {strides = array<i32>} : memref<392x128xf32, #tpu.memory_space<vmem>>, vector<392x128xf32>,
    return
  }
  func.func @transform_0(%arg0: i32, %arg1: i32) -> (i32, i32) {
    %c0_i32 = arith.constant 0 : i32
    %c0_i32_0 = arith.constant 0 : i32
    return %arg0, %c0_i32 : i32, i32
  }
  func.func @transform_1(%arg0: i32, %arg1: i32) -> (i32, i32) {
    %c0_i32 = arith.constant 0 : i32
    %c0_i32_0 = arith.constant 0 : i32
    return %c0_i32, %arg1 : i32, i32
  }
  func.func @transform_2(%arg0: i32, %arg1: i32) -> (i32, i32) {
    %c0_i32 = arith.constant 0 : i32
    %c0_i32_0 = arith.constant 0 : i32
    return %c0_i32, %arg1 : i32, i32
  }
  func.func @transform_3(%arg0: i32, %arg1: i32) -> (i32, i32) {
    %c0_i32 = arith.constant 0 : i32
    return %arg0, %arg1 : i32, i32
  }
}

module attributes {stable_mosaic.version = 11 : i64} {
  func.func @_matmul_bias_act_kernel(%arg0: i32, %arg1: i32, %arg2: memref<392x200xbf16, #tpu.memory_space<vmem>>, %arg3: memref<200x128xbf16, #tpu.memory_space<vmem>>, %arg4: memref<1x128xf32, #tpu.memory_space<vmem>>, %arg5: memref<392x128xf32, #tpu.memory_space<vmem>>) attributes {dimension_semantics = [#tpu.dimension_semantics<parallel>, #tpu.dimension_semantics<parallel>], iteration_bounds = array<i64: 1, 1>, scalar_prefetch = 0 : i64, scratch_operands = 0 : i64, tpu.core_type = #tpu.core_type<tc>, window_params = [{transform_indices = @transform_0, window_bounds = array<i64: 392, 200>}, {transform_indices = @transform_1, window_bounds = array<i64: 200, 128>}, {transform_indices = @transform_2, window_bounds = array<i64: 1, 128>}, {transform_indices = @transform_3, window_bounds = array<i64: 392, 128>}]} {
    %c0 = arith.constant 0 : index
    %c0_0 = arith.constant 0 : index
    %0 = vector.load %arg2[%c0, %c0_0] : memref<392x200xbf16, #tpu.memory_space<vmem>>, vector<392x200xbf16>
    %c0_1 = arith.constant 0 : index
    %c0_2 = arith.constant 0 : index
    %1 = vector.load %arg3[%c0_1, %c0_2] : memref<200x128xbf16, #tpu.memory_space<vmem>>, vector<200x128xbf16>
    %cst = arith.constant dense<0.000000e+00> : vector<392x128xf32>
    %2 = tpu.matmul %0, %1, %cst {dimension_numbers = #tpu.dot_dimension_numbers<[1], [0], [0], [1], [0, 0, 1, 1], [], []>} : vector<392x200xbf16>, vector<200x128xbf16>, vector<392x128xf32> -> vector<392x128xf32>
    %c0_3 = arith.constant 0 : index
    %c0_4 = arith.constant 0 : index
    %3 = vector.load %arg4[%c0_3, %c0_4] : memref<1x128xf32, #tpu.memory_space<vmem>>, vector<1x128xf32>
    %4 = vector.broadcast %3 : vector<1x128xf32> to vector<392x128xf32>
    %5 = arith.addf %2, %4 : vector<392x128xf32>
    %cst_5 = arith.constant 0.000000e+00 : f32
    %6 = vector.broadcast %cst_5 : f32 to vector<392x128xf32>
    %7 = arith.maximumf %5, %6 : vector<392x128xf32>
    %c0_6 = arith.constant 0 : index
    %c0_7 = arith.constant 0 : index
    %8 = vector.load %arg5[%c0_6, %c0_7] : memref<392x128xf32, #tpu.memory_space<vmem>>, vector<392x128xf32>
    tpu.vector_store %arg5[%c0_6, %c0_7], %7 {strides = array<i32>} : memref<392x128xf32, #tpu.memory_space<vmem>>, vector<392x128xf32>,
    return
  }
  func.func @transform_0(%arg0: i32, %arg1: i32) -> (i32, i32) {
    %c0_i32 = arith.constant 0 : i32
    %c0_i32_0 = arith.constant 0 : i32
    return %arg0, %c0_i32 : i32, i32
  }
  func.func @transform_1(%arg0: i32, %arg1: i32) -> (i32, i32) {
    %c0_i32 = arith.constant 0 : i32
    %c0_i32_0 = arith.constant 0 : i32
    return %c0_i32, %arg1 : i32, i32
  }
  func.func @transform_2(%arg0: i32, %arg1: i32) -> (i32, i32) {
    %c0_i32 = arith.constant 0 : i32
    %c0_i32_0 = arith.constant 0 : i32
    return %c0_i32, %arg1 : i32, i32
  }
  func.func @transform_3(%arg0: i32, %arg1: i32) -> (i32, i32) {
    %c0_i32 = arith.constant 0 : i32
    return %arg0, %arg1 : i32, i32
  }
}

module attributes {stable_mosaic.version = 11 : i64} {
  func.func @_max_kernel(%arg0: memref<392x32xf32, #tpu.memory_space<vmem>>, %arg1: memref<392x32xf32, #tpu.memory_space<vmem>>, %arg2: memref<392x32xf32, #tpu.memory_space<vmem>>, %arg3: memref<392x32xf32, #tpu.memory_space<vmem>>, %arg4: memref<392x32xf32, #tpu.memory_space<vmem>>, %arg5: memref<392x32xf32, #tpu.memory_space<vmem>>, %arg6: memref<392x32xf32, #tpu.memory_space<vmem>>, %arg7: memref<392x32xf32, #tpu.memory_space<vmem>>, %arg8: memref<392x32xf32, #tpu.memory_space<vmem>>, %arg9: memref<392x32xf32, #tpu.memory_space<vmem>>) attributes {dimension_semantics = [], scalar_prefetch = 0 : i64, scratch_operands = 0 : i64, tpu.core_type = #tpu.core_type<tc>} {
    %c0 = arith.constant 0 : index
    %c0_0 = arith.constant 0 : index
    %0 = vector.load %arg0[%c0, %c0_0] : memref<392x32xf32, #tpu.memory_space<vmem>>, vector<392x32xf32>
    %c0_1 = arith.constant 0 : index
    %c0_2 = arith.constant 0 : index
    %1 = vector.load %arg1[%c0_1, %c0_2] : memref<392x32xf32, #tpu.memory_space<vmem>>, vector<392x32xf32>
    %2 = arith.maximumf %0, %1 : vector<392x32xf32>
    %c0_3 = arith.constant 0 : index
    %c0_4 = arith.constant 0 : index
    %3 = vector.load %arg2[%c0_3, %c0_4] : memref<392x32xf32, #tpu.memory_space<vmem>>, vector<392x32xf32>
    %4 = arith.maximumf %2, %3 : vector<392x32xf32>
    %c0_5 = arith.constant 0 : index
    %c0_6 = arith.constant 0 : index
    %5 = vector.load %arg3[%c0_5, %c0_6] : memref<392x32xf32, #tpu.memory_space<vmem>>, vector<392x32xf32>
    %6 = arith.maximumf %4, %5 : vector<392x32xf32>
    %c0_7 = arith.constant 0 : index
    %c0_8 = arith.constant 0 : index
    %7 = vector.load %arg4[%c0_7, %c0_8] : memref<392x32xf32, #tpu.memory_space<vmem>>, vector<392x32xf32>
    %8 = arith.maximumf %6, %7 : vector<392x32xf32>
    %c0_9 = arith.constant 0 : index
    %c0_10 = arith.constant 0 : index
    %9 = vector.load %arg5[%c0_9, %c0_10] : memref<392x32xf32, #tpu.memory_space<vmem>>, vector<392x32xf32>
    %10 = arith.maximumf %8, %9 : vector<392x32xf32>
    %c0_11 = arith.constant 0 : index
    %c0_12 = arith.constant 0 : index
    %11 = vector.load %arg6[%c0_11, %c0_12] : memref<392x32xf32, #tpu.memory_space<vmem>>, vector<392x32xf32>
    %12 = arith.maximumf %10, %11 : vector<392x32xf32>
    %c0_13 = arith.constant 0 : index
    %c0_14 = arith.constant 0 : index
    %13 = vector.load %arg7[%c0_13, %c0_14] : memref<392x32xf32, #tpu.memory_space<vmem>>, vector<392x32xf32>
    %14 = arith.maximumf %12, %13 : vector<392x32xf32>
    %c0_15 = arith.constant 0 : index
    %c0_16 = arith.constant 0 : index
    %15 = vector.load %arg8[%c0_15, %c0_16] : memref<392x32xf32, #tpu.memory_space<vmem>>, vector<392x32xf32>
    %16 = arith.maximumf %14, %15 : vector<392x32xf32>
    %c0_17 = arith.constant 0 : index
    %c0_18 = arith.constant 0 : index
    %17 = vector.load %arg9[%c0_17, %c0_18] : memref<392x32xf32, #tpu.memory_space<vmem>>, vector<392x32xf32>
    tpu.vector_store %arg9[%c0_17, %c0_18], %16 {strides = array<i32>} : memref<392x32xf32, #tpu.memory_space<vmem>>, vector<392x32xf32>,
    return
  }
}

module attributes {stable_mosaic.version = 11 : i64} {
  func.func @_matmul_bias_act_kernel(%arg0: i32, %arg1: i32, %arg2: memref<392x32xbf16, #tpu.memory_space<vmem>>, %arg3: memref<32x128xbf16, #tpu.memory_space<vmem>>, %arg4: memref<1x128xf32, #tpu.memory_space<vmem>>, %arg5: memref<392x128xf32, #tpu.memory_space<vmem>>) attributes {dimension_semantics = [#tpu.dimension_semantics<parallel>, #tpu.dimension_semantics<parallel>], iteration_bounds = array<i64: 1, 1>, scalar_prefetch = 0 : i64, scratch_operands = 0 : i64, tpu.core_type = #tpu.core_type<tc>, window_params = [{transform_indices = @transform_0, window_bounds = array<i64: 392, 32>}, {transform_indices = @transform_1, window_bounds = array<i64: 32, 128>}, {transform_indices = @transform_2, window_bounds = array<i64: 1, 128>}, {transform_indices = @transform_3, window_bounds = array<i64: 392, 128>}]} {
    %c0 = arith.constant 0 : index
    %c0_0 = arith.constant 0 : index
    %0 = vector.load %arg2[%c0, %c0_0] : memref<392x32xbf16, #tpu.memory_space<vmem>>, vector<392x32xbf16>
    %c0_1 = arith.constant 0 : index
    %c0_2 = arith.constant 0 : index
    %1 = vector.load %arg3[%c0_1, %c0_2] : memref<32x128xbf16, #tpu.memory_space<vmem>>, vector<32x128xbf16>
    %cst = arith.constant dense<0.000000e+00> : vector<392x128xf32>
    %2 = tpu.matmul %0, %1, %cst {dimension_numbers = #tpu.dot_dimension_numbers<[1], [0], [0], [1], [0, 0, 1, 1], [], []>} : vector<392x32xbf16>, vector<32x128xbf16>, vector<392x128xf32> -> vector<392x128xf32>
    %c0_3 = arith.constant 0 : index
    %c0_4 = arith.constant 0 : index
    %3 = vector.load %arg4[%c0_3, %c0_4] : memref<1x128xf32, #tpu.memory_space<vmem>>, vector<1x128xf32>
    %4 = vector.broadcast %3 : vector<1x128xf32> to vector<392x128xf32>
    %5 = arith.addf %2, %4 : vector<392x128xf32>
    %cst_5 = arith.constant 0.000000e+00 : f32
    %6 = vector.broadcast %cst_5 : f32 to vector<392x128xf32>
    %7 = arith.maximumf %5, %6 : vector<392x128xf32>
    %c0_6 = arith.constant 0 : index
    %c0_7 = arith.constant 0 : index
    %8 = vector.load %arg5[%c0_6, %c0_7] : memref<392x128xf32, #tpu.memory_space<vmem>>, vector<392x128xf32>
    tpu.vector_store %arg5[%c0_6, %c0_7], %7 {strides = array<i32>} : memref<392x128xf32, #tpu.memory_space<vmem>>, vector<392x128xf32>,
    return
  }
  func.func @transform_0(%arg0: i32, %arg1: i32) -> (i32, i32) {
    %c0_i32 = arith.constant 0 : i32
    %c0_i32_0 = arith.constant 0 : i32
    return %arg0, %c0_i32 : i32, i32
  }
  func.func @transform_1(%arg0: i32, %arg1: i32) -> (i32, i32) {
    %c0_i32 = arith.constant 0 : i32
    %c0_i32_0 = arith.constant 0 : i32
    return %c0_i32, %arg1 : i32, i32
  }
  func.func @transform_2(%arg0: i32, %arg1: i32) -> (i32, i32) {
    %c0_i32 = arith.constant 0 : i32
    %c0_i32_0 = arith.constant 0 : i32
    return %c0_i32, %arg1 : i32, i32
  }
  func.func @transform_3(%arg0: i32, %arg1: i32) -> (i32, i32) {
    %c0_i32 = arith.constant 0 : i32
    return %arg0, %arg1 : i32, i32
  }
}

module attributes {stable_mosaic.version = 11 : i64} {
  func.func @_max_kernel(%arg0: memref<98x72xf32, #tpu.memory_space<vmem>>, %arg1: memref<98x72xf32, #tpu.memory_space<vmem>>, %arg2: memref<98x72xf32, #tpu.memory_space<vmem>>, %arg3: memref<98x72xf32, #tpu.memory_space<vmem>>, %arg4: memref<98x72xf32, #tpu.memory_space<vmem>>) attributes {dimension_semantics = [], scalar_prefetch = 0 : i64, scratch_operands = 0 : i64, tpu.core_type = #tpu.core_type<tc>} {
    %c0 = arith.constant 0 : index
    %c0_0 = arith.constant 0 : index
    %0 = vector.load %arg0[%c0, %c0_0] : memref<98x72xf32, #tpu.memory_space<vmem>>, vector<98x72xf32>
    %c0_1 = arith.constant 0 : index
    %c0_2 = arith.constant 0 : index
    %1 = vector.load %arg1[%c0_1, %c0_2] : memref<98x72xf32, #tpu.memory_space<vmem>>, vector<98x72xf32>
    %2 = arith.maximumf %0, %1 : vector<98x72xf32>
    %c0_3 = arith.constant 0 : index
    %c0_4 = arith.constant 0 : index
    %3 = vector.load %arg2[%c0_3, %c0_4] : memref<98x72xf32, #tpu.memory_space<vmem>>, vector<98x72xf32>
    %4 = arith.maximumf %2, %3 : vector<98x72xf32>
    %c0_5 = arith.constant 0 : index
    %c0_6 = arith.constant 0 : index
    %5 = vector.load %arg3[%c0_5, %c0_6] : memref<98x72xf32, #tpu.memory_space<vmem>>, vector<98x72xf32>
    %6 = arith.maximumf %4, %5 : vector<98x72xf32>
    %c0_7 = arith.constant 0 : index
    %c0_8 = arith.constant 0 : index
    %7 = vector.load %arg4[%c0_7, %c0_8] : memref<98x72xf32, #tpu.memory_space<vmem>>, vector<98x72xf32>
    tpu.vector_store %arg4[%c0_7, %c0_8], %6 {strides = array<i32>} : memref<98x72xf32, #tpu.memory_space<vmem>>, vector<98x72xf32>,
    return
  }
}

module attributes {stable_mosaic.version = 11 : i64} {
  func.func @_classifier_kernel(%arg0: memref<8x3528xbf16, #tpu.memory_space<vmem>>, %arg1: memref<3528x128xbf16, #tpu.memory_space<vmem>>, %arg2: memref<1x128xf32, #tpu.memory_space<vmem>>, %arg3: memref<128x128xf32, #tpu.memory_space<vmem>>, %arg4: memref<1x128xf32, #tpu.memory_space<vmem>>, %arg5: memref<8x128xf32, #tpu.memory_space<vmem>>) attributes {dimension_semantics = [], scalar_prefetch = 0 : i64, scratch_operands = 0 : i64, tpu.core_type = #tpu.core_type<tc>} {
    %c0 = arith.constant 0 : index
    %c0_0 = arith.constant 0 : index
    %0 = vector.load %arg0[%c0, %c0_0] : memref<8x3528xbf16, #tpu.memory_space<vmem>>, vector<8x3528xbf16>
    %c0_1 = arith.constant 0 : index
    %c0_2 = arith.constant 0 : index
    %1 = vector.load %arg1[%c0_1, %c0_2] : memref<3528x128xbf16, #tpu.memory_space<vmem>>, vector<3528x128xbf16>
    %cst = arith.constant dense<0.000000e+00> : vector<8x128xf32>
    %2 = tpu.matmul %0, %1, %cst {dimension_numbers = #tpu.dot_dimension_numbers<[1], [0], [0], [1], [0, 0, 1, 1], [], []>} : vector<8x3528xbf16>, vector<3528x128xbf16>, vector<8x128xf32> -> vector<8x128xf32>
    %c0_3 = arith.constant 0 : index
    %c0_4 = arith.constant 0 : index
    %3 = vector.load %arg2[%c0_3, %c0_4] : memref<1x128xf32, #tpu.memory_space<vmem>>, vector<1x128xf32>
    %4 = vector.broadcast %3 : vector<1x128xf32> to vector<8x128xf32>
    %5 = arith.addf %2, %4 : vector<8x128xf32>
    %cst_5 = arith.constant 0.000000e+00 : f32
    %6 = vector.broadcast %cst_5 : f32 to vector<8x128xf32>
    %7 = arith.maximumf %5, %6 : vector<8x128xf32>
    %c0_6 = arith.constant 0 : index
    %c0_7 = arith.constant 0 : index
    %8 = vector.load %arg3[%c0_6, %c0_7] : memref<128x128xf32, #tpu.memory_space<vmem>>, vector<128x128xf32>
    %cst_8 = arith.constant dense<0.000000e+00> : vector<8x128xf32>
    %9 = tpu.matmul %7, %8, %cst_8 {dimension_numbers = #tpu.dot_dimension_numbers<[1], [0], [0], [1], [0, 0, 1, 1], [], []>} : vector<8x128xf32>, vector<128x128xf32>, vector<8x128xf32> -> vector<8x128xf32>
    %c0_9 = arith.constant 0 : index
    %c0_10 = arith.constant 0 : index
    %10 = vector.load %arg4[%c0_9, %c0_10] : memref<1x128xf32, #tpu.memory_space<vmem>>, vector<1x128xf32>
    %11 = vector.broadcast %10 : vector<1x128xf32> to vector<8x128xf32>
    %12 = arith.addf %9, %11 : vector<8x128xf32>
    %c0_11 = arith.constant 0 : index
    %c0_12 = arith.constant 0 : index
    %13 = vector.load %arg5[%c0_11, %c0_12] : memref<8x128xf32, #tpu.memory_space<vmem>>, vector<8x128xf32>
    tpu.vector_store %arg5[%c0_11, %c0_12], %12 {strides = array<i32>} : memref<8x128xf32, #tpu.memory_space<vmem>>, vector<8x128xf32>,
    return
  }
}

</mosaic_0001>

<bundles_post_ra>
// kernel: sesame_forward.9
= control target key start
LH: loop header
LB: loop body
LE: loop exit
PB: predicated region body
PF: predicated region fallthrough
CT: control target
= control target key end

     0   :  { %s1272_s12 = smov 0   ;;  %s1274_s13 = smov 0   ;;  %s1541_s0 = inlined_call_operand.vmem [shape: bf16[1568,80], index: 0, kind: input, shape index: {}]   ;;  %s1542_s1 = inlined_call_operand.vmem [shape: bf16[80,128], index: 1, kind: input, shape index: {}]   ;;  %s1543_s2 = inlined_call_operand.vmem [shape: f32[1,128], index: 2, kind: input, shape index: {}]   ;;  %s1544_s3 = inlined_call_operand.vmem [shape: f32[1568,128], index: 3, kind: output, shape index: {}]  }
   0x1   :  { %s1276_s14 = smov 0  }
   0x2 LB: > { %s25_s15 = sadd.s32 1, %s1244_s13  ;;  %p959_p0 = scmp.ge.s32.totalorder %s1248_s14, 1  ;;  %s1248_s14 = sphi %s1276_s14, %s13_s14   ;;  %s1244_s13 = sphi %s1274_s13, %s1546_s13   ;;  %s1240_s12 = sphi %s1272_s12, %s1545_s12  }
   0x3   : > { %p27_p1 = scmp.ge.s32.totalorder %s25_s15, 4  ;;  %p169_p2 = scmp.lt.s32.totalorder %s1248_s14, 5 }
   0x5   : > { %s1548_s15 = smov (%p27_p1, %s25_s15), 0  ;;  %p170_p3 = pnand %p959_p0, %p169_p2 }
   0x6   : > { %v1196_v0 = vld [vmem:[%s1542_s1] sm:$0xff] (!%p170_p3)   ;;  %v1250_v1 = vmov (!%p170_p3), 0.0   ;;  %v1197_v2 = vld [vmem:[%s1542_s1 + $0x8] sm:$0xff] (!%p170_p3)   ;;  %s203_s20 = smul.u32 (!%p170_p3), 49, %s1240_s12  ;;  %vm1251_vm0 = vmmov (!%p170_p3), 0   ;;  %v1198_v3 = vld [vmem:[%s1542_s1 + $0x10] sm:$0xff] (!%p170_p3)  }
   0x7   : > { %173 = sbr.rel (%p170_p3) target bundleno = 342 (0x156), region = 32  ;;  %1050 = vmatprep.subr.bf16.mxu0 (!%p170_p3), %v1250_v1  ;;  %1160 = vmatprep.subr.bf16.mxu1 (!%p170_p3), %v1250_v1  ;;  %v1199_v4 = vld [vmem:[%s1542_s1 + $0x18] sm:$0xff] (!%p170_p3)   ;;  %v1200_v5 = vld [vmem:[%s1542_s1 + $0x20] sm:$0xff] (!%p170_p3)   ;;  %vm445_vm1 = vcmask (!%p170_p3), 654336  }
   0x8   : > { %1051 = vmatpush3.bf16.msra.mxu0 (!%p170_p3), %v1196_v0  ;;  %1165 = vmatpush3.bf16.msra.mxu1 (!%p170_p3), %v1196_v0  ;;  %p204_p4 = scmp.lt.s32.totalorder (!%p170_p3), %s203_s20, 195  ;;  %v1426_v31 = vld [vmem:[%s1543_s2] ss:$0 sm:$0xff] (!%p170_p3) }
   0x9   : > { %1052 = vmatprep.subr.bf16.mxu0 (!%p170_p3), %v1250_v1  ;;  %1161 = vmatprep.subr.bf16.mxu1 (!%p170_p3), %v1250_v1 }
   0xa   : > { %1060 = vmatprep.mubr.msk.bf16.mxu0 (!%p170_p3), %vm1251_vm0, %v1250_v1  ;;  %1112 = vmatprep.mubr.msk.bf16.mxu1 (!%p170_p3), %vm1251_vm0, %v1250_v1 }
   0xc   : > { %1053 = vmatpush3.bf16.msra.mxu0 (!%p170_p3), %v1197_v2  ;;  %1166 = vmatpush3.bf16.msra.mxu1 (!%p170_p3), %v1197_v2 }
   0xd   : > { %1054 = vmatprep.subr.bf16.mxu0 (!%p170_p3), %v1250_v1  ;;  %1162 = vmatprep.subr.bf16.mxu1 (!%p170_p3), %v1250_v1 }
   0xe   : > { %s1550_s20 = smov (!%p204_p4, %s203_s20), 195 }
   0xf   : > { %s960_s23 = sshll.u32 %s1550_s20, 2  ;;  %s961_s6 = sshll.u32 %s1550_s20, 3 }
  0x10   : > { %s1315_s26 = scalar_lea.vmem %s1541_s0, %s960_s23  ;;  %1055 = vmatpush3.bf16.msra.mxu0 %v1198_v3  ;;  %1167 = vmatpush3.bf16.msra.mxu1 %v1198_v3  ;;  %s1434_s9 = scalar_lea.vmem %s1544_s3, %s961_s6 }
  0x11   : > { %1056 = vmatprep.subr.bf16.mxu0 %v1250_v1  ;;  %1163 = vmatprep.subr.bf16.mxu1 %v1250_v1  ;;  %v1201_v6 = vld [vmem:[%s1315_s26] sm:$0xff]   ;;  %v1202_v7 = vld [vmem:[%s1315_s26 + $0x68] sm:$0xff]   ;;  %v1204_v9 = vld [vmem:[%s1315_s26 + $0x70] sm:$0xff]  }
  0x12   : > { %v1203_v8 = vld [vmem:[%s1315_s26 + $0x8] sm:$0xff]   ;;  %v1205_v10 = vld [vmem:[%s1315_s26 + $0x10] sm:$0xff]   ;;  %v1206_v11 = vld [vmem:[%s1315_s26 + $0x78] sm:$0xff]  }
  0x13   : > { %v1207_v12 = vld [vmem:[%s1315_s26 + $0x18] sm:$0xff]   ;;  %v1208_v13 = vld [vmem:[%s1315_s26 + $0x80] sm:$0xff]   ;;  %v1210_v15 = vld [vmem:[%s1315_s26 + $0x88] sm:$0xff]  }
  0x14   : > { %1057 = vmatpush3.bf16.msra.mxu0 %v1199_v4  ;;  %1168 = vmatpush3.bf16.msra.mxu1 %v1199_v4  ;;  %v1209_v14 = vld [vmem:[%s1315_s26 + $0x20] sm:$0xff]   ;;  %v1211_v16 = vld [vmem:[%s1315_s26 + $0x28] sm:$0xff]   ;;  %v1212_v17 = vld [vmem:[%s1315_s26 + $0x90] sm:$0xff]  }
  0x15   : > { %1058 = vmatprep.subr.bf16.mxu0 %v1250_v1  ;;  %1164 = vmatprep.subr.bf16.mxu1 %v1250_v1  ;;  %v1213_v18 = vld [vmem:[%s1315_s26 + $0x30] sm:$0xff]   ;;  %v1214_v19 = vld [vmem:[%s1315_s26 + $0x98] sm:$0xff]   ;;  %v1216_v21 = vld [vmem:[%s1315_s26 + $0xa0] sm:$0xff]  }
  0x16   : > { %v1215_v20 = vld [vmem:[%s1315_s26 + $0x38] sm:$0xff]   ;;  %v1217_v22 = vld [vmem:[%s1315_s26 + $0x40] sm:$0xff]   ;;  %v1218_v23 = vld [vmem:[%s1315_s26 + $0xa8] sm:$0xff]  }
  0x17   : > { %v1219_v24 = vld [vmem:[%s1315_s26 + $0x48] sm:$0xff]   ;;  %v1220_v25 = vld [vmem:[%s1315_s26 + $0xb0] sm:$0xff]   ;;  %v1222_v27 = vld [vmem:[%s1315_s26 + $0xb8] sm:$0xff]  }
  0x18   : > { %1059 = vmatpush3.bf16.msra.mxu0 %v1200_v5  ;;  %1169 = vmatpush3.bf16.msra.mxu1 %v1200_v5  ;;  %v1221_v26 = vld [vmem:[%s1315_s26 + $0x50] sm:$0xff]   ;;  %v1223_v28 = vld [vmem:[%s1315_s26 + $0x58] sm:$0xff]   ;;  %v1224_v29 = vld [vmem:[%s1315_s26 + $0xc0] ss:$0 sps:$4 sm:$0xff]  }
  0x19   : > { %v1225_v30 = vld [vmem:[%s1315_s26 + $0x60] sm:$0xff]  }
  0x1b   : > { %1061 = vmatmul.mubr.msk.bf16.vlgmr.msra.gmra.mrb[0].mxu0 %vm445_vm1, %v1201_v6  ;;  %1113 = vmatmul.mubr.msk.bf16.vlgmr.msra.gmra.mrb[0].mxu1 %vm445_vm1, %v1202_v7 }
  0x1c   : > { %1064 = vmatprep.mubr.msk.bf16.mxu0 %vm1251_vm0, %v1250_v1  ;;  %1116 = vmatprep.mubr.msk.bf16.mxu1 %vm1251_vm0, %v1250_v1 }
  0x23   : > { %1065 = vmatmul.mubr.msk.bf16.gmra.mrb[4].mxu0 %vm445_vm1, %v1203_v8  ;;  %1117 = vmatmul.mubr.msk.bf16.gmra.mrb[4].mxu1 %vm445_vm1, %v1204_v9 }
  0x24   : > { %1068 = vmatprep.mubr.msk.bf16.mxu0 %vm1251_vm0, %v1250_v1  ;;  %1120 = vmatprep.mubr.msk.bf16.mxu1 %vm1251_vm0, %v1250_v1 }
  0x2b   : > { %1069 = vmatmul.mubr.msk.bf16.gmra.mrb[8].mxu0 %vm445_vm1, %v1205_v10  ;;  %1121 = vmatmul.mubr.msk.bf16.gmra.mrb[8].mxu1 %vm445_vm1, %v1206_v11 }
  0x2c   : > { %1072 = vmatprep.mubr.msk.bf16.mxu0 %vm1251_vm0, %v1250_v1  ;;  %1124 = vmatprep.mubr.msk.bf16.mxu1 %vm1251_vm0, %v1250_v1 }
  0x33   : > { %1073 = vmatmul.mubr.msk.bf16.gmra.mrb[12].mxu0 %vm445_vm1, %v1207_v12  ;;  %1125 = vmatmul.mubr.msk.bf16.gmra.mrb[12].mxu1 %vm445_vm1, %v1208_v13 }
  0x34   : > { %1076 = vmatprep.mubr.msk.bf16.mxu0 %vm1251_vm0, %v1250_v1  ;;  %1128 = vmatprep.mubr.msk.bf16.mxu1 %vm1251_vm0, %v1250_v1 }
  0x3b   : > { %1077 = vmatmul.mubr.msk.bf16.gmra.mrb[16].mxu0 %vm445_vm1, %v1209_v14  ;;  %1129 = vmatmul.mubr.msk.bf16.gmra.mrb[16].mxu1 %vm445_vm1, %v1210_v15 }
  0x3c   : > { %1080 = vmatprep.mubr.msk.bf16.mxu0 %vm1251_vm0, %v1250_v1  ;;  %1132 = vmatprep.mubr.msk.bf16.mxu1 %vm1251_vm0, %v1250_v1 }
  0x43   : > { %1081 = vmatmul.mubr.msk.bf16.gmra.mrb[20].mxu0 %vm445_vm1, %v1211_v16  ;;  %1133 = vmatmul.mubr.msk.bf16.gmra.mrb[20].mxu1 %vm445_vm1, %v1212_v17 }
  0x44   : > { %1084 = vmatprep.mubr.msk.bf16.mxu0 %vm1251_vm0, %v1250_v1  ;;  %1136 = vmatprep.mubr.msk.bf16.mxu1 %vm1251_vm0, %v1250_v1 }
  0x4b   : > { %1085 = vmatmul.mubr.msk.bf16.gmra.mrb[24].mxu0 %vm445_vm1, %v1213_v18  ;;  %1137 = vmatmul.mubr.msk.bf16.gmra.mrb[24].mxu1 %vm445_vm1, %v1214_v19 }
  0x4c   : > { %1088 = vmatprep.mubr.msk.bf16.mxu0 %vm1251_vm0, %v1250_v1  ;;  %1140 = vmatprep.mubr.msk.bf16.mxu1 %vm1251_vm0, %v1250_v1 }
  0x53   : > { %1089 = vmatmul.mubr.msk.bf16.gmra.mrb[28].mxu0 %vm445_vm1, %v1215_v20  ;;  %1141 = vmatmul.mubr.msk.bf16.gmra.mrb[28].mxu1 %vm445_vm1, %v1216_v21 }
  0x54   : > { %1092 = vmatprep.mubr.msk.bf16.mxu0 %vm1251_vm0, %v1250_v1  ;;  %1144 = vmatprep.mubr.msk.bf16.mxu1 %vm1251_vm0, %v1250_v1 }
  0x5b   : > { %1093 = vmatmul.mubr.msk.bf16.gmra.mrb[32].mxu0 %vm445_vm1, %v1217_v22  ;;  %1145 = vmatmul.mubr.msk.bf16.gmra.mrb[32].mxu1 %vm445_vm1, %v1218_v23 }
  0x5c   : > { %1096 = vmatprep.mubr.msk.bf16.mxu0 %vm1251_vm0, %v1250_v1  ;;  %1148 = vmatprep.mubr.msk.bf16.mxu1 %vm1251_vm0, %v1250_v1 }
  0x63   : > { %1097 = vmatmul.mubr.msk.bf16.gmra.mrb[36].mxu0 %vm445_vm1, %v1219_v24  ;;  %1149 = vmatmul.mubr.msk.bf16.gmra.mrb[36].mxu1 %vm445_vm1, %v1220_v25 }
  0x64   : > { %1100 = vmatprep.mubr.msk.bf16.mxu0 %vm1251_vm0, %v1250_v1  ;;  %1152 = vmatprep.mubr.msk.bf16.mxu1 %vm1251_vm0, %v1250_v1 }
  0x6b   : > { %1101 = vmatmul.mubr.msk.bf16.gmra.mrb[40].mxu0 %vm445_vm1, %v1221_v26  ;;  %1153 = vmatmul.mubr.msk.bf16.gmra.mrb[40].mxu1 %vm445_vm1, %v1222_v27 }
  0x6c   : > { %1104 = vmatprep.mubr.msk.bf16.mxu0 %vm1251_vm0, %v1250_v1  ;;  %1156 = vmatprep.mubr.msk.bf16.mxu1 %vm1251_vm0, %v1250_v1 }
  0x73   : > { %1105 = vmatmul.mubr.msk.bf16.gmra.mrb[44].mxu0 %vm445_vm1, %v1223_v28  ;;  %1157 = vmatmul.mubr.msk.bf16.gmra.mrb[44].mxu1 %vm445_vm1, %v1224_v29 }
  0x74   : > { %1108 = vmatprep.mubr.msk.bf16.mxu0 %vm1251_vm0, %v1250_v1 }
  0x7b   : > { %1109 = vmatmul.mubr.msk.bf16.gmra.mrb[48].mxu0 %vm445_vm1, %v1225_v30 }
  0xee   : > { %v555_v32 = vpop.f32.mrb[0].mxu0  ;;  %v659_v33 = vpop.f32.mrb[0].mxu1 }
  0xef   : > { %v556_v34 = vadd.f32 %v1426_v31, %v555_v32  ;;  %v1062_v35 = vpop.f32.mrb[1].mxu0  ;;  %v660_v36 = vadd.f32 %v1426_v31, %v659_v33  ;;  %v1114_v37 = vpop.f32.mrb[1].mxu1 }
  0xf0   : > { %v558_v38 = vpop.f32.mrb[2].mxu0  ;;  %v662_v39 = vpop.f32.mrb[2].mxu1 }
  0xf1   : > { %v753_v40 = vmax.f32 %v556_v34, 0.0  ;;  %v559_v41 = vadd.f32 %v1426_v31, %v558_v38  ;;  %v1063_v42 = vpop.f32.mrb[3].mxu0  ;;  %v779_v43 = vmax.f32 %v660_v36, 0.0  ;;  %v663_v44 = vadd.f32 %v1426_v31, %v662_v39  ;;  %v1115_v45 = vpop.f32.mrb[3].mxu1 }
  0xf3   : > { %802 = vst [vmem:[%s1434_s9] sm:$0xff] %v753_v40  ;;  %v754_v46 = vmax.f32 %v559_v41, 0.0  ;;  %828 = vst [vmem:[%s1434_s9 + $0xd0] sm:$0xff] %v779_v43  ;;  %v780_v47 = vmax.f32 %v663_v44, 0.0 }
  0xf5   : > { %803 = vst [vmem:[%s1434_s9 + $0x8] sm:$0xff] %v754_v46  ;;  %829 = vst [vmem:[%s1434_s9 + $0xd8] sm:$0xff] %v780_v47 }
  0xf6   : > { %v563_v48 = vpop.f32.mrb[4].mxu0  ;;  %v667_v49 = vpop.f32.mrb[4].mxu1 }
  0xf7   : > { %v564_v50 = vadd.f32 %v1426_v31, %v563_v48  ;;  %v1066_v51 = vpop.f32.mrb[5].mxu0  ;;  %v668_v52 = vadd.f32 %v1426_v31, %v667_v49  ;;  %v1118_v53 = vpop.f32.mrb[5].mxu1 }
  0xf8   : > { %v566_v54 = vpop.f32.mrb[6].mxu0  ;;  %v670_v55 = vpop.f32.mrb[6].mxu1 }
  0xf9   : > { %v755_v56 = vmax.f32 %v564_v50, 0.0  ;;  %v567_v57 = vadd.f32 %v1426_v31, %v566_v54  ;;  %v1067_v58 = vpop.f32.mrb[7].mxu0  ;;  %v781_v59 = vmax.f32 %v668_v52, 0.0  ;;  %v671_v60 = vadd.f32 %v1426_v31, %v670_v55  ;;  %v1119_v61 = vpop.f32.mrb[7].mxu1 }
  0xfb   : > { %804 = vst [vmem:[%s1434_s9 + $0x10] sm:$0xff] %v755_v56  ;;  %v756_v62 = vmax.f32 %v567_v57, 0.0  ;;  %830 = vst [vmem:[%s1434_s9 + $0xe0] sm:$0xff] %v781_v59  ;;  %v782_v63 = vmax.f32 %v671_v60, 0.0 }
  0xfd   : > { %805 = vst [vmem:[%s1434_s9 + $0x18] sm:$0xff] %v756_v62  ;;  %831 = vst [vmem:[%s1434_s9 + $0xe8] sm:$0xff] %v782_v63 }
  0xfe   : > { %v571_v0 = vpop.f32.mrb[8].mxu0  ;;  %v675_v1 = vpop.f32.mrb[8].mxu1 }
  0xff   : > { %v572_v2 = vadd.f32 %v1426_v31, %v571_v0  ;;  %v1070_v3 = vpop.f32.mrb[9].mxu0  ;;  %v676_v4 = vadd.f32 %v1426_v31, %v675_v1  ;;  %v1122_v5 = vpop.f32.mrb[9].mxu1 }
 0x100   : > { %v574_v6 = vpop.f32.mrb[10].mxu0  ;;  %v678_v7 = vpop.f32.mrb[10].mxu1 }
 0x101   : > { %v757_v8 = vmax.f32 %v572_v2, 0.0  ;;  %v575_v9 = vadd.f32 %v1426_v31, %v574_v6  ;;  %v1071_v10 = vpop.f32.mrb[11].mxu0  ;;  %v783_v11 = vmax.f32 %v676_v4, 0.0  ;;  %v679_v12 = vadd.f32 %v1426_v31, %v678_v7  ;;  %v1123_v13 = vpop.f32.mrb[11].mxu1 }
 0x103   : > { %806 = vst [vmem:[%s1434_s9 + $0x20] sm:$0xff] %v757_v8  ;;  %v758_v14 = vmax.f32 %v575_v9, 0.0  ;;  %832 = vst [vmem:[%s1434_s9 + $0xf0] sm:$0xff] %v783_v11  ;;  %v784_v15 = vmax.f32 %v679_v12, 0.0 }
 0x105   : > { %807 = vst [vmem:[%s1434_s9 + $0x28] sm:$0xff] %v758_v14  ;;  %833 = vst [vmem:[%s1434_s9 + $0xf8] sm:$0xff] %v784_v15 }
 0x106   : > { %v579_v16 = vpop.f32.mrb[12].mxu0  ;;  %v683_v17 = vpop.f32.mrb[12].mxu1 }
 0x107   : > { %v580_v18 = vadd.f32 %v1426_v31, %v579_v16  ;;  %v1074_v19 = vpop.f32.mrb[13].mxu0  ;;  %v684_v20 = vadd.f32 %v1426_v31, %v683_v17  ;;  %v1126_v21 = vpop.f32.mrb[13].mxu1 }
 0x108   : > { %v582_v22 = vpop.f32.mrb[14].mxu0  ;;  %v686_v23 = vpop.f32.mrb[14].mxu1 }
 0x109   : > { %v759_v24 = vmax.f32 %v580_v18, 0.0  ;;  %v583_v25 = vadd.f32 %v1426_v31, %v582_v22  ;;  %v1075_v26 = vpop.f32.mrb[15].mxu0  ;;  %v785_v27 = vmax.f32 %v684_v20, 0.0  ;;  %v687_v28 = vadd.f32 %v1426_v31, %v686_v23  ;;  %v1127_v29 = vpop.f32.mrb[15].mxu1 }
 0x10b   : > { %808 = vst [vmem:[%s1434_s9 + $0x30] sm:$0xff] %v759_v24  ;;  %v760_v30 = vmax.f32 %v583_v25, 0.0  ;;  %834 = vst [vmem:[%s1434_s9 + $0x100] sm:$0xff] %v785_v27  ;;  %v786_v32 = vmax.f32 %v687_v28, 0.0 }
 0x10d   : > { %809 = vst [vmem:[%s1434_s9 + $0x38] sm:$0xff] %v760_v30  ;;  %835 = vst [vmem:[%s1434_s9 + $0x108] sm:$0xff] %v786_v32 }
 0x10e   : > { %v587_v33 = vpop.f32.mrb[16].mxu0  ;;  %v691_v34 = vpop.f32.mrb[16].mxu1 }
 0x10f   : > { %v588_v35 = vadd.f32 %v1426_v31, %v587_v33  ;;  %v1078_v36 = vpop.f32.mrb[17].mxu0  ;;  %v692_v37 = vadd.f32 %v1426_v31, %v691_v34  ;;  %v1130_v38 = vpop.f32.mrb[17].mxu1 }
 0x110   : > { %v590_v39 = vpop.f32.mrb[18].mxu0  ;;  %v694_v40 = vpop.f32.mrb[18].mxu1 }
 0x111   : > { %v761_v41 = vmax.f32 %v588_v35, 0.0  ;;  %v591_v42 = vadd.f32 %v1426_v31, %v590_v39  ;;  %v1079_v43 = vpop.f32.mrb[19].mxu0  ;;  %v787_v44 = vmax.f32 %v692_v37, 0.0  ;;  %v695_v45 = vadd.f32 %v1426_v31, %v694_v40  ;;  %v1131_v46 = vpop.f32.mrb[19].mxu1 }
 0x113   : > { %810 = vst [vmem:[%s1434_s9 + $0x40] sm:$0xff] %v761_v41  ;;  %v762_v47 = vmax.f32 %v591_v42, 0.0  ;;  %836 = vst [vmem:[%s1434_s9 + $0x110] sm:$0xff] %v787_v44  ;;  %v788_v48 = vmax.f32 %v695_v45, 0.0 }
 0x115   : > { %811 = vst [vmem:[%s1434_s9 + $0x48] sm:$0xff] %v762_v47  ;;  %837 = vst [vmem:[%s1434_s9 + $0x118] sm:$0xff] %v788_v48 }
 0x116   : > { %v595_v49 = vpop.f32.mrb[20].mxu0  ;;  %v699_v50 = vpop.f32.mrb[20].mxu1 }
 0x117   : > { %v596_v51 = vadd.f32 %v1426_v31, %v595_v49  ;;  %v1082_v52 = vpop.f32.mrb[21].mxu0  ;;  %v700_v53 = vadd.f32 %v1426_v31, %v699_v50  ;;  %v1134_v54 = vpop.f32.mrb[21].mxu1 }
 0x118   : > { %v598_v55 = vpop.f32.mrb[22].mxu0  ;;  %v702_v56 = vpop.f32.mrb[22].mxu1 }
 0x119   : > { %v763_v57 = vmax.f32 %v596_v51, 0.0  ;;  %v599_v58 = vadd.f32 %v1426_v31, %v598_v55  ;;  %v1083_v59 = vpop.f32.mrb[23].mxu0  ;;  %v789_v60 = vmax.f32 %v700_v53, 0.0  ;;  %v703_v61 = vadd.f32 %v1426_v31, %v702_v56  ;;  %v1135_v62 = vpop.f32.mrb[23].mxu1 }
 0x11b   : > { %812 = vst [vmem:[%s1434_s9 + $0x50] sm:$0xff] %v763_v57  ;;  %v764_v63 = vmax.f32 %v599_v58, 0.0  ;;  %838 = vst [vmem:[%s1434_s9 + $0x120] sm:$0xff] %v789_v60  ;;  %v790_v0 = vmax.f32 %v703_v61, 0.0 }
 0x11d   : > { %813 = vst [vmem:[%s1434_s9 + $0x58] sm:$0xff] %v764_v63  ;;  %839 = vst [vmem:[%s1434_s9 + $0x128] sm:$0xff] %v790_v0 }
 0x11e   : > { %v603_v1 = vpop.f32.mrb[24].mxu0  ;;  %v707_v2 = vpop.f32.mrb[24].mxu1 }
 0x11f   : > { %v604_v3 = vadd.f32 %v1426_v31, %v603_v1  ;;  %v1086_v4 = vpop.f32.mrb[25].mxu0  ;;  %v708_v5 = vadd.f32 %v1426_v31, %v707_v2  ;;  %v1138_v6 = vpop.f32.mrb[25].mxu1 }
 0x120   : > { %v606_v7 = vpop.f32.mrb[26].mxu0  ;;  %v710_v8 = vpop.f32.mrb[26].mxu1 }
 0x121   : > { %v765_v9 = vmax.f32 %v604_v3, 0.0  ;;  %v607_v10 = vadd.f32 %v1426_v31, %v606_v7  ;;  %v1087_v11 = vpop.f32.mrb[27].mxu0  ;;  %v791_v12 = vmax.f32 %v708_v5, 0.0  ;;  %v711_v13 = vadd.f32 %v1426_v31, %v710_v8  ;;  %v1139_v14 = vpop.f32.mrb[27].mxu1 }
 0x123   : > { %814 = vst [vmem:[%s1434_s9 + $0x60] sm:$0xff] %v765_v9  ;;  %v766_v15 = vmax.f32 %v607_v10, 0.0  ;;  %840 = vst [vmem:[%s1434_s9 + $0x130] sm:$0xff] %v791_v12  ;;  %v792_v16 = vmax.f32 %v711_v13, 0.0 }
 0x125   : > { %815 = vst [vmem:[%s1434_s9 + $0x68] sm:$0xff] %v766_v15  ;;  %841 = vst [vmem:[%s1434_s9 + $0x138] sm:$0xff] %v792_v16 }
 0x126   : > { %v611_v17 = vpop.f32.mrb[28].mxu0  ;;  %v715_v18 = vpop.f32.mrb[28].mxu1 }
 0x127   : > { %v612_v19 = vadd.f32 %v1426_v31, %v611_v17  ;;  %v1090_v20 = vpop.f32.mrb[29].mxu0  ;;  %v716_v21 = vadd.f32 %v1426_v31, %v715_v18  ;;  %v1142_v22 = vpop.f32.mrb[29].mxu1 }
 0x128   : > { %v614_v23 = vpop.f32.mrb[30].mxu0  ;;  %v718_v24 = vpop.f32.mrb[30].mxu1 }
 0x129   : > { %v767_v25 = vmax.f32 %v612_v19, 0.0  ;;  %v615_v26 = vadd.f32 %v1426_v31, %v614_v23  ;;  %v1091_v27 = vpop.f32.mrb[31].mxu0  ;;  %v793_v28 = vmax.f32 %v716_v21, 0.0  ;;  %v719_v29 = vadd.f32 %v1426_v31, %v718_v24  ;;  %v1143_v30 = vpop.f32.mrb[31].mxu1 }
 0x12b   : > { %816 = vst [vmem:[%s1434_s9 + $0x70] sm:$0xff] %v767_v25  ;;  %v768_v32 = vmax.f32 %v615_v26, 0.0  ;;  %842 = vst [vmem:[%s1434_s9 + $0x140] sm:$0xff] %v793_v28  ;;  %v794_v33 = vmax.f32 %v719_v29, 0.0 }
 0x12d   : > { %817 = vst [vmem:[%s1434_s9 + $0x78] sm:$0xff] %v768_v32  ;;  %843 = vst [vmem:[%s1434_s9 + $0x148] sm:$0xff] %v794_v33 }
 0x12e   : > { %v619_v34 = vpop.f32.mrb[32].mxu0  ;;  %v723_v35 = vpop.f32.mrb[32].mxu1 }
 0x12f   : > { %v620_v36 = vadd.f32 %v1426_v31, %v619_v34  ;;  %v1094_v37 = vpop.f32.mrb[33].mxu0  ;;  %v724_v38 = vadd.f32 %v1426_v31, %v723_v35  ;;  %v1146_v39 = vpop.f32.mrb[33].mxu1 }
 0x130   : > { %v622_v40 = vpop.f32.mrb[34].mxu0  ;;  %v726_v41 = vpop.f32.mrb[34].mxu1 }
 0x131   : > { %v769_v42 = vmax.f32 %v620_v36, 0.0  ;;  %v623_v43 = vadd.f32 %v1426_v31, %v622_v40  ;;  %v1095_v44 = vpop.f32.mrb[35].mxu0  ;;  %v795_v45 = vmax.f32 %v724_v38, 0.0  ;;  %v727_v46 = vadd.f32 %v1426_v31, %v726_v41  ;;  %v1147_v47 = vpop.f32.mrb[35].mxu1 }
 0x133   : > { %818 = vst [vmem:[%s1434_s9 + $0x80] sm:$0xff] %v769_v42  ;;  %v770_v48 = vmax.f32 %v623_v43, 0.0  ;;  %844 = vst [vmem:[%s1434_s9 + $0x150] sm:$0xff] %v795_v45  ;;  %v796_v49 = vmax.f32 %v727_v46, 0.0 }
 0x135   : > { %819 = vst [vmem:[%s1434_s9 + $0x88] sm:$0xff] %v770_v48  ;;  %845 = vst [vmem:[%s1434_s9 + $0x158] sm:$0xff] %v796_v49 }
 0x136   : > { %v627_v50 = vpop.f32.mrb[36].mxu0  ;;  %v731_v51 = vpop.f32.mrb[36].mxu1 }
 0x137   : > { %v628_v52 = vadd.f32 %v1426_v31, %v627_v50  ;;  %v1098_v53 = vpop.f32.mrb[37].mxu0  ;;  %v732_v54 = vadd.f32 %v1426_v31, %v731_v51  ;;  %v1150_v55 = vpop.f32.mrb[37].mxu1 }
 0x138   : > { %v630_v56 = vpop.f32.mrb[38].mxu0  ;;  %v734_v57 = vpop.f32.mrb[38].mxu1 }
 0x139   : > { %v771_v58 = vmax.f32 %v628_v52, 0.0  ;;  %v631_v59 = vadd.f32 %v1426_v31, %v630_v56  ;;  %v1099_v60 = vpop.f32.mrb[39].mxu0  ;;  %v797_v61 = vmax.f32 %v732_v54, 0.0  ;;  %v735_v62 = vadd.f32 %v1426_v31, %v734_v57  ;;  %v1151_v63 = vpop.f32.mrb[39].mxu1 }
 0x13b   : > { %820 = vst [vmem:[%s1434_s9 + $0x90] sm:$0xff] %v771_v58  ;;  %v772_v0 = vmax.f32 %v631_v59, 0.0  ;;  %846 = vst [vmem:[%s1434_s9 + $0x160] sm:$0xff] %v797_v61  ;;  %v798_v1 = vmax.f32 %v735_v62, 0.0 }
 0x13d   : > { %821 = vst [vmem:[%s1434_s9 + $0x98] sm:$0xff] %v772_v0  ;;  %847 = vst [vmem:[%s1434_s9 + $0x168] sm:$0xff] %v798_v1 }
 0x13e   : > { %v635_v2 = vpop.f32.mrb[40].mxu0  ;;  %v739_v3 = vpop.f32.mrb[40].mxu1 }
 0x13f   : > { %v636_v4 = vadd.f32 %v1426_v31, %v635_v2  ;;  %v1102_v5 = vpop.f32.mrb[41].mxu0  ;;  %v740_v6 = vadd.f32 %v1426_v31, %v739_v3  ;;  %v1154_v7 = vpop.f32.mrb[41].mxu1 }
 0x140   : > { %v638_v8 = vpop.f32.mrb[42].mxu0  ;;  %v742_v9 = vpop.f32.mrb[42].mxu1 }
 0x141   : > { %v773_v10 = vmax.f32 %v636_v4, 0.0  ;;  %v639_v11 = vadd.f32 %v1426_v31, %v638_v8  ;;  %v1103_v12 = vpop.f32.mrb[43].mxu0  ;;  %v799_v13 = vmax.f32 %v740_v6, 0.0  ;;  %v743_v14 = vadd.f32 %v1426_v31, %v742_v9  ;;  %v1155_v15 = vpop.f32.mrb[43].mxu1 }
 0x143   : > { %822 = vst [vmem:[%s1434_s9 + $0xa0] sm:$0xff] %v773_v10  ;;  %v774_v16 = vmax.f32 %v639_v11, 0.0  ;;  %848 = vst [vmem:[%s1434_s9 + $0x170] sm:$0xff] %v799_v13  ;;  %v800_v17 = vmax.f32 %v743_v14, 0.0 }
 0x145   : > { %823 = vst [vmem:[%s1434_s9 + $0xa8] sm:$0xff] %v774_v16  ;;  %849 = vst [vmem:[%s1434_s9 + $0x178] sm:$0xff] %v800_v17 }
 0x146   : > { %v643_v18 = vpop.f32.mrb[44].mxu0  ;;  %v747_v19 = vpop.f32.mrb[44].mxu1 }
 0x147   : > { %v644_v20 = vadd.f32 %v1426_v31, %v643_v18  ;;  %v1106_v21 = vpop.f32.mrb[45].mxu0  ;;  %v748_v22 = vadd.f32 %v1426_v31, %v747_v19  ;;  %v1158_v23 = vpop.f32.mrb[45].mxu1 }
 0x148   : > { %v646_v24 = vpop.f32.mrb[46].mxu0  ;;  %v750_v25 = vpop.f32.mrb[46].mxu1 }
 0x149   : > { %v775_v26 = vmax.f32 %v644_v20, 0.0  ;;  %v647_v27 = vadd.f32 %v1426_v31, %v646_v24  ;;  %v1107_v28 = vpop.f32.mrb[47].mxu0  ;;  %v801_v29 = vmax.f32 %v748_v22, 0.0  ;;  %v1159_v30 = vpop.f32.mrb[47].mxu1 }
 0x14b   : > { %824 = vst [vmem:[%s1434_s9 + $0xb0] sm:$0xff] %v775_v26  ;;  %v776_v32 = vmax.f32 %v647_v27, 0.0  ;;  %850 = vst [vmem:[%s1434_s9 + $0x180] sm:$0xff] %v801_v29 }
 0x14d   : > { %825 = vst [vmem:[%s1434_s9 + $0xb8] sm:$0xff] %v776_v32 }
 0x14e   : > { %v651_v33 = vpop.f32.mrb[48].mxu0 }
 0x14f   : > { %v652_v34 = vadd.f32 %v1426_v31, %v651_v33  ;;  %v1110_v35 = vpop.f32.mrb[49].mxu0 }
 0x150   : > { %v654_v36 = vpop.f32.mrb[50].mxu0 }
 0x151   : > { %v777_v37 = vmax.f32 %v652_v34, 0.0  ;;  %v655_v38 = vadd.f32 %v1426_v31, %v654_v36  ;;  %v1111_v39 = vpop.f32.mrb[51].mxu0 }
 0x153   : > { %826 = vst [vmem:[%s1434_s9 + $0xc0] sm:$0xff] %v777_v37  ;;  %v778_v40 = vmax.f32 %v655_v38, 0.0 }
 0x155   : > { %827 = vst [vmem:[%s1434_s9 + $0xc8] sm:$0xff] %v778_v40 }
 0x156 PF: > { %s13_s14 = sadd.s32 1, %s1248_s14   ;;  %s1545_s12 = smov %s1244_s13 }
 0x157   : > { %p10_p5 = scmp.ge.s32.totalorder %s13_s14, 6   ;;  %s1546_s13 = smov %s1548_s15 }
 0x159   :  { %12 = sbr.rel (!%p10_p5) target bundleno = 2 (0x2), region = 68 }

// kernel: sesame_forward.10
= control target key start
LH: loop header
LB: loop body
LE: loop exit
PB: predicated region body
PF: predicated region fallthrough
CT: control target
= control target key end

     0   :  { %vm360_vm0 = vcmask 261120   ;;  %s1223_s0 = inlined_call_operand.vmem [shape: f32[392,32], index: 0, kind: input, shape index: {}]   ;;  %s1224_s1 = inlined_call_operand.vmem [shape: f32[392,32], index: 1, kind: input, shape index: {}]   ;;  %s1225_s2 = inlined_call_operand.vmem [shape: f32[392,32], index: 2, kind: input, shape index: {}]   ;;  %s1226_s3 = inlined_call_operand.vmem [shape: f32[392,32], index: 3, kind: input, shape index: {}]   ;;  %s1227_s4 = inlined_call_operand.vmem [shape: f32[392,32], index: 4, kind: output, shape index: {}]  }
   0x1   :  { %v17_v0 = vld [vmem:[%s1223_s0] sm:$0xff]  ;;  %v18_v4 = vld [vmem:[%s1223_s0 + $0x8] sm:$0xff]  ;;  %v19_v9 = vld [vmem:[%s1223_s0 + $0x10] sm:$0xff] }
   0x2   :  { %v66_v1 = vld [vmem:[%s1224_s1] sm:$0xff]  ;;  %v67_v5 = vld [vmem:[%s1224_s1 + $0x8] sm:$0xff]  ;;  %v68_v12 = vld [vmem:[%s1224_s1 + $0x10] sm:$0xff] }
   0x3   :  { %v164_v2 = vld [vmem:[%s1225_s2] sm:$0xff]  ;;  %v115_v3 = vmax.f32 %v17_v0, %v66_v1  ;;  %v116_v7 = vmax.f32 %v18_v4, %v67_v5  ;;  %v165_v8 = vld [vmem:[%s1225_s2 + $0x8] sm:$0xff]  ;;  %v166_v13 = vld [vmem:[%s1225_s2 + $0x10] sm:$0xff]  ;;  %v117_v15 = vmax.f32 %v19_v9, %v68_v12 }
   0x4   :  { %v262_v6 = vld [vmem:[%s1226_s3] sm:$0xff]  ;;  %v263_v11 = vld [vmem:[%s1226_s3 + $0x8] sm:$0xff]  ;;  %v20_v16 = vld [vmem:[%s1223_s0 + $0x18] sm:$0xff] }
   0x5   :  { %v213_v10 = vmax.f32 %v115_v3, %v164_v2  ;;  %v214_v14 = vmax.f32 %v116_v7, %v165_v8  ;;  %v69_v17 = vld [vmem:[%s1224_s1 + $0x18] sm:$0xff]  ;;  %v264_v20 = vld [vmem:[%s1226_s3 + $0x10] sm:$0xff]  ;;  %v21_v22 = vld [vmem:[%s1223_s0 + $0x20] sm:$0xff]  ;;  %v215_v25 = vmax.f32 %v117_v15, %v166_v13 }
   0x6   :  { %v167_v18 = vld [vmem:[%s1225_s2 + $0x18] sm:$0xff]  ;;  %v118_v21 = vmax.f32 %v20_v16, %v69_v17  ;;  %v70_v23 = vld [vmem:[%s1224_s1 + $0x20] sm:$0xff]  ;;  %v22_v29 = vld [vmem:[%s1223_s0 + $0x28] sm:$0xff] }
   0x7   :  { %v311_v19 = vmax.f32 %v213_v10, %v262_v6  ;;  %v312_v24 = vmax.f32 %v214_v14, %v263_v11  ;;  %v265_v26 = vld [vmem:[%s1226_s3 + $0x18] sm:$0xff]  ;;  %v119_v27 = vmax.f32 %v21_v22, %v70_v23  ;;  %v168_v28 = vld [vmem:[%s1225_s2 + $0x20] sm:$0xff]  ;;  %v71_v32 = vld [vmem:[%s1224_s1 + $0x28] sm:$0xff]  ;;  %v313_v34 = vmax.f32 %v215_v25, %v264_v20 }
   0x8   :  { %v216_v30 = vmax.f32 %v118_v21, %v167_v18  ;;  %v266_v31 = vld [vmem:[%s1226_s3 + $0x20] sm:$0xff]  ;;  %v169_v33 = vld [vmem:[%s1225_s2 + $0x28] sm:$0xff]  ;;  %v120_v36 = vmax.f32 %v22_v29, %v71_v32  ;;  %v23_v37 = vld [vmem:[%s1223_s0 + $0x30] sm:$0xff] }
   0x9   :  { %361 = vst.msk [vmem:[%s1227_s4] sm:$0xff] %vm360_vm0, %v311_v19  ;;  %362 = vst.msk [vmem:[%s1227_s4 + $0x8] sm:$0xff] %vm360_vm0, %v312_v24  ;;  %v217_v35 = vmax.f32 %v119_v27, %v168_v28  ;;  %v72_v38 = vld [vmem:[%s1224_s1 + $0x30] sm:$0xff]  ;;  %v267_v41 = vld [vmem:[%s1226_s3 + $0x28] sm:$0xff] }
   0xa   :  { %v170_v39 = vld [vmem:[%s1225_s2 + $0x30] sm:$0xff]  ;;  %v314_v40 = vmax.f32 %v216_v30, %v265_v26  ;;  %v121_v42 = vmax.f32 %v23_v37, %v72_v38  ;;  %v24_v43 = vld [vmem:[%s1223_s0 + $0x38] sm:$0xff]  ;;  %363 = vst.msk [vmem:[%s1227_s4 + $0x10] sm:$0xff] %vm360_vm0, %v313_v34  ;;  %v218_v46 = vmax.f32 %v120_v36, %v169_v33  ;;  %v25_v50 = vld [vmem:[%s1223_s0 + $0x40] sm:$0xff] }
   0xb   :  { %v73_v44 = vld [vmem:[%s1224_s1 + $0x38] sm:$0xff]  ;;  %v315_v45 = vmax.f32 %v217_v35, %v266_v31  ;;  %v268_v47 = vld [vmem:[%s1226_s3 + $0x30] sm:$0xff]  ;;  %v74_v53 = vld [vmem:[%s1224_s1 + $0x40] sm:$0xff] }
   0xc   :  { %v122_v48 = vmax.f32 %v24_v43, %v73_v44  ;;  %v171_v49 = vld [vmem:[%s1225_s2 + $0x38] sm:$0xff]  ;;  %364 = vst.msk [vmem:[%s1227_s4 + $0x18] sm:$0xff] %vm360_vm0, %v314_v40  ;;  %v219_v51 = vmax.f32 %v121_v42, %v170_v39  ;;  %v172_v54 = vld [vmem:[%s1225_s2 + $0x40] sm:$0xff]  ;;  %v316_v55 = vmax.f32 %v218_v46, %v267_v41  ;;  %v123_v57 = vmax.f32 %v25_v50, %v74_v53  ;;  %v26_v58 = vld [vmem:[%s1223_s0 + $0x48] sm:$0xff] }
   0xd   :  { %v269_v52 = vld [vmem:[%s1226_s3 + $0x38] sm:$0xff]  ;;  %365 = vst.msk [vmem:[%s1227_s4 + $0x20] sm:$0xff] %vm360_vm0, %v315_v45  ;;  %v75_v59 = vld [vmem:[%s1224_s1 + $0x48] sm:$0xff]  ;;  %v270_v62 = vld [vmem:[%s1226_s3 + $0x40] sm:$0xff] }
   0xe   :  { %v220_v56 = vmax.f32 %v122_v48, %v171_v49  ;;  %v173_v60 = vld [vmem:[%s1225_s2 + $0x48] sm:$0xff]  ;;  %v317_v61 = vmax.f32 %v219_v51, %v268_v47  ;;  %v124_v63 = vmax.f32 %v26_v58, %v75_v59  ;;  %v27_v0 = vld [vmem:[%s1223_s0 + $0x50] sm:$0xff]  ;;  %366 = vst.msk [vmem:[%s1227_s4 + $0x28] sm:$0xff] %vm360_vm0, %v316_v55  ;;  %v221_v3 = vmax.f32 %v123_v57, %v172_v54  ;;  %v28_v7 = vld [vmem:[%s1223_s0 + $0x58] sm:$0xff] }
   0xf   :  { %v76_v1 = vld [vmem:[%s1224_s1 + $0x50] sm:$0xff]  ;;  %v271_v4 = vld [vmem:[%s1226_s3 + $0x48] sm:$0xff]  ;;  %v77_v10 = vld [vmem:[%s1224_s1 + $0x58] sm:$0xff] }
  0x10   :  { %v318_v2 = vmax.f32 %v220_v56, %v269_v52  ;;  %v125_v5 = vmax.f32 %v27_v0, %v76_v1  ;;  %v174_v6 = vld [vmem:[%s1225_s2 + $0x50] sm:$0xff]  ;;  %367 = vst.msk [vmem:[%s1227_s4 + $0x30] sm:$0xff] %vm360_vm0, %v317_v61  ;;  %v222_v8 = vmax.f32 %v124_v63, %v173_v60  ;;  %v175_v11 = vld [vmem:[%s1225_s2 + $0x58] sm:$0xff]  ;;  %v319_v12 = vmax.f32 %v221_v3, %v270_v62  ;;  %v29_v15 = vld [vmem:[%s1223_s0 + $0x60] sm:$0xff] }
  0x11   :  { %v272_v9 = vld [vmem:[%s1226_s3 + $0x50] sm:$0xff]  ;;  %v126_v14 = vmax.f32 %v28_v7, %v77_v10  ;;  %v78_v16 = vld [vmem:[%s1224_s1 + $0x60] sm:$0xff]  ;;  %v273_v19 = vld [vmem:[%s1226_s3 + $0x58] sm:$0xff] }
  0x12   :  { %368 = vst.msk [vmem:[%s1227_s4 + $0x38] sm:$0xff] %vm360_vm0, %v318_v2  ;;  %v223_v13 = vmax.f32 %v125_v5, %v174_v6  ;;  %v176_v17 = vld [vmem:[%s1225_s2 + $0x60] sm:$0xff]  ;;  %v320_v18 = vmax.f32 %v222_v8, %v271_v4  ;;  %v127_v20 = vmax.f32 %v29_v15, %v78_v16  ;;  %v30_v21 = vld [vmem:[%s1223_s0 + $0x68] sm:$0xff]  ;;  %369 = vst.msk [vmem:[%s1227_s4 + $0x40] sm:$0xff] %vm360_vm0, %v319_v12 }
  0x13   :  { %v79_v22 = vld [vmem:[%s1224_s1 + $0x68] sm:$0xff]  ;;  %v224_v24 = vmax.f32 %v126_v14, %v175_v11  ;;  %v274_v25 = vld [vmem:[%s1226_s3 + $0x60] sm:$0xff]  ;;  %v31_v28 = vld [vmem:[%s1223_s0 + $0x70] sm:$0xff] }
  0x14   :  { %v321_v23 = vmax.f32 %v223_v13, %v272_v9  ;;  %v128_v26 = vmax.f32 %v30_v21, %v79_v22  ;;  %v177_v27 = vld [vmem:[%s1225_s2 + $0x68] sm:$0xff]  ;;  %370 = vst.msk [vmem:[%s1227_s4 + $0x48] sm:$0xff] %vm360_vm0, %v320_v18  ;;  %v225_v29 = vmax.f32 %v127_v20, %v176_v17  ;;  %v80_v31 = vld [vmem:[%s1224_s1 + $0x70] sm:$0xff]  ;;  %v32_v36 = vld [vmem:[%s1223_s0 + $0x78] sm:$0xff] }
  0x15   :  { %v275_v30 = vld [vmem:[%s1226_s3 + $0x68] sm:$0xff]  ;;  %v178_v32 = vld [vmem:[%s1225_s2 + $0x70] sm:$0xff]  ;;  %v322_v33 = vmax.f32 %v224_v24, %v273_v19  ;;  %v129_v35 = vmax.f32 %v31_v28, %v80_v31  ;;  %v81_v37 = vld [vmem:[%s1224_s1 + $0x78] sm:$0xff] }
  0x16   :  { %371 = vst.msk [vmem:[%s1227_s4 + $0x50] sm:$0xff] %vm360_vm0, %v321_v23  ;;  %v226_v34 = vmax.f32 %v128_v26, %v177_v27  ;;  %v179_v38 = vld [vmem:[%s1225_s2 + $0x78] sm:$0xff]  ;;  %v323_v39 = vmax.f32 %v225_v29, %v274_v25  ;;  %v276_v40 = vld [vmem:[%s1226_s3 + $0x70] sm:$0xff]  ;;  %v130_v41 = vmax.f32 %v32_v36, %v81_v37  ;;  %v33_v42 = vld [vmem:[%s1223_s0 + $0x80] sm:$0xff] }
  0x17   :  { %v82_v43 = vld [vmem:[%s1224_s1 + $0x80] sm:$0xff]  ;;  %372 = vst.msk [vmem:[%s1227_s4 + $0x58] sm:$0xff] %vm360_vm0, %v322_v33  ;;  %v227_v45 = vmax.f32 %v129_v35, %v178_v32  ;;  %v277_v46 = vld [vmem:[%s1226_s3 + $0x78] sm:$0xff]  ;;  %v34_v49 = vld [vmem:[%s1223_s0 + $0x88] sm:$0xff] }
  0x18   :  { %v324_v44 = vmax.f32 %v226_v34, %v275_v30  ;;  %v131_v47 = vmax.f32 %v33_v42, %v82_v43  ;;  %v180_v48 = vld [vmem:[%s1225_s2 + $0x80] sm:$0xff]  ;;  %373 = vst.msk [vmem:[%s1227_s4 + $0x60] sm:$0xff] %vm360_vm0, %v323_v39  ;;  %v228_v50 = vmax.f32 %v130_v41, %v179_v38  ;;  %v83_v52 = vld [vmem:[%s1224_s1 + $0x88] sm:$0xff]  ;;  %v35_v57 = vld [vmem:[%s1223_s0 + $0x90] sm:$0xff] }
  0x19   :  { %v278_v51 = vld [vmem:[%s1226_s3 + $0x80] sm:$0xff]  ;;  %v181_v53 = vld [vmem:[%s1225_s2 + $0x88] sm:$0xff]  ;;  %v325_v54 = vmax.f32 %v227_v45, %v276_v40  ;;  %v132_v56 = vmax.f32 %v34_v49, %v83_v52  ;;  %v84_v58 = vld [vmem:[%s1224_s1 + $0x90] sm:$0xff] }
  0x1a   :  { %374 = vst.msk [vmem:[%s1227_s4 + $0x68] sm:$0xff] %vm360_vm0, %v324_v44  ;;  %v229_v55 = vmax.f32 %v131_v47, %v180_v48  ;;  %v182_v59 = vld [vmem:[%s1225_s2 + $0x90] sm:$0xff]  ;;  %v326_v60 = vmax.f32 %v228_v50, %v277_v46  ;;  %v279_v61 = vld [vmem:[%s1226_s3 + $0x88] sm:$0xff]  ;;  %v133_v62 = vmax.f32 %v35_v57, %v84_v58  ;;  %v36_v63 = vld [vmem:[%s1223_s0 + $0x98] sm:$0xff] }
  0x1b   :  { %v85_v0 = vld [vmem:[%s1224_s1 + $0x98] sm:$0xff]  ;;  %375 = vst.msk [vmem:[%s1227_s4 + $0x70] sm:$0xff] %vm360_vm0, %v325_v54  ;;  %v230_v2 = vmax.f32 %v132_v56, %v181_v53  ;;  %v280_v3 = vld [vmem:[%s1226_s3 + $0x90] sm:$0xff]  ;;  %v37_v6 = vld [vmem:[%s1223_s0 + $0xa0] sm:$0xff] }
  0x1c   :  { %v327_v1 = vmax.f32 %v229_v55, %v278_v51  ;;  %v134_v4 = vmax.f32 %v36_v63, %v85_v0  ;;  %v183_v5 = vld [vmem:[%s1225_s2 + $0x98] sm:$0xff]  ;;  %376 = vst.msk [vmem:[%s1227_s4 + $0x78] sm:$0xff] %vm360_vm0, %v326_v60  ;;  %v231_v7 = vmax.f32 %v133_v62, %v182_v59  ;;  %v86_v9 = vld [vmem:[%s1224_s1 + $0xa0] sm:$0xff]  ;;  %v38_v14 = vld [vmem:[%s1223_s0 + $0xa8] sm:$0xff] }
  0x1d   :  { %v281_v8 = vld [vmem:[%s1226_s3 + $0x98] sm:$0xff]  ;;  %v184_v10 = vld [vmem:[%s1225_s2 + $0xa0] sm:$0xff]  ;;  %v328_v11 = vmax.f32 %v230_v2, %v279_v61  ;;  %v135_v13 = vmax.f32 %v37_v6, %v86_v9  ;;  %v87_v15 = vld [vmem:[%s1224_s1 + $0xa8] sm:$0xff] }
  0x1e   :  { %377 = vst.msk [vmem:[%s1227_s4 + $0x80] sm:$0xff] %vm360_vm0, %v327_v1  ;;  %v232_v12 = vmax.f32 %v134_v4, %v183_v5  ;;  %v185_v16 = vld [vmem:[%s1225_s2 + $0xa8] sm:$0xff]  ;;  %v329_v17 = vmax.f32 %v231_v7, %v280_v3  ;;  %v282_v18 = vld [vmem:[%s1226_s3 + $0xa0] sm:$0xff]  ;;  %v136_v19 = vmax.f32 %v38_v14, %v87_v15  ;;  %v39_v20 = vld [vmem:[%s1223_s0 + $0xb0] sm:$0xff] }
  0x1f   :  { %v88_v21 = vld [vmem:[%s1224_s1 + $0xb0] sm:$0xff]  ;;  %378 = vst.msk [vmem:[%s1227_s4 + $0x88] sm:$0xff] %vm360_vm0, %v328_v11  ;;  %v233_v23 = vmax.f32 %v135_v13, %v184_v10  ;;  %v283_v24 = vld [vmem:[%s1226_s3 + $0xa8] sm:$0xff]  ;;  %v40_v27 = vld [vmem:[%s1223_s0 + $0xb8] sm:$0xff] }
  0x20   :  { %v330_v22 = vmax.f32 %v232_v12, %v281_v8  ;;  %v137_v25 = vmax.f32 %v39_v20, %v88_v21  ;;  %v186_v26 = vld [vmem:[%s1225_s2 + $0xb0] sm:$0xff]  ;;  %379 = vst.msk [vmem:[%s1227_s4 + $0x90] sm:$0xff] %vm360_vm0, %v329_v17  ;;  %v234_v28 = vmax.f32 %v136_v19, %v185_v16  ;;  %v89_v30 = vld [vmem:[%s1224_s1 + $0xb8] sm:$0xff]  ;;  %v41_v35 = vld [vmem:[%s1223_s0 + $0xc0] sm:$0xff] }
  0x21   :  { %v284_v29 = vld [vmem:[%s1226_s3 + $0xb0] sm:$0xff]  ;;  %v187_v31 = vld [vmem:[%s1225_s2 + $0xb8] sm:$0xff]  ;;  %v331_v32 = vmax.f32 %v233_v23, %v282_v18  ;;  %v138_v34 = vmax.f32 %v40_v27, %v89_v30  ;;  %v90_v36 = vld [vmem:[%s1224_s1 + $0xc0] sm:$0xff] }
  0x22   :  { %380 = vst.msk [vmem:[%s1227_s4 + $0x98] sm:$0xff] %vm360_vm0, %v330_v22  ;;  %v235_v33 = vmax.f32 %v137_v25, %v186_v26  ;;  %v188_v37 = vld [vmem:[%s1225_s2 + $0xc0] sm:$0xff]  ;;  %v332_v38 = vmax.f32 %v234_v28, %v283_v24  ;;  %v285_v39 = vld [vmem:[%s1226_s3 + $0xb8] sm:$0xff]  ;;  %v139_v40 = vmax.f32 %v41_v35, %v90_v36  ;;  %v42_v41 = vld [vmem:[%s1223_s0 + $0xc8] sm:$0xff] }
  0x23   :  { %v91_v42 = vld [vmem:[%s1224_s1 + $0xc8] sm:$0xff]  ;;  %381 = vst.msk [vmem:[%s1227_s4 + $0xa0] sm:$0xff] %vm360_vm0, %v331_v32  ;;  %v236_v44 = vmax.f32 %v138_v34, %v187_v31  ;;  %v286_v45 = vld [vmem:[%s1226_s3 + $0xc0] sm:$0xff]  ;;  %v43_v48 = vld [vmem:[%s1223_s0 + $0xd0] sm:$0xff] }
  0x24   :  { %v333_v43 = vmax.f32 %v235_v33, %v284_v29  ;;  %v140_v46 = vmax.f32 %v42_v41, %v91_v42  ;;  %v189_v47 = vld [vmem:[%s1225_s2 + $0xc8] sm:$0xff]  ;;  %382 = vst.msk [vmem:[%s1227_s4 + $0xa8] sm:$0xff] %vm360_vm0, %v332_v38  ;;  %v237_v49 = vmax.f32 %v139_v40, %v188_v37  ;;  %v92_v51 = vld [vmem:[%s1224_s1 + $0xd0] sm:$0xff]  ;;  %v44_v56 = vld [vmem:[%s1223_s0 + $0xd8] sm:$0xff] }
  0x25   :  { %v287_v50 = vld [vmem:[%s1226_s3 + $0xc8] sm:$0xff]  ;;  %v190_v52 = vld [vmem:[%s1225_s2 + $0xd0] sm:$0xff]  ;;  %v334_v53 = vmax.f32 %v236_v44, %v285_v39  ;;  %v141_v55 = vmax.f32 %v43_v48, %v92_v51  ;;  %v93_v57 = vld [vmem:[%s1224_s1 + $0xd8] sm:$0xff] }
  0x26   :  { %383 = vst.msk [vmem:[%s1227_s4 + $0xb0] sm:$0xff] %vm360_vm0, %v333_v43  ;;  %v238_v54 = vmax.f32 %v140_v46, %v189_v47  ;;  %v191_v58 = vld [vmem:[%s1225_s2 + $0xd8] sm:$0xff]  ;;  %v335_v59 = vmax.f32 %v237_v49, %v286_v45  ;;  %v288_v60 = vld [vmem:[%s1226_s3 + $0xd0] sm:$0xff]  ;;  %v142_v61 = vmax.f32 %v44_v56, %v93_v57  ;;  %v45_v62 = vld [vmem:[%s1223_s0 + $0xe0] sm:$0xff] }
  0x27   :  { %v94_v63 = vld [vmem:[%s1224_s1 + $0xe0] sm:$0xff]  ;;  %384 = vst.msk [vmem:[%s1227_s4 + $0xb8] sm:$0xff] %vm360_vm0, %v334_v53  ;;  %v239_v1 = vmax.f32 %v141_v55, %v190_v52  ;;  %v289_v2 = vld [vmem:[%s1226_s3 + $0xd8] sm:$0xff]  ;;  %v46_v5 = vld [vmem:[%s1223_s0 + $0xe8] sm:$0xff] }
  0x28   :  { %v336_v0 = vmax.f32 %v238_v54, %v287_v50  ;;  %v143_v3 = vmax.f32 %v45_v62, %v94_v63  ;;  %v192_v4 = vld [vmem:[%s1225_s2 + $0xe0] sm:$0xff]  ;;  %385 = vst.msk [vmem:[%s1227_s4 + $0xc0] sm:$0xff] %vm360_vm0, %v335_v59  ;;  %v240_v6 = vmax.f32 %v142_v61, %v191_v58  ;;  %v95_v8 = vld [vmem:[%s1224_s1 + $0xe8] sm:$0xff]  ;;  %v47_v13 = vld [vmem:[%s1223_s0 + $0xf0] sm:$0xff] }
  0x29   :  { %v290_v7 = vld [vmem:[%s1226_s3 + $0xe0] sm:$0xff]  ;;  %v193_v9 = vld [vmem:[%s1225_s2 + $0xe8] sm:$0xff]  ;;  %v337_v10 = vmax.f32 %v239_v1, %v288_v60  ;;  %v144_v12 = vmax.f32 %v46_v5, %v95_v8  ;;  %v96_v14 = vld [vmem:[%s1224_s1 + $0xf0] sm:$0xff] }
  0x2a   :  { %386 = vst.msk [vmem:[%s1227_s4 + $0xc8] sm:$0xff] %vm360_vm0, %v336_v0  ;;  %v241_v11 = vmax.f32 %v143_v3, %v192_v4  ;;  %v194_v15 = vld [vmem:[%s1225_s2 + $0xf0] sm:$0xff]  ;;  %v338_v16 = vmax.f32 %v240_v6, %v289_v2  ;;  %v291_v17 = vld [vmem:[%s1226_s3 + $0xe8] sm:$0xff]  ;;  %v145_v18 = vmax.f32 %v47_v13, %v96_v14  ;;  %v48_v19 = vld [vmem:[%s1223_s0 + $0xf8] sm:$0xff] }
  0x2b   :  { %v97_v20 = vld [vmem:[%s1224_s1 + $0xf8] sm:$0xff]  ;;  %387 = vst.msk [vmem:[%s1227_s4 + $0xd0] sm:$0xff] %vm360_vm0, %v337_v10  ;;  %v242_v22 = vmax.f32 %v144_v12, %v193_v9  ;;  %v292_v23 = vld [vmem:[%s1226_s3 + $0xf0] sm:$0xff]  ;;  %v49_v26 = vld [vmem:[%s1223_s0 + $0x100] sm:$0xff] }
  0x2c   :  { %v339_v21 = vmax.f32 %v241_v11, %v290_v7  ;;  %v146_v24 = vmax.f32 %v48_v19, %v97_v20  ;;  %v195_v25 = vld [vmem:[%s1225_s2 + $0xf8] sm:$0xff]  ;;  %388 = vst.msk [vmem:[%s1227_s4 + $0xd8] sm:$0xff] %vm360_vm0, %v338_v16  ;;  %v243_v27 = vmax.f32 %v145_v18, %v194_v15  ;;  %v98_v29 = vld [vmem:[%s1224_s1 + $0x100] sm:$0xff]  ;;  %v50_v34 = vld [vmem:[%s1223_s0 + $0x108] sm:$0xff] }
  0x2d   :  { %v293_v28 = vld [vmem:[%s1226_s3 + $0xf8] sm:$0xff]  ;;  %v196_v30 = vld [vmem:[%s1225_s2 + $0x100] sm:$0xff]  ;;  %v340_v31 = vmax.f32 %v242_v22, %v291_v17  ;;  %v147_v33 = vmax.f32 %v49_v26, %v98_v29  ;;  %v99_v35 = vld [vmem:[%s1224_s1 + $0x108] sm:$0xff] }
  0x2e   :  { %389 = vst.msk [vmem:[%s1227_s4 + $0xe0] sm:$0xff] %vm360_vm0, %v339_v21  ;;  %v244_v32 = vmax.f32 %v146_v24, %v195_v25  ;;  %v197_v36 = vld [vmem:[%s1225_s2 + $0x108] sm:$0xff]  ;;  %v341_v37 = vmax.f32 %v243_v27, %v292_v23  ;;  %v294_v38 = vld [vmem:[%s1226_s3 + $0x100] sm:$0xff]  ;;  %v148_v39 = vmax.f32 %v50_v34, %v99_v35  ;;  %v51_v40 = vld [vmem:[%s1223_s0 + $0x110] sm:$0xff] }
  0x2f   :  { %v100_v41 = vld [vmem:[%s1224_s1 + $0x110] sm:$0xff]  ;;  %390 = vst.msk [vmem:[%s1227_s4 + $0xe8] sm:$0xff] %vm360_vm0, %v340_v31  ;;  %v245_v43 = vmax.f32 %v147_v33, %v196_v30  ;;  %v295_v44 = vld [vmem:[%s1226_s3 + $0x108] sm:$0xff]  ;;  %v52_v47 = vld [vmem:[%s1223_s0 + $0x118] sm:$0xff] }
  0x30   :  { %v342_v42 = vmax.f32 %v244_v32, %v293_v28  ;;  %v149_v45 = vmax.f32 %v51_v40, %v100_v41  ;;  %v198_v46 = vld [vmem:[%s1225_s2 + $0x110] sm:$0xff]  ;;  %391 = vst.msk [vmem:[%s1227_s4 + $0xf0] sm:$0xff] %vm360_vm0, %v341_v37  ;;  %v246_v48 = vmax.f32 %v148_v39, %v197_v36  ;;  %v101_v50 = vld [vmem:[%s1224_s1 + $0x118] sm:$0xff]  ;;  %v53_v55 = vld [vmem:[%s1223_s0 + $0x120] sm:$0xff] }
  0x31   :  { %v296_v49 = vld [vmem:[%s1226_s3 + $0x110] sm:$0xff]  ;;  %v199_v51 = vld [vmem:[%s1225_s2 + $0x118] sm:$0xff]  ;;  %v343_v52 = vmax.f32 %v245_v43, %v294_v38  ;;  %v150_v54 = vmax.f32 %v52_v47, %v101_v50  ;;  %v102_v56 = vld [vmem:[%s1224_s1 + $0x120] sm:$0xff] }
  0x32   :  { %392 = vst.msk [vmem:[%s1227_s4 + $0xf8] sm:$0xff] %vm360_vm0, %v342_v42  ;;  %v247_v53 = vmax.f32 %v149_v45, %v198_v46  ;;  %v200_v57 = vld [vmem:[%s1225_s2 + $0x120] sm:$0xff]  ;;  %v344_v58 = vmax.f32 %v246_v48, %v295_v44  ;;  %v297_v59 = vld [vmem:[%s1226_s3 + $0x118] sm:$0xff]  ;;  %v151_v60 = vmax.f32 %v53_v55, %v102_v56  ;;  %v54_v61 = vld [vmem:[%s1223_s0 + $0x128] sm:$0xff] }
  0x33   :  { %v103_v62 = vld [vmem:[%s1224_s1 + $0x128] sm:$0xff]  ;;  %393 = vst.msk [vmem:[%s1227_s4 + $0x100] sm:$0xff] %vm360_vm0, %v343_v52  ;;  %v248_v0 = vmax.f32 %v150_v54, %v199_v51  ;;  %v298_v1 = vld [vmem:[%s1226_s3 + $0x120] sm:$0xff]  ;;  %v55_v4 = vld [vmem:[%s1223_s0 + $0x130] sm:$0xff] }
  0x34   :  { %v345_v63 = vmax.f32 %v247_v53, %v296_v49  ;;  %v152_v2 = vmax.f32 %v54_v61, %v103_v62  ;;  %v201_v3 = vld [vmem:[%s1225_s2 + $0x128] sm:$0xff]  ;;  %394 = vst.msk [vmem:[%s1227_s4 + $0x108] sm:$0xff] %vm360_vm0, %v344_v58  ;;  %v249_v5 = vmax.f32 %v151_v60, %v200_v57  ;;  %v104_v7 = vld [vmem:[%s1224_s1 + $0x130] sm:$0xff]  ;;  %v56_v12 = vld [vmem:[%s1223_s0 + $0x138] sm:$0xff] }
  0x35   :  { %v299_v6 = vld [vmem:[%s1226_s3 + $0x128] sm:$0xff]  ;;  %v202_v8 = vld [vmem:[%s1225_s2 + $0x130] sm:$0xff]  ;;  %v346_v9 = vmax.f32 %v248_v0, %v297_v59  ;;  %v153_v11 = vmax.f32 %v55_v4, %v104_v7  ;;  %v105_v13 = vld [vmem:[%s1224_s1 + $0x138] sm:$0xff] }
  0x36   :  { %395 = vst.msk [vmem:[%s1227_s4 + $0x110] sm:$0xff] %vm360_vm0, %v345_v63  ;;  %v250_v10 = vmax.f32 %v152_v2, %v201_v3  ;;  %v203_v14 = vld [vmem:[%s1225_s2 + $0x138] sm:$0xff]  ;;  %v347_v15 = vmax.f32 %v249_v5, %v298_v1  ;;  %v300_v16 = vld [vmem:[%s1226_s3 + $0x130] sm:$0xff]  ;;  %v154_v17 = vmax.f32 %v56_v12, %v105_v13  ;;  %v57_v18 = vld [vmem:[%s1223_s0 + $0x140] sm:$0xff] }
  0x37   :  { %v106_v19 = vld [vmem:[%s1224_s1 + $0x140] sm:$0xff]  ;;  %396 = vst.msk [vmem:[%s1227_s4 + $0x118] sm:$0xff] %vm360_vm0, %v346_v9  ;;  %v251_v21 = vmax.f32 %v153_v11, %v202_v8  ;;  %v301_v22 = vld [vmem:[%s1226_s3 + $0x138] sm:$0xff]  ;;  %v58_v25 = vld [vmem:[%s1223_s0 + $0x148] sm:$0xff] }
  0x38   :  { %v348_v20 = vmax.f32 %v250_v10, %v299_v6  ;;  %v155_v23 = vmax.f32 %v57_v18, %v106_v19  ;;  %v204_v24 = vld [vmem:[%s1225_s2 + $0x140] sm:$0xff]  ;;  %397 = vst.msk [vmem:[%s1227_s4 + $0x120] sm:$0xff] %vm360_vm0, %v347_v15  ;;  %v252_v26 = vmax.f32 %v154_v17, %v203_v14  ;;  %v107_v28 = vld [vmem:[%s1224_s1 + $0x148] sm:$0xff]  ;;  %v59_v33 = vld [vmem:[%s1223_s0 + $0x150] sm:$0xff] }
  0x39   :  { %v302_v27 = vld [vmem:[%s1226_s3 + $0x140] sm:$0xff]  ;;  %v205_v29 = vld [vmem:[%s1225_s2 + $0x148] sm:$0xff]  ;;  %v349_v30 = vmax.f32 %v251_v21, %v300_v16  ;;  %v156_v32 = vmax.f32 %v58_v25, %v107_v28  ;;  %v108_v34 = vld [vmem:[%s1224_s1 + $0x150] sm:$0xff] }
  0x3a   :  { %398 = vst.msk [vmem:[%s1227_s4 + $0x128] sm:$0xff] %vm360_vm0, %v348_v20  ;;  %v253_v31 = vmax.f32 %v155_v23, %v204_v24  ;;  %v206_v35 = vld [vmem:[%s1225_s2 + $0x150] sm:$0xff]  ;;  %v350_v36 = vmax.f32 %v252_v26, %v301_v22  ;;  %v303_v37 = vld [vmem:[%s1226_s3 + $0x148] sm:$0xff]  ;;  %v157_v38 = vmax.f32 %v59_v33, %v108_v34  ;;  %v60_v39 = vld [vmem:[%s1223_s0 + $0x158] sm:$0xff] }
  0x3b   :  { %v109_v40 = vld [vmem:[%s1224_s1 + $0x158] sm:$0xff]  ;;  %399 = vst.msk [vmem:[%s1227_s4 + $0x130] sm:$0xff] %vm360_vm0, %v349_v30  ;;  %v254_v42 = vmax.f32 %v156_v32, %v205_v29  ;;  %v304_v43 = vld [vmem:[%s1226_s3 + $0x150] sm:$0xff]  ;;  %v61_v46 = vld [vmem:[%s1223_s0 + $0x160] sm:$0xff] }
  0x3c   :  { %v351_v41 = vmax.f32 %v253_v31, %v302_v27  ;;  %v158_v44 = vmax.f32 %v60_v39, %v109_v40  ;;  %v207_v45 = vld [vmem:[%s1225_s2 + $0x158] sm:$0xff]  ;;  %400 = vst.msk [vmem:[%s1227_s4 + $0x138] sm:$0xff] %vm360_vm0, %v350_v36  ;;  %v255_v47 = vmax.f32 %v157_v38, %v206_v35  ;;  %v110_v49 = vld [vmem:[%s1224_s1 + $0x160] sm:$0xff]  ;;  %v62_v54 = vld [vmem:[%s1223_s0 + $0x168] sm:$0xff] }
  0x3d   :  { %v305_v48 = vld [vmem:[%s1226_s3 + $0x158] sm:$0xff]  ;;  %v208_v50 = vld [vmem:[%s1225_s2 + $0x160] sm:$0xff]  ;;  %v352_v51 = vmax.f32 %v254_v42, %v303_v37  ;;  %v159_v53 = vmax.f32 %v61_v46, %v110_v49  ;;  %v111_v55 = vld [vmem:[%s1224_s1 + $0x168] sm:$0xff] }
  0x3e   :  { %401 = vst.msk [vmem:[%s1227_s4 + $0x140] sm:$0xff] %vm360_vm0, %v351_v41  ;;  %v256_v52 = vmax.f32 %v158_v44, %v207_v45  ;;  %v209_v56 = vld [vmem:[%s1225_s2 + $0x168] sm:$0xff]  ;;  %v353_v57 = vmax.f32 %v255_v47, %v304_v43  ;;  %v306_v58 = vld [vmem:[%s1226_s3 + $0x160] sm:$0xff]  ;;  %v160_v59 = vmax.f32 %v62_v54, %v111_v55  ;;  %v63_v60 = vld [vmem:[%s1223_s0 + $0x170] sm:$0xff] }
  0x3f   :  { %v112_v61 = vld [vmem:[%s1224_s1 + $0x170] sm:$0xff]  ;;  %402 = vst.msk [vmem:[%s1227_s4 + $0x148] sm:$0xff] %vm360_vm0, %v352_v51  ;;  %v257_v63 = vmax.f32 %v159_v53, %v208_v50  ;;  %v307_v0 = vld [vmem:[%s1226_s3 + $0x168] sm:$0xff]  ;;  %v64_v3 = vld [vmem:[%s1223_s0 + $0x178] sm:$0xff] }
  0x40   :  { %v354_v62 = vmax.f32 %v256_v52, %v305_v48  ;;  %v161_v1 = vmax.f32 %v63_v60, %v112_v61  ;;  %v210_v2 = vld [vmem:[%s1225_s2 + $0x170] sm:$0xff]  ;;  %403 = vst.msk [vmem:[%s1227_s4 + $0x150] sm:$0xff] %vm360_vm0, %v353_v57  ;;  %v258_v4 = vmax.f32 %v160_v59, %v209_v56  ;;  %v113_v6 = vld [vmem:[%s1224_s1 + $0x178] sm:$0xff]  ;;  %v65_v11 = vld [vmem:[%s1223_s0 + $0x180] sm:$0xff] }
  0x41   :  { %v308_v5 = vld [vmem:[%s1226_s3 + $0x170] sm:$0xff]  ;;  %v211_v7 = vld [vmem:[%s1225_s2 + $0x178] sm:$0xff]  ;;  %v355_v8 = vmax.f32 %v257_v63, %v306_v58  ;;  %v162_v10 = vmax.f32 %v64_v3, %v113_v6  ;;  %v114_v12 = vld [vmem:[%s1224_s1 + $0x180] sm:$0xff] }
  0x42   :  { %404 = vst.msk [vmem:[%s1227_s4 + $0x158] sm:$0xff] %vm360_vm0, %v354_v62  ;;  %v259_v9 = vmax.f32 %v161_v1, %v210_v2  ;;  %v212_v13 = vld [vmem:[%s1225_s2 + $0x180] sm:$0xff]  ;;  %v356_v14 = vmax.f32 %v258_v4, %v307_v0  ;;  %v309_v15 = vld [vmem:[%s1226_s3 + $0x178] sm:$0xff]  ;;  %v163_v16 = vmax.f32 %v65_v11, %v114_v12 }
  0x43   :  { %405 = vst.msk [vmem:[%s1227_s4 + $0x160] sm:$0xff] %vm360_vm0, %v355_v8  ;;  %v260_v18 = vmax.f32 %v162_v10, %v211_v7  ;;  %v310_v19 = vld [vmem:[%s1226_s3 + $0x180] sm:$0xff] }
  0x44   :  { %v357_v17 = vmax.f32 %v259_v9, %v308_v5  ;;  %406 = vst.msk [vmem:[%s1227_s4 + $0x168] sm:$0xff] %vm360_vm0, %v356_v14  ;;  %v261_v20 = vmax.f32 %v163_v16, %v212_v13 }
  0x45   :  { %v358_v21 = vmax.f32 %v260_v18, %v309_v15 }
  0x46   :  { %407 = vst.msk [vmem:[%s1227_s4 + $0x170] sm:$0xff] %vm360_vm0, %v357_v17  ;;  %v359_v22 = vmax.f32 %v261_v20, %v310_v19 }
  0x47   :  { %408 = vst.msk [vmem:[%s1227_s4 + $0x178] sm:$0xff] %vm360_vm0, %v358_v21 }
  0x48   :  { %409 = vst.msk [vmem:[%s1227_s4 + $0x180] sm:$0xff] %vm360_vm0, %v359_v22 }

// kernel: sesame_forward.11
= control target key start
LH: loop header
LB: loop body
LE: loop exit
PB: predicated region body
PF: predicated region fallthrough
CT: control target
= control target key end

     0   :  { %v892_v0 = vmov 0.0   ;;  %vm893_vm0 = vmmov 0   ;;  %vm210_vm1 = vcmask 261120   ;;  %v518_v28 = vlaneseq  ;;  %s1376_s1 = inlined_call_operand.vmem [shape: bf16[32,128], index: 1, kind: input, shape index: {}]   ;;  %s1377_s0 = inlined_call_operand.vmem [shape: bf16[392,32], index: 0, kind: input, shape index: {}]   ;;  %s1378_s2 = inlined_call_operand.vmem [shape: f32[1,128], index: 2, kind: input, shape index: {}]   ;;  %s1379_s3 = inlined_call_operand.vmem [shape: f32[392,128], index: 3, kind: output, shape index: {}]  }
   0x1   :  { %755 = vmatprep.subr.bf16.mxu0 %v892_v0  ;;  %v865_v1 = vld [vmem:[%s1376_s1] sm:$0xff]   ;;  %859 = vmatprep.subr.bf16.mxu1 %v892_v0  ;;  %v866_v2 = vld [vmem:[%s1376_s1 + $0x8] sm:$0xff]   ;;  %v870_v6 = vld [vmem:[%s1377_s0 + $0x70] sm:$0xff]  }
   0x2   :  { %759 = vmatprep.mubr.msk.bf16.mxu0 %vm893_vm0, %v892_v0  ;;  %811 = vmatprep.mubr.msk.bf16.mxu1 %vm893_vm0, %v892_v0  ;;  %v867_v3 = vld [vmem:[%s1377_s0] sm:$0xff]   ;;  %v868_v4 = vld [vmem:[%s1377_s0 + $0x68] sm:$0xff]   ;;  %v871_v7 = vld [vmem:[%s1377_s0 + $0x10] sm:$0xff]   ;;  %v1079_v30 = vand.u32 127, %v518_v28 }
   0x3   :  { %756 = vmatpush3.bf16.msra.mxu0 %v865_v1  ;;  %861 = vmatpush3.bf16.msra.mxu1 %v865_v1  ;;  %v869_v5 = vld [vmem:[%s1377_s0 + $0x8] sm:$0xff]   ;;  %v872_v8 = vld [vmem:[%s1377_s0 + $0x78] sm:$0xff]   ;;  %v874_v10 = vld [vmem:[%s1377_s0 + $0x80] sm:$0xff]  }
   0x4   :  { %757 = vmatprep.subr.bf16.mxu0 %v892_v0  ;;  %860 = vmatprep.subr.bf16.mxu1 %v892_v0  ;;  %v873_v9 = vld [vmem:[%s1377_s0 + $0x18] sm:$0xff]   ;;  %v875_v11 = vld [vmem:[%s1377_s0 + $0x20] sm:$0xff]   ;;  %v876_v12 = vld [vmem:[%s1377_s0 + $0x88] sm:$0xff]   ;;  %vm523_vm2 = vcmp.lt.s32.totalorder %v1079_v30, 16 }
   0x5   :  { %v877_v13 = vld [vmem:[%s1377_s0 + $0x28] sm:$0xff]   ;;  %v878_v14 = vld [vmem:[%s1377_s0 + $0x90] sm:$0xff]   ;;  %v880_v16 = vld [vmem:[%s1377_s0 + $0x98] sm:$0xff]  }
   0x6   :  { %v879_v15 = vld [vmem:[%s1377_s0 + $0x30] sm:$0xff]   ;;  %v881_v17 = vld [vmem:[%s1377_s0 + $0x38] sm:$0xff]   ;;  %v882_v18 = vld [vmem:[%s1377_s0 + $0xa0] sm:$0xff]  }
   0x7   :  { %758 = vmatpush3.bf16.msra.mxu0 %v866_v2  ;;  %862 = vmatpush3.bf16.msra.mxu1 %v866_v2  ;;  %v883_v19 = vld [vmem:[%s1377_s0 + $0x40] sm:$0xff]   ;;  %v884_v20 = vld [vmem:[%s1377_s0 + $0xa8] sm:$0xff]   ;;  %v886_v22 = vld [vmem:[%s1377_s0 + $0xb0] sm:$0xff]  }
   0x8   :  { %v885_v21 = vld [vmem:[%s1377_s0 + $0x48] sm:$0xff]   ;;  %v887_v23 = vld [vmem:[%s1377_s0 + $0x50] sm:$0xff]   ;;  %v888_v24 = vld [vmem:[%s1377_s0 + $0xb8] sm:$0xff]  }
   0x9   :  { %v889_v25 = vld [vmem:[%s1377_s0 + $0x58] sm:$0xff]   ;;  %v890_v26 = vld [vmem:[%s1377_s0 + $0xc0] ss:$0 sps:$4 sm:$0xff]  }
   0xa   :  { %760 = vmatmul.mubr.msk.bf16.vlgmr.msra.gmra.mrb[0].mxu0 %vm210_vm1, %v867_v3  ;;  %812 = vmatmul.mubr.msk.bf16.vlgmr.msra.gmra.mrb[0].mxu1 %vm210_vm1, %v868_v4  ;;  %v891_v27 = vld [vmem:[%s1377_s0 + $0x60] sm:$0xff]  }
   0xb   :  { %763 = vmatprep.mubr.msk.bf16.mxu0 %vm893_vm0, %v892_v0  ;;  %815 = vmatprep.mubr.msk.bf16.mxu1 %vm893_vm0, %v892_v0  ;;  %v1077_v29 = vld [vmem:[%s1378_s2] ss:$0 sm:$0xff] }
  0x12   :  { %764 = vmatmul.mubr.msk.bf16.gmra.mrb[4].mxu0 %vm210_vm1, %v869_v5  ;;  %816 = vmatmul.mubr.msk.bf16.gmra.mrb[4].mxu1 %vm210_vm1, %v870_v6 }
  0x13   :  { %767 = vmatprep.mubr.msk.bf16.mxu0 %vm893_vm0, %v892_v0  ;;  %819 = vmatprep.mubr.msk.bf16.mxu1 %vm893_vm0, %v892_v0 }
  0x1a   :  { %768 = vmatmul.mubr.msk.bf16.gmra.mrb[8].mxu0 %vm210_vm1, %v871_v7  ;;  %820 = vmatmul.mubr.msk.bf16.gmra.mrb[8].mxu1 %vm210_vm1, %v872_v8 }
  0x1b   :  { %771 = vmatprep.mubr.msk.bf16.mxu0 %vm893_vm0, %v892_v0  ;;  %823 = vmatprep.mubr.msk.bf16.mxu1 %vm893_vm0, %v892_v0 }
  0x22   :  { %772 = vmatmul.mubr.msk.bf16.gmra.mrb[12].mxu0 %vm210_vm1, %v873_v9  ;;  %824 = vmatmul.mubr.msk.bf16.gmra.mrb[12].mxu1 %vm210_vm1, %v874_v10 }
  0x23   :  { %775 = vmatprep.mubr.msk.bf16.mxu0 %vm893_vm0, %v892_v0  ;;  %827 = vmatprep.mubr.msk.bf16.mxu1 %vm893_vm0, %v892_v0 }
  0x2a   :  { %776 = vmatmul.mubr.msk.bf16.gmra.mrb[16].mxu0 %vm210_vm1, %v875_v11  ;;  %828 = vmatmul.mubr.msk.bf16.gmra.mrb[16].mxu1 %vm210_vm1, %v876_v12 }
  0x2b   :  { %779 = vmatprep.mubr.msk.bf16.mxu0 %vm893_vm0, %v892_v0  ;;  %831 = vmatprep.mubr.msk.bf16.mxu1 %vm893_vm0, %v892_v0 }
  0x32   :  { %780 = vmatmul.mubr.msk.bf16.gmra.mrb[20].mxu0 %vm210_vm1, %v877_v13  ;;  %832 = vmatmul.mubr.msk.bf16.gmra.mrb[20].mxu1 %vm210_vm1, %v878_v14 }
  0x33   :  { %783 = vmatprep.mubr.msk.bf16.mxu0 %vm893_vm0, %v892_v0  ;;  %835 = vmatprep.mubr.msk.bf16.mxu1 %vm893_vm0, %v892_v0 }
  0x3a   :  { %784 = vmatmul.mubr.msk.bf16.gmra.mrb[24].mxu0 %vm210_vm1, %v879_v15  ;;  %836 = vmatmul.mubr.msk.bf16.gmra.mrb[24].mxu1 %vm210_vm1, %v880_v16 }
  0x3b   :  { %787 = vmatprep.mubr.msk.bf16.mxu0 %vm893_vm0, %v892_v0  ;;  %839 = vmatprep.mubr.msk.bf16.mxu1 %vm893_vm0, %v892_v0 }
  0x42   :  { %788 = vmatmul.mubr.msk.bf16.gmra.mrb[28].mxu0 %vm210_vm1, %v881_v17  ;;  %840 = vmatmul.mubr.msk.bf16.gmra.mrb[28].mxu1 %vm210_vm1, %v882_v18 }
  0x43   :  { %791 = vmatprep.mubr.msk.bf16.mxu0 %vm893_vm0, %v892_v0  ;;  %843 = vmatprep.mubr.msk.bf16.mxu1 %vm893_vm0, %v892_v0 }
  0x4a   :  { %792 = vmatmul.mubr.msk.bf16.gmra.mrb[32].mxu0 %vm210_vm1, %v883_v19  ;;  %844 = vmatmul.mubr.msk.bf16.gmra.mrb[32].mxu1 %vm210_vm1, %v884_v20 }
  0x4b   :  { %795 = vmatprep.mubr.msk.bf16.mxu0 %vm893_vm0, %v892_v0  ;;  %847 = vmatprep.mubr.msk.bf16.mxu1 %vm893_vm0, %v892_v0 }
  0x52   :  { %796 = vmatmul.mubr.msk.bf16.gmra.mrb[36].mxu0 %vm210_vm1, %v885_v21  ;;  %848 = vmatmul.mubr.msk.bf16.gmra.mrb[36].mxu1 %vm210_vm1, %v886_v22 }
  0x53   :  { %799 = vmatprep.mubr.msk.bf16.mxu0 %vm893_vm0, %v892_v0  ;;  %851 = vmatprep.mubr.msk.bf16.mxu1 %vm893_vm0, %v892_v0 }
  0x5a   :  { %800 = vmatmul.mubr.msk.bf16.gmra.mrb[40].mxu0 %vm210_vm1, %v887_v23  ;;  %852 = vmatmul.mubr.msk.bf16.gmra.mrb[40].mxu1 %vm210_vm1, %v888_v24 }
  0x5b   :  { %803 = vmatprep.mubr.msk.bf16.mxu0 %vm893_vm0, %v892_v0  ;;  %855 = vmatprep.mubr.msk.bf16.mxu1 %vm893_vm0, %v892_v0 }
  0x62   :  { %804 = vmatmul.mubr.msk.bf16.gmra.mrb[44].mxu0 %vm210_vm1, %v889_v25  ;;  %856 = vmatmul.mubr.msk.bf16.gmra.mrb[44].mxu1 %vm210_vm1, %v890_v26 }
  0x63   :  { %807 = vmatprep.mubr.msk.bf16.mxu0 %vm893_vm0, %v892_v0 }
  0x6a   :  { %808 = vmatmul.mubr.msk.bf16.gmra.mrb[48].mxu0 %vm210_vm1, %v891_v27 }
  0xdd   :  { %v320_v31 = vpop.f32.mrb[0].mxu0  ;;  %v424_v32 = vpop.f32.mrb[0].mxu1 }
  0xde   :  { %v321_v33 = vadd.f32 %v1077_v29, %v320_v31  ;;  %v761_v34 = vpop.f32.mrb[1].mxu0  ;;  %v425_v35 = vadd.f32 %v1077_v29, %v424_v32  ;;  %v813_v36 = vpop.f32.mrb[1].mxu1 }
  0xdf   :  { %v323_v37 = vpop.f32.mrb[2].mxu0  ;;  %v427_v38 = vpop.f32.mrb[2].mxu1 }
  0xe0   :  { %v524_v39 = vmax.f32 %v321_v33, 0.0  ;;  %v324_v40 = vadd.f32 %v1077_v29, %v323_v37  ;;  %v762_v41 = vpop.f32.mrb[3].mxu0  ;;  %v550_v42 = vmax.f32 %v425_v35, 0.0  ;;  %v428_v43 = vadd.f32 %v1077_v29, %v427_v38  ;;  %v814_v44 = vpop.f32.mrb[3].mxu1 }
  0xe2   :  { %v573_v45 = vsel %vm523_vm2, %v524_v39, %v321_v33  ;;  %v525_v46 = vmax.f32 %v324_v40, 0.0  ;;  %v599_v47 = vsel %vm523_vm2, %v550_v42, %v425_v35  ;;  %v551_v48 = vmax.f32 %v428_v43, 0.0 }
  0xe3   :  { %622 = vst [vmem:[%s1379_s3] sm:$0xff] %v573_v45  ;;  %648 = vst [vmem:[%s1379_s3 + $0xd0] sm:$0xff] %v599_v47 }
  0xe4   :  { %v574_v49 = vsel %vm523_vm2, %v525_v46, %v324_v40  ;;  %v600_v50 = vsel %vm523_vm2, %v551_v48, %v428_v43 }
  0xe5   :  { %623 = vst [vmem:[%s1379_s3 + $0x8] sm:$0xff] %v574_v49  ;;  %v328_v51 = vpop.f32.mrb[4].mxu0  ;;  %649 = vst [vmem:[%s1379_s3 + $0xd8] sm:$0xff] %v600_v50  ;;  %v432_v52 = vpop.f32.mrb[4].mxu1 }
  0xe6   :  { %v329_v53 = vadd.f32 %v1077_v29, %v328_v51  ;;  %v765_v54 = vpop.f32.mrb[5].mxu0  ;;  %v433_v55 = vadd.f32 %v1077_v29, %v432_v52  ;;  %v817_v56 = vpop.f32.mrb[5].mxu1 }
  0xe7   :  { %v331_v57 = vpop.f32.mrb[6].mxu0  ;;  %v435_v58 = vpop.f32.mrb[6].mxu1 }
  0xe8   :  { %v526_v59 = vmax.f32 %v329_v53, 0.0  ;;  %v332_v60 = vadd.f32 %v1077_v29, %v331_v57  ;;  %v766_v61 = vpop.f32.mrb[7].mxu0  ;;  %v552_v62 = vmax.f32 %v433_v55, 0.0  ;;  %v436_v63 = vadd.f32 %v1077_v29, %v435_v58  ;;  %v818_v0 = vpop.f32.mrb[7].mxu1 }
  0xea   :  { %v575_v1 = vsel %vm523_vm2, %v526_v59, %v329_v53  ;;  %v527_v2 = vmax.f32 %v332_v60, 0.0  ;;  %v601_v3 = vsel %vm523_vm2, %v552_v62, %v433_v55  ;;  %v553_v4 = vmax.f32 %v436_v63, 0.0 }
  0xeb   :  { %624 = vst [vmem:[%s1379_s3 + $0x10] sm:$0xff] %v575_v1  ;;  %650 = vst [vmem:[%s1379_s3 + $0xe0] sm:$0xff] %v601_v3 }
  0xec   :  { %v576_v5 = vsel %vm523_vm2, %v527_v2, %v332_v60  ;;  %v602_v6 = vsel %vm523_vm2, %v553_v4, %v436_v63 }
  0xed   :  { %625 = vst [vmem:[%s1379_s3 + $0x18] sm:$0xff] %v576_v5  ;;  %v336_v7 = vpop.f32.mrb[8].mxu0  ;;  %651 = vst [vmem:[%s1379_s3 + $0xe8] sm:$0xff] %v602_v6  ;;  %v440_v8 = vpop.f32.mrb[8].mxu1 }
  0xee   :  { %v337_v9 = vadd.f32 %v1077_v29, %v336_v7  ;;  %v769_v10 = vpop.f32.mrb[9].mxu0  ;;  %v441_v11 = vadd.f32 %v1077_v29, %v440_v8  ;;  %v821_v12 = vpop.f32.mrb[9].mxu1 }
  0xef   :  { %v339_v13 = vpop.f32.mrb[10].mxu0  ;;  %v443_v14 = vpop.f32.mrb[10].mxu1 }
  0xf0   :  { %v528_v15 = vmax.f32 %v337_v9, 0.0  ;;  %v340_v16 = vadd.f32 %v1077_v29, %v339_v13  ;;  %v770_v17 = vpop.f32.mrb[11].mxu0  ;;  %v554_v18 = vmax.f32 %v441_v11, 0.0  ;;  %v444_v19 = vadd.f32 %v1077_v29, %v443_v14  ;;  %v822_v20 = vpop.f32.mrb[11].mxu1 }
  0xf2   :  { %v577_v21 = vsel %vm523_vm2, %v528_v15, %v337_v9  ;;  %v529_v22 = vmax.f32 %v340_v16, 0.0  ;;  %v603_v23 = vsel %vm523_vm2, %v554_v18, %v441_v11  ;;  %v555_v24 = vmax.f32 %v444_v19, 0.0 }
  0xf3   :  { %626 = vst [vmem:[%s1379_s3 + $0x20] sm:$0xff] %v577_v21  ;;  %652 = vst [vmem:[%s1379_s3 + $0xf0] sm:$0xff] %v603_v23 }
  0xf4   :  { %v578_v25 = vsel %vm523_vm2, %v529_v22, %v340_v16  ;;  %v604_v26 = vsel %vm523_vm2, %v555_v24, %v444_v19 }
  0xf5   :  { %627 = vst [vmem:[%s1379_s3 + $0x28] sm:$0xff] %v578_v25  ;;  %v344_v27 = vpop.f32.mrb[12].mxu0  ;;  %653 = vst [vmem:[%s1379_s3 + $0xf8] sm:$0xff] %v604_v26  ;;  %v448_v28 = vpop.f32.mrb[12].mxu1 }
  0xf6   :  { %v345_v31 = vadd.f32 %v1077_v29, %v344_v27  ;;  %v773_v32 = vpop.f32.mrb[13].mxu0  ;;  %v449_v33 = vadd.f32 %v1077_v29, %v448_v28  ;;  %v825_v34 = vpop.f32.mrb[13].mxu1 }
  0xf7   :  { %v347_v35 = vpop.f32.mrb[14].mxu0  ;;  %v451_v36 = vpop.f32.mrb[14].mxu1 }
  0xf8   :  { %v530_v37 = vmax.f32 %v345_v31, 0.0  ;;  %v348_v38 = vadd.f32 %v1077_v29, %v347_v35  ;;  %v774_v39 = vpop.f32.mrb[15].mxu0  ;;  %v556_v40 = vmax.f32 %v449_v33, 0.0  ;;  %v452_v41 = vadd.f32 %v1077_v29, %v451_v36  ;;  %v826_v42 = vpop.f32.mrb[15].mxu1 }
  0xfa   :  { %v579_v43 = vsel %vm523_vm2, %v530_v37, %v345_v31  ;;  %v531_v44 = vmax.f32 %v348_v38, 0.0  ;;  %v605_v45 = vsel %vm523_vm2, %v556_v40, %v449_v33  ;;  %v557_v46 = vmax.f32 %v452_v41, 0.0 }
  0xfb   :  { %628 = vst [vmem:[%s1379_s3 + $0x30] sm:$0xff] %v579_v43  ;;  %654 = vst [vmem:[%s1379_s3 + $0x100] sm:$0xff] %v605_v45 }
  0xfc   :  { %v580_v47 = vsel %vm523_vm2, %v531_v44, %v348_v38  ;;  %v606_v48 = vsel %vm523_vm2, %v557_v46, %v452_v41 }
  0xfd   :  { %629 = vst [vmem:[%s1379_s3 + $0x38] sm:$0xff] %v580_v47  ;;  %v352_v49 = vpop.f32.mrb[16].mxu0  ;;  %655 = vst [vmem:[%s1379_s3 + $0x108] sm:$0xff] %v606_v48  ;;  %v456_v50 = vpop.f32.mrb[16].mxu1 }
  0xfe   :  { %v353_v51 = vadd.f32 %v1077_v29, %v352_v49  ;;  %v777_v52 = vpop.f32.mrb[17].mxu0  ;;  %v457_v53 = vadd.f32 %v1077_v29, %v456_v50  ;;  %v829_v54 = vpop.f32.mrb[17].mxu1 }
  0xff   :  { %v355_v55 = vpop.f32.mrb[18].mxu0  ;;  %v459_v56 = vpop.f32.mrb[18].mxu1 }
 0x100   :  { %v532_v57 = vmax.f32 %v353_v51, 0.0  ;;  %v356_v58 = vadd.f32 %v1077_v29, %v355_v55  ;;  %v778_v59 = vpop.f32.mrb[19].mxu0  ;;  %v558_v60 = vmax.f32 %v457_v53, 0.0  ;;  %v460_v61 = vadd.f32 %v1077_v29, %v459_v56  ;;  %v830_v62 = vpop.f32.mrb[19].mxu1 }
 0x102   :  { %v581_v63 = vsel %vm523_vm2, %v532_v57, %v353_v51  ;;  %v533_v0 = vmax.f32 %v356_v58, 0.0  ;;  %v607_v1 = vsel %vm523_vm2, %v558_v60, %v457_v53  ;;  %v559_v2 = vmax.f32 %v460_v61, 0.0 }
 0x103   :  { %630 = vst [vmem:[%s1379_s3 + $0x40] sm:$0xff] %v581_v63  ;;  %656 = vst [vmem:[%s1379_s3 + $0x110] sm:$0xff] %v607_v1 }
 0x104   :  { %v582_v3 = vsel %vm523_vm2, %v533_v0, %v356_v58  ;;  %v608_v4 = vsel %vm523_vm2, %v559_v2, %v460_v61 }
 0x105   :  { %631 = vst [vmem:[%s1379_s3 + $0x48] sm:$0xff] %v582_v3  ;;  %v360_v5 = vpop.f32.mrb[20].mxu0  ;;  %657 = vst [vmem:[%s1379_s3 + $0x118] sm:$0xff] %v608_v4  ;;  %v464_v6 = vpop.f32.mrb[20].mxu1 }
 0x106   :  { %v361_v7 = vadd.f32 %v1077_v29, %v360_v5  ;;  %v781_v8 = vpop.f32.mrb[21].mxu0  ;;  %v465_v9 = vadd.f32 %v1077_v29, %v464_v6  ;;  %v833_v10 = vpop.f32.mrb[21].mxu1 }
 0x107   :  { %v363_v11 = vpop.f32.mrb[22].mxu0  ;;  %v467_v12 = vpop.f32.mrb[22].mxu1 }
 0x108   :  { %v534_v13 = vmax.f32 %v361_v7, 0.0  ;;  %v364_v14 = vadd.f32 %v1077_v29, %v363_v11  ;;  %v782_v15 = vpop.f32.mrb[23].mxu0  ;;  %v560_v16 = vmax.f32 %v465_v9, 0.0  ;;  %v468_v17 = vadd.f32 %v1077_v29, %v467_v12  ;;  %v834_v18 = vpop.f32.mrb[23].mxu1 }
 0x10a   :  { %v583_v19 = vsel %vm523_vm2, %v534_v13, %v361_v7  ;;  %v535_v20 = vmax.f32 %v364_v14, 0.0  ;;  %v609_v21 = vsel %vm523_vm2, %v560_v16, %v465_v9  ;;  %v561_v22 = vmax.f32 %v468_v17, 0.0 }
 0x10b   :  { %632 = vst [vmem:[%s1379_s3 + $0x50] sm:$0xff] %v583_v19  ;;  %658 = vst [vmem:[%s1379_s3 + $0x120] sm:$0xff] %v609_v21 }
 0x10c   :  { %v584_v23 = vsel %vm523_vm2, %v535_v20, %v364_v14  ;;  %v610_v24 = vsel %vm523_vm2, %v561_v22, %v468_v17 }
 0x10d   :  { %633 = vst [vmem:[%s1379_s3 + $0x58] sm:$0xff] %v584_v23  ;;  %v368_v25 = vpop.f32.mrb[24].mxu0  ;;  %659 = vst [vmem:[%s1379_s3 + $0x128] sm:$0xff] %v610_v24  ;;  %v472_v26 = vpop.f32.mrb[24].mxu1 }
 0x10e   :  { %v369_v27 = vadd.f32 %v1077_v29, %v368_v25  ;;  %v785_v28 = vpop.f32.mrb[25].mxu0  ;;  %v473_v31 = vadd.f32 %v1077_v29, %v472_v26  ;;  %v837_v32 = vpop.f32.mrb[25].mxu1 }
 0x10f   :  { %v371_v33 = vpop.f32.mrb[26].mxu0  ;;  %v475_v34 = vpop.f32.mrb[26].mxu1 }
 0x110   :  { %v536_v35 = vmax.f32 %v369_v27, 0.0  ;;  %v372_v36 = vadd.f32 %v1077_v29, %v371_v33  ;;  %v786_v37 = vpop.f32.mrb[27].mxu0  ;;  %v562_v38 = vmax.f32 %v473_v31, 0.0  ;;  %v476_v39 = vadd.f32 %v1077_v29, %v475_v34  ;;  %v838_v40 = vpop.f32.mrb[27].mxu1 }
 0x112   :  { %v585_v41 = vsel %vm523_vm2, %v536_v35, %v369_v27  ;;  %v537_v42 = vmax.f32 %v372_v36, 0.0  ;;  %v611_v43 = vsel %vm523_vm2, %v562_v38, %v473_v31  ;;  %v563_v44 = vmax.f32 %v476_v39, 0.0 }
 0x113   :  { %634 = vst [vmem:[%s1379_s3 + $0x60] sm:$0xff] %v585_v41  ;;  %660 = vst [vmem:[%s1379_s3 + $0x130] sm:$0xff] %v611_v43 }
 0x114   :  { %v586_v45 = vsel %vm523_vm2, %v537_v42, %v372_v36  ;;  %v612_v46 = vsel %vm523_vm2, %v563_v44, %v476_v39 }
 0x115   :  { %635 = vst [vmem:[%s1379_s3 + $0x68] sm:$0xff] %v586_v45  ;;  %v376_v47 = vpop.f32.mrb[28].mxu0  ;;  %661 = vst [vmem:[%s1379_s3 + $0x138] sm:$0xff] %v612_v46  ;;  %v480_v48 = vpop.f32.mrb[28].mxu1 }
 0x116   :  { %v377_v49 = vadd.f32 %v1077_v29, %v376_v47  ;;  %v789_v50 = vpop.f32.mrb[29].mxu0  ;;  %v481_v51 = vadd.f32 %v1077_v29, %v480_v48  ;;  %v841_v52 = vpop.f32.mrb[29].mxu1 }
 0x117   :  { %v379_v53 = vpop.f32.mrb[30].mxu0  ;;  %v483_v54 = vpop.f32.mrb[30].mxu1 }
 0x118   :  { %v538_v55 = vmax.f32 %v377_v49, 0.0  ;;  %v380_v56 = vadd.f32 %v1077_v29, %v379_v53  ;;  %v790_v57 = vpop.f32.mrb[31].mxu0  ;;  %v564_v58 = vmax.f32 %v481_v51, 0.0  ;;  %v484_v59 = vadd.f32 %v1077_v29, %v483_v54  ;;  %v842_v60 = vpop.f32.mrb[31].mxu1 }
 0x11a   :  { %v587_v61 = vsel %vm523_vm2, %v538_v55, %v377_v49  ;;  %v539_v62 = vmax.f32 %v380_v56, 0.0  ;;  %v613_v63 = vsel %vm523_vm2, %v564_v58, %v481_v51  ;;  %v565_v0 = vmax.f32 %v484_v59, 0.0 }
 0x11b   :  { %636 = vst [vmem:[%s1379_s3 + $0x70] sm:$0xff] %v587_v61  ;;  %662 = vst [vmem:[%s1379_s3 + $0x140] sm:$0xff] %v613_v63 }
 0x11c   :  { %v588_v1 = vsel %vm523_vm2, %v539_v62, %v380_v56  ;;  %v614_v2 = vsel %vm523_vm2, %v565_v0, %v484_v59 }
 0x11d   :  { %637 = vst [vmem:[%s1379_s3 + $0x78] sm:$0xff] %v588_v1  ;;  %v384_v3 = vpop.f32.mrb[32].mxu0  ;;  %663 = vst [vmem:[%s1379_s3 + $0x148] sm:$0xff] %v614_v2  ;;  %v488_v4 = vpop.f32.mrb[32].mxu1 }
 0x11e   :  { %v385_v5 = vadd.f32 %v1077_v29, %v384_v3  ;;  %v793_v6 = vpop.f32.mrb[33].mxu0  ;;  %v489_v7 = vadd.f32 %v1077_v29, %v488_v4  ;;  %v845_v8 = vpop.f32.mrb[33].mxu1 }
 0x11f   :  { %v387_v9 = vpop.f32.mrb[34].mxu0  ;;  %v491_v10 = vpop.f32.mrb[34].mxu1 }
 0x120   :  { %v540_v11 = vmax.f32 %v385_v5, 0.0  ;;  %v388_v12 = vadd.f32 %v1077_v29, %v387_v9  ;;  %v794_v13 = vpop.f32.mrb[35].mxu0  ;;  %v566_v14 = vmax.f32 %v489_v7, 0.0  ;;  %v492_v15 = vadd.f32 %v1077_v29, %v491_v10  ;;  %v846_v16 = vpop.f32.mrb[35].mxu1 }
 0x122   :  { %v589_v17 = vsel %vm523_vm2, %v540_v11, %v385_v5  ;;  %v541_v18 = vmax.f32 %v388_v12, 0.0  ;;  %v615_v19 = vsel %vm523_vm2, %v566_v14, %v489_v7  ;;  %v567_v20 = vmax.f32 %v492_v15, 0.0 }
 0x123   :  { %638 = vst [vmem:[%s1379_s3 + $0x80] sm:$0xff] %v589_v17  ;;  %664 = vst [vmem:[%s1379_s3 + $0x150] sm:$0xff] %v615_v19 }
 0x124   :  { %v590_v21 = vsel %vm523_vm2, %v541_v18, %v388_v12  ;;  %v616_v22 = vsel %vm523_vm2, %v567_v20, %v492_v15 }
 0x125   :  { %639 = vst [vmem:[%s1379_s3 + $0x88] sm:$0xff] %v590_v21  ;;  %v392_v23 = vpop.f32.mrb[36].mxu0  ;;  %665 = vst [vmem:[%s1379_s3 + $0x158] sm:$0xff] %v616_v22  ;;  %v496_v24 = vpop.f32.mrb[36].mxu1 }
 0x126   :  { %v393_v25 = vadd.f32 %v1077_v29, %v392_v23  ;;  %v797_v26 = vpop.f32.mrb[37].mxu0  ;;  %v497_v27 = vadd.f32 %v1077_v29, %v496_v24  ;;  %v849_v28 = vpop.f32.mrb[37].mxu1 }
 0x127   :  { %v395_v31 = vpop.f32.mrb[38].mxu0  ;;  %v499_v32 = vpop.f32.mrb[38].mxu1 }
 0x128   :  { %v542_v33 = vmax.f32 %v393_v25, 0.0  ;;  %v396_v34 = vadd.f32 %v1077_v29, %v395_v31  ;;  %v798_v35 = vpop.f32.mrb[39].mxu0  ;;  %v568_v36 = vmax.f32 %v497_v27, 0.0  ;;  %v500_v37 = vadd.f32 %v1077_v29, %v499_v32  ;;  %v850_v38 = vpop.f32.mrb[39].mxu1 }
 0x12a   :  { %v591_v39 = vsel %vm523_vm2, %v542_v33, %v393_v25  ;;  %v543_v40 = vmax.f32 %v396_v34, 0.0  ;;  %v617_v41 = vsel %vm523_vm2, %v568_v36, %v497_v27  ;;  %v569_v42 = vmax.f32 %v500_v37, 0.0 }
 0x12b   :  { %640 = vst [vmem:[%s1379_s3 + $0x90] sm:$0xff] %v591_v39  ;;  %666 = vst [vmem:[%s1379_s3 + $0x160] sm:$0xff] %v617_v41 }
 0x12c   :  { %v592_v43 = vsel %vm523_vm2, %v543_v40, %v396_v34  ;;  %v618_v44 = vsel %vm523_vm2, %v569_v42, %v500_v37 }
 0x12d   :  { %641 = vst [vmem:[%s1379_s3 + $0x98] sm:$0xff] %v592_v43  ;;  %v400_v45 = vpop.f32.mrb[40].mxu0  ;;  %667 = vst [vmem:[%s1379_s3 + $0x168] sm:$0xff] %v618_v44  ;;  %v504_v46 = vpop.f32.mrb[40].mxu1 }
 0x12e   :  { %v401_v47 = vadd.f32 %v1077_v29, %v400_v45  ;;  %v801_v48 = vpop.f32.mrb[41].mxu0  ;;  %v505_v49 = vadd.f32 %v1077_v29, %v504_v46  ;;  %v853_v50 = vpop.f32.mrb[41].mxu1 }
 0x12f   :  { %v403_v51 = vpop.f32.mrb[42].mxu0  ;;  %v507_v52 = vpop.f32.mrb[42].mxu1 }
 0x130   :  { %v544_v53 = vmax.f32 %v401_v47, 0.0  ;;  %v404_v54 = vadd.f32 %v1077_v29, %v403_v51  ;;  %v802_v55 = vpop.f32.mrb[43].mxu0  ;;  %v570_v56 = vmax.f32 %v505_v49, 0.0  ;;  %v508_v57 = vadd.f32 %v1077_v29, %v507_v52  ;;  %v854_v58 = vpop.f32.mrb[43].mxu1 }
 0x132   :  { %v593_v59 = vsel %vm523_vm2, %v544_v53, %v401_v47  ;;  %v545_v60 = vmax.f32 %v404_v54, 0.0  ;;  %v619_v61 = vsel %vm523_vm2, %v570_v56, %v505_v49  ;;  %v571_v62 = vmax.f32 %v508_v57, 0.0 }
 0x133   :  { %642 = vst [vmem:[%s1379_s3 + $0xa0] sm:$0xff] %v593_v59  ;;  %668 = vst [vmem:[%s1379_s3 + $0x170] sm:$0xff] %v619_v61 }
 0x134   :  { %v594_v63 = vsel %vm523_vm2, %v545_v60, %v404_v54  ;;  %v620_v0 = vsel %vm523_vm2, %v571_v62, %v508_v57 }
 0x135   :  { %643 = vst [vmem:[%s1379_s3 + $0xa8] sm:$0xff] %v594_v63  ;;  %v408_v1 = vpop.f32.mrb[44].mxu0  ;;  %669 = vst [vmem:[%s1379_s3 + $0x178] sm:$0xff] %v620_v0  ;;  %v512_v2 = vpop.f32.mrb[44].mxu1 }
 0x136   :  { %v409_v3 = vadd.f32 %v1077_v29, %v408_v1  ;;  %v805_v4 = vpop.f32.mrb[45].mxu0  ;;  %v513_v5 = vadd.f32 %v1077_v29, %v512_v2  ;;  %v857_v6 = vpop.f32.mrb[45].mxu1 }
 0x137   :  { %v411_v7 = vpop.f32.mrb[46].mxu0  ;;  %v515_v8 = vpop.f32.mrb[46].mxu1 }
 0x138   :  { %v546_v9 = vmax.f32 %v409_v3, 0.0  ;;  %v412_v10 = vadd.f32 %v1077_v29, %v411_v7  ;;  %v806_v11 = vpop.f32.mrb[47].mxu0  ;;  %v572_v12 = vmax.f32 %v513_v5, 0.0  ;;  %v858_v13 = vpop.f32.mrb[47].mxu1 }
 0x13a   :  { %v595_v14 = vsel %vm523_vm2, %v546_v9, %v409_v3  ;;  %v547_v15 = vmax.f32 %v412_v10, 0.0  ;;  %v621_v16 = vsel %vm523_vm2, %v572_v12, %v513_v5 }
 0x13b   :  { %644 = vst [vmem:[%s1379_s3 + $0xb0] sm:$0xff] %v595_v14  ;;  %670 = vst [vmem:[%s1379_s3 + $0x180] sm:$0xff] %v621_v16 }
 0x13c   :  { %v596_v17 = vsel %vm523_vm2, %v547_v15, %v412_v10 }
 0x13d   :  { %645 = vst [vmem:[%s1379_s3 + $0xb8] sm:$0xff] %v596_v17  ;;  %v416_v18 = vpop.f32.mrb[48].mxu0 }
 0x13e   :  { %v417_v19 = vadd.f32 %v1077_v29, %v416_v18  ;;  %v809_v20 = vpop.f32.mrb[49].mxu0 }
 0x13f   :  { %v419_v21 = vpop.f32.mrb[50].mxu0 }
 0x140   :  { %v548_v22 = vmax.f32 %v417_v19, 0.0  ;;  %v420_v23 = vadd.f32 %v1077_v29, %v419_v21  ;;  %v810_v24 = vpop.f32.mrb[51].mxu0 }
 0x142   :  { %v597_v25 = vsel %vm523_vm2, %v548_v22, %v417_v19  ;;  %v549_v26 = vmax.f32 %v420_v23, 0.0 }
 0x143   :  { %646 = vst [vmem:[%s1379_s3 + $0xc0] sm:$0xff] %v597_v25 }
 0x144   :  { %v598_v27 = vsel %vm523_vm2, %v549_v26, %v420_v23 }
 0x145   :  { %647 = vst [vmem:[%s1379_s3 + $0xc8] sm:$0xff] %v598_v27 }

// kernel: sesame_forward.12
= control target key start
LH: loop header
LB: loop body
LE: loop exit
PB: predicated region body
PF: predicated region fallthrough
CT: control target
= control target key end

     0   :  { %v962_v0 = vmov 0   ;;  %vm365_vm0 = vcmask 130048   ;;  %s1383_s1 = inlined_call_operand.vmem [shape: bf16[144,128], index: 1, kind: input, shape index: {}]   ;;  %s1384_s0 = inlined_call_operand.vmem [shape: bf16[392,144], index: 0, kind: input, shape index: {}]   ;;  %s1385_s2 = inlined_call_operand.vmem [shape: f32[1,128], index: 2, kind: input, shape index: {}]   ;;  %s1386_s3 = inlined_call_operand.vmem [shape: f32[392,128], index: 3, kind: output, shape index: {}]  }
   0x1   :  { %441 = vmatprep.subr.bf16.mxu0 %v962_v0  ;;  %v879_v1 = vld [vmem:[%s1383_s1] sm:$0xff]   ;;  %860 = vmatprep.subr.bf16.mxu1 %v962_v0  ;;  %v880_v2 = vld [vmem:[%s1383_s1 + $0x8] sm:$0xff]   ;;  %v881_v3 = vld [vmem:[%s1383_s1 + $0x10] sm:$0xff]  }
   0x2   :  { %442 = vmatpush1.bf16.msra.mxu0 %v879_v1  ;;  %869 = vmatpush1.bf16.msra.mxu1 %v879_v1  ;;  %v882_v4 = vld [vmem:[%s1383_s1 + $0x18] sm:$0xff]   ;;  %v890_v5 = vld [vmem:[%s1384_s0 + $0x4] ss:$8 sps:$4 sm:$0xff]   ;;  %v885_v9 = vld [vmem:[%s1383_s1 + $0x30] sm:$0xff]  }
   0x3   :  { %443 = vmatprep.subr.bf16.mxu0 %v962_v0  ;;  %861 = vmatprep.subr.bf16.mxu1 %v962_v0  ;;  %v893_v6 = vld [vmem:[%s1384_s0 + $0xd4] ss:$8 sps:$4 sm:$0xff]   ;;  %v883_v7 = vld [vmem:[%s1383_s1 + $0x20] sm:$0xff]   ;;  %v884_v8 = vld [vmem:[%s1383_s1 + $0x28] sm:$0xff]  }
   0x4   :  { %835 = vmatprep.mubr.msk.bf16.mxu0 %vm365_vm0, %v890_v5  ;;  %848 = vmatprep.mubr.msk.bf16.mxu1 %vm365_vm0, %v893_v6  ;;  %v886_v10 = vld [vmem:[%s1383_s1 + $0x38] sm:$0xff]   ;;  %v887_v11 = vld [vmem:[%s1383_s1 + $0x40] sm:$0xff]  }
   0x5   :  { %v888_v12 = vld [vmem:[%s1384_s0] ss:$8 sps:$4 sm:$0xff]   ;;  %v891_v13 = vld [vmem:[%s1384_s0 + $0xd0] ss:$8 sps:$4 sm:$0xff]   ;;  %v894_v14 = vld [vmem:[%s1384_s0 + $0x14] ss:$8 sps:$4 sm:$0xff]  }
   0x6   :  { %444 = vmatpush1.bf16.msra.mxu0 %v880_v2  ;;  %870 = vmatpush1.bf16.msra.mxu1 %v880_v2  ;;  %v897_v15 = vld [vmem:[%s1384_s0 + $0xe4] ss:$8 sps:$4 sm:$0xff]   ;;  %v896_v16 = vld [vmem:[%s1384_s0 + $0x10] ss:$8 sps:$4 sm:$0xff]   ;;  %v901_v17 = vld [vmem:[%s1384_s0 + $0xe0] ss:$8 sps:$4 sm:$0xff]  }
   0x7   :  { %445 = vmatprep.subr.bf16.mxu0 %v962_v0  ;;  %862 = vmatprep.subr.bf16.mxu1 %v962_v0  ;;  %v899_v18 = vld [vmem:[%s1384_s0 + $0x24] ss:$8 sps:$4 sm:$0xff]   ;;  %v903_v19 = vld [vmem:[%s1384_s0 + $0xf4] ss:$8 sps:$4 sm:$0xff]   ;;  %v902_v20 = vld [vmem:[%s1384_s0 + $0x20] ss:$8 sps:$4 sm:$0xff]  }
   0x8   :  { %v907_v21 = vld [vmem:[%s1384_s0 + $0xf0] ss:$8 sps:$4 sm:$0xff]   ;;  %v905_v22 = vld [vmem:[%s1384_s0 + $0x34] ss:$8 sps:$4 sm:$0xff]   ;;  %v909_v23 = vld [vmem:[%s1384_s0 + $0x104] ss:$8 sps:$4 sm:$0xff]  }
   0x9   :  { %v908_v24 = vld [vmem:[%s1384_s0 + $0x30] ss:$8 sps:$4 sm:$0xff]   ;;  %v913_v25 = vld [vmem:[%s1384_s0 + $0x100] ss:$8 sps:$4 sm:$0xff]   ;;  %v911_v26 = vld [vmem:[%s1384_s0 + $0x44] ss:$8 sps:$4 sm:$0xff]  }
   0xa   :  { %446 = vmatpush1.bf16.msra.mxu0 %v881_v3  ;;  %871 = vmatpush1.bf16.msra.mxu1 %v881_v3  ;;  %v915_v27 = vld [vmem:[%s1384_s0 + $0x114] ss:$8 sps:$4 sm:$0xff]   ;;  %v914_v28 = vld [vmem:[%s1384_s0 + $0x40] ss:$8 sps:$4 sm:$0xff]   ;;  %v919_v29 = vld [vmem:[%s1384_s0 + $0x110] ss:$8 sps:$4 sm:$0xff]  }
   0xb   :  { %447 = vmatprep.subr.bf16.mxu0 %v962_v0  ;;  %863 = vmatprep.subr.bf16.mxu1 %v962_v0  ;;  %v917_v30 = vld [vmem:[%s1384_s0 + $0x54] ss:$8 sps:$4 sm:$0xff]   ;;  %v921_v31 = vld [vmem:[%s1384_s0 + $0x124] ss:$8 sps:$4 sm:$0xff]   ;;  %v920_v32 = vld [vmem:[%s1384_s0 + $0x50] ss:$8 sps:$4 sm:$0xff]  }
   0xc   :  { %v925_v33 = vld [vmem:[%s1384_s0 + $0x120] ss:$8 sps:$4 sm:$0xff]   ;;  %v923_v34 = vld [vmem:[%s1384_s0 + $0x64] ss:$8 sps:$4 sm:$0xff]   ;;  %v927_v35 = vld [vmem:[%s1384_s0 + $0x134] ss:$8 sps:$4 sm:$0xff]  }
   0xd   :  { %v926_v36 = vld [vmem:[%s1384_s0 + $0x60] ss:$8 sps:$4 sm:$0xff]   ;;  %v931_v37 = vld [vmem:[%s1384_s0 + $0x130] ss:$8 sps:$4 sm:$0xff]   ;;  %v929_v38 = vld [vmem:[%s1384_s0 + $0x74] ss:$8 sps:$4 sm:$0xff]  }
   0xe   :  { %448 = vmatpush1.bf16.msra.mxu0 %v882_v4  ;;  %872 = vmatpush1.bf16.msra.mxu1 %v882_v4  ;;  %v933_v39 = vld [vmem:[%s1384_s0 + $0x144] ss:$8 sps:$4 sm:$0xff]   ;;  %v932_v40 = vld [vmem:[%s1384_s0 + $0x70] ss:$8 sps:$4 sm:$0xff]   ;;  %v937_v41 = vld [vmem:[%s1384_s0 + $0x140] ss:$8 sps:$4 sm:$0xff]  }
   0xf   :  { %449 = vmatprep.subr.bf16.mxu0 %v962_v0  ;;  %864 = vmatprep.subr.bf16.mxu1 %v962_v0  ;;  %v935_v42 = vld [vmem:[%s1384_s0 + $0x84] ss:$8 sps:$4 sm:$0xff]   ;;  %v939_v43 = vld [vmem:[%s1384_s0 + $0x154] ss:$8 sps:$4 sm:$0xff]   ;;  %v938_v44 = vld [vmem:[%s1384_s0 + $0x80] ss:$8 sps:$4 sm:$0xff]  }
  0x10   :  { %v943_v45 = vld [vmem:[%s1384_s0 + $0x150] ss:$8 sps:$4 sm:$0xff]   ;;  %v941_v46 = vld [vmem:[%s1384_s0 + $0x94] ss:$8 sps:$4 sm:$0xff]   ;;  %v945_v47 = vld [vmem:[%s1384_s0 + $0x164] ss:$8 sps:$4 sm:$0xff]  }
  0x11   :  { %v944_v48 = vld [vmem:[%s1384_s0 + $0x90] ss:$8 sps:$4 sm:$0xff]   ;;  %v949_v49 = vld [vmem:[%s1384_s0 + $0x160] ss:$8 sps:$4 sm:$0xff]   ;;  %v947_v50 = vld [vmem:[%s1384_s0 + $0xa4] ss:$8 sps:$4 sm:$0xff]  }
  0x12   :  { %450 = vmatpush1.bf16.msra.mxu0 %v883_v7  ;;  %873 = vmatpush1.bf16.msra.mxu1 %v883_v7  ;;  %v951_v51 = vld [vmem:[%s1384_s0 + $0x174] ss:$8 sps:$4 sm:$0xff]   ;;  %v63_v52 = vld [vmem:[%s1384_s0 + $0x180] sm:$0xff]  ;;  %v955_v54 = vld [vmem:[%s1384_s0 + $0x170] ss:$8 sps:$4 sm:$0xff]  }
  0x13   :  { %451 = vmatprep.subr.bf16.mxu0 %v962_v0  ;;  %865 = vmatprep.subr.bf16.mxu1 %v962_v0  ;;  %v950_v53 = vld [vmem:[%s1384_s0 + $0xa0] ss:$8 sps:$4 sm:$0xff]   ;;  %v953_v55 = vld [vmem:[%s1384_s0 + $0xb4] ss:$8 sps:$4 sm:$0xff]   ;;  %v825_v56 = vcombine.high %v63_v52, %v63_v52  ;;  %v956_v57 = vld [vmem:[%s1384_s0 + $0xb0] ss:$8 sps:$4 sm:$0xff]   ;;  %v824_v58 = vcombine.low %v63_v52, %v63_v52 }
  0x14   :  { %v958_v59 = vld [vmem:[%s1384_s0 + $0xc4] ss:$8 sps:$4 sm:$0xff]   ;;  %v961_v60 = vld [vmem:[%s1384_s0 + $0xc0] ss:$8 sps:$4 sm:$0xff]  }
  0x15   :  { %v1185_v61 = vld [vmem:[%s1385_s2] ss:$0 sm:$0xff] }
  0x16   :  { %452 = vmatpush1.bf16.msra.mxu0 %v884_v8  ;;  %874 = vmatpush1.bf16.msra.mxu1 %v884_v8 }
  0x17   :  { %453 = vmatprep.subr.bf16.mxu0 %v962_v0  ;;  %866 = vmatprep.subr.bf16.mxu1 %v962_v0 }
  0x1a   :  { %454 = vmatpush1.bf16.msra.mxu0 %v885_v9  ;;  %875 = vmatpush1.bf16.msra.mxu1 %v885_v9 }
  0x1b   :  { %455 = vmatprep.subr.bf16.mxu0 %v962_v0  ;;  %867 = vmatprep.subr.bf16.mxu1 %v962_v0 }
  0x1e   :  { %456 = vmatpush1.bf16.msra.mxu0 %v886_v10  ;;  %876 = vmatpush1.bf16.msra.mxu1 %v886_v10 }
  0x1f   :  { %457 = vmatprep.subr.bf16.mxu0 %v962_v0  ;;  %868 = vmatprep.subr.bf16.mxu1 %v962_v0 }
  0x22   :  { %458 = vmatpush1.bf16.msra.mxu0 %v887_v11  ;;  %877 = vmatpush1.bf16.msra.mxu1 %v887_v11 }
  0x25   :  { %474 = vmatmul.mubr.bf16.vlgmr.msra.gmra.mrb[0].mxu0 %v888_v12  ;;  %578 = vmatmul.mubr.bf16.vlgmr.msra.gmra.mrb[0].mxu1 %v891_v13 }
  0x26   :  { %836 = vmatprep.mubr.msk.bf16.mxu0 %vm365_vm0, %v894_v14  ;;  %849 = vmatprep.mubr.msk.bf16.mxu1 %vm365_vm0, %v897_v15 }
  0x2d   :  { %482 = vmatmul.mubr.bf16.gmra.mrb[4].mxu0 %v896_v16  ;;  %586 = vmatmul.mubr.bf16.gmra.mrb[4].mxu1 %v901_v17 }
  0x2e   :  { %837 = vmatprep.mubr.msk.bf16.mxu0 %vm365_vm0, %v899_v18  ;;  %850 = vmatprep.mubr.msk.bf16.mxu1 %vm365_vm0, %v903_v19 }
  0x35   :  { %490 = vmatmul.mubr.bf16.gmra.mrb[8].mxu0 %v902_v20  ;;  %594 = vmatmul.mubr.bf16.gmra.mrb[8].mxu1 %v907_v21 }
  0x36   :  { %838 = vmatprep.mubr.msk.bf16.mxu0 %vm365_vm0, %v905_v22  ;;  %851 = vmatprep.mubr.msk.bf16.mxu1 %vm365_vm0, %v909_v23 }
  0x3d   :  { %498 = vmatmul.mubr.bf16.gmra.mrb[12].mxu0 %v908_v24  ;;  %602 = vmatmul.mubr.bf16.gmra.mrb[12].mxu1 %v913_v25 }
  0x3e   :  { %839 = vmatprep.mubr.msk.bf16.mxu0 %vm365_vm0, %v911_v26  ;;  %852 = vmatprep.mubr.msk.bf16.mxu1 %vm365_vm0, %v915_v27 }
  0x45   :  { %506 = vmatmul.mubr.bf16.gmra.mrb[16].mxu0 %v914_v28  ;;  %610 = vmatmul.mubr.bf16.gmra.mrb[16].mxu1 %v919_v29 }
  0x46   :  { %840 = vmatprep.mubr.msk.bf16.mxu0 %vm365_vm0, %v917_v30  ;;  %853 = vmatprep.mubr.msk.bf16.mxu1 %vm365_vm0, %v921_v31 }
  0x4d   :  { %514 = vmatmul.mubr.bf16.gmra.mrb[20].mxu0 %v920_v32  ;;  %618 = vmatmul.mubr.bf16.gmra.mrb[20].mxu1 %v925_v33 }
  0x4e   :  { %841 = vmatprep.mubr.msk.bf16.mxu0 %vm365_vm0, %v923_v34  ;;  %854 = vmatprep.mubr.msk.bf16.mxu1 %vm365_vm0, %v927_v35 }
  0x55   :  { %522 = vmatmul.mubr.bf16.gmra.mrb[24].mxu0 %v926_v36  ;;  %626 = vmatmul.mubr.bf16.gmra.mrb[24].mxu1 %v931_v37 }
  0x56   :  { %842 = vmatprep.mubr.msk.bf16.mxu0 %vm365_vm0, %v929_v38  ;;  %855 = vmatprep.mubr.msk.bf16.mxu1 %vm365_vm0, %v933_v39 }
  0x5d   :  { %530 = vmatmul.mubr.bf16.gmra.mrb[28].mxu0 %v932_v40  ;;  %634 = vmatmul.mubr.bf16.gmra.mrb[28].mxu1 %v937_v41 }
  0x5e   :  { %843 = vmatprep.mubr.msk.bf16.mxu0 %vm365_vm0, %v935_v42  ;;  %856 = vmatprep.mubr.msk.bf16.mxu1 %vm365_vm0, %v939_v43 }
  0x65   :  { %538 = vmatmul.mubr.bf16.gmra.mrb[32].mxu0 %v938_v44  ;;  %642 = vmatmul.mubr.bf16.gmra.mrb[32].mxu1 %v943_v45 }
  0x66   :  { %844 = vmatprep.mubr.msk.bf16.mxu0 %vm365_vm0, %v941_v46  ;;  %857 = vmatprep.mubr.msk.bf16.mxu1 %vm365_vm0, %v945_v47 }
  0x6d   :  { %546 = vmatmul.mubr.bf16.gmra.mrb[36].mxu0 %v944_v48  ;;  %650 = vmatmul.mubr.bf16.gmra.mrb[36].mxu1 %v949_v49 }
  0x6e   :  { %845 = vmatprep.mubr.msk.bf16.mxu0 %vm365_vm0, %v947_v50  ;;  %858 = vmatprep.mubr.msk.bf16.mxu1 %vm365_vm0, %v951_v51 }
  0x75   :  { %554 = vmatmul.mubr.bf16.gmra.mrb[40].mxu0 %v950_v53  ;;  %658 = vmatmul.mubr.bf16.gmra.mrb[40].mxu1 %v955_v54 }
  0x76   :  { %846 = vmatprep.mubr.msk.bf16.mxu0 %vm365_vm0, %v953_v55  ;;  %859 = vmatprep.mubr.msk.bf16.mxu1 %vm365_vm0, %v825_v56 }
  0x7d   :  { %562 = vmatmul.mubr.bf16.gmra.mrb[44].mxu0 %v956_v57  ;;  %666 = vmatmul.mubr.bf16.gmra.mrb[44].mxu1 %v824_v58 }
  0x7e   :  { %847 = vmatprep.mubr.msk.bf16.mxu0 %vm365_vm0, %v958_v59 }
  0x85   :  { %570 = vmatmul.mubr.bf16.gmra.mrb[48].mxu0 %v961_v60 }
  0xf8   :  { %v475_v62 = vpop.f32.mrb[0].mxu0  ;;  %v579_v63 = vpop.f32.mrb[0].mxu1 }
  0xf9   :  { %v476_v0 = vadd.f32 %v1185_v61, %v475_v62  ;;  %v477_v1 = vpop.f32.mrb[1].mxu0  ;;  %v580_v2 = vadd.f32 %v1185_v61, %v579_v63  ;;  %v581_v3 = vpop.f32.mrb[1].mxu1 }
  0xfa   :  { %v478_v4 = vpop.f32.mrb[2].mxu0  ;;  %v582_v5 = vpop.f32.mrb[2].mxu1 }
  0xfb   :  { %v673_v6 = vmax.f32 %v476_v0, 0.0  ;;  %v479_v7 = vadd.f32 %v1185_v61, %v478_v4  ;;  %v480_v8 = vpop.f32.mrb[3].mxu0  ;;  %v699_v9 = vmax.f32 %v580_v2, 0.0  ;;  %v583_v10 = vadd.f32 %v1185_v61, %v582_v5  ;;  %v584_v11 = vpop.f32.mrb[3].mxu1 }
  0xfd   :  { %722 = vst [vmem:[%s1386_s3] sm:$0xff] %v673_v6  ;;  %v674_v12 = vmax.f32 %v479_v7, 0.0  ;;  %748 = vst [vmem:[%s1386_s3 + $0xd0] sm:$0xff] %v699_v9  ;;  %v700_v13 = vmax.f32 %v583_v10, 0.0 }
  0xff   :  { %723 = vst [vmem:[%s1386_s3 + $0x8] sm:$0xff] %v674_v12  ;;  %749 = vst [vmem:[%s1386_s3 + $0xd8] sm:$0xff] %v700_v13 }
 0x100   :  { %v483_v14 = vpop.f32.mrb[4].mxu0  ;;  %v587_v15 = vpop.f32.mrb[4].mxu1 }
 0x101   :  { %v484_v16 = vadd.f32 %v1185_v61, %v483_v14  ;;  %v485_v17 = vpop.f32.mrb[5].mxu0  ;;  %v588_v18 = vadd.f32 %v1185_v61, %v587_v15  ;;  %v589_v19 = vpop.f32.mrb[5].mxu1 }
 0x102   :  { %v486_v20 = vpop.f32.mrb[6].mxu0  ;;  %v590_v21 = vpop.f32.mrb[6].mxu1 }
 0x103   :  { %v675_v22 = vmax.f32 %v484_v16, 0.0  ;;  %v487_v23 = vadd.f32 %v1185_v61, %v486_v20  ;;  %v488_v24 = vpop.f32.mrb[7].mxu0  ;;  %v701_v25 = vmax.f32 %v588_v18, 0.0  ;;  %v591_v26 = vadd.f32 %v1185_v61, %v590_v21  ;;  %v592_v27 = vpop.f32.mrb[7].mxu1 }
 0x105   :  { %724 = vst [vmem:[%s1386_s3 + $0x10] sm:$0xff] %v675_v22  ;;  %v676_v28 = vmax.f32 %v487_v23, 0.0  ;;  %750 = vst [vmem:[%s1386_s3 + $0xe0] sm:$0xff] %v701_v25  ;;  %v702_v29 = vmax.f32 %v591_v26, 0.0 }
 0x107   :  { %725 = vst [vmem:[%s1386_s3 + $0x18] sm:$0xff] %v676_v28  ;;  %751 = vst [vmem:[%s1386_s3 + $0xe8] sm:$0xff] %v702_v29 }
 0x108   :  { %v491_v30 = vpop.f32.mrb[8].mxu0  ;;  %v595_v31 = vpop.f32.mrb[8].mxu1 }
 0x109   :  { %v492_v32 = vadd.f32 %v1185_v61, %v491_v30  ;;  %v493_v33 = vpop.f32.mrb[9].mxu0  ;;  %v596_v34 = vadd.f32 %v1185_v61, %v595_v31  ;;  %v597_v35 = vpop.f32.mrb[9].mxu1 }
 0x10a   :  { %v494_v36 = vpop.f32.mrb[10].mxu0  ;;  %v598_v37 = vpop.f32.mrb[10].mxu1 }
 0x10b   :  { %v677_v38 = vmax.f32 %v492_v32, 0.0  ;;  %v495_v39 = vadd.f32 %v1185_v61, %v494_v36  ;;  %v496_v40 = vpop.f32.mrb[11].mxu0  ;;  %v703_v41 = vmax.f32 %v596_v34, 0.0  ;;  %v599_v42 = vadd.f32 %v1185_v61, %v598_v37  ;;  %v600_v43 = vpop.f32.mrb[11].mxu1 }
 0x10d   :  { %726 = vst [vmem:[%s1386_s3 + $0x20] sm:$0xff] %v677_v38  ;;  %v678_v44 = vmax.f32 %v495_v39, 0.0  ;;  %752 = vst [vmem:[%s1386_s3 + $0xf0] sm:$0xff] %v703_v41  ;;  %v704_v45 = vmax.f32 %v599_v42, 0.0 }
 0x10f   :  { %727 = vst [vmem:[%s1386_s3 + $0x28] sm:$0xff] %v678_v44  ;;  %753 = vst [vmem:[%s1386_s3 + $0xf8] sm:$0xff] %v704_v45 }
 0x110   :  { %v499_v46 = vpop.f32.mrb[12].mxu0  ;;  %v603_v47 = vpop.f32.mrb[12].mxu1 }
 0x111   :  { %v500_v48 = vadd.f32 %v1185_v61, %v499_v46  ;;  %v501_v49 = vpop.f32.mrb[13].mxu0  ;;  %v604_v50 = vadd.f32 %v1185_v61, %v603_v47  ;;  %v605_v51 = vpop.f32.mrb[13].mxu1 }
 0x112   :  { %v502_v52 = vpop.f32.mrb[14].mxu0  ;;  %v606_v53 = vpop.f32.mrb[14].mxu1 }
 0x113   :  { %v679_v54 = vmax.f32 %v500_v48, 0.0  ;;  %v503_v55 = vadd.f32 %v1185_v61, %v502_v52  ;;  %v504_v56 = vpop.f32.mrb[15].mxu0  ;;  %v705_v57 = vmax.f32 %v604_v50, 0.0  ;;  %v607_v58 = vadd.f32 %v1185_v61, %v606_v53  ;;  %v608_v59 = vpop.f32.mrb[15].mxu1 }
 0x115   :  { %728 = vst [vmem:[%s1386_s3 + $0x30] sm:$0xff] %v679_v54  ;;  %v680_v60 = vmax.f32 %v503_v55, 0.0  ;;  %754 = vst [vmem:[%s1386_s3 + $0x100] sm:$0xff] %v705_v57  ;;  %v706_v62 = vmax.f32 %v607_v58, 0.0 }
 0x117   :  { %729 = vst [vmem:[%s1386_s3 + $0x38] sm:$0xff] %v680_v60  ;;  %755 = vst [vmem:[%s1386_s3 + $0x108] sm:$0xff] %v706_v62 }
 0x118   :  { %v507_v63 = vpop.f32.mrb[16].mxu0  ;;  %v611_v0 = vpop.f32.mrb[16].mxu1 }
 0x119   :  { %v508_v1 = vadd.f32 %v1185_v61, %v507_v63  ;;  %v509_v2 = vpop.f32.mrb[17].mxu0  ;;  %v612_v3 = vadd.f32 %v1185_v61, %v611_v0  ;;  %v613_v4 = vpop.f32.mrb[17].mxu1 }
 0x11a   :  { %v510_v5 = vpop.f32.mrb[18].mxu0  ;;  %v614_v6 = vpop.f32.mrb[18].mxu1 }
 0x11b   :  { %v681_v7 = vmax.f32 %v508_v1, 0.0  ;;  %v511_v8 = vadd.f32 %v1185_v61, %v510_v5  ;;  %v512_v9 = vpop.f32.mrb[19].mxu0  ;;  %v707_v10 = vmax.f32 %v612_v3, 0.0  ;;  %v615_v11 = vadd.f32 %v1185_v61, %v614_v6  ;;  %v616_v12 = vpop.f32.mrb[19].mxu1 }
 0x11d   :  { %730 = vst [vmem:[%s1386_s3 + $0x40] sm:$0xff] %v681_v7  ;;  %v682_v13 = vmax.f32 %v511_v8, 0.0  ;;  %756 = vst [vmem:[%s1386_s3 + $0x110] sm:$0xff] %v707_v10  ;;  %v708_v14 = vmax.f32 %v615_v11, 0.0 }
 0x11f   :  { %731 = vst [vmem:[%s1386_s3 + $0x48] sm:$0xff] %v682_v13  ;;  %757 = vst [vmem:[%s1386_s3 + $0x118] sm:$0xff] %v708_v14 }
 0x120   :  { %v515_v15 = vpop.f32.mrb[20].mxu0  ;;  %v619_v16 = vpop.f32.mrb[20].mxu1 }
 0x121   :  { %v516_v17 = vadd.f32 %v1185_v61, %v515_v15  ;;  %v517_v18 = vpop.f32.mrb[21].mxu0  ;;  %v620_v19 = vadd.f32 %v1185_v61, %v619_v16  ;;  %v621_v20 = vpop.f32.mrb[21].mxu1 }
 0x122   :  { %v518_v21 = vpop.f32.mrb[22].mxu0  ;;  %v622_v22 = vpop.f32.mrb[22].mxu1 }
 0x123   :  { %v683_v23 = vmax.f32 %v516_v17, 0.0  ;;  %v519_v24 = vadd.f32 %v1185_v61, %v518_v21  ;;  %v520_v25 = vpop.f32.mrb[23].mxu0  ;;  %v709_v26 = vmax.f32 %v620_v19, 0.0  ;;  %v623_v27 = vadd.f32 %v1185_v61, %v622_v22  ;;  %v624_v28 = vpop.f32.mrb[23].mxu1 }
 0x125   :  { %732 = vst [vmem:[%s1386_s3 + $0x50] sm:$0xff] %v683_v23  ;;  %v684_v29 = vmax.f32 %v519_v24, 0.0  ;;  %758 = vst [vmem:[%s1386_s3 + $0x120] sm:$0xff] %v709_v26  ;;  %v710_v30 = vmax.f32 %v623_v27, 0.0 }
 0x127   :  { %733 = vst [vmem:[%s1386_s3 + $0x58] sm:$0xff] %v684_v29  ;;  %759 = vst [vmem:[%s1386_s3 + $0x128] sm:$0xff] %v710_v30 }
 0x128   :  { %v523_v31 = vpop.f32.mrb[24].mxu0  ;;  %v627_v32 = vpop.f32.mrb[24].mxu1 }
 0x129   :  { %v524_v33 = vadd.f32 %v1185_v61, %v523_v31  ;;  %v525_v34 = vpop.f32.mrb[25].mxu0  ;;  %v628_v35 = vadd.f32 %v1185_v61, %v627_v32  ;;  %v629_v36 = vpop.f32.mrb[25].mxu1 }
 0x12a   :  { %v526_v37 = vpop.f32.mrb[26].mxu0  ;;  %v630_v38 = vpop.f32.mrb[26].mxu1 }
 0x12b   :  { %v685_v39 = vmax.f32 %v524_v33, 0.0  ;;  %v527_v40 = vadd.f32 %v1185_v61, %v526_v37  ;;  %v528_v41 = vpop.f32.mrb[27].mxu0  ;;  %v711_v42 = vmax.f32 %v628_v35, 0.0  ;;  %v631_v43 = vadd.f32 %v1185_v61, %v630_v38  ;;  %v632_v44 = vpop.f32.mrb[27].mxu1 }
 0x12d   :  { %734 = vst [vmem:[%s1386_s3 + $0x60] sm:$0xff] %v685_v39  ;;  %v686_v45 = vmax.f32 %v527_v40, 0.0  ;;  %760 = vst [vmem:[%s1386_s3 + $0x130] sm:$0xff] %v711_v42  ;;  %v712_v46 = vmax.f32 %v631_v43, 0.0 }
 0x12f   :  { %735 = vst [vmem:[%s1386_s3 + $0x68] sm:$0xff] %v686_v45  ;;  %761 = vst [vmem:[%s1386_s3 + $0x138] sm:$0xff] %v712_v46 }
 0x130   :  { %v531_v47 = vpop.f32.mrb[28].mxu0  ;;  %v635_v48 = vpop.f32.mrb[28].mxu1 }
 0x131   :  { %v532_v49 = vadd.f32 %v1185_v61, %v531_v47  ;;  %v533_v50 = vpop.f32.mrb[29].mxu0  ;;  %v636_v51 = vadd.f32 %v1185_v61, %v635_v48  ;;  %v637_v52 = vpop.f32.mrb[29].mxu1 }
 0x132   :  { %v534_v53 = vpop.f32.mrb[30].mxu0  ;;  %v638_v54 = vpop.f32.mrb[30].mxu1 }
 0x133   :  { %v687_v55 = vmax.f32 %v532_v49, 0.0  ;;  %v535_v56 = vadd.f32 %v1185_v61, %v534_v53  ;;  %v536_v57 = vpop.f32.mrb[31].mxu0  ;;  %v713_v58 = vmax.f32 %v636_v51, 0.0  ;;  %v639_v59 = vadd.f32 %v1185_v61, %v638_v54  ;;  %v640_v60 = vpop.f32.mrb[31].mxu1 }
 0x135   :  { %736 = vst [vmem:[%s1386_s3 + $0x70] sm:$0xff] %v687_v55  ;;  %v688_v62 = vmax.f32 %v535_v56, 0.0  ;;  %762 = vst [vmem:[%s1386_s3 + $0x140] sm:$0xff] %v713_v58  ;;  %v714_v63 = vmax.f32 %v639_v59, 0.0 }
 0x137   :  { %737 = vst [vmem:[%s1386_s3 + $0x78] sm:$0xff] %v688_v62  ;;  %763 = vst [vmem:[%s1386_s3 + $0x148] sm:$0xff] %v714_v63 }
 0x138   :  { %v539_v0 = vpop.f32.mrb[32].mxu0  ;;  %v643_v1 = vpop.f32.mrb[32].mxu1 }
 0x139   :  { %v540_v2 = vadd.f32 %v1185_v61, %v539_v0  ;;  %v541_v3 = vpop.f32.mrb[33].mxu0  ;;  %v644_v4 = vadd.f32 %v1185_v61, %v643_v1  ;;  %v645_v5 = vpop.f32.mrb[33].mxu1 }
 0x13a   :  { %v542_v6 = vpop.f32.mrb[34].mxu0  ;;  %v646_v7 = vpop.f32.mrb[34].mxu1 }
 0x13b   :  { %v689_v8 = vmax.f32 %v540_v2, 0.0  ;;  %v543_v9 = vadd.f32 %v1185_v61, %v542_v6  ;;  %v544_v10 = vpop.f32.mrb[35].mxu0  ;;  %v715_v11 = vmax.f32 %v644_v4, 0.0  ;;  %v647_v12 = vadd.f32 %v1185_v61, %v646_v7  ;;  %v648_v13 = vpop.f32.mrb[35].mxu1 }
 0x13d   :  { %738 = vst [vmem:[%s1386_s3 + $0x80] sm:$0xff] %v689_v8  ;;  %v690_v14 = vmax.f32 %v543_v9, 0.0  ;;  %764 = vst [vmem:[%s1386_s3 + $0x150] sm:$0xff] %v715_v11  ;;  %v716_v15 = vmax.f32 %v647_v12, 0.0 }
 0x13f   :  { %739 = vst [vmem:[%s1386_s3 + $0x88] sm:$0xff] %v690_v14  ;;  %765 = vst [vmem:[%s1386_s3 + $0x158] sm:$0xff] %v716_v15 }
 0x140   :  { %v547_v16 = vpop.f32.mrb[36].mxu0  ;;  %v651_v17 = vpop.f32.mrb[36].mxu1 }
 0x141   :  { %v548_v18 = vadd.f32 %v1185_v61, %v547_v16  ;;  %v549_v19 = vpop.f32.mrb[37].mxu0  ;;  %v652_v20 = vadd.f32 %v1185_v61, %v651_v17  ;;  %v653_v21 = vpop.f32.mrb[37].mxu1 }
 0x142   :  { %v550_v22 = vpop.f32.mrb[38].mxu0  ;;  %v654_v23 = vpop.f32.mrb[38].mxu1 }
 0x143   :  { %v691_v24 = vmax.f32 %v548_v18, 0.0  ;;  %v551_v25 = vadd.f32 %v1185_v61, %v550_v22  ;;  %v552_v26 = vpop.f32.mrb[39].mxu0  ;;  %v717_v27 = vmax.f32 %v652_v20, 0.0  ;;  %v655_v28 = vadd.f32 %v1185_v61, %v654_v23  ;;  %v656_v29 = vpop.f32.mrb[39].mxu1 }
 0x145   :  { %740 = vst [vmem:[%s1386_s3 + $0x90] sm:$0xff] %v691_v24  ;;  %v692_v30 = vmax.f32 %v551_v25, 0.0  ;;  %766 = vst [vmem:[%s1386_s3 + $0x160] sm:$0xff] %v717_v27  ;;  %v718_v31 = vmax.f32 %v655_v28, 0.0 }
 0x147   :  { %741 = vst [vmem:[%s1386_s3 + $0x98] sm:$0xff] %v692_v30  ;;  %767 = vst [vmem:[%s1386_s3 + $0x168] sm:$0xff] %v718_v31 }
 0x148   :  { %v555_v32 = vpop.f32.mrb[40].mxu0  ;;  %v659_v33 = vpop.f32.mrb[40].mxu1 }
 0x149   :  { %v556_v34 = vadd.f32 %v1185_v61, %v555_v32  ;;  %v557_v35 = vpop.f32.mrb[41].mxu0  ;;  %v660_v36 = vadd.f32 %v1185_v61, %v659_v33  ;;  %v661_v37 = vpop.f32.mrb[41].mxu1 }
 0x14a   :  { %v558_v38 = vpop.f32.mrb[42].mxu0  ;;  %v662_v39 = vpop.f32.mrb[42].mxu1 }
 0x14b   :  { %v693_v40 = vmax.f32 %v556_v34, 0.0  ;;  %v559_v41 = vadd.f32 %v1185_v61, %v558_v38  ;;  %v560_v42 = vpop.f32.mrb[43].mxu0  ;;  %v719_v43 = vmax.f32 %v660_v36, 0.0  ;;  %v663_v44 = vadd.f32 %v1185_v61, %v662_v39  ;;  %v664_v45 = vpop.f32.mrb[43].mxu1 }
 0x14d   :  { %742 = vst [vmem:[%s1386_s3 + $0xa0] sm:$0xff] %v693_v40  ;;  %v694_v46 = vmax.f32 %v559_v41, 0.0  ;;  %768 = vst [vmem:[%s1386_s3 + $0x170] sm:$0xff] %v719_v43  ;;  %v720_v47 = vmax.f32 %v663_v44, 0.0 }
 0x14f   :  { %743 = vst [vmem:[%s1386_s3 + $0xa8] sm:$0xff] %v694_v46  ;;  %769 = vst [vmem:[%s1386_s3 + $0x178] sm:$0xff] %v720_v47 }
 0x150   :  { %v563_v48 = vpop.f32.mrb[44].mxu0  ;;  %v667_v49 = vpop.f32.mrb[44].mxu1 }
 0x151   :  { %v564_v50 = vadd.f32 %v1185_v61, %v563_v48  ;;  %v565_v51 = vpop.f32.mrb[45].mxu0  ;;  %v668_v52 = vadd.f32 %v1185_v61, %v667_v49  ;;  %v669_v53 = vpop.f32.mrb[45].mxu1 }
 0x152   :  { %v566_v54 = vpop.f32.mrb[46].mxu0  ;;  %v670_v55 = vpop.f32.mrb[46].mxu1 }
 0x153   :  { %v695_v56 = vmax.f32 %v564_v50, 0.0  ;;  %v567_v57 = vadd.f32 %v1185_v61, %v566_v54  ;;  %v568_v58 = vpop.f32.mrb[47].mxu0  ;;  %v721_v59 = vmax.f32 %v668_v52, 0.0  ;;  %v671_v60 = vpop.f32.mrb[47].mxu1 }
 0x155   :  { %744 = vst [vmem:[%s1386_s3 + $0xb0] sm:$0xff] %v695_v56  ;;  %v696_v62 = vmax.f32 %v567_v57, 0.0  ;;  %770 = vst [vmem:[%s1386_s3 + $0x180] sm:$0xff] %v721_v59 }
 0x157   :  { %745 = vst [vmem:[%s1386_s3 + $0xb8] sm:$0xff] %v696_v62 }
 0x158   :  { %v571_v63 = vpop.f32.mrb[48].mxu0 }
 0x159   :  { %v572_v0 = vadd.f32 %v1185_v61, %v571_v63  ;;  %v573_v1 = vpop.f32.mrb[49].mxu0 }
 0x15a   :  { %v574_v2 = vpop.f32.mrb[50].mxu0 }
 0x15b   :  { %v697_v3 = vmax.f32 %v572_v0, 0.0  ;;  %v575_v4 = vadd.f32 %v1185_v61, %v574_v2  ;;  %v576_v5 = vpop.f32.mrb[51].mxu0 }
 0x15d   :  { %746 = vst [vmem:[%s1386_s3 + $0xc0] sm:$0xff] %v697_v3  ;;  %v698_v6 = vmax.f32 %v575_v4, 0.0 }
 0x15f   :  { %747 = vst [vmem:[%s1386_s3 + $0xc8] sm:$0xff] %v698_v6 }

// kernel: sesame_forward.13
= control target key start
LH: loop header
LB: loop body
LE: loop exit
PB: predicated region body
PF: predicated region fallthrough
CT: control target
= control target key end

     0   :  { %v1010_v0 = vmov 0   ;;  %vm393_vm0 = vcmask 588800   ;;  %vm469_vm1 = vcmask 1043456   ;;  %s1469_s1 = inlined_call_operand.vmem [shape: bf16[200,128], index: 1, kind: input, shape index: {}]   ;;  %s1470_s0 = inlined_call_operand.vmem [shape: bf16[392,200], index: 0, kind: input, shape index: {}]   ;;  %s1471_s2 = inlined_call_operand.vmem [shape: f32[1,128], index: 2, kind: input, shape index: {}]   ;;  %s1472_s3 = inlined_call_operand.vmem [shape: f32[392,128], index: 3, kind: output, shape index: {}]  }
   0x1   :  { %473 = vmatprep.subr.bf16.mxu0 %v1010_v0  ;;  %v923_v1 = vld [vmem:[%s1469_s1] sm:$0xff]   ;;  %896 = vmatprep.subr.bf16.mxu1 %v1010_v0  ;;  %v924_v2 = vld [vmem:[%s1469_s1 + $0x8] sm:$0xff]   ;;  %v925_v3 = vld [vmem:[%s1469_s1 + $0x10] sm:$0xff]  }
   0x2   :  { %474 = vmatpush1.bf16.msra.mxu0 %v923_v1  ;;  %909 = vmatpush1.bf16.msra.mxu1 %v923_v1  ;;  %v926_v4 = vld [vmem:[%s1469_s1 + $0x18] sm:$0xff]   ;;  %v938_v5 = vld [vmem:[%s1470_s0 + $0x4] ss:$8 sps:$4 sm:$0xff]   ;;  %v929_v9 = vld [vmem:[%s1469_s1 + $0x30] sm:$0xff]  }
   0x3   :  { %475 = vmatprep.subr.bf16.mxu0 %v1010_v0  ;;  %897 = vmatprep.subr.bf16.mxu1 %v1010_v0  ;;  %v927_v6 = vld [vmem:[%s1469_s1 + $0x20] sm:$0xff]   ;;  %v941_v7 = vld [vmem:[%s1470_s0 + $0xd4] ss:$8 sps:$4 sm:$0xff]   ;;  %v928_v8 = vld [vmem:[%s1469_s1 + $0x28] sm:$0xff]  }
   0x4   :  { %871 = vmatprep.mubr.msk.bf16.mxu0 %vm393_vm0, %v938_v5  ;;  %884 = vmatprep.mubr.msk.bf16.mxu1 %vm393_vm0, %v941_v7  ;;  %v930_v10 = vld [vmem:[%s1469_s1 + $0x38] sm:$0xff]   ;;  %v931_v11 = vld [vmem:[%s1469_s1 + $0x40] sm:$0xff]   ;;  %v932_v12 = vld [vmem:[%s1469_s1 + $0x48] sm:$0xff]  }
   0x5   :  { %v933_v13 = vld [vmem:[%s1469_s1 + $0x50] sm:$0xff]   ;;  %v934_v14 = vld [vmem:[%s1469_s1 + $0x58] sm:$0xff]   ;;  %v935_v15 = vld [vmem:[%s1469_s1 + $0x60] ss:$0 sps:$4 sm:$0xff]  }
   0x6   :  { %476 = vmatpush1.bf16.msra.mxu0 %v924_v2  ;;  %910 = vmatpush1.bf16.msra.mxu1 %v924_v2  ;;  %v471_v16 = vsel %vm469_vm1, %v935_v15, 0  ;;  %v936_v17 = vld [vmem:[%s1470_s0] ss:$8 sps:$4 sm:$0xff]   ;;  %v939_v18 = vld [vmem:[%s1470_s0 + $0xd0] ss:$8 sps:$4 sm:$0xff]  }
   0x7   :  { %477 = vmatprep.subr.bf16.mxu0 %v1010_v0  ;;  %898 = vmatprep.subr.bf16.mxu1 %v1010_v0  ;;  %v942_v19 = vld [vmem:[%s1470_s0 + $0x14] ss:$8 sps:$4 sm:$0xff]   ;;  %v945_v20 = vld [vmem:[%s1470_s0 + $0xe4] ss:$8 sps:$4 sm:$0xff]   ;;  %v944_v21 = vld [vmem:[%s1470_s0 + $0x10] ss:$8 sps:$4 sm:$0xff]  }
   0x8   :  { %v949_v22 = vld [vmem:[%s1470_s0 + $0xe0] ss:$8 sps:$4 sm:$0xff]   ;;  %v947_v23 = vld [vmem:[%s1470_s0 + $0x24] ss:$8 sps:$4 sm:$0xff]   ;;  %v951_v24 = vld [vmem:[%s1470_s0 + $0xf4] ss:$8 sps:$4 sm:$0xff]  }
   0x9   :  { %v950_v25 = vld [vmem:[%s1470_s0 + $0x20] ss:$8 sps:$4 sm:$0xff]   ;;  %v955_v26 = vld [vmem:[%s1470_s0 + $0xf0] ss:$8 sps:$4 sm:$0xff]   ;;  %v953_v27 = vld [vmem:[%s1470_s0 + $0x34] ss:$8 sps:$4 sm:$0xff]  }
   0xa   :  { %478 = vmatpush1.bf16.msra.mxu0 %v925_v3  ;;  %911 = vmatpush1.bf16.msra.mxu1 %v925_v3  ;;  %v957_v28 = vld [vmem:[%s1470_s0 + $0x104] ss:$8 sps:$4 sm:$0xff]   ;;  %v956_v29 = vld [vmem:[%s1470_s0 + $0x30] ss:$8 sps:$4 sm:$0xff]   ;;  %v961_v30 = vld [vmem:[%s1470_s0 + $0x100] ss:$8 sps:$4 sm:$0xff]  }
   0xb   :  { %479 = vmatprep.subr.bf16.mxu0 %v1010_v0  ;;  %899 = vmatprep.subr.bf16.mxu1 %v1010_v0  ;;  %v959_v31 = vld [vmem:[%s1470_s0 + $0x44] ss:$8 sps:$4 sm:$0xff]   ;;  %v963_v32 = vld [vmem:[%s1470_s0 + $0x114] ss:$8 sps:$4 sm:$0xff]   ;;  %v962_v33 = vld [vmem:[%s1470_s0 + $0x40] ss:$8 sps:$4 sm:$0xff]  }
   0xc   :  { %v967_v34 = vld [vmem:[%s1470_s0 + $0x110] ss:$8 sps:$4 sm:$0xff]   ;;  %v965_v35 = vld [vmem:[%s1470_s0 + $0x54] ss:$8 sps:$4 sm:$0xff]   ;;  %v969_v36 = vld [vmem:[%s1470_s0 + $0x124] ss:$8 sps:$4 sm:$0xff]  }
   0xd   :  { %v968_v37 = vld [vmem:[%s1470_s0 + $0x50] ss:$8 sps:$4 sm:$0xff]   ;;  %v973_v38 = vld [vmem:[%s1470_s0 + $0x120] ss:$8 sps:$4 sm:$0xff]   ;;  %v971_v39 = vld [vmem:[%s1470_s0 + $0x64] ss:$8 sps:$4 sm:$0xff]  }
   0xe   :  { %480 = vmatpush1.bf16.msra.mxu0 %v926_v4  ;;  %912 = vmatpush1.bf16.msra.mxu1 %v926_v4  ;;  %v975_v40 = vld [vmem:[%s1470_s0 + $0x134] ss:$8 sps:$4 sm:$0xff]   ;;  %v974_v41 = vld [vmem:[%s1470_s0 + $0x60] ss:$8 sps:$4 sm:$0xff]   ;;  %v979_v42 = vld [vmem:[%s1470_s0 + $0x130] ss:$8 sps:$4 sm:$0xff]  }
   0xf   :  { %481 = vmatprep.subr.bf16.mxu0 %v1010_v0  ;;  %900 = vmatprep.subr.bf16.mxu1 %v1010_v0  ;;  %v977_v43 = vld [vmem:[%s1470_s0 + $0x74] ss:$8 sps:$4 sm:$0xff]   ;;  %v981_v44 = vld [vmem:[%s1470_s0 + $0x144] ss:$8 sps:$4 sm:$0xff]   ;;  %v980_v45 = vld [vmem:[%s1470_s0 + $0x70] ss:$8 sps:$4 sm:$0xff]  }
  0x10   :  { %v985_v46 = vld [vmem:[%s1470_s0 + $0x140] ss:$8 sps:$4 sm:$0xff]   ;;  %v983_v47 = vld [vmem:[%s1470_s0 + $0x84] ss:$8 sps:$4 sm:$0xff]   ;;  %v987_v48 = vld [vmem:[%s1470_s0 + $0x154] ss:$8 sps:$4 sm:$0xff]  }
  0x11   :  { %v986_v49 = vld [vmem:[%s1470_s0 + $0x80] ss:$8 sps:$4 sm:$0xff]   ;;  %v991_v50 = vld [vmem:[%s1470_s0 + $0x150] ss:$8 sps:$4 sm:$0xff]   ;;  %v989_v51 = vld [vmem:[%s1470_s0 + $0x94] ss:$8 sps:$4 sm:$0xff]  }
  0x12   :  { %482 = vmatpush1.bf16.msra.mxu0 %v927_v6  ;;  %913 = vmatpush1.bf16.msra.mxu1 %v927_v6  ;;  %v993_v52 = vld [vmem:[%s1470_s0 + $0x164] ss:$8 sps:$4 sm:$0xff]   ;;  %v992_v53 = vld [vmem:[%s1470_s0 + $0x90] ss:$8 sps:$4 sm:$0xff]   ;;  %v997_v54 = vld [vmem:[%s1470_s0 + $0x160] ss:$8 sps:$4 sm:$0xff]  }
  0x13   :  { %483 = vmatprep.subr.bf16.mxu0 %v1010_v0  ;;  %901 = vmatprep.subr.bf16.mxu1 %v1010_v0  ;;  %v995_v55 = vld [vmem:[%s1470_s0 + $0xa4] ss:$8 sps:$4 sm:$0xff]   ;;  %v999_v56 = vld [vmem:[%s1470_s0 + $0x174] ss:$8 sps:$4 sm:$0xff]   ;;  %v998_v58 = vld [vmem:[%s1470_s0 + $0xa0] ss:$8 sps:$4 sm:$0xff]  }
  0x14   :  { %v63_v57 = vld [vmem:[%s1470_s0 + $0x180] sm:$0xff]  ;;  %v1003_v59 = vld [vmem:[%s1470_s0 + $0x170] ss:$8 sps:$4 sm:$0xff]   ;;  %v1001_v60 = vld [vmem:[%s1470_s0 + $0xb4] ss:$8 sps:$4 sm:$0xff]  }
  0x15   :  { %v857_v61 = vcombine.high %v63_v57, %v63_v57  ;;  %v1004_v62 = vld [vmem:[%s1470_s0 + $0xb0] ss:$8 sps:$4 sm:$0xff]   ;;  %v856_v63 = vcombine.low %v63_v57, %v63_v57  ;;  %v1009_v1 = vld [vmem:[%s1470_s0 + $0xc0] ss:$8 sps:$4 sm:$0xff]  }
  0x16   :  { %484 = vmatpush1.bf16.msra.mxu0 %v928_v8  ;;  %914 = vmatpush1.bf16.msra.mxu1 %v928_v8  ;;  %v1271_v2 = vld [vmem:[%s1471_s2] ss:$0 sm:$0xff] }
  0x17   :  { %485 = vmatprep.subr.bf16.mxu0 %v1010_v0  ;;  %902 = vmatprep.subr.bf16.mxu1 %v1010_v0 }
  0x1a   :  { %486 = vmatpush1.bf16.msra.mxu0 %v929_v9  ;;  %915 = vmatpush1.bf16.msra.mxu1 %v929_v9 }
  0x1b   :  { %487 = vmatprep.subr.bf16.mxu0 %v1010_v0  ;;  %903 = vmatprep.subr.bf16.mxu1 %v1010_v0 }
  0x1e   :  { %488 = vmatpush1.bf16.msra.mxu0 %v930_v10  ;;  %916 = vmatpush1.bf16.msra.mxu1 %v930_v10 }
  0x1f   :  { %489 = vmatprep.subr.bf16.mxu0 %v1010_v0  ;;  %904 = vmatprep.subr.bf16.mxu1 %v1010_v0 }
  0x22   :  { %490 = vmatpush1.bf16.msra.mxu0 %v931_v11  ;;  %917 = vmatpush1.bf16.msra.mxu1 %v931_v11 }
  0x23   :  { %491 = vmatprep.subr.bf16.mxu0 %v1010_v0  ;;  %905 = vmatprep.subr.bf16.mxu1 %v1010_v0 }
  0x26   :  { %492 = vmatpush1.bf16.msra.mxu0 %v932_v12  ;;  %918 = vmatpush1.bf16.msra.mxu1 %v932_v12 }
  0x27   :  { %493 = vmatprep.subr.bf16.mxu0 %v1010_v0  ;;  %906 = vmatprep.subr.bf16.mxu1 %v1010_v0 }
  0x2a   :  { %494 = vmatpush1.bf16.msra.mxu0 %v933_v13  ;;  %919 = vmatpush1.bf16.msra.mxu1 %v933_v13 }
  0x2b   :  { %495 = vmatprep.subr.bf16.mxu0 %v1010_v0  ;;  %907 = vmatprep.subr.bf16.mxu1 %v1010_v0 }
  0x2e   :  { %496 = vmatpush1.bf16.msra.mxu0 %v934_v14  ;;  %920 = vmatpush1.bf16.msra.mxu1 %v934_v14 }
  0x2f   :  { %497 = vmatprep.subr.bf16.mxu0 %v1010_v0  ;;  %908 = vmatprep.subr.bf16.mxu1 %v1010_v0  ;;  %v1006_v0 = vld [vmem:[%s1470_s0 + $0xc4] ss:$8 sps:$4 sm:$0xff]  }
  0x32   :  { %498 = vmatpush1.bf16.msra.mxu0 %v471_v16  ;;  %921 = vmatpush1.bf16.msra.mxu1 %v471_v16 }
  0x35   :  { %506 = vmatmul.mubr.bf16.vlgmr.msra.gmra.mrb[0].mxu0 %v936_v17  ;;  %610 = vmatmul.mubr.bf16.vlgmr.msra.gmra.mrb[0].mxu1 %v939_v18 }
  0x36   :  { %872 = vmatprep.mubr.msk.bf16.mxu0 %vm393_vm0, %v942_v19  ;;  %885 = vmatprep.mubr.msk.bf16.mxu1 %vm393_vm0, %v945_v20 }
  0x3d   :  { %514 = vmatmul.mubr.bf16.gmra.mrb[4].mxu0 %v944_v21  ;;  %618 = vmatmul.mubr.bf16.gmra.mrb[4].mxu1 %v949_v22 }
  0x3e   :  { %873 = vmatprep.mubr.msk.bf16.mxu0 %vm393_vm0, %v947_v23  ;;  %886 = vmatprep.mubr.msk.bf16.mxu1 %vm393_vm0, %v951_v24 }
  0x45   :  { %522 = vmatmul.mubr.bf16.gmra.mrb[8].mxu0 %v950_v25  ;;  %626 = vmatmul.mubr.bf16.gmra.mrb[8].mxu1 %v955_v26 }
  0x46   :  { %874 = vmatprep.mubr.msk.bf16.mxu0 %vm393_vm0, %v953_v27  ;;  %887 = vmatprep.mubr.msk.bf16.mxu1 %vm393_vm0, %v957_v28 }
  0x4d   :  { %530 = vmatmul.mubr.bf16.gmra.mrb[12].mxu0 %v956_v29  ;;  %634 = vmatmul.mubr.bf16.gmra.mrb[12].mxu1 %v961_v30 }
  0x4e   :  { %875 = vmatprep.mubr.msk.bf16.mxu0 %vm393_vm0, %v959_v31  ;;  %888 = vmatprep.mubr.msk.bf16.mxu1 %vm393_vm0, %v963_v32 }
  0x55   :  { %538 = vmatmul.mubr.bf16.gmra.mrb[16].mxu0 %v962_v33  ;;  %642 = vmatmul.mubr.bf16.gmra.mrb[16].mxu1 %v967_v34 }
  0x56   :  { %876 = vmatprep.mubr.msk.bf16.mxu0 %vm393_vm0, %v965_v35  ;;  %889 = vmatprep.mubr.msk.bf16.mxu1 %vm393_vm0, %v969_v36 }
  0x5d   :  { %546 = vmatmul.mubr.bf16.gmra.mrb[20].mxu0 %v968_v37  ;;  %650 = vmatmul.mubr.bf16.gmra.mrb[20].mxu1 %v973_v38 }
  0x5e   :  { %877 = vmatprep.mubr.msk.bf16.mxu0 %vm393_vm0, %v971_v39  ;;  %890 = vmatprep.mubr.msk.bf16.mxu1 %vm393_vm0, %v975_v40 }
  0x65   :  { %554 = vmatmul.mubr.bf16.gmra.mrb[24].mxu0 %v974_v41  ;;  %658 = vmatmul.mubr.bf16.gmra.mrb[24].mxu1 %v979_v42 }
  0x66   :  { %878 = vmatprep.mubr.msk.bf16.mxu0 %vm393_vm0, %v977_v43  ;;  %891 = vmatprep.mubr.msk.bf16.mxu1 %vm393_vm0, %v981_v44 }
  0x6d   :  { %562 = vmatmul.mubr.bf16.gmra.mrb[28].mxu0 %v980_v45  ;;  %666 = vmatmul.mubr.bf16.gmra.mrb[28].mxu1 %v985_v46 }
  0x6e   :  { %879 = vmatprep.mubr.msk.bf16.mxu0 %vm393_vm0, %v983_v47  ;;  %892 = vmatprep.mubr.msk.bf16.mxu1 %vm393_vm0, %v987_v48 }
  0x75   :  { %570 = vmatmul.mubr.bf16.gmra.mrb[32].mxu0 %v986_v49  ;;  %674 = vmatmul.mubr.bf16.gmra.mrb[32].mxu1 %v991_v50 }
  0x76   :  { %880 = vmatprep.mubr.msk.bf16.mxu0 %vm393_vm0, %v989_v51  ;;  %893 = vmatprep.mubr.msk.bf16.mxu1 %vm393_vm0, %v993_v52 }
  0x7d   :  { %578 = vmatmul.mubr.bf16.gmra.mrb[36].mxu0 %v992_v53  ;;  %682 = vmatmul.mubr.bf16.gmra.mrb[36].mxu1 %v997_v54 }
  0x7e   :  { %881 = vmatprep.mubr.msk.bf16.mxu0 %vm393_vm0, %v995_v55  ;;  %894 = vmatprep.mubr.msk.bf16.mxu1 %vm393_vm0, %v999_v56 }
  0x85   :  { %586 = vmatmul.mubr.bf16.gmra.mrb[40].mxu0 %v998_v58  ;;  %690 = vmatmul.mubr.bf16.gmra.mrb[40].mxu1 %v1003_v59 }
  0x86   :  { %882 = vmatprep.mubr.msk.bf16.mxu0 %vm393_vm0, %v1001_v60  ;;  %895 = vmatprep.mubr.msk.bf16.mxu1 %vm393_vm0, %v857_v61 }
  0x8d   :  { %594 = vmatmul.mubr.bf16.gmra.mrb[44].mxu0 %v1004_v62  ;;  %698 = vmatmul.mubr.bf16.gmra.mrb[44].mxu1 %v856_v63 }
  0x8e   :  { %883 = vmatprep.mubr.msk.bf16.mxu0 %vm393_vm0, %v1006_v0 }
  0x95   :  { %602 = vmatmul.mubr.bf16.gmra.mrb[48].mxu0 %v1009_v1 }
 0x108   :  { %v507_v3 = vpop.f32.mrb[0].mxu0  ;;  %v611_v4 = vpop.f32.mrb[0].mxu1 }
 0x109   :  { %v508_v5 = vadd.f32 %v1271_v2, %v507_v3  ;;  %v509_v6 = vpop.f32.mrb[1].mxu0  ;;  %v612_v7 = vadd.f32 %v1271_v2, %v611_v4  ;;  %v613_v8 = vpop.f32.mrb[1].mxu1 }
 0x10a   :  { %v510_v9 = vpop.f32.mrb[2].mxu0  ;;  %v614_v10 = vpop.f32.mrb[2].mxu1 }
 0x10b   :  { %v705_v11 = vmax.f32 %v508_v5, 0.0  ;;  %v511_v12 = vadd.f32 %v1271_v2, %v510_v9  ;;  %v512_v13 = vpop.f32.mrb[3].mxu0  ;;  %v731_v14 = vmax.f32 %v612_v7, 0.0  ;;  %v615_v15 = vadd.f32 %v1271_v2, %v614_v10  ;;  %v616_v16 = vpop.f32.mrb[3].mxu1 }
 0x10d   :  { %754 = vst [vmem:[%s1472_s3] sm:$0xff] %v705_v11  ;;  %v706_v17 = vmax.f32 %v511_v12, 0.0  ;;  %780 = vst [vmem:[%s1472_s3 + $0xd0] sm:$0xff] %v731_v14  ;;  %v732_v18 = vmax.f32 %v615_v15, 0.0 }
 0x10f   :  { %755 = vst [vmem:[%s1472_s3 + $0x8] sm:$0xff] %v706_v17  ;;  %781 = vst [vmem:[%s1472_s3 + $0xd8] sm:$0xff] %v732_v18 }
 0x110   :  { %v515_v19 = vpop.f32.mrb[4].mxu0  ;;  %v619_v20 = vpop.f32.mrb[4].mxu1 }
 0x111   :  { %v516_v21 = vadd.f32 %v1271_v2, %v515_v19  ;;  %v517_v22 = vpop.f32.mrb[5].mxu0  ;;  %v620_v23 = vadd.f32 %v1271_v2, %v619_v20  ;;  %v621_v24 = vpop.f32.mrb[5].mxu1 }
 0x112   :  { %v518_v25 = vpop.f32.mrb[6].mxu0  ;;  %v622_v26 = vpop.f32.mrb[6].mxu1 }
 0x113   :  { %v707_v27 = vmax.f32 %v516_v21, 0.0  ;;  %v519_v28 = vadd.f32 %v1271_v2, %v518_v25  ;;  %v520_v29 = vpop.f32.mrb[7].mxu0  ;;  %v733_v30 = vmax.f32 %v620_v23, 0.0  ;;  %v623_v31 = vadd.f32 %v1271_v2, %v622_v26  ;;  %v624_v32 = vpop.f32.mrb[7].mxu1 }
 0x115   :  { %756 = vst [vmem:[%s1472_s3 + $0x10] sm:$0xff] %v707_v27  ;;  %v708_v33 = vmax.f32 %v519_v28, 0.0  ;;  %782 = vst [vmem:[%s1472_s3 + $0xe0] sm:$0xff] %v733_v30  ;;  %v734_v34 = vmax.f32 %v623_v31, 0.0 }
 0x117   :  { %757 = vst [vmem:[%s1472_s3 + $0x18] sm:$0xff] %v708_v33  ;;  %783 = vst [vmem:[%s1472_s3 + $0xe8] sm:$0xff] %v734_v34 }
 0x118   :  { %v523_v35 = vpop.f32.mrb[8].mxu0  ;;  %v627_v36 = vpop.f32.mrb[8].mxu1 }
 0x119   :  { %v524_v37 = vadd.f32 %v1271_v2, %v523_v35  ;;  %v525_v38 = vpop.f32.mrb[9].mxu0  ;;  %v628_v39 = vadd.f32 %v1271_v2, %v627_v36  ;;  %v629_v40 = vpop.f32.mrb[9].mxu1 }
 0x11a   :  { %v526_v41 = vpop.f32.mrb[10].mxu0  ;;  %v630_v42 = vpop.f32.mrb[10].mxu1 }
 0x11b   :  { %v709_v43 = vmax.f32 %v524_v37, 0.0  ;;  %v527_v44 = vadd.f32 %v1271_v2, %v526_v41  ;;  %v528_v45 = vpop.f32.mrb[11].mxu0  ;;  %v735_v46 = vmax.f32 %v628_v39, 0.0  ;;  %v631_v47 = vadd.f32 %v1271_v2, %v630_v42  ;;  %v632_v48 = vpop.f32.mrb[11].mxu1 }
 0x11d   :  { %758 = vst [vmem:[%s1472_s3 + $0x20] sm:$0xff] %v709_v43  ;;  %v710_v49 = vmax.f32 %v527_v44, 0.0  ;;  %784 = vst [vmem:[%s1472_s3 + $0xf0] sm:$0xff] %v735_v46  ;;  %v736_v50 = vmax.f32 %v631_v47, 0.0 }
 0x11f   :  { %759 = vst [vmem:[%s1472_s3 + $0x28] sm:$0xff] %v710_v49  ;;  %785 = vst [vmem:[%s1472_s3 + $0xf8] sm:$0xff] %v736_v50 }
 0x120   :  { %v531_v51 = vpop.f32.mrb[12].mxu0  ;;  %v635_v52 = vpop.f32.mrb[12].mxu1 }
 0x121   :  { %v532_v53 = vadd.f32 %v1271_v2, %v531_v51  ;;  %v533_v54 = vpop.f32.mrb[13].mxu0  ;;  %v636_v55 = vadd.f32 %v1271_v2, %v635_v52  ;;  %v637_v56 = vpop.f32.mrb[13].mxu1 }
 0x122   :  { %v534_v57 = vpop.f32.mrb[14].mxu0  ;;  %v638_v58 = vpop.f32.mrb[14].mxu1 }
 0x123   :  { %v711_v59 = vmax.f32 %v532_v53, 0.0  ;;  %v535_v60 = vadd.f32 %v1271_v2, %v534_v57  ;;  %v536_v61 = vpop.f32.mrb[15].mxu0  ;;  %v737_v62 = vmax.f32 %v636_v55, 0.0  ;;  %v639_v63 = vadd.f32 %v1271_v2, %v638_v58  ;;  %v640_v0 = vpop.f32.mrb[15].mxu1 }
 0x125   :  { %760 = vst [vmem:[%s1472_s3 + $0x30] sm:$0xff] %v711_v59  ;;  %v712_v1 = vmax.f32 %v535_v60, 0.0  ;;  %786 = vst [vmem:[%s1472_s3 + $0x100] sm:$0xff] %v737_v62  ;;  %v738_v3 = vmax.f32 %v639_v63, 0.0 }
 0x127   :  { %761 = vst [vmem:[%s1472_s3 + $0x38] sm:$0xff] %v712_v1  ;;  %787 = vst [vmem:[%s1472_s3 + $0x108] sm:$0xff] %v738_v3 }
 0x128   :  { %v539_v4 = vpop.f32.mrb[16].mxu0  ;;  %v643_v5 = vpop.f32.mrb[16].mxu1 }
 0x129   :  { %v540_v6 = vadd.f32 %v1271_v2, %v539_v4  ;;  %v541_v7 = vpop.f32.mrb[17].mxu0  ;;  %v644_v8 = vadd.f32 %v1271_v2, %v643_v5  ;;  %v645_v9 = vpop.f32.mrb[17].mxu1 }
 0x12a   :  { %v542_v10 = vpop.f32.mrb[18].mxu0  ;;  %v646_v11 = vpop.f32.mrb[18].mxu1 }
 0x12b   :  { %v713_v12 = vmax.f32 %v540_v6, 0.0  ;;  %v543_v13 = vadd.f32 %v1271_v2, %v542_v10  ;;  %v544_v14 = vpop.f32.mrb[19].mxu0  ;;  %v739_v15 = vmax.f32 %v644_v8, 0.0  ;;  %v647_v16 = vadd.f32 %v1271_v2, %v646_v11  ;;  %v648_v17 = vpop.f32.mrb[19].mxu1 }
 0x12d   :  { %762 = vst [vmem:[%s1472_s3 + $0x40] sm:$0xff] %v713_v12  ;;  %v714_v18 = vmax.f32 %v543_v13, 0.0  ;;  %788 = vst [vmem:[%s1472_s3 + $0x110] sm:$0xff] %v739_v15  ;;  %v740_v19 = vmax.f32 %v647_v16, 0.0 }
 0x12f   :  { %763 = vst [vmem:[%s1472_s3 + $0x48] sm:$0xff] %v714_v18  ;;  %789 = vst [vmem:[%s1472_s3 + $0x118] sm:$0xff] %v740_v19 }
 0x130   :  { %v547_v20 = vpop.f32.mrb[20].mxu0  ;;  %v651_v21 = vpop.f32.mrb[20].mxu1 }
 0x131   :  { %v548_v22 = vadd.f32 %v1271_v2, %v547_v20  ;;  %v549_v23 = vpop.f32.mrb[21].mxu0  ;;  %v652_v24 = vadd.f32 %v1271_v2, %v651_v21  ;;  %v653_v25 = vpop.f32.mrb[21].mxu1 }
 0x132   :  { %v550_v26 = vpop.f32.mrb[22].mxu0  ;;  %v654_v27 = vpop.f32.mrb[22].mxu1 }
 0x133   :  { %v715_v28 = vmax.f32 %v548_v22, 0.0  ;;  %v551_v29 = vadd.f32 %v1271_v2, %v550_v26  ;;  %v552_v30 = vpop.f32.mrb[23].mxu0  ;;  %v741_v31 = vmax.f32 %v652_v24, 0.0  ;;  %v655_v32 = vadd.f32 %v1271_v2, %v654_v27  ;;  %v656_v33 = vpop.f32.mrb[23].mxu1 }
 0x135   :  { %764 = vst [vmem:[%s1472_s3 + $0x50] sm:$0xff] %v715_v28  ;;  %v716_v34 = vmax.f32 %v551_v29, 0.0  ;;  %790 = vst [vmem:[%s1472_s3 + $0x120] sm:$0xff] %v741_v31  ;;  %v742_v35 = vmax.f32 %v655_v32, 0.0 }
 0x137   :  { %765 = vst [vmem:[%s1472_s3 + $0x58] sm:$0xff] %v716_v34  ;;  %791 = vst [vmem:[%s1472_s3 + $0x128] sm:$0xff] %v742_v35 }
 0x138   :  { %v555_v36 = vpop.f32.mrb[24].mxu0  ;;  %v659_v37 = vpop.f32.mrb[24].mxu1 }
 0x139   :  { %v556_v38 = vadd.f32 %v1271_v2, %v555_v36  ;;  %v557_v39 = vpop.f32.mrb[25].mxu0  ;;  %v660_v40 = vadd.f32 %v1271_v2, %v659_v37  ;;  %v661_v41 = vpop.f32.mrb[25].mxu1 }
 0x13a   :  { %v558_v42 = vpop.f32.mrb[26].mxu0  ;;  %v662_v43 = vpop.f32.mrb[26].mxu1 }
 0x13b   :  { %v717_v44 = vmax.f32 %v556_v38, 0.0  ;;  %v559_v45 = vadd.f32 %v1271_v2, %v558_v42  ;;  %v560_v46 = vpop.f32.mrb[27].mxu0  ;;  %v743_v47 = vmax.f32 %v660_v40, 0.0  ;;  %v663_v48 = vadd.f32 %v1271_v2, %v662_v43  ;;  %v664_v49 = vpop.f32.mrb[27].mxu1 }
 0x13d   :  { %766 = vst [vmem:[%s1472_s3 + $0x60] sm:$0xff] %v717_v44  ;;  %v718_v50 = vmax.f32 %v559_v45, 0.0  ;;  %792 = vst [vmem:[%s1472_s3 + $0x130] sm:$0xff] %v743_v47  ;;  %v744_v51 = vmax.f32 %v663_v48, 0.0 }
 0x13f   :  { %767 = vst [vmem:[%s1472_s3 + $0x68] sm:$0xff] %v718_v50  ;;  %793 = vst [vmem:[%s1472_s3 + $0x138] sm:$0xff] %v744_v51 }
 0x140   :  { %v563_v52 = vpop.f32.mrb[28].mxu0  ;;  %v667_v53 = vpop.f32.mrb[28].mxu1 }
 0x141   :  { %v564_v54 = vadd.f32 %v1271_v2, %v563_v52  ;;  %v565_v55 = vpop.f32.mrb[29].mxu0  ;;  %v668_v56 = vadd.f32 %v1271_v2, %v667_v53  ;;  %v669_v57 = vpop.f32.mrb[29].mxu1 }
 0x142   :  { %v566_v58 = vpop.f32.mrb[30].mxu0  ;;  %v670_v59 = vpop.f32.mrb[30].mxu1 }
 0x143   :  { %v719_v60 = vmax.f32 %v564_v54, 0.0  ;;  %v567_v61 = vadd.f32 %v1271_v2, %v566_v58  ;;  %v568_v62 = vpop.f32.mrb[31].mxu0  ;;  %v745_v63 = vmax.f32 %v668_v56, 0.0  ;;  %v671_v0 = vadd.f32 %v1271_v2, %v670_v59  ;;  %v672_v1 = vpop.f32.mrb[31].mxu1 }
 0x145   :  { %768 = vst [vmem:[%s1472_s3 + $0x70] sm:$0xff] %v719_v60  ;;  %v720_v3 = vmax.f32 %v567_v61, 0.0  ;;  %794 = vst [vmem:[%s1472_s3 + $0x140] sm:$0xff] %v745_v63  ;;  %v746_v4 = vmax.f32 %v671_v0, 0.0 }
 0x147   :  { %769 = vst [vmem:[%s1472_s3 + $0x78] sm:$0xff] %v720_v3  ;;  %795 = vst [vmem:[%s1472_s3 + $0x148] sm:$0xff] %v746_v4 }
 0x148   :  { %v571_v5 = vpop.f32.mrb[32].mxu0  ;;  %v675_v6 = vpop.f32.mrb[32].mxu1 }
 0x149   :  { %v572_v7 = vadd.f32 %v1271_v2, %v571_v5  ;;  %v573_v8 = vpop.f32.mrb[33].mxu0  ;;  %v676_v9 = vadd.f32 %v1271_v2, %v675_v6  ;;  %v677_v10 = vpop.f32.mrb[33].mxu1 }
 0x14a   :  { %v574_v11 = vpop.f32.mrb[34].mxu0  ;;  %v678_v12 = vpop.f32.mrb[34].mxu1 }
 0x14b   :  { %v721_v13 = vmax.f32 %v572_v7, 0.0  ;;  %v575_v14 = vadd.f32 %v1271_v2, %v574_v11  ;;  %v576_v15 = vpop.f32.mrb[35].mxu0  ;;  %v747_v16 = vmax.f32 %v676_v9, 0.0  ;;  %v679_v17 = vadd.f32 %v1271_v2, %v678_v12  ;;  %v680_v18 = vpop.f32.mrb[35].mxu1 }
 0x14d   :  { %770 = vst [vmem:[%s1472_s3 + $0x80] sm:$0xff] %v721_v13  ;;  %v722_v19 = vmax.f32 %v575_v14, 0.0  ;;  %796 = vst [vmem:[%s1472_s3 + $0x150] sm:$0xff] %v747_v16  ;;  %v748_v20 = vmax.f32 %v679_v17, 0.0 }
 0x14f   :  { %771 = vst [vmem:[%s1472_s3 + $0x88] sm:$0xff] %v722_v19  ;;  %797 = vst [vmem:[%s1472_s3 + $0x158] sm:$0xff] %v748_v20 }
 0x150   :  { %v579_v21 = vpop.f32.mrb[36].mxu0  ;;  %v683_v22 = vpop.f32.mrb[36].mxu1 }
 0x151   :  { %v580_v23 = vadd.f32 %v1271_v2, %v579_v21  ;;  %v581_v24 = vpop.f32.mrb[37].mxu0  ;;  %v684_v25 = vadd.f32 %v1271_v2, %v683_v22  ;;  %v685_v26 = vpop.f32.mrb[37].mxu1 }
 0x152   :  { %v582_v27 = vpop.f32.mrb[38].mxu0  ;;  %v686_v28 = vpop.f32.mrb[38].mxu1 }
 0x153   :  { %v723_v29 = vmax.f32 %v580_v23, 0.0  ;;  %v583_v30 = vadd.f32 %v1271_v2, %v582_v27  ;;  %v584_v31 = vpop.f32.mrb[39].mxu0  ;;  %v749_v32 = vmax.f32 %v684_v25, 0.0  ;;  %v687_v33 = vadd.f32 %v1271_v2, %v686_v28  ;;  %v688_v34 = vpop.f32.mrb[39].mxu1 }
 0x155   :  { %772 = vst [vmem:[%s1472_s3 + $0x90] sm:$0xff] %v723_v29  ;;  %v724_v35 = vmax.f32 %v583_v30, 0.0  ;;  %798 = vst [vmem:[%s1472_s3 + $0x160] sm:$0xff] %v749_v32  ;;  %v750_v36 = vmax.f32 %v687_v33, 0.0 }
 0x157   :  { %773 = vst [vmem:[%s1472_s3 + $0x98] sm:$0xff] %v724_v35  ;;  %799 = vst [vmem:[%s1472_s3 + $0x168] sm:$0xff] %v750_v36 }
 0x158   :  { %v587_v37 = vpop.f32.mrb[40].mxu0  ;;  %v691_v38 = vpop.f32.mrb[40].mxu1 }
 0x159   :  { %v588_v39 = vadd.f32 %v1271_v2, %v587_v37  ;;  %v589_v40 = vpop.f32.mrb[41].mxu0  ;;  %v692_v41 = vadd.f32 %v1271_v2, %v691_v38  ;;  %v693_v42 = vpop.f32.mrb[41].mxu1 }
 0x15a   :  { %v590_v43 = vpop.f32.mrb[42].mxu0  ;;  %v694_v44 = vpop.f32.mrb[42].mxu1 }
 0x15b   :  { %v725_v45 = vmax.f32 %v588_v39, 0.0  ;;  %v591_v46 = vadd.f32 %v1271_v2, %v590_v43  ;;  %v592_v47 = vpop.f32.mrb[43].mxu0  ;;  %v751_v48 = vmax.f32 %v692_v41, 0.0  ;;  %v695_v49 = vadd.f32 %v1271_v2, %v694_v44  ;;  %v696_v50 = vpop.f32.mrb[43].mxu1 }
 0x15d   :  { %774 = vst [vmem:[%s1472_s3 + $0xa0] sm:$0xff] %v725_v45  ;;  %v726_v51 = vmax.f32 %v591_v46, 0.0  ;;  %800 = vst [vmem:[%s1472_s3 + $0x170] sm:$0xff] %v751_v48  ;;  %v752_v52 = vmax.f32 %v695_v49, 0.0 }
 0x15f   :  { %775 = vst [vmem:[%s1472_s3 + $0xa8] sm:$0xff] %v726_v51  ;;  %801 = vst [vmem:[%s1472_s3 + $0x178] sm:$0xff] %v752_v52 }
 0x160   :  { %v595_v53 = vpop.f32.mrb[44].mxu0  ;;  %v699_v54 = vpop.f32.mrb[44].mxu1 }
 0x161   :  { %v596_v55 = vadd.f32 %v1271_v2, %v595_v53  ;;  %v597_v56 = vpop.f32.mrb[45].mxu0  ;;  %v700_v57 = vadd.f32 %v1271_v2, %v699_v54  ;;  %v701_v58 = vpop.f32.mrb[45].mxu1 }
 0x162   :  { %v598_v59 = vpop.f32.mrb[46].mxu0  ;;  %v702_v60 = vpop.f32.mrb[46].mxu1 }
 0x163   :  { %v727_v61 = vmax.f32 %v596_v55, 0.0  ;;  %v599_v62 = vadd.f32 %v1271_v2, %v598_v59  ;;  %v600_v63 = vpop.f32.mrb[47].mxu0  ;;  %v753_v0 = vmax.f32 %v700_v57, 0.0  ;;  %v703_v1 = vpop.f32.mrb[47].mxu1 }
 0x165   :  { %776 = vst [vmem:[%s1472_s3 + $0xb0] sm:$0xff] %v727_v61  ;;  %v728_v3 = vmax.f32 %v599_v62, 0.0  ;;  %802 = vst [vmem:[%s1472_s3 + $0x180] sm:$0xff] %v753_v0 }
 0x167   :  { %777 = vst [vmem:[%s1472_s3 + $0xb8] sm:$0xff] %v728_v3 }
 0x168   :  { %v603_v4 = vpop.f32.mrb[48].mxu0 }
 0x169   :  { %v604_v5 = vadd.f32 %v1271_v2, %v603_v4  ;;  %v605_v6 = vpop.f32.mrb[49].mxu0 }
 0x16a   :  { %v606_v7 = vpop.f32.mrb[50].mxu0 }
 0x16b   :  { %v729_v8 = vmax.f32 %v604_v5, 0.0  ;;  %v607_v9 = vadd.f32 %v1271_v2, %v606_v7  ;;  %v608_v10 = vpop.f32.mrb[51].mxu0 }
 0x16d   :  { %778 = vst [vmem:[%s1472_s3 + $0xc0] sm:$0xff] %v729_v8  ;;  %v730_v11 = vmax.f32 %v607_v9, 0.0 }
 0x16f   :  { %779 = vst [vmem:[%s1472_s3 + $0xc8] sm:$0xff] %v730_v11 }

// kernel: sesame_forward.15
= control target key start
LH: loop header
LB: loop body
LE: loop exit
PB: predicated region body
PF: predicated region fallthrough
CT: control target
= control target key end

     0   :  { %v837_v0 = vmov 0.0   ;;  %vm838_vm0 = vmmov 0   ;;  %vm210_vm1 = vcmask 261120   ;;  %s1220_s1 = inlined_call_operand.vmem [shape: bf16[32,128], index: 1, kind: input, shape index: {}]   ;;  %s1221_s0 = inlined_call_operand.vmem [shape: bf16[392,32], index: 0, kind: input, shape index: {}]   ;;  %s1222_s2 = inlined_call_operand.vmem [shape: f32[1,128], index: 2, kind: input, shape index: {}]   ;;  %s1223_s3 = inlined_call_operand.vmem [shape: f32[392,128], index: 3, kind: output, shape index: {}]  }
   0x1   :  { %700 = vmatprep.subr.bf16.mxu0 %v837_v0  ;;  %v810_v1 = vld [vmem:[%s1220_s1] sm:$0xff]   ;;  %804 = vmatprep.subr.bf16.mxu1 %v837_v0  ;;  %v811_v2 = vld [vmem:[%s1220_s1 + $0x8] sm:$0xff]   ;;  %v815_v6 = vld [vmem:[%s1221_s0 + $0x70] sm:$0xff]  }
   0x2   :  { %704 = vmatprep.mubr.msk.bf16.mxu0 %vm838_vm0, %v837_v0  ;;  %756 = vmatprep.mubr.msk.bf16.mxu1 %vm838_vm0, %v837_v0  ;;  %v812_v3 = vld [vmem:[%s1221_s0] sm:$0xff]   ;;  %v813_v4 = vld [vmem:[%s1221_s0 + $0x68] sm:$0xff]   ;;  %v816_v7 = vld [vmem:[%s1221_s0 + $0x10] sm:$0xff]  }
   0x3   :  { %701 = vmatpush3.bf16.msra.mxu0 %v810_v1  ;;  %806 = vmatpush3.bf16.msra.mxu1 %v810_v1  ;;  %v814_v5 = vld [vmem:[%s1221_s0 + $0x8] sm:$0xff]   ;;  %v817_v8 = vld [vmem:[%s1221_s0 + $0x78] sm:$0xff]   ;;  %v819_v10 = vld [vmem:[%s1221_s0 + $0x80] sm:$0xff]  }
   0x4   :  { %702 = vmatprep.subr.bf16.mxu0 %v837_v0  ;;  %805 = vmatprep.subr.bf16.mxu1 %v837_v0  ;;  %v818_v9 = vld [vmem:[%s1221_s0 + $0x18] sm:$0xff]   ;;  %v820_v11 = vld [vmem:[%s1221_s0 + $0x20] sm:$0xff]   ;;  %v821_v12 = vld [vmem:[%s1221_s0 + $0x88] sm:$0xff]  }
   0x5   :  { %v822_v13 = vld [vmem:[%s1221_s0 + $0x28] sm:$0xff]   ;;  %v823_v14 = vld [vmem:[%s1221_s0 + $0x90] sm:$0xff]   ;;  %v825_v16 = vld [vmem:[%s1221_s0 + $0x98] sm:$0xff]  }
   0x6   :  { %v824_v15 = vld [vmem:[%s1221_s0 + $0x30] sm:$0xff]   ;;  %v826_v17 = vld [vmem:[%s1221_s0 + $0x38] sm:$0xff]   ;;  %v827_v18 = vld [vmem:[%s1221_s0 + $0xa0] sm:$0xff]  }
   0x7   :  { %703 = vmatpush3.bf16.msra.mxu0 %v811_v2  ;;  %807 = vmatpush3.bf16.msra.mxu1 %v811_v2  ;;  %v828_v19 = vld [vmem:[%s1221_s0 + $0x40] sm:$0xff]   ;;  %v829_v20 = vld [vmem:[%s1221_s0 + $0xa8] sm:$0xff]   ;;  %v831_v22 = vld [vmem:[%s1221_s0 + $0xb0] sm:$0xff]  }
   0x8   :  { %v830_v21 = vld [vmem:[%s1221_s0 + $0x48] sm:$0xff]   ;;  %v832_v23 = vld [vmem:[%s1221_s0 + $0x50] sm:$0xff]   ;;  %v833_v24 = vld [vmem:[%s1221_s0 + $0xb8] sm:$0xff]  }
   0x9   :  { %v834_v25 = vld [vmem:[%s1221_s0 + $0x58] sm:$0xff]   ;;  %v835_v26 = vld [vmem:[%s1221_s0 + $0xc0] ss:$0 sps:$4 sm:$0xff]  }
   0xa   :  { %705 = vmatmul.mubr.msk.bf16.vlgmr.msra.gmra.mrb[0].mxu0 %vm210_vm1, %v812_v3  ;;  %757 = vmatmul.mubr.msk.bf16.vlgmr.msra.gmra.mrb[0].mxu1 %vm210_vm1, %v813_v4  ;;  %v836_v27 = vld [vmem:[%s1221_s0 + $0x60] sm:$0xff]  }
   0xb   :  { %708 = vmatprep.mubr.msk.bf16.mxu0 %vm838_vm0, %v837_v0  ;;  %760 = vmatprep.mubr.msk.bf16.mxu1 %vm838_vm0, %v837_v0  ;;  %v1022_v28 = vld [vmem:[%s1222_s2] ss:$0 sm:$0xff] }
  0x12   :  { %709 = vmatmul.mubr.msk.bf16.gmra.mrb[4].mxu0 %vm210_vm1, %v814_v5  ;;  %761 = vmatmul.mubr.msk.bf16.gmra.mrb[4].mxu1 %vm210_vm1, %v815_v6 }
  0x13   :  { %712 = vmatprep.mubr.msk.bf16.mxu0 %vm838_vm0, %v837_v0  ;;  %764 = vmatprep.mubr.msk.bf16.mxu1 %vm838_vm0, %v837_v0 }
  0x1a   :  { %713 = vmatmul.mubr.msk.bf16.gmra.mrb[8].mxu0 %vm210_vm1, %v816_v7  ;;  %765 = vmatmul.mubr.msk.bf16.gmra.mrb[8].mxu1 %vm210_vm1, %v817_v8 }
  0x1b   :  { %716 = vmatprep.mubr.msk.bf16.mxu0 %vm838_vm0, %v837_v0  ;;  %768 = vmatprep.mubr.msk.bf16.mxu1 %vm838_vm0, %v837_v0 }
  0x22   :  { %717 = vmatmul.mubr.msk.bf16.gmra.mrb[12].mxu0 %vm210_vm1, %v818_v9  ;;  %769 = vmatmul.mubr.msk.bf16.gmra.mrb[12].mxu1 %vm210_vm1, %v819_v10 }
  0x23   :  { %720 = vmatprep.mubr.msk.bf16.mxu0 %vm838_vm0, %v837_v0  ;;  %772 = vmatprep.mubr.msk.bf16.mxu1 %vm838_vm0, %v837_v0 }
  0x2a   :  { %721 = vmatmul.mubr.msk.bf16.gmra.mrb[16].mxu0 %vm210_vm1, %v820_v11  ;;  %773 = vmatmul.mubr.msk.bf16.gmra.mrb[16].mxu1 %vm210_vm1, %v821_v12 }
  0x2b   :  { %724 = vmatprep.mubr.msk.bf16.mxu0 %vm838_vm0, %v837_v0  ;;  %776 = vmatprep.mubr.msk.bf16.mxu1 %vm838_vm0, %v837_v0 }
  0x32   :  { %725 = vmatmul.mubr.msk.bf16.gmra.mrb[20].mxu0 %vm210_vm1, %v822_v13  ;;  %777 = vmatmul.mubr.msk.bf16.gmra.mrb[20].mxu1 %vm210_vm1, %v823_v14 }
  0x33   :  { %728 = vmatprep.mubr.msk.bf16.mxu0 %vm838_vm0, %v837_v0  ;;  %780 = vmatprep.mubr.msk.bf16.mxu1 %vm838_vm0, %v837_v0 }
  0x3a   :  { %729 = vmatmul.mubr.msk.bf16.gmra.mrb[24].mxu0 %vm210_vm1, %v824_v15  ;;  %781 = vmatmul.mubr.msk.bf16.gmra.mrb[24].mxu1 %vm210_vm1, %v825_v16 }
  0x3b   :  { %732 = vmatprep.mubr.msk.bf16.mxu0 %vm838_vm0, %v837_v0  ;;  %784 = vmatprep.mubr.msk.bf16.mxu1 %vm838_vm0, %v837_v0 }
  0x42   :  { %733 = vmatmul.mubr.msk.bf16.gmra.mrb[28].mxu0 %vm210_vm1, %v826_v17  ;;  %785 = vmatmul.mubr.msk.bf16.gmra.mrb[28].mxu1 %vm210_vm1, %v827_v18 }
  0x43   :  { %736 = vmatprep.mubr.msk.bf16.mxu0 %vm838_vm0, %v837_v0  ;;  %788 = vmatprep.mubr.msk.bf16.mxu1 %vm838_vm0, %v837_v0 }
  0x4a   :  { %737 = vmatmul.mubr.msk.bf16.gmra.mrb[32].mxu0 %vm210_vm1, %v828_v19  ;;  %789 = vmatmul.mubr.msk.bf16.gmra.mrb[32].mxu1 %vm210_vm1, %v829_v20 }
  0x4b   :  { %740 = vmatprep.mubr.msk.bf16.mxu0 %vm838_vm0, %v837_v0  ;;  %792 = vmatprep.mubr.msk.bf16.mxu1 %vm838_vm0, %v837_v0 }
  0x52   :  { %741 = vmatmul.mubr.msk.bf16.gmra.mrb[36].mxu0 %vm210_vm1, %v830_v21  ;;  %793 = vmatmul.mubr.msk.bf16.gmra.mrb[36].mxu1 %vm210_vm1, %v831_v22 }
  0x53   :  { %744 = vmatprep.mubr.msk.bf16.mxu0 %vm838_vm0, %v837_v0  ;;  %796 = vmatprep.mubr.msk.bf16.mxu1 %vm838_vm0, %v837_v0 }
  0x5a   :  { %745 = vmatmul.mubr.msk.bf16.gmra.mrb[40].mxu0 %vm210_vm1, %v832_v23  ;;  %797 = vmatmul.mubr.msk.bf16.gmra.mrb[40].mxu1 %vm210_vm1, %v833_v24 }
  0x5b   :  { %748 = vmatprep.mubr.msk.bf16.mxu0 %vm838_vm0, %v837_v0  ;;  %800 = vmatprep.mubr.msk.bf16.mxu1 %vm838_vm0, %v837_v0 }
  0x62   :  { %749 = vmatmul.mubr.msk.bf16.gmra.mrb[44].mxu0 %vm210_vm1, %v834_v25  ;;  %801 = vmatmul.mubr.msk.bf16.gmra.mrb[44].mxu1 %vm210_vm1, %v835_v26 }
  0x63   :  { %752 = vmatprep.mubr.msk.bf16.mxu0 %vm838_vm0, %v837_v0 }
  0x6a   :  { %753 = vmatmul.mubr.msk.bf16.gmra.mrb[48].mxu0 %vm210_vm1, %v836_v27 }
  0xdd   :  { %v320_v29 = vpop.f32.mrb[0].mxu0  ;;  %v424_v30 = vpop.f32.mrb[0].mxu1 }
  0xde   :  { %v321_v31 = vadd.f32 %v1022_v28, %v320_v29  ;;  %v706_v32 = vpop.f32.mrb[1].mxu0  ;;  %v425_v33 = vadd.f32 %v1022_v28, %v424_v30  ;;  %v758_v34 = vpop.f32.mrb[1].mxu1 }
  0xdf   :  { %v323_v35 = vpop.f32.mrb[2].mxu0  ;;  %v427_v36 = vpop.f32.mrb[2].mxu1 }
  0xe0   :  { %v518_v37 = vmax.f32 %v321_v31, 0.0  ;;  %v324_v38 = vadd.f32 %v1022_v28, %v323_v35  ;;  %v707_v39 = vpop.f32.mrb[3].mxu0  ;;  %v544_v40 = vmax.f32 %v425_v33, 0.0  ;;  %v428_v41 = vadd.f32 %v1022_v28, %v427_v36  ;;  %v759_v42 = vpop.f32.mrb[3].mxu1 }
  0xe2   :  { %567 = vst [vmem:[%s1223_s3] sm:$0xff] %v518_v37  ;;  %v519_v43 = vmax.f32 %v324_v38, 0.0  ;;  %593 = vst [vmem:[%s1223_s3 + $0xd0] sm:$0xff] %v544_v40  ;;  %v545_v44 = vmax.f32 %v428_v41, 0.0 }
  0xe4   :  { %568 = vst [vmem:[%s1223_s3 + $0x8] sm:$0xff] %v519_v43  ;;  %594 = vst [vmem:[%s1223_s3 + $0xd8] sm:$0xff] %v545_v44 }
  0xe5   :  { %v328_v45 = vpop.f32.mrb[4].mxu0  ;;  %v432_v46 = vpop.f32.mrb[4].mxu1 }
  0xe6   :  { %v329_v47 = vadd.f32 %v1022_v28, %v328_v45  ;;  %v710_v48 = vpop.f32.mrb[5].mxu0  ;;  %v433_v49 = vadd.f32 %v1022_v28, %v432_v46  ;;  %v762_v50 = vpop.f32.mrb[5].mxu1 }
  0xe7   :  { %v331_v51 = vpop.f32.mrb[6].mxu0  ;;  %v435_v52 = vpop.f32.mrb[6].mxu1 }
  0xe8   :  { %v520_v53 = vmax.f32 %v329_v47, 0.0  ;;  %v332_v54 = vadd.f32 %v1022_v28, %v331_v51  ;;  %v711_v55 = vpop.f32.mrb[7].mxu0  ;;  %v546_v56 = vmax.f32 %v433_v49, 0.0  ;;  %v436_v57 = vadd.f32 %v1022_v28, %v435_v52  ;;  %v763_v58 = vpop.f32.mrb[7].mxu1 }
  0xea   :  { %569 = vst [vmem:[%s1223_s3 + $0x10] sm:$0xff] %v520_v53  ;;  %v521_v59 = vmax.f32 %v332_v54, 0.0  ;;  %595 = vst [vmem:[%s1223_s3 + $0xe0] sm:$0xff] %v546_v56  ;;  %v547_v60 = vmax.f32 %v436_v57, 0.0 }
  0xec   :  { %570 = vst [vmem:[%s1223_s3 + $0x18] sm:$0xff] %v521_v59  ;;  %596 = vst [vmem:[%s1223_s3 + $0xe8] sm:$0xff] %v547_v60 }
  0xed   :  { %v336_v61 = vpop.f32.mrb[8].mxu0  ;;  %v440_v62 = vpop.f32.mrb[8].mxu1 }
  0xee   :  { %v337_v63 = vadd.f32 %v1022_v28, %v336_v61  ;;  %v714_v0 = vpop.f32.mrb[9].mxu0  ;;  %v441_v1 = vadd.f32 %v1022_v28, %v440_v62  ;;  %v766_v2 = vpop.f32.mrb[9].mxu1 }
  0xef   :  { %v339_v3 = vpop.f32.mrb[10].mxu0  ;;  %v443_v4 = vpop.f32.mrb[10].mxu1 }
  0xf0   :  { %v522_v5 = vmax.f32 %v337_v63, 0.0  ;;  %v340_v6 = vadd.f32 %v1022_v28, %v339_v3  ;;  %v715_v7 = vpop.f32.mrb[11].mxu0  ;;  %v548_v8 = vmax.f32 %v441_v1, 0.0  ;;  %v444_v9 = vadd.f32 %v1022_v28, %v443_v4  ;;  %v767_v10 = vpop.f32.mrb[11].mxu1 }
  0xf2   :  { %571 = vst [vmem:[%s1223_s3 + $0x20] sm:$0xff] %v522_v5  ;;  %v523_v11 = vmax.f32 %v340_v6, 0.0  ;;  %597 = vst [vmem:[%s1223_s3 + $0xf0] sm:$0xff] %v548_v8  ;;  %v549_v12 = vmax.f32 %v444_v9, 0.0 }
  0xf4   :  { %572 = vst [vmem:[%s1223_s3 + $0x28] sm:$0xff] %v523_v11  ;;  %598 = vst [vmem:[%s1223_s3 + $0xf8] sm:$0xff] %v549_v12 }
  0xf5   :  { %v344_v13 = vpop.f32.mrb[12].mxu0  ;;  %v448_v14 = vpop.f32.mrb[12].mxu1 }
  0xf6   :  { %v345_v15 = vadd.f32 %v1022_v28, %v344_v13  ;;  %v718_v16 = vpop.f32.mrb[13].mxu0  ;;  %v449_v17 = vadd.f32 %v1022_v28, %v448_v14  ;;  %v770_v18 = vpop.f32.mrb[13].mxu1 }
  0xf7   :  { %v347_v19 = vpop.f32.mrb[14].mxu0  ;;  %v451_v20 = vpop.f32.mrb[14].mxu1 }
  0xf8   :  { %v524_v21 = vmax.f32 %v345_v15, 0.0  ;;  %v348_v22 = vadd.f32 %v1022_v28, %v347_v19  ;;  %v719_v23 = vpop.f32.mrb[15].mxu0  ;;  %v550_v24 = vmax.f32 %v449_v17, 0.0  ;;  %v452_v25 = vadd.f32 %v1022_v28, %v451_v20  ;;  %v771_v26 = vpop.f32.mrb[15].mxu1 }
  0xfa   :  { %573 = vst [vmem:[%s1223_s3 + $0x30] sm:$0xff] %v524_v21  ;;  %v525_v27 = vmax.f32 %v348_v22, 0.0  ;;  %599 = vst [vmem:[%s1223_s3 + $0x100] sm:$0xff] %v550_v24  ;;  %v551_v29 = vmax.f32 %v452_v25, 0.0 }
  0xfc   :  { %574 = vst [vmem:[%s1223_s3 + $0x38] sm:$0xff] %v525_v27  ;;  %600 = vst [vmem:[%s1223_s3 + $0x108] sm:$0xff] %v551_v29 }
  0xfd   :  { %v352_v30 = vpop.f32.mrb[16].mxu0  ;;  %v456_v31 = vpop.f32.mrb[16].mxu1 }
  0xfe   :  { %v353_v32 = vadd.f32 %v1022_v28, %v352_v30  ;;  %v722_v33 = vpop.f32.mrb[17].mxu0  ;;  %v457_v34 = vadd.f32 %v1022_v28, %v456_v31  ;;  %v774_v35 = vpop.f32.mrb[17].mxu1 }
  0xff   :  { %v355_v36 = vpop.f32.mrb[18].mxu0  ;;  %v459_v37 = vpop.f32.mrb[18].mxu1 }
 0x100   :  { %v526_v38 = vmax.f32 %v353_v32, 0.0  ;;  %v356_v39 = vadd.f32 %v1022_v28, %v355_v36  ;;  %v723_v40 = vpop.f32.mrb[19].mxu0  ;;  %v552_v41 = vmax.f32 %v457_v34, 0.0  ;;  %v460_v42 = vadd.f32 %v1022_v28, %v459_v37  ;;  %v775_v43 = vpop.f32.mrb[19].mxu1 }
 0x102   :  { %575 = vst [vmem:[%s1223_s3 + $0x40] sm:$0xff] %v526_v38  ;;  %v527_v44 = vmax.f32 %v356_v39, 0.0  ;;  %601 = vst [vmem:[%s1223_s3 + $0x110] sm:$0xff] %v552_v41  ;;  %v553_v45 = vmax.f32 %v460_v42, 0.0 }
 0x104   :  { %576 = vst [vmem:[%s1223_s3 + $0x48] sm:$0xff] %v527_v44  ;;  %602 = vst [vmem:[%s1223_s3 + $0x118] sm:$0xff] %v553_v45 }
 0x105   :  { %v360_v46 = vpop.f32.mrb[20].mxu0  ;;  %v464_v47 = vpop.f32.mrb[20].mxu1 }
 0x106   :  { %v361_v48 = vadd.f32 %v1022_v28, %v360_v46  ;;  %v726_v49 = vpop.f32.mrb[21].mxu0  ;;  %v465_v50 = vadd.f32 %v1022_v28, %v464_v47  ;;  %v778_v51 = vpop.f32.mrb[21].mxu1 }
 0x107   :  { %v363_v52 = vpop.f32.mrb[22].mxu0  ;;  %v467_v53 = vpop.f32.mrb[22].mxu1 }
 0x108   :  { %v528_v54 = vmax.f32 %v361_v48, 0.0  ;;  %v364_v55 = vadd.f32 %v1022_v28, %v363_v52  ;;  %v727_v56 = vpop.f32.mrb[23].mxu0  ;;  %v554_v57 = vmax.f32 %v465_v50, 0.0  ;;  %v468_v58 = vadd.f32 %v1022_v28, %v467_v53  ;;  %v779_v59 = vpop.f32.mrb[23].mxu1 }
 0x10a   :  { %577 = vst [vmem:[%s1223_s3 + $0x50] sm:$0xff] %v528_v54  ;;  %v529_v60 = vmax.f32 %v364_v55, 0.0  ;;  %603 = vst [vmem:[%s1223_s3 + $0x120] sm:$0xff] %v554_v57  ;;  %v555_v61 = vmax.f32 %v468_v58, 0.0 }
 0x10c   :  { %578 = vst [vmem:[%s1223_s3 + $0x58] sm:$0xff] %v529_v60  ;;  %604 = vst [vmem:[%s1223_s3 + $0x128] sm:$0xff] %v555_v61 }
 0x10d   :  { %v368_v62 = vpop.f32.mrb[24].mxu0  ;;  %v472_v63 = vpop.f32.mrb[24].mxu1 }
 0x10e   :  { %v369_v0 = vadd.f32 %v1022_v28, %v368_v62  ;;  %v730_v1 = vpop.f32.mrb[25].mxu0  ;;  %v473_v2 = vadd.f32 %v1022_v28, %v472_v63  ;;  %v782_v3 = vpop.f32.mrb[25].mxu1 }
 0x10f   :  { %v371_v4 = vpop.f32.mrb[26].mxu0  ;;  %v475_v5 = vpop.f32.mrb[26].mxu1 }
 0x110   :  { %v530_v6 = vmax.f32 %v369_v0, 0.0  ;;  %v372_v7 = vadd.f32 %v1022_v28, %v371_v4  ;;  %v731_v8 = vpop.f32.mrb[27].mxu0  ;;  %v556_v9 = vmax.f32 %v473_v2, 0.0  ;;  %v476_v10 = vadd.f32 %v1022_v28, %v475_v5  ;;  %v783_v11 = vpop.f32.mrb[27].mxu1 }
 0x112   :  { %579 = vst [vmem:[%s1223_s3 + $0x60] sm:$0xff] %v530_v6  ;;  %v531_v12 = vmax.f32 %v372_v7, 0.0  ;;  %605 = vst [vmem:[%s1223_s3 + $0x130] sm:$0xff] %v556_v9  ;;  %v557_v13 = vmax.f32 %v476_v10, 0.0 }
 0x114   :  { %580 = vst [vmem:[%s1223_s3 + $0x68] sm:$0xff] %v531_v12  ;;  %606 = vst [vmem:[%s1223_s3 + $0x138] sm:$0xff] %v557_v13 }
 0x115   :  { %v376_v14 = vpop.f32.mrb[28].mxu0  ;;  %v480_v15 = vpop.f32.mrb[28].mxu1 }
 0x116   :  { %v377_v16 = vadd.f32 %v1022_v28, %v376_v14  ;;  %v734_v17 = vpop.f32.mrb[29].mxu0  ;;  %v481_v18 = vadd.f32 %v1022_v28, %v480_v15  ;;  %v786_v19 = vpop.f32.mrb[29].mxu1 }
 0x117   :  { %v379_v20 = vpop.f32.mrb[30].mxu0  ;;  %v483_v21 = vpop.f32.mrb[30].mxu1 }
 0x118   :  { %v532_v22 = vmax.f32 %v377_v16, 0.0  ;;  %v380_v23 = vadd.f32 %v1022_v28, %v379_v20  ;;  %v735_v24 = vpop.f32.mrb[31].mxu0  ;;  %v558_v25 = vmax.f32 %v481_v18, 0.0  ;;  %v484_v26 = vadd.f32 %v1022_v28, %v483_v21  ;;  %v787_v27 = vpop.f32.mrb[31].mxu1 }
 0x11a   :  { %581 = vst [vmem:[%s1223_s3 + $0x70] sm:$0xff] %v532_v22  ;;  %v533_v29 = vmax.f32 %v380_v23, 0.0  ;;  %607 = vst [vmem:[%s1223_s3 + $0x140] sm:$0xff] %v558_v25  ;;  %v559_v30 = vmax.f32 %v484_v26, 0.0 }
 0x11c   :  { %582 = vst [vmem:[%s1223_s3 + $0x78] sm:$0xff] %v533_v29  ;;  %608 = vst [vmem:[%s1223_s3 + $0x148] sm:$0xff] %v559_v30 }
 0x11d   :  { %v384_v31 = vpop.f32.mrb[32].mxu0  ;;  %v488_v32 = vpop.f32.mrb[32].mxu1 }
 0x11e   :  { %v385_v33 = vadd.f32 %v1022_v28, %v384_v31  ;;  %v738_v34 = vpop.f32.mrb[33].mxu0  ;;  %v489_v35 = vadd.f32 %v1022_v28, %v488_v32  ;;  %v790_v36 = vpop.f32.mrb[33].mxu1 }
 0x11f   :  { %v387_v37 = vpop.f32.mrb[34].mxu0  ;;  %v491_v38 = vpop.f32.mrb[34].mxu1 }
 0x120   :  { %v534_v39 = vmax.f32 %v385_v33, 0.0  ;;  %v388_v40 = vadd.f32 %v1022_v28, %v387_v37  ;;  %v739_v41 = vpop.f32.mrb[35].mxu0  ;;  %v560_v42 = vmax.f32 %v489_v35, 0.0  ;;  %v492_v43 = vadd.f32 %v1022_v28, %v491_v38  ;;  %v791_v44 = vpop.f32.mrb[35].mxu1 }
 0x122   :  { %583 = vst [vmem:[%s1223_s3 + $0x80] sm:$0xff] %v534_v39  ;;  %v535_v45 = vmax.f32 %v388_v40, 0.0  ;;  %609 = vst [vmem:[%s1223_s3 + $0x150] sm:$0xff] %v560_v42  ;;  %v561_v46 = vmax.f32 %v492_v43, 0.0 }
 0x124   :  { %584 = vst [vmem:[%s1223_s3 + $0x88] sm:$0xff] %v535_v45  ;;  %610 = vst [vmem:[%s1223_s3 + $0x158] sm:$0xff] %v561_v46 }
 0x125   :  { %v392_v47 = vpop.f32.mrb[36].mxu0  ;;  %v496_v48 = vpop.f32.mrb[36].mxu1 }
 0x126   :  { %v393_v49 = vadd.f32 %v1022_v28, %v392_v47  ;;  %v742_v50 = vpop.f32.mrb[37].mxu0  ;;  %v497_v51 = vadd.f32 %v1022_v28, %v496_v48  ;;  %v794_v52 = vpop.f32.mrb[37].mxu1 }
 0x127   :  { %v395_v53 = vpop.f32.mrb[38].mxu0  ;;  %v499_v54 = vpop.f32.mrb[38].mxu1 }
 0x128   :  { %v536_v55 = vmax.f32 %v393_v49, 0.0  ;;  %v396_v56 = vadd.f32 %v1022_v28, %v395_v53  ;;  %v743_v57 = vpop.f32.mrb[39].mxu0  ;;  %v562_v58 = vmax.f32 %v497_v51, 0.0  ;;  %v500_v59 = vadd.f32 %v1022_v28, %v499_v54  ;;  %v795_v60 = vpop.f32.mrb[39].mxu1 }
 0x12a   :  { %585 = vst [vmem:[%s1223_s3 + $0x90] sm:$0xff] %v536_v55  ;;  %v537_v61 = vmax.f32 %v396_v56, 0.0  ;;  %611 = vst [vmem:[%s1223_s3 + $0x160] sm:$0xff] %v562_v58  ;;  %v563_v62 = vmax.f32 %v500_v59, 0.0 }
 0x12c   :  { %586 = vst [vmem:[%s1223_s3 + $0x98] sm:$0xff] %v537_v61  ;;  %612 = vst [vmem:[%s1223_s3 + $0x168] sm:$0xff] %v563_v62 }
 0x12d   :  { %v400_v63 = vpop.f32.mrb[40].mxu0  ;;  %v504_v0 = vpop.f32.mrb[40].mxu1 }
 0x12e   :  { %v401_v1 = vadd.f32 %v1022_v28, %v400_v63  ;;  %v746_v2 = vpop.f32.mrb[41].mxu0  ;;  %v505_v3 = vadd.f32 %v1022_v28, %v504_v0  ;;  %v798_v4 = vpop.f32.mrb[41].mxu1 }
 0x12f   :  { %v403_v5 = vpop.f32.mrb[42].mxu0  ;;  %v507_v6 = vpop.f32.mrb[42].mxu1 }
 0x130   :  { %v538_v7 = vmax.f32 %v401_v1, 0.0  ;;  %v404_v8 = vadd.f32 %v1022_v28, %v403_v5  ;;  %v747_v9 = vpop.f32.mrb[43].mxu0  ;;  %v564_v10 = vmax.f32 %v505_v3, 0.0  ;;  %v508_v11 = vadd.f32 %v1022_v28, %v507_v6  ;;  %v799_v12 = vpop.f32.mrb[43].mxu1 }
 0x132   :  { %587 = vst [vmem:[%s1223_s3 + $0xa0] sm:$0xff] %v538_v7  ;;  %v539_v13 = vmax.f32 %v404_v8, 0.0  ;;  %613 = vst [vmem:[%s1223_s3 + $0x170] sm:$0xff] %v564_v10  ;;  %v565_v14 = vmax.f32 %v508_v11, 0.0 }
 0x134   :  { %588 = vst [vmem:[%s1223_s3 + $0xa8] sm:$0xff] %v539_v13  ;;  %614 = vst [vmem:[%s1223_s3 + $0x178] sm:$0xff] %v565_v14 }
 0x135   :  { %v408_v15 = vpop.f32.mrb[44].mxu0  ;;  %v512_v16 = vpop.f32.mrb[44].mxu1 }
 0x136   :  { %v409_v17 = vadd.f32 %v1022_v28, %v408_v15  ;;  %v750_v18 = vpop.f32.mrb[45].mxu0  ;;  %v513_v19 = vadd.f32 %v1022_v28, %v512_v16  ;;  %v802_v20 = vpop.f32.mrb[45].mxu1 }
 0x137   :  { %v411_v21 = vpop.f32.mrb[46].mxu0  ;;  %v515_v22 = vpop.f32.mrb[46].mxu1 }
 0x138   :  { %v540_v23 = vmax.f32 %v409_v17, 0.0  ;;  %v412_v24 = vadd.f32 %v1022_v28, %v411_v21  ;;  %v751_v25 = vpop.f32.mrb[47].mxu0  ;;  %v566_v26 = vmax.f32 %v513_v19, 0.0  ;;  %v803_v27 = vpop.f32.mrb[47].mxu1 }
 0x13a   :  { %589 = vst [vmem:[%s1223_s3 + $0xb0] sm:$0xff] %v540_v23  ;;  %v541_v29 = vmax.f32 %v412_v24, 0.0  ;;  %615 = vst [vmem:[%s1223_s3 + $0x180] sm:$0xff] %v566_v26 }
 0x13c   :  { %590 = vst [vmem:[%s1223_s3 + $0xb8] sm:$0xff] %v541_v29 }
 0x13d   :  { %v416_v30 = vpop.f32.mrb[48].mxu0 }
 0x13e   :  { %v417_v31 = vadd.f32 %v1022_v28, %v416_v30  ;;  %v754_v32 = vpop.f32.mrb[49].mxu0 }
 0x13f   :  { %v419_v33 = vpop.f32.mrb[50].mxu0 }
 0x140   :  { %v542_v34 = vmax.f32 %v417_v31, 0.0  ;;  %v420_v35 = vadd.f32 %v1022_v28, %v419_v33  ;;  %v755_v36 = vpop.f32.mrb[51].mxu0 }
 0x142   :  { %591 = vst [vmem:[%s1223_s3 + $0xc0] sm:$0xff] %v542_v34  ;;  %v543_v37 = vmax.f32 %v420_v35, 0.0 }
 0x144   :  { %592 = vst [vmem:[%s1223_s3 + $0xc8] sm:$0xff] %v543_v37 }

// kernel: sesame_forward.14
= control target key start
LH: loop header
LB: loop body
LE: loop exit
PB: predicated region body
PF: predicated region fallthrough
CT: control target
= control target key end

     0   :  { %vm865_vm0 = vcmask 261120   ;;  %s2488_s0 = inlined_call_operand.vmem [shape: f32[392,32], index: 0, kind: input, shape index: {}]   ;;  %s2489_s1 = inlined_call_operand.vmem [shape: f32[392,32], index: 1, kind: input, shape index: {}]   ;;  %s2490_s2 = inlined_call_operand.vmem [shape: f32[392,32], index: 2, kind: input, shape index: {}]   ;;  %s2491_s3 = inlined_call_operand.vmem [shape: f32[392,32], index: 3, kind: input, shape index: {}]   ;;  %s2492_s4 = inlined_call_operand.vmem [shape: f32[392,32], index: 4, kind: input, shape index: {}]   ;;  %s2493_s5 = inlined_call_operand.vmem [shape: f32[392,32], index: 5, kind: input, shape index: {}]   ;;  %s2494_s6 = inlined_call_operand.vmem [shape: f32[392,32], index: 6, kind: input, shape index: {}]   ;;  %s2495_s7 = inlined_call_operand.vmem [shape: f32[392,32], index: 7, kind: input, shape index: {}]   ;;  %s2496_s8 = inlined_call_operand.vmem [shape: f32[392,32], index: 8, kind: input, shape index: {}]   ;;  %s2497_s9 = inlined_call_operand.vmem [shape: f32[392,32], index: 9, kind: output, shape index: {}]  }
   0x1   :  { %v32_v0 = vld [vmem:[%s2488_s0] sm:$0xff]  ;;  %v33_v6 = vld [vmem:[%s2488_s0 + $0x8] sm:$0xff]  ;;  %v34_v15 = vld [vmem:[%s2488_s0 + $0x10] sm:$0xff] }
   0x2   :  { %v81_v1 = vld [vmem:[%s2489_s1] sm:$0xff]  ;;  %v82_v7 = vld [vmem:[%s2489_s1 + $0x8] sm:$0xff]  ;;  %v83_v16 = vld [vmem:[%s2489_s1 + $0x10] sm:$0xff] }
   0x3   :  { %v179_v2 = vld [vmem:[%s2490_s2] sm:$0xff]  ;;  %v130_v3 = vmax.f32 %v32_v0, %v81_v1  ;;  %v180_v8 = vld [vmem:[%s2490_s2 + $0x8] sm:$0xff]  ;;  %v131_v10 = vmax.f32 %v33_v6, %v82_v7  ;;  %v181_v17 = vld [vmem:[%s2490_s2 + $0x10] sm:$0xff]  ;;  %v132_v20 = vmax.f32 %v34_v15, %v83_v16 }
   0x4   :  { %v277_v4 = vld [vmem:[%s2491_s3] sm:$0xff]  ;;  %v278_v13 = vld [vmem:[%s2491_s3 + $0x8] sm:$0xff]  ;;  %v279_v24 = vld [vmem:[%s2491_s3 + $0x10] sm:$0xff] }
   0x5   :  { %v228_v5 = vmax.f32 %v130_v3, %v179_v2  ;;  %v375_v9 = vld [vmem:[%s2492_s4] sm:$0xff]  ;;  %v229_v14 = vmax.f32 %v131_v10, %v180_v8  ;;  %v376_v19 = vld [vmem:[%s2492_s4 + $0x8] sm:$0xff]  ;;  %v230_v26 = vmax.f32 %v132_v20, %v181_v17  ;;  %v35_v27 = vld [vmem:[%s2488_s0 + $0x18] sm:$0xff] }
   0x6   :  { %v473_v12 = vld [vmem:[%s2493_s5] sm:$0xff]  ;;  %v474_v23 = vld [vmem:[%s2493_s5 + $0x8] sm:$0xff]  ;;  %v84_v28 = vld [vmem:[%s2489_s1 + $0x18] sm:$0xff] }
   0x7   :  { %v326_v11 = vmax.f32 %v228_v5, %v277_v4  ;;  %v571_v21 = vld [vmem:[%s2494_s6] sm:$0xff]  ;;  %v327_v22 = vmax.f32 %v229_v14, %v278_v13  ;;  %v182_v29 = vld [vmem:[%s2490_s2 + $0x18] sm:$0xff]  ;;  %v377_v33 = vld [vmem:[%s2492_s4 + $0x10] sm:$0xff]  ;;  %v133_v34 = vmax.f32 %v35_v27, %v84_v28  ;;  %v328_v37 = vmax.f32 %v230_v26, %v279_v24 }
   0x8   :  { %v669_v30 = vld [vmem:[%s2495_s7] sm:$0xff]  ;;  %v572_v36 = vld [vmem:[%s2494_s6 + $0x8] sm:$0xff]  ;;  %v475_v38 = vld [vmem:[%s2493_s5 + $0x10] sm:$0xff] }
   0x9   :  { %v424_v18 = vmax.f32 %v326_v11, %v375_v9  ;;  %v767_v31 = vld [vmem:[%s2496_s8] sm:$0xff]  ;;  %v425_v32 = vmax.f32 %v327_v22, %v376_v19  ;;  %v280_v39 = vld [vmem:[%s2491_s3 + $0x18] sm:$0xff]  ;;  %v231_v41 = vmax.f32 %v133_v34, %v182_v29  ;;  %v670_v46 = vld [vmem:[%s2495_s7 + $0x8] sm:$0xff]  ;;  %v426_v48 = vmax.f32 %v328_v37, %v377_v33 }
   0xa   :  { %v36_v42 = vld [vmem:[%s2488_s0 + $0x20] sm:$0xff]  ;;  %v768_v47 = vld [vmem:[%s2496_s8 + $0x8] sm:$0xff]  ;;  %v378_v49 = vld [vmem:[%s2492_s4 + $0x18] sm:$0xff] }
   0xb   :  { %v522_v25 = vmax.f32 %v424_v18, %v473_v12  ;;  %v523_v40 = vmax.f32 %v425_v32, %v474_v23  ;;  %v85_v43 = vld [vmem:[%s2489_s1 + $0x20] sm:$0xff]  ;;  %v573_v52 = vld [vmem:[%s2494_s6 + $0x10] sm:$0xff]  ;;  %v329_v53 = vmax.f32 %v231_v41, %v280_v39  ;;  %v476_v54 = vld [vmem:[%s2493_s5 + $0x18] sm:$0xff]  ;;  %v524_v57 = vmax.f32 %v426_v48, %v475_v38 }
   0xc   :  { %v183_v44 = vld [vmem:[%s2490_s2 + $0x20] sm:$0xff]  ;;  %v134_v50 = vmax.f32 %v36_v42, %v85_v43  ;;  %v37_v59 = vld [vmem:[%s2488_s0 + $0x28] sm:$0xff]  ;;  %v671_v63 = vld [vmem:[%s2495_s7 + $0x10] sm:$0xff] }
   0xd   :  { %v620_v35 = vmax.f32 %v522_v25, %v571_v21  ;;  %v621_v51 = vmax.f32 %v523_v40, %v572_v36  ;;  %v281_v55 = vld [vmem:[%s2491_s3 + $0x20] sm:$0xff]  ;;  %v86_v60 = vld [vmem:[%s2489_s1 + $0x28] sm:$0xff]  ;;  %v769_v0 = vld [vmem:[%s2496_s8 + $0x10] sm:$0xff]  ;;  %v427_v1 = vmax.f32 %v329_v53, %v378_v49  ;;  %v622_v4 = vmax.f32 %v524_v57, %v573_v52 }
   0xe   :  { %v232_v58 = vmax.f32 %v134_v50, %v183_v44  ;;  %v184_v61 = vld [vmem:[%s2490_s2 + $0x28] sm:$0xff]  ;;  %v379_v2 = vld [vmem:[%s2492_s4 + $0x20] sm:$0xff]  ;;  %v135_v3 = vmax.f32 %v37_v59, %v86_v60  ;;  %v574_v5 = vld [vmem:[%s2494_s6 + $0x18] sm:$0xff] }
   0xf   :  { %v718_v45 = vmax.f32 %v620_v35, %v669_v30  ;;  %v719_v62 = vmax.f32 %v621_v51, %v670_v46  ;;  %v477_v7 = vld [vmem:[%s2493_s5 + $0x20] sm:$0xff]  ;;  %v282_v8 = vld [vmem:[%s2491_s3 + $0x28] sm:$0xff]  ;;  %v525_v10 = vmax.f32 %v427_v1, %v476_v54  ;;  %v38_v12 = vld [vmem:[%s2488_s0 + $0x30] sm:$0xff]  ;;  %v720_v15 = vmax.f32 %v622_v4, %v671_v63 }
  0x10   :  { %v330_v6 = vmax.f32 %v232_v58, %v281_v55  ;;  %v233_v11 = vmax.f32 %v135_v3, %v184_v61  ;;  %v87_v13 = vld [vmem:[%s2489_s1 + $0x30] sm:$0xff]  ;;  %v672_v16 = vld [vmem:[%s2495_s7 + $0x18] sm:$0xff]  ;;  %v380_v19 = vld [vmem:[%s2492_s4 + $0x28] sm:$0xff] }
  0x11   :  { %v816_v56 = vmax.f32 %v718_v45, %v767_v31  ;;  %v817_v9 = vmax.f32 %v719_v62, %v768_v47  ;;  %v185_v14 = vld [vmem:[%s2490_s2 + $0x30] sm:$0xff]  ;;  %v770_v17 = vld [vmem:[%s2496_s8 + $0x18] sm:$0xff]  ;;  %v136_v20 = vmax.f32 %v38_v12, %v87_v13  ;;  %v623_v21 = vmax.f32 %v525_v10, %v574_v5  ;;  %v575_v22 = vld [vmem:[%s2494_s6 + $0x20] sm:$0xff] }
  0x12   :  { %v428_v18 = vmax.f32 %v330_v6, %v379_v2  ;;  %v331_v23 = vmax.f32 %v233_v11, %v282_v8  ;;  %v478_v24 = vld [vmem:[%s2493_s5 + $0x28] sm:$0xff]  ;;  %v283_v25 = vld [vmem:[%s2491_s3 + $0x30] sm:$0xff]  ;;  %v818_v26 = vmax.f32 %v720_v15, %v769_v0  ;;  %v39_v29 = vld [vmem:[%s2488_s0 + $0x38] sm:$0xff] }
  0x13   :  { %866 = vst.msk [vmem:[%s2497_s9] sm:$0xff] %vm865_vm0, %v816_v56  ;;  %867 = vst.msk [vmem:[%s2497_s9 + $0x8] sm:$0xff] %vm865_vm0, %v817_v9  ;;  %v234_v28 = vmax.f32 %v136_v20, %v185_v14  ;;  %v88_v30 = vld [vmem:[%s2489_s1 + $0x38] sm:$0xff]  ;;  %v721_v32 = vmax.f32 %v623_v21, %v672_v16  ;;  %v673_v33 = vld [vmem:[%s2495_s7 + $0x20] sm:$0xff] }
  0x14   :  { %v526_v27 = vmax.f32 %v428_v18, %v477_v7  ;;  %v186_v31 = vld [vmem:[%s2490_s2 + $0x38] sm:$0xff]  ;;  %v771_v34 = vld [vmem:[%s2496_s8 + $0x20] sm:$0xff]  ;;  %v429_v35 = vmax.f32 %v331_v23, %v380_v19  ;;  %v381_v36 = vld [vmem:[%s2492_s4 + $0x30] sm:$0xff]  ;;  %v137_v37 = vmax.f32 %v39_v29, %v88_v30  ;;  %868 = vst.msk [vmem:[%s2497_s9 + $0x10] sm:$0xff] %vm865_vm0, %v818_v26 }
  0x15   :  { %v576_v39 = vld [vmem:[%s2494_s6 + $0x28] sm:$0xff]  ;;  %v332_v40 = vmax.f32 %v234_v28, %v283_v25  ;;  %v479_v41 = vld [vmem:[%s2493_s5 + $0x30] sm:$0xff]  ;;  %v284_v42 = vld [vmem:[%s2491_s3 + $0x38] sm:$0xff]  ;;  %v819_v43 = vmax.f32 %v721_v32, %v770_v17 }
  0x16   :  { %v624_v38 = vmax.f32 %v526_v27, %v575_v22  ;;  %v527_v44 = vmax.f32 %v429_v35, %v478_v24  ;;  %v235_v45 = vmax.f32 %v137_v37, %v186_v31  ;;  %v40_v46 = vld [vmem:[%s2488_s0 + $0x40] sm:$0xff]  ;;  %v674_v50 = vld [vmem:[%s2495_s7 + $0x28] sm:$0xff]  ;;  %v382_v53 = vld [vmem:[%s2492_s4 + $0x38] sm:$0xff] }
  0x17   :  { %v89_v47 = vld [vmem:[%s2489_s1 + $0x40] sm:$0xff]  ;;  %v772_v51 = vld [vmem:[%s2496_s8 + $0x28] sm:$0xff]  ;;  %v430_v52 = vmax.f32 %v332_v40, %v381_v36  ;;  %869 = vst.msk [vmem:[%s2497_s9 + $0x18] sm:$0xff] %vm865_vm0, %v819_v43  ;;  %v577_v56 = vld [vmem:[%s2494_s6 + $0x30] sm:$0xff] }
  0x18   :  { %v187_v48 = vld [vmem:[%s2490_s2 + $0x40] sm:$0xff]  ;;  %v722_v49 = vmax.f32 %v624_v38, %v673_v33  ;;  %v138_v54 = vmax.f32 %v40_v46, %v89_v47  ;;  %v625_v55 = vmax.f32 %v527_v44, %v576_v39  ;;  %v333_v57 = vmax.f32 %v235_v45, %v284_v42  ;;  %v480_v58 = vld [vmem:[%s2493_s5 + $0x38] sm:$0xff]  ;;  %v41_v63 = vld [vmem:[%s2488_s0 + $0x48] sm:$0xff] }
  0x19   :  { %v285_v59 = vld [vmem:[%s2491_s3 + $0x40] sm:$0xff]  ;;  %v528_v61 = vmax.f32 %v430_v52, %v479_v41  ;;  %v90_v0 = vld [vmem:[%s2489_s1 + $0x48] sm:$0xff]  ;;  %v675_v3 = vld [vmem:[%s2495_s7 + $0x30] sm:$0xff] }
  0x1a   :  { %v820_v60 = vmax.f32 %v722_v49, %v771_v34  ;;  %v236_v62 = vmax.f32 %v138_v54, %v187_v48  ;;  %v188_v1 = vld [vmem:[%s2490_s2 + $0x48] sm:$0xff]  ;;  %v723_v2 = vmax.f32 %v625_v55, %v674_v50  ;;  %v773_v4 = vld [vmem:[%s2496_s8 + $0x30] sm:$0xff]  ;;  %v431_v5 = vmax.f32 %v333_v57, %v382_v53  ;;  %v383_v6 = vld [vmem:[%s2492_s4 + $0x40] sm:$0xff] }
  0x1b   :  { %v139_v7 = vmax.f32 %v41_v63, %v90_v0  ;;  %v626_v8 = vmax.f32 %v528_v61, %v577_v56  ;;  %v578_v9 = vld [vmem:[%s2494_s6 + $0x38] sm:$0xff]  ;;  %v481_v11 = vld [vmem:[%s2493_s5 + $0x40] sm:$0xff]  ;;  %v286_v12 = vld [vmem:[%s2491_s3 + $0x48] sm:$0xff] }
  0x1c   :  { %870 = vst.msk [vmem:[%s2497_s9 + $0x20] sm:$0xff] %vm865_vm0, %v820_v60  ;;  %v334_v10 = vmax.f32 %v236_v62, %v285_v59  ;;  %v821_v13 = vmax.f32 %v723_v2, %v772_v51  ;;  %v529_v14 = vmax.f32 %v431_v5, %v480_v58  ;;  %v42_v16 = vld [vmem:[%s2488_s0 + $0x50] sm:$0xff]  ;;  %v676_v20 = vld [vmem:[%s2495_s7 + $0x38] sm:$0xff]  ;;  %v384_v23 = vld [vmem:[%s2492_s4 + $0x48] sm:$0xff] }
  0x1d   :  { %v237_v15 = vmax.f32 %v139_v7, %v188_v1  ;;  %v91_v17 = vld [vmem:[%s2489_s1 + $0x50] sm:$0xff]  ;;  %v724_v19 = vmax.f32 %v626_v8, %v675_v3  ;;  %v774_v21 = vld [vmem:[%s2496_s8 + $0x38] sm:$0xff]  ;;  %v579_v26 = vld [vmem:[%s2494_s6 + $0x40] sm:$0xff] }
  0x1e   :  { %v189_v18 = vld [vmem:[%s2490_s2 + $0x50] sm:$0xff]  ;;  %v432_v22 = vmax.f32 %v334_v10, %v383_v6  ;;  %v140_v24 = vmax.f32 %v42_v16, %v91_v17  ;;  %871 = vst.msk [vmem:[%s2497_s9 + $0x28] sm:$0xff] %vm865_vm0, %v821_v13  ;;  %v627_v25 = vmax.f32 %v529_v14, %v578_v9  ;;  %v482_v28 = vld [vmem:[%s2493_s5 + $0x48] sm:$0xff]  ;;  %v43_v33 = vld [vmem:[%s2488_s0 + $0x58] sm:$0xff] }
  0x1f   :  { %v335_v27 = vmax.f32 %v237_v15, %v286_v12  ;;  %v287_v29 = vld [vmem:[%s2491_s3 + $0x50] sm:$0xff]  ;;  %v822_v30 = vmax.f32 %v724_v19, %v773_v4  ;;  %v92_v34 = vld [vmem:[%s2489_s1 + $0x58] sm:$0xff]  ;;  %v677_v37 = vld [vmem:[%s2495_s7 + $0x40] sm:$0xff] }
  0x20   :  { %v530_v31 = vmax.f32 %v432_v22, %v481_v11  ;;  %v238_v32 = vmax.f32 %v140_v24, %v189_v18  ;;  %v190_v35 = vld [vmem:[%s2490_s2 + $0x58] sm:$0xff]  ;;  %v725_v36 = vmax.f32 %v627_v25, %v676_v20  ;;  %v775_v38 = vld [vmem:[%s2496_s8 + $0x40] sm:$0xff]  ;;  %v385_v40 = vld [vmem:[%s2492_s4 + $0x50] sm:$0xff]  ;;  %v141_v41 = vmax.f32 %v43_v33, %v92_v34 }
  0x21   :  { %v433_v39 = vmax.f32 %v335_v27, %v384_v23  ;;  %872 = vst.msk [vmem:[%s2497_s9 + $0x30] sm:$0xff] %vm865_vm0, %v822_v30  ;;  %v580_v43 = vld [vmem:[%s2494_s6 + $0x48] sm:$0xff]  ;;  %v483_v45 = vld [vmem:[%s2493_s5 + $0x50] sm:$0xff]  ;;  %v288_v46 = vld [vmem:[%s2491_s3 + $0x58] sm:$0xff] }
  0x22   :  { %v628_v42 = vmax.f32 %v530_v31, %v579_v26  ;;  %v336_v44 = vmax.f32 %v238_v32, %v287_v29  ;;  %v823_v47 = vmax.f32 %v725_v36, %v774_v21  ;;  %v239_v49 = vmax.f32 %v141_v41, %v190_v35  ;;  %v44_v50 = vld [vmem:[%s2488_s0 + $0x60] sm:$0xff]  ;;  %v678_v54 = vld [vmem:[%s2495_s7 + $0x48] sm:$0xff]  ;;  %v386_v57 = vld [vmem:[%s2492_s4 + $0x58] sm:$0xff] }
  0x23   :  { %v531_v48 = vmax.f32 %v433_v39, %v482_v28  ;;  %v93_v51 = vld [vmem:[%s2489_s1 + $0x60] sm:$0xff]  ;;  %v776_v55 = vld [vmem:[%s2496_s8 + $0x48] sm:$0xff]  ;;  %v581_v60 = vld [vmem:[%s2494_s6 + $0x50] sm:$0xff] }
  0x24   :  { %v191_v52 = vld [vmem:[%s2490_s2 + $0x60] sm:$0xff]  ;;  %v726_v53 = vmax.f32 %v628_v42, %v677_v37  ;;  %v434_v56 = vmax.f32 %v336_v44, %v385_v40  ;;  %v142_v58 = vmax.f32 %v44_v50, %v93_v51  ;;  %873 = vst.msk [vmem:[%s2497_s9 + $0x38] sm:$0xff] %vm865_vm0, %v823_v47  ;;  %v337_v61 = vmax.f32 %v239_v49, %v288_v46  ;;  %v484_v62 = vld [vmem:[%s2493_s5 + $0x58] sm:$0xff]  ;;  %v45_v3 = vld [vmem:[%s2488_s0 + $0x68] sm:$0xff] }
  0x25   :  { %v629_v59 = vmax.f32 %v531_v48, %v580_v43  ;;  %v289_v63 = vld [vmem:[%s2491_s3 + $0x60] sm:$0xff]  ;;  %v94_v4 = vld [vmem:[%s2489_s1 + $0x68] sm:$0xff]  ;;  %v679_v7 = vld [vmem:[%s2495_s7 + $0x50] sm:$0xff] }
  0x26   :  { %v824_v0 = vmax.f32 %v726_v53, %v775_v38  ;;  %v532_v1 = vmax.f32 %v434_v56, %v483_v45  ;;  %v240_v2 = vmax.f32 %v142_v58, %v191_v52  ;;  %v192_v5 = vld [vmem:[%s2490_s2 + $0x68] sm:$0xff]  ;;  %v777_v8 = vld [vmem:[%s2496_s8 + $0x50] sm:$0xff]  ;;  %v435_v9 = vmax.f32 %v337_v61, %v386_v57  ;;  %v387_v10 = vld [vmem:[%s2492_s4 + $0x60] sm:$0xff] }
  0x27   :  { %v727_v6 = vmax.f32 %v629_v59, %v678_v54  ;;  %v143_v11 = vmax.f32 %v45_v3, %v94_v4  ;;  %v582_v13 = vld [vmem:[%s2494_s6 + $0x58] sm:$0xff]  ;;  %v485_v15 = vld [vmem:[%s2493_s5 + $0x60] sm:$0xff]  ;;  %v290_v16 = vld [vmem:[%s2491_s3 + $0x68] sm:$0xff] }
  0x28   :  { %874 = vst.msk [vmem:[%s2497_s9 + $0x40] sm:$0xff] %vm865_vm0, %v824_v0  ;;  %v630_v12 = vmax.f32 %v532_v1, %v581_v60  ;;  %v338_v14 = vmax.f32 %v240_v2, %v289_v63  ;;  %v533_v18 = vmax.f32 %v435_v9, %v484_v62  ;;  %v46_v20 = vld [vmem:[%s2488_s0 + $0x70] sm:$0xff]  ;;  %v680_v24 = vld [vmem:[%s2495_s7 + $0x58] sm:$0xff]  ;;  %v388_v27 = vld [vmem:[%s2492_s4 + $0x68] sm:$0xff] }
  0x29   :  { %v825_v17 = vmax.f32 %v727_v6, %v776_v55  ;;  %v241_v19 = vmax.f32 %v143_v11, %v192_v5  ;;  %v95_v21 = vld [vmem:[%s2489_s1 + $0x70] sm:$0xff]  ;;  %v778_v25 = vld [vmem:[%s2496_s8 + $0x58] sm:$0xff]  ;;  %v583_v30 = vld [vmem:[%s2494_s6 + $0x60] sm:$0xff] }
  0x2a   :  { %v193_v22 = vld [vmem:[%s2490_s2 + $0x70] sm:$0xff]  ;;  %v728_v23 = vmax.f32 %v630_v12, %v679_v7  ;;  %v436_v26 = vmax.f32 %v338_v14, %v387_v10  ;;  %v144_v28 = vmax.f32 %v46_v20, %v95_v21  ;;  %v631_v29 = vmax.f32 %v533_v18, %v582_v13  ;;  %v486_v32 = vld [vmem:[%s2493_s5 + $0x68] sm:$0xff]  ;;  %v47_v37 = vld [vmem:[%s2488_s0 + $0x78] sm:$0xff] }
  0x2b   :  { %875 = vst.msk [vmem:[%s2497_s9 + $0x48] sm:$0xff] %vm865_vm0, %v825_v17  ;;  %v339_v31 = vmax.f32 %v241_v19, %v290_v16  ;;  %v291_v33 = vld [vmem:[%s2491_s3 + $0x70] sm:$0xff]  ;;  %v96_v38 = vld [vmem:[%s2489_s1 + $0x78] sm:$0xff]  ;;  %v681_v41 = vld [vmem:[%s2495_s7 + $0x60] sm:$0xff] }
  0x2c   :  { %v826_v34 = vmax.f32 %v728_v23, %v777_v8  ;;  %v534_v35 = vmax.f32 %v436_v26, %v485_v15  ;;  %v242_v36 = vmax.f32 %v144_v28, %v193_v22  ;;  %v194_v39 = vld [vmem:[%s2490_s2 + $0x78] sm:$0xff]  ;;  %v729_v40 = vmax.f32 %v631_v29, %v680_v24  ;;  %v779_v42 = vld [vmem:[%s2496_s8 + $0x60] sm:$0xff]  ;;  %v389_v44 = vld [vmem:[%s2492_s4 + $0x70] sm:$0xff] }
  0x2d   :  { %v437_v43 = vmax.f32 %v339_v31, %v388_v27  ;;  %v145_v45 = vmax.f32 %v47_v37, %v96_v38  ;;  %v584_v47 = vld [vmem:[%s2494_s6 + $0x68] sm:$0xff]  ;;  %v487_v49 = vld [vmem:[%s2493_s5 + $0x70] sm:$0xff]  ;;  %v292_v50 = vld [vmem:[%s2491_s3 + $0x78] sm:$0xff] }
  0x2e   :  { %876 = vst.msk [vmem:[%s2497_s9 + $0x50] sm:$0xff] %vm865_vm0, %v826_v34  ;;  %v632_v46 = vmax.f32 %v534_v35, %v583_v30  ;;  %v340_v48 = vmax.f32 %v242_v36, %v291_v33  ;;  %v827_v51 = vmax.f32 %v729_v40, %v778_v25  ;;  %v48_v54 = vld [vmem:[%s2488_s0 + $0x80] sm:$0xff]  ;;  %v682_v58 = vld [vmem:[%s2495_s7 + $0x68] sm:$0xff]  ;;  %v390_v61 = vld [vmem:[%s2492_s4 + $0x78] sm:$0xff] }
  0x2f   :  { %v535_v52 = vmax.f32 %v437_v43, %v486_v32  ;;  %v243_v53 = vmax.f32 %v145_v45, %v194_v39  ;;  %v97_v55 = vld [vmem:[%s2489_s1 + $0x80] sm:$0xff]  ;;  %v780_v59 = vld [vmem:[%s2496_s8 + $0x68] sm:$0xff]  ;;  %v585_v0 = vld [vmem:[%s2494_s6 + $0x70] sm:$0xff] }
  0x30   :  { %v195_v56 = vld [vmem:[%s2490_s2 + $0x80] sm:$0xff]  ;;  %v730_v57 = vmax.f32 %v632_v46, %v681_v41  ;;  %v438_v60 = vmax.f32 %v340_v48, %v389_v44  ;;  %v146_v62 = vmax.f32 %v48_v54, %v97_v55  ;;  %877 = vst.msk [vmem:[%s2497_s9 + $0x58] sm:$0xff] %vm865_vm0, %v827_v51  ;;  %v488_v2 = vld [vmem:[%s2493_s5 + $0x78] sm:$0xff]  ;;  %v49_v7 = vld [vmem:[%s2488_s0 + $0x88] sm:$0xff] }
  0x31   :  { %v633_v63 = vmax.f32 %v535_v52, %v584_v47  ;;  %v341_v1 = vmax.f32 %v243_v53, %v292_v50  ;;  %v293_v3 = vld [vmem:[%s2491_s3 + $0x80] sm:$0xff]  ;;  %v98_v8 = vld [vmem:[%s2489_s1 + $0x88] sm:$0xff]  ;;  %v683_v11 = vld [vmem:[%s2495_s7 + $0x70] sm:$0xff] }
  0x32   :  { %v828_v4 = vmax.f32 %v730_v57, %v779_v42  ;;  %v536_v5 = vmax.f32 %v438_v60, %v487_v49  ;;  %v244_v6 = vmax.f32 %v146_v62, %v195_v56  ;;  %v196_v9 = vld [vmem:[%s2490_s2 + $0x88] sm:$0xff]  ;;  %v781_v12 = vld [vmem:[%s2496_s8 + $0x70] sm:$0xff]  ;;  %v391_v14 = vld [vmem:[%s2492_s4 + $0x80] sm:$0xff]  ;;  %v147_v15 = vmax.f32 %v49_v7, %v98_v8 }
  0x33   :  { %v731_v10 = vmax.f32 %v633_v63, %v682_v58  ;;  %v439_v13 = vmax.f32 %v341_v1, %v390_v61  ;;  %v586_v17 = vld [vmem:[%s2494_s6 + $0x78] sm:$0xff]  ;;  %v489_v19 = vld [vmem:[%s2493_s5 + $0x80] sm:$0xff]  ;;  %v294_v20 = vld [vmem:[%s2491_s3 + $0x88] sm:$0xff] }
  0x34   :  { %878 = vst.msk [vmem:[%s2497_s9 + $0x60] sm:$0xff] %vm865_vm0, %v828_v4  ;;  %v634_v16 = vmax.f32 %v536_v5, %v585_v0  ;;  %v342_v18 = vmax.f32 %v244_v6, %v293_v3  ;;  %v245_v23 = vmax.f32 %v147_v15, %v196_v9  ;;  %v50_v24 = vld [vmem:[%s2488_s0 + $0x90] sm:$0xff]  ;;  %v684_v28 = vld [vmem:[%s2495_s7 + $0x78] sm:$0xff]  ;;  %v392_v31 = vld [vmem:[%s2492_s4 + $0x88] sm:$0xff] }
  0x35   :  { %v829_v21 = vmax.f32 %v731_v10, %v780_v59  ;;  %v537_v22 = vmax.f32 %v439_v13, %v488_v2  ;;  %v99_v25 = vld [vmem:[%s2489_s1 + $0x90] sm:$0xff]  ;;  %v782_v29 = vld [vmem:[%s2496_s8 + $0x78] sm:$0xff]  ;;  %v587_v34 = vld [vmem:[%s2494_s6 + $0x80] sm:$0xff] }
  0x36   :  { %v197_v26 = vld [vmem:[%s2490_s2 + $0x90] sm:$0xff]  ;;  %v732_v27 = vmax.f32 %v634_v16, %v683_v11  ;;  %v440_v30 = vmax.f32 %v342_v18, %v391_v14  ;;  %v148_v32 = vmax.f32 %v50_v24, %v99_v25  ;;  %v343_v35 = vmax.f32 %v245_v23, %v294_v20  ;;  %v490_v36 = vld [vmem:[%s2493_s5 + $0x88] sm:$0xff]  ;;  %v51_v41 = vld [vmem:[%s2488_s0 + $0x98] sm:$0xff] }
  0x37   :  { %879 = vst.msk [vmem:[%s2497_s9 + $0x68] sm:$0xff] %vm865_vm0, %v829_v21  ;;  %v635_v33 = vmax.f32 %v537_v22, %v586_v17  ;;  %v295_v37 = vld [vmem:[%s2491_s3 + $0x90] sm:$0xff]  ;;  %v100_v42 = vld [vmem:[%s2489_s1 + $0x98] sm:$0xff]  ;;  %v685_v45 = vld [vmem:[%s2495_s7 + $0x80] sm:$0xff] }
  0x38   :  { %v830_v38 = vmax.f32 %v732_v27, %v781_v12  ;;  %v538_v39 = vmax.f32 %v440_v30, %v489_v19  ;;  %v246_v40 = vmax.f32 %v148_v32, %v197_v26  ;;  %v198_v43 = vld [vmem:[%s2490_s2 + $0x98] sm:$0xff]  ;;  %v783_v46 = vld [vmem:[%s2496_s8 + $0x80] sm:$0xff]  ;;  %v441_v47 = vmax.f32 %v343_v35, %v392_v31  ;;  %v393_v48 = vld [vmem:[%s2492_s4 + $0x90] sm:$0xff] }
  0x39   :  { %v733_v44 = vmax.f32 %v635_v33, %v684_v28  ;;  %v149_v49 = vmax.f32 %v51_v41, %v100_v42  ;;  %v588_v51 = vld [vmem:[%s2494_s6 + $0x88] sm:$0xff]  ;;  %v491_v53 = vld [vmem:[%s2493_s5 + $0x90] sm:$0xff]  ;;  %v296_v54 = vld [vmem:[%s2491_s3 + $0x98] sm:$0xff] }
  0x3a   :  { %880 = vst.msk [vmem:[%s2497_s9 + $0x70] sm:$0xff] %vm865_vm0, %v830_v38  ;;  %v636_v50 = vmax.f32 %v538_v39, %v587_v34  ;;  %v344_v52 = vmax.f32 %v246_v40, %v295_v37  ;;  %v539_v56 = vmax.f32 %v441_v47, %v490_v36  ;;  %v52_v58 = vld [vmem:[%s2488_s0 + $0xa0] sm:$0xff]  ;;  %v686_v62 = vld [vmem:[%s2495_s7 + $0x88] sm:$0xff]  ;;  %v394_v1 = vld [vmem:[%s2492_s4 + $0x98] sm:$0xff] }
  0x3b   :  { %v831_v55 = vmax.f32 %v733_v44, %v782_v29  ;;  %v247_v57 = vmax.f32 %v149_v49, %v198_v43  ;;  %v101_v59 = vld [vmem:[%s2489_s1 + $0xa0] sm:$0xff]  ;;  %v784_v63 = vld [vmem:[%s2496_s8 + $0x88] sm:$0xff]  ;;  %v589_v4 = vld [vmem:[%s2494_s6 + $0x90] sm:$0xff] }
  0x3c   :  { %v199_v60 = vld [vmem:[%s2490_s2 + $0xa0] sm:$0xff]  ;;  %v734_v61 = vmax.f32 %v636_v50, %v685_v45  ;;  %v442_v0 = vmax.f32 %v344_v52, %v393_v48  ;;  %v150_v2 = vmax.f32 %v52_v58, %v101_v59  ;;  %v637_v3 = vmax.f32 %v539_v56, %v588_v51  ;;  %v492_v6 = vld [vmem:[%s2493_s5 + $0x98] sm:$0xff]  ;;  %v53_v11 = vld [vmem:[%s2488_s0 + $0xa8] sm:$0xff] }
  0x3d   :  { %881 = vst.msk [vmem:[%s2497_s9 + $0x78] sm:$0xff] %vm865_vm0, %v831_v55  ;;  %v345_v5 = vmax.f32 %v247_v57, %v296_v54  ;;  %v297_v7 = vld [vmem:[%s2491_s3 + $0xa0] sm:$0xff]  ;;  %v102_v12 = vld [vmem:[%s2489_s1 + $0xa8] sm:$0xff]  ;;  %v687_v15 = vld [vmem:[%s2495_s7 + $0x90] sm:$0xff] }
  0x3e   :  { %v832_v8 = vmax.f32 %v734_v61, %v783_v46  ;;  %v540_v9 = vmax.f32 %v442_v0, %v491_v53  ;;  %v248_v10 = vmax.f32 %v150_v2, %v199_v60  ;;  %v200_v13 = vld [vmem:[%s2490_s2 + $0xa8] sm:$0xff]  ;;  %v735_v14 = vmax.f32 %v637_v3, %v686_v62  ;;  %v785_v16 = vld [vmem:[%s2496_s8 + $0x90] sm:$0xff]  ;;  %v395_v18 = vld [vmem:[%s2492_s4 + $0xa0] sm:$0xff] }
  0x3f   :  { %v443_v17 = vmax.f32 %v345_v5, %v394_v1  ;;  %v151_v19 = vmax.f32 %v53_v11, %v102_v12  ;;  %v590_v21 = vld [vmem:[%s2494_s6 + $0x98] sm:$0xff]  ;;  %v493_v23 = vld [vmem:[%s2493_s5 + $0xa0] sm:$0xff]  ;;  %v298_v24 = vld [vmem:[%s2491_s3 + $0xa8] sm:$0xff] }
  0x40   :  { %882 = vst.msk [vmem:[%s2497_s9 + $0x80] sm:$0xff] %vm865_vm0, %v832_v8  ;;  %v638_v20 = vmax.f32 %v540_v9, %v589_v4  ;;  %v346_v22 = vmax.f32 %v248_v10, %v297_v7  ;;  %v833_v25 = vmax.f32 %v735_v14, %v784_v63  ;;  %v54_v28 = vld [vmem:[%s2488_s0 + $0xb0] sm:$0xff]  ;;  %v688_v32 = vld [vmem:[%s2495_s7 + $0x98] sm:$0xff]  ;;  %v396_v35 = vld [vmem:[%s2492_s4 + $0xa8] sm:$0xff] }
  0x41   :  { %v541_v26 = vmax.f32 %v443_v17, %v492_v6  ;;  %v249_v27 = vmax.f32 %v151_v19, %v200_v13  ;;  %v103_v29 = vld [vmem:[%s2489_s1 + $0xb0] sm:$0xff]  ;;  %v786_v33 = vld [vmem:[%s2496_s8 + $0x98] sm:$0xff]  ;;  %v591_v38 = vld [vmem:[%s2494_s6 + $0xa0] sm:$0xff] }
  0x42   :  { %v201_v30 = vld [vmem:[%s2490_s2 + $0xb0] sm:$0xff]  ;;  %v736_v31 = vmax.f32 %v638_v20, %v687_v15  ;;  %v444_v34 = vmax.f32 %v346_v22, %v395_v18  ;;  %v152_v36 = vmax.f32 %v54_v28, %v103_v29  ;;  %883 = vst.msk [vmem:[%s2497_s9 + $0x88] sm:$0xff] %vm865_vm0, %v833_v25  ;;  %v494_v40 = vld [vmem:[%s2493_s5 + $0xa8] sm:$0xff]  ;;  %v55_v45 = vld [vmem:[%s2488_s0 + $0xb8] sm:$0xff] }
  0x43   :  { %v639_v37 = vmax.f32 %v541_v26, %v590_v21  ;;  %v347_v39 = vmax.f32 %v249_v27, %v298_v24  ;;  %v299_v41 = vld [vmem:[%s2491_s3 + $0xb0] sm:$0xff]  ;;  %v104_v46 = vld [vmem:[%s2489_s1 + $0xb8] sm:$0xff]  ;;  %v689_v49 = vld [vmem:[%s2495_s7 + $0xa0] sm:$0xff] }
  0x44   :  { %v834_v42 = vmax.f32 %v736_v31, %v785_v16  ;;  %v542_v43 = vmax.f32 %v444_v34, %v493_v23  ;;  %v250_v44 = vmax.f32 %v152_v36, %v201_v30  ;;  %v202_v47 = vld [vmem:[%s2490_s2 + $0xb8] sm:$0xff]  ;;  %v787_v50 = vld [vmem:[%s2496_s8 + $0xa0] sm:$0xff]  ;;  %v397_v52 = vld [vmem:[%s2492_s4 + $0xb0] sm:$0xff]  ;;  %v153_v53 = vmax.f32 %v55_v45, %v104_v46 }
  0x45   :  { %v737_v48 = vmax.f32 %v639_v37, %v688_v32  ;;  %v445_v51 = vmax.f32 %v347_v39, %v396_v35  ;;  %v592_v55 = vld [vmem:[%s2494_s6 + $0xa8] sm:$0xff]  ;;  %v495_v57 = vld [vmem:[%s2493_s5 + $0xb0] sm:$0xff]  ;;  %v300_v58 = vld [vmem:[%s2491_s3 + $0xb8] sm:$0xff] }
  0x46   :  { %884 = vst.msk [vmem:[%s2497_s9 + $0x90] sm:$0xff] %vm865_vm0, %v834_v42  ;;  %v640_v54 = vmax.f32 %v542_v43, %v591_v38  ;;  %v348_v56 = vmax.f32 %v250_v44, %v299_v41  ;;  %v251_v61 = vmax.f32 %v153_v53, %v202_v47  ;;  %v56_v62 = vld [vmem:[%s2488_s0 + $0xc0] sm:$0xff]  ;;  %v690_v2 = vld [vmem:[%s2495_s7 + $0xa8] sm:$0xff]  ;;  %v398_v5 = vld [vmem:[%s2492_s4 + $0xb8] sm:$0xff] }
  0x47   :  { %v835_v59 = vmax.f32 %v737_v48, %v786_v33  ;;  %v543_v60 = vmax.f32 %v445_v51, %v494_v40  ;;  %v105_v63 = vld [vmem:[%s2489_s1 + $0xc0] sm:$0xff]  ;;  %v788_v3 = vld [vmem:[%s2496_s8 + $0xa8] sm:$0xff]  ;;  %v593_v8 = vld [vmem:[%s2494_s6 + $0xb0] sm:$0xff] }
  0x48   :  { %v203_v0 = vld [vmem:[%s2490_s2 + $0xc0] sm:$0xff]  ;;  %v738_v1 = vmax.f32 %v640_v54, %v689_v49  ;;  %v446_v4 = vmax.f32 %v348_v56, %v397_v52  ;;  %v154_v6 = vmax.f32 %v56_v62, %v105_v63  ;;  %v349_v9 = vmax.f32 %v251_v61, %v300_v58  ;;  %v496_v10 = vld [vmem:[%s2493_s5 + $0xb8] sm:$0xff]  ;;  %v57_v15 = vld [vmem:[%s2488_s0 + $0xc8] sm:$0xff] }
  0x49   :  { %885 = vst.msk [vmem:[%s2497_s9 + $0x98] sm:$0xff] %vm865_vm0, %v835_v59  ;;  %v641_v7 = vmax.f32 %v543_v60, %v592_v55  ;;  %v301_v11 = vld [vmem:[%s2491_s3 + $0xc0] sm:$0xff]  ;;  %v106_v16 = vld [vmem:[%s2489_s1 + $0xc8] sm:$0xff]  ;;  %v691_v19 = vld [vmem:[%s2495_s7 + $0xb0] sm:$0xff] }
  0x4a   :  { %v836_v12 = vmax.f32 %v738_v1, %v787_v50  ;;  %v544_v13 = vmax.f32 %v446_v4, %v495_v57  ;;  %v252_v14 = vmax.f32 %v154_v6, %v203_v0  ;;  %v204_v17 = vld [vmem:[%s2490_s2 + $0xc8] sm:$0xff]  ;;  %v789_v20 = vld [vmem:[%s2496_s8 + $0xb0] sm:$0xff]  ;;  %v447_v21 = vmax.f32 %v349_v9, %v398_v5  ;;  %v399_v22 = vld [vmem:[%s2492_s4 + $0xc0] sm:$0xff] }
  0x4b   :  { %v739_v18 = vmax.f32 %v641_v7, %v690_v2  ;;  %v155_v23 = vmax.f32 %v57_v15, %v106_v16  ;;  %v594_v25 = vld [vmem:[%s2494_s6 + $0xb8] sm:$0xff]  ;;  %v497_v27 = vld [vmem:[%s2493_s5 + $0xc0] sm:$0xff]  ;;  %v302_v28 = vld [vmem:[%s2491_s3 + $0xc8] sm:$0xff] }
  0x4c   :  { %886 = vst.msk [vmem:[%s2497_s9 + $0xa0] sm:$0xff] %vm865_vm0, %v836_v12  ;;  %v642_v24 = vmax.f32 %v544_v13, %v593_v8  ;;  %v350_v26 = vmax.f32 %v252_v14, %v301_v11  ;;  %v545_v30 = vmax.f32 %v447_v21, %v496_v10  ;;  %v58_v32 = vld [vmem:[%s2488_s0 + $0xd0] sm:$0xff]  ;;  %v692_v36 = vld [vmem:[%s2495_s7 + $0xb8] sm:$0xff]  ;;  %v400_v39 = vld [vmem:[%s2492_s4 + $0xc8] sm:$0xff] }
  0x4d   :  { %v837_v29 = vmax.f32 %v739_v18, %v788_v3  ;;  %v253_v31 = vmax.f32 %v155_v23, %v204_v17  ;;  %v107_v33 = vld [vmem:[%s2489_s1 + $0xd0] sm:$0xff]  ;;  %v790_v37 = vld [vmem:[%s2496_s8 + $0xb8] sm:$0xff]  ;;  %v595_v42 = vld [vmem:[%s2494_s6 + $0xc0] sm:$0xff] }
  0x4e   :  { %v205_v34 = vld [vmem:[%s2490_s2 + $0xd0] sm:$0xff]  ;;  %v740_v35 = vmax.f32 %v642_v24, %v691_v19  ;;  %v448_v38 = vmax.f32 %v350_v26, %v399_v22  ;;  %v156_v40 = vmax.f32 %v58_v32, %v107_v33  ;;  %v643_v41 = vmax.f32 %v545_v30, %v594_v25  ;;  %v498_v44 = vld [vmem:[%s2493_s5 + $0xc8] sm:$0xff]  ;;  %v59_v49 = vld [vmem:[%s2488_s0 + $0xd8] sm:$0xff] }
  0x4f   :  { %887 = vst.msk [vmem:[%s2497_s9 + $0xa8] sm:$0xff] %vm865_vm0, %v837_v29  ;;  %v351_v43 = vmax.f32 %v253_v31, %v302_v28  ;;  %v303_v45 = vld [vmem:[%s2491_s3 + $0xd0] sm:$0xff]  ;;  %v108_v50 = vld [vmem:[%s2489_s1 + $0xd8] sm:$0xff]  ;;  %v693_v53 = vld [vmem:[%s2495_s7 + $0xc0] sm:$0xff] }
  0x50   :  { %v838_v46 = vmax.f32 %v740_v35, %v789_v20  ;;  %v546_v47 = vmax.f32 %v448_v38, %v497_v27  ;;  %v254_v48 = vmax.f32 %v156_v40, %v205_v34  ;;  %v206_v51 = vld [vmem:[%s2490_s2 + $0xd8] sm:$0xff]  ;;  %v741_v52 = vmax.f32 %v643_v41, %v692_v36  ;;  %v791_v54 = vld [vmem:[%s2496_s8 + $0xc0] sm:$0xff]  ;;  %v401_v56 = vld [vmem:[%s2492_s4 + $0xd0] sm:$0xff] }
  0x51   :  { %v449_v55 = vmax.f32 %v351_v43, %v400_v39  ;;  %v157_v57 = vmax.f32 %v59_v49, %v108_v50  ;;  %v596_v59 = vld [vmem:[%s2494_s6 + $0xc8] sm:$0xff]  ;;  %v499_v61 = vld [vmem:[%s2493_s5 + $0xd0] sm:$0xff]  ;;  %v304_v62 = vld [vmem:[%s2491_s3 + $0xd8] sm:$0xff] }
  0x52   :  { %888 = vst.msk [vmem:[%s2497_s9 + $0xb0] sm:$0xff] %vm865_vm0, %v838_v46  ;;  %v644_v58 = vmax.f32 %v546_v47, %v595_v42  ;;  %v352_v60 = vmax.f32 %v254_v48, %v303_v45  ;;  %v839_v63 = vmax.f32 %v741_v52, %v790_v37  ;;  %v60_v2 = vld [vmem:[%s2488_s0 + $0xe0] sm:$0xff]  ;;  %v694_v6 = vld [vmem:[%s2495_s7 + $0xc8] sm:$0xff]  ;;  %v402_v9 = vld [vmem:[%s2492_s4 + $0xd8] sm:$0xff] }
  0x53   :  { %v547_v0 = vmax.f32 %v449_v55, %v498_v44  ;;  %v255_v1 = vmax.f32 %v157_v57, %v206_v51  ;;  %v109_v3 = vld [vmem:[%s2489_s1 + $0xe0] sm:$0xff]  ;;  %v792_v7 = vld [vmem:[%s2496_s8 + $0xc8] sm:$0xff]  ;;  %v597_v12 = vld [vmem:[%s2494_s6 + $0xd0] sm:$0xff] }
  0x54   :  { %v207_v4 = vld [vmem:[%s2490_s2 + $0xe0] sm:$0xff]  ;;  %v742_v5 = vmax.f32 %v644_v58, %v693_v53  ;;  %v450_v8 = vmax.f32 %v352_v60, %v401_v56  ;;  %v158_v10 = vmax.f32 %v60_v2, %v109_v3  ;;  %889 = vst.msk [vmem:[%s2497_s9 + $0xb8] sm:$0xff] %vm865_vm0, %v839_v63  ;;  %v500_v14 = vld [vmem:[%s2493_s5 + $0xd8] sm:$0xff]  ;;  %v61_v19 = vld [vmem:[%s2488_s0 + $0xe8] sm:$0xff] }
  0x55   :  { %v645_v11 = vmax.f32 %v547_v0, %v596_v59  ;;  %v353_v13 = vmax.f32 %v255_v1, %v304_v62  ;;  %v305_v15 = vld [vmem:[%s2491_s3 + $0xe0] sm:$0xff]  ;;  %v110_v20 = vld [vmem:[%s2489_s1 + $0xe8] sm:$0xff]  ;;  %v695_v23 = vld [vmem:[%s2495_s7 + $0xd0] sm:$0xff] }
  0x56   :  { %v840_v16 = vmax.f32 %v742_v5, %v791_v54  ;;  %v548_v17 = vmax.f32 %v450_v8, %v499_v61  ;;  %v256_v18 = vmax.f32 %v158_v10, %v207_v4  ;;  %v208_v21 = vld [vmem:[%s2490_s2 + $0xe8] sm:$0xff]  ;;  %v793_v24 = vld [vmem:[%s2496_s8 + $0xd0] sm:$0xff]  ;;  %v403_v26 = vld [vmem:[%s2492_s4 + $0xe0] sm:$0xff]  ;;  %v159_v27 = vmax.f32 %v61_v19, %v110_v20 }
  0x57   :  { %v743_v22 = vmax.f32 %v645_v11, %v694_v6  ;;  %v451_v25 = vmax.f32 %v353_v13, %v402_v9  ;;  %v598_v29 = vld [vmem:[%s2494_s6 + $0xd8] sm:$0xff]  ;;  %v501_v31 = vld [vmem:[%s2493_s5 + $0xe0] sm:$0xff]  ;;  %v306_v32 = vld [vmem:[%s2491_s3 + $0xe8] sm:$0xff] }
  0x58   :  { %890 = vst.msk [vmem:[%s2497_s9 + $0xc0] sm:$0xff] %vm865_vm0, %v840_v16  ;;  %v646_v28 = vmax.f32 %v548_v17, %v597_v12  ;;  %v354_v30 = vmax.f32 %v256_v18, %v305_v15  ;;  %v257_v35 = vmax.f32 %v159_v27, %v208_v21  ;;  %v62_v36 = vld [vmem:[%s2488_s0 + $0xf0] sm:$0xff]  ;;  %v696_v40 = vld [vmem:[%s2495_s7 + $0xd8] sm:$0xff]  ;;  %v404_v43 = vld [vmem:[%s2492_s4 + $0xe8] sm:$0xff] }
  0x59   :  { %v841_v33 = vmax.f32 %v743_v22, %v792_v7  ;;  %v549_v34 = vmax.f32 %v451_v25, %v500_v14  ;;  %v111_v37 = vld [vmem:[%s2489_s1 + $0xf0] sm:$0xff]  ;;  %v794_v41 = vld [vmem:[%s2496_s8 + $0xd8] sm:$0xff]  ;;  %v599_v46 = vld [vmem:[%s2494_s6 + $0xe0] sm:$0xff] }
  0x5a   :  { %v209_v38 = vld [vmem:[%s2490_s2 + $0xf0] sm:$0xff]  ;;  %v744_v39 = vmax.f32 %v646_v28, %v695_v23  ;;  %v452_v42 = vmax.f32 %v354_v30, %v403_v26  ;;  %v160_v44 = vmax.f32 %v62_v36, %v111_v37  ;;  %v355_v47 = vmax.f32 %v257_v35, %v306_v32  ;;  %v502_v48 = vld [vmem:[%s2493_s5 + $0xe8] sm:$0xff]  ;;  %v63_v53 = vld [vmem:[%s2488_s0 + $0xf8] sm:$0xff] }
  0x5b   :  { %891 = vst.msk [vmem:[%s2497_s9 + $0xc8] sm:$0xff] %vm865_vm0, %v841_v33  ;;  %v647_v45 = vmax.f32 %v549_v34, %v598_v29  ;;  %v307_v49 = vld [vmem:[%s2491_s3 + $0xf0] sm:$0xff]  ;;  %v112_v54 = vld [vmem:[%s2489_s1 + $0xf8] sm:$0xff]  ;;  %v697_v57 = vld [vmem:[%s2495_s7 + $0xe0] sm:$0xff] }
  0x5c   :  { %v842_v50 = vmax.f32 %v744_v39, %v793_v24  ;;  %v550_v51 = vmax.f32 %v452_v42, %v501_v31  ;;  %v258_v52 = vmax.f32 %v160_v44, %v209_v38  ;;  %v210_v55 = vld [vmem:[%s2490_s2 + $0xf8] sm:$0xff]  ;;  %v795_v58 = vld [vmem:[%s2496_s8 + $0xe0] sm:$0xff]  ;;  %v453_v59 = vmax.f32 %v355_v47, %v404_v43  ;;  %v405_v60 = vld [vmem:[%s2492_s4 + $0xf0] sm:$0xff] }
  0x5d   :  { %v745_v56 = vmax.f32 %v647_v45, %v696_v40  ;;  %v161_v61 = vmax.f32 %v63_v53, %v112_v54  ;;  %v600_v63 = vld [vmem:[%s2494_s6 + $0xe8] sm:$0xff]  ;;  %v503_v1 = vld [vmem:[%s2493_s5 + $0xf0] sm:$0xff]  ;;  %v308_v2 = vld [vmem:[%s2491_s3 + $0xf8] sm:$0xff] }
  0x5e   :  { %892 = vst.msk [vmem:[%s2497_s9 + $0xd0] sm:$0xff] %vm865_vm0, %v842_v50  ;;  %v648_v62 = vmax.f32 %v550_v51, %v599_v46  ;;  %v356_v0 = vmax.f32 %v258_v52, %v307_v49  ;;  %v551_v4 = vmax.f32 %v453_v59, %v502_v48  ;;  %v64_v6 = vld [vmem:[%s2488_s0 + $0x100] sm:$0xff]  ;;  %v698_v10 = vld [vmem:[%s2495_s7 + $0xe8] sm:$0xff]  ;;  %v406_v13 = vld [vmem:[%s2492_s4 + $0xf8] sm:$0xff] }
  0x5f   :  { %v843_v3 = vmax.f32 %v745_v56, %v794_v41  ;;  %v259_v5 = vmax.f32 %v161_v61, %v210_v55  ;;  %v113_v7 = vld [vmem:[%s2489_s1 + $0x100] sm:$0xff]  ;;  %v796_v11 = vld [vmem:[%s2496_s8 + $0xe8] sm:$0xff]  ;;  %v601_v16 = vld [vmem:[%s2494_s6 + $0xf0] sm:$0xff] }
  0x60   :  { %v211_v8 = vld [vmem:[%s2490_s2 + $0x100] sm:$0xff]  ;;  %v746_v9 = vmax.f32 %v648_v62, %v697_v57  ;;  %v454_v12 = vmax.f32 %v356_v0, %v405_v60  ;;  %v162_v14 = vmax.f32 %v64_v6, %v113_v7  ;;  %v649_v15 = vmax.f32 %v551_v4, %v600_v63  ;;  %v504_v18 = vld [vmem:[%s2493_s5 + $0xf8] sm:$0xff]  ;;  %v65_v23 = vld [vmem:[%s2488_s0 + $0x108] sm:$0xff] }
  0x61   :  { %893 = vst.msk [vmem:[%s2497_s9 + $0xd8] sm:$0xff] %vm865_vm0, %v843_v3  ;;  %v357_v17 = vmax.f32 %v259_v5, %v308_v2  ;;  %v309_v19 = vld [vmem:[%s2491_s3 + $0x100] sm:$0xff]  ;;  %v114_v24 = vld [vmem:[%s2489_s1 + $0x108] sm:$0xff]  ;;  %v699_v27 = vld [vmem:[%s2495_s7 + $0xf0] sm:$0xff] }
  0x62   :  { %v844_v20 = vmax.f32 %v746_v9, %v795_v58  ;;  %v552_v21 = vmax.f32 %v454_v12, %v503_v1  ;;  %v260_v22 = vmax.f32 %v162_v14, %v211_v8  ;;  %v212_v25 = vld [vmem:[%s2490_s2 + $0x108] sm:$0xff]  ;;  %v747_v26 = vmax.f32 %v649_v15, %v698_v10  ;;  %v797_v28 = vld [vmem:[%s2496_s8 + $0xf0] sm:$0xff]  ;;  %v407_v30 = vld [vmem:[%s2492_s4 + $0x100] sm:$0xff] }
  0x63   :  { %v455_v29 = vmax.f32 %v357_v17, %v406_v13  ;;  %v163_v31 = vmax.f32 %v65_v23, %v114_v24  ;;  %v602_v33 = vld [vmem:[%s2494_s6 + $0xf8] sm:$0xff]  ;;  %v505_v35 = vld [vmem:[%s2493_s5 + $0x100] sm:$0xff]  ;;  %v310_v36 = vld [vmem:[%s2491_s3 + $0x108] sm:$0xff] }
  0x64   :  { %894 = vst.msk [vmem:[%s2497_s9 + $0xe0] sm:$0xff] %vm865_vm0, %v844_v20  ;;  %v650_v32 = vmax.f32 %v552_v21, %v601_v16  ;;  %v358_v34 = vmax.f32 %v260_v22, %v309_v19  ;;  %v845_v37 = vmax.f32 %v747_v26, %v796_v11  ;;  %v66_v40 = vld [vmem:[%s2488_s0 + $0x110] sm:$0xff]  ;;  %v700_v44 = vld [vmem:[%s2495_s7 + $0xf8] sm:$0xff]  ;;  %v408_v47 = vld [vmem:[%s2492_s4 + $0x108] sm:$0xff] }
  0x65   :  { %v553_v38 = vmax.f32 %v455_v29, %v504_v18  ;;  %v261_v39 = vmax.f32 %v163_v31, %v212_v25  ;;  %v115_v41 = vld [vmem:[%s2489_s1 + $0x110] sm:$0xff]  ;;  %v798_v45 = vld [vmem:[%s2496_s8 + $0xf8] sm:$0xff]  ;;  %v603_v50 = vld [vmem:[%s2494_s6 + $0x100] sm:$0xff] }
  0x66   :  { %v213_v42 = vld [vmem:[%s2490_s2 + $0x110] sm:$0xff]  ;;  %v748_v43 = vmax.f32 %v650_v32, %v699_v27  ;;  %v456_v46 = vmax.f32 %v358_v34, %v407_v30  ;;  %v164_v48 = vmax.f32 %v66_v40, %v115_v41  ;;  %895 = vst.msk [vmem:[%s2497_s9 + $0xe8] sm:$0xff] %vm865_vm0, %v845_v37  ;;  %v506_v52 = vld [vmem:[%s2493_s5 + $0x108] sm:$0xff]  ;;  %v67_v57 = vld [vmem:[%s2488_s0 + $0x118] sm:$0xff] }
  0x67   :  { %v651_v49 = vmax.f32 %v553_v38, %v602_v33  ;;  %v359_v51 = vmax.f32 %v261_v39, %v310_v36  ;;  %v311_v53 = vld [vmem:[%s2491_s3 + $0x110] sm:$0xff]  ;;  %v116_v58 = vld [vmem:[%s2489_s1 + $0x118] sm:$0xff]  ;;  %v701_v61 = vld [vmem:[%s2495_s7 + $0x100] sm:$0xff] }
  0x68   :  { %v846_v54 = vmax.f32 %v748_v43, %v797_v28  ;;  %v554_v55 = vmax.f32 %v456_v46, %v505_v35  ;;  %v262_v56 = vmax.f32 %v164_v48, %v213_v42  ;;  %v214_v59 = vld [vmem:[%s2490_s2 + $0x118] sm:$0xff]  ;;  %v799_v62 = vld [vmem:[%s2496_s8 + $0x100] sm:$0xff]  ;;  %v409_v0 = vld [vmem:[%s2492_s4 + $0x110] sm:$0xff]  ;;  %v165_v1 = vmax.f32 %v67_v57, %v116_v58 }
  0x69   :  { %v749_v60 = vmax.f32 %v651_v49, %v700_v44  ;;  %v457_v63 = vmax.f32 %v359_v51, %v408_v47  ;;  %v604_v3 = vld [vmem:[%s2494_s6 + $0x108] sm:$0xff]  ;;  %v507_v5 = vld [vmem:[%s2493_s5 + $0x110] sm:$0xff]  ;;  %v312_v6 = vld [vmem:[%s2491_s3 + $0x118] sm:$0xff] }
  0x6a   :  { %896 = vst.msk [vmem:[%s2497_s9 + $0xf0] sm:$0xff] %vm865_vm0, %v846_v54  ;;  %v652_v2 = vmax.f32 %v554_v55, %v603_v50  ;;  %v360_v4 = vmax.f32 %v262_v56, %v311_v53  ;;  %v263_v9 = vmax.f32 %v165_v1, %v214_v59  ;;  %v68_v10 = vld [vmem:[%s2488_s0 + $0x120] sm:$0xff]  ;;  %v702_v14 = vld [vmem:[%s2495_s7 + $0x108] sm:$0xff]  ;;  %v410_v17 = vld [vmem:[%s2492_s4 + $0x118] sm:$0xff] }
  0x6b   :  { %v847_v7 = vmax.f32 %v749_v60, %v798_v45  ;;  %v555_v8 = vmax.f32 %v457_v63, %v506_v52  ;;  %v117_v11 = vld [vmem:[%s2489_s1 + $0x120] sm:$0xff]  ;;  %v800_v15 = vld [vmem:[%s2496_s8 + $0x108] sm:$0xff]  ;;  %v605_v20 = vld [vmem:[%s2494_s6 + $0x110] sm:$0xff] }
  0x6c   :  { %v215_v12 = vld [vmem:[%s2490_s2 + $0x120] sm:$0xff]  ;;  %v750_v13 = vmax.f32 %v652_v2, %v701_v61  ;;  %v458_v16 = vmax.f32 %v360_v4, %v409_v0  ;;  %v166_v18 = vmax.f32 %v68_v10, %v117_v11  ;;  %v361_v21 = vmax.f32 %v263_v9, %v312_v6  ;;  %v508_v22 = vld [vmem:[%s2493_s5 + $0x118] sm:$0xff]  ;;  %v69_v27 = vld [vmem:[%s2488_s0 + $0x128] sm:$0xff] }
  0x6d   :  { %897 = vst.msk [vmem:[%s2497_s9 + $0xf8] sm:$0xff] %vm865_vm0, %v847_v7  ;;  %v653_v19 = vmax.f32 %v555_v8, %v604_v3  ;;  %v313_v23 = vld [vmem:[%s2491_s3 + $0x120] sm:$0xff]  ;;  %v118_v28 = vld [vmem:[%s2489_s1 + $0x128] sm:$0xff]  ;;  %v703_v31 = vld [vmem:[%s2495_s7 + $0x110] sm:$0xff] }
  0x6e   :  { %v848_v24 = vmax.f32 %v750_v13, %v799_v62  ;;  %v556_v25 = vmax.f32 %v458_v16, %v507_v5  ;;  %v264_v26 = vmax.f32 %v166_v18, %v215_v12  ;;  %v216_v29 = vld [vmem:[%s2490_s2 + $0x128] sm:$0xff]  ;;  %v801_v32 = vld [vmem:[%s2496_s8 + $0x110] sm:$0xff]  ;;  %v459_v33 = vmax.f32 %v361_v21, %v410_v17  ;;  %v411_v34 = vld [vmem:[%s2492_s4 + $0x120] sm:$0xff] }
  0x6f   :  { %v751_v30 = vmax.f32 %v653_v19, %v702_v14  ;;  %v167_v35 = vmax.f32 %v69_v27, %v118_v28  ;;  %v606_v37 = vld [vmem:[%s2494_s6 + $0x118] sm:$0xff]  ;;  %v509_v39 = vld [vmem:[%s2493_s5 + $0x120] sm:$0xff]  ;;  %v314_v40 = vld [vmem:[%s2491_s3 + $0x128] sm:$0xff] }
  0x70   :  { %898 = vst.msk [vmem:[%s2497_s9 + $0x100] sm:$0xff] %vm865_vm0, %v848_v24  ;;  %v654_v36 = vmax.f32 %v556_v25, %v605_v20  ;;  %v362_v38 = vmax.f32 %v264_v26, %v313_v23  ;;  %v557_v42 = vmax.f32 %v459_v33, %v508_v22  ;;  %v70_v44 = vld [vmem:[%s2488_s0 + $0x130] sm:$0xff]  ;;  %v704_v48 = vld [vmem:[%s2495_s7 + $0x118] sm:$0xff]  ;;  %v412_v51 = vld [vmem:[%s2492_s4 + $0x128] sm:$0xff] }
  0x71   :  { %v849_v41 = vmax.f32 %v751_v30, %v800_v15  ;;  %v265_v43 = vmax.f32 %v167_v35, %v216_v29  ;;  %v119_v45 = vld [vmem:[%s2489_s1 + $0x130] sm:$0xff]  ;;  %v802_v49 = vld [vmem:[%s2496_s8 + $0x118] sm:$0xff]  ;;  %v607_v54 = vld [vmem:[%s2494_s6 + $0x120] sm:$0xff] }
  0x72   :  { %v217_v46 = vld [vmem:[%s2490_s2 + $0x130] sm:$0xff]  ;;  %v752_v47 = vmax.f32 %v654_v36, %v703_v31  ;;  %v460_v50 = vmax.f32 %v362_v38, %v411_v34  ;;  %v168_v52 = vmax.f32 %v70_v44, %v119_v45  ;;  %v655_v53 = vmax.f32 %v557_v42, %v606_v37  ;;  %v510_v56 = vld [vmem:[%s2493_s5 + $0x128] sm:$0xff]  ;;  %v71_v61 = vld [vmem:[%s2488_s0 + $0x138] sm:$0xff] }
  0x73   :  { %899 = vst.msk [vmem:[%s2497_s9 + $0x108] sm:$0xff] %vm865_vm0, %v849_v41  ;;  %v363_v55 = vmax.f32 %v265_v43, %v314_v40  ;;  %v315_v57 = vld [vmem:[%s2491_s3 + $0x130] sm:$0xff]  ;;  %v120_v62 = vld [vmem:[%s2489_s1 + $0x138] sm:$0xff]  ;;  %v705_v1 = vld [vmem:[%s2495_s7 + $0x120] sm:$0xff] }
  0x74   :  { %v850_v58 = vmax.f32 %v752_v47, %v801_v32  ;;  %v558_v59 = vmax.f32 %v460_v50, %v509_v39  ;;  %v266_v60 = vmax.f32 %v168_v52, %v217_v46  ;;  %v218_v63 = vld [vmem:[%s2490_s2 + $0x138] sm:$0xff]  ;;  %v753_v0 = vmax.f32 %v655_v53, %v704_v48  ;;  %v803_v2 = vld [vmem:[%s2496_s8 + $0x120] sm:$0xff]  ;;  %v413_v4 = vld [vmem:[%s2492_s4 + $0x130] sm:$0xff] }
  0x75   :  { %v461_v3 = vmax.f32 %v363_v55, %v412_v51  ;;  %v169_v5 = vmax.f32 %v71_v61, %v120_v62  ;;  %v608_v7 = vld [vmem:[%s2494_s6 + $0x128] sm:$0xff]  ;;  %v511_v9 = vld [vmem:[%s2493_s5 + $0x130] sm:$0xff]  ;;  %v316_v10 = vld [vmem:[%s2491_s3 + $0x138] sm:$0xff] }
  0x76   :  { %900 = vst.msk [vmem:[%s2497_s9 + $0x110] sm:$0xff] %vm865_vm0, %v850_v58  ;;  %v656_v6 = vmax.f32 %v558_v59, %v607_v54  ;;  %v364_v8 = vmax.f32 %v266_v60, %v315_v57  ;;  %v851_v11 = vmax.f32 %v753_v0, %v802_v49  ;;  %v72_v14 = vld [vmem:[%s2488_s0 + $0x140] sm:$0xff]  ;;  %v706_v18 = vld [vmem:[%s2495_s7 + $0x128] sm:$0xff]  ;;  %v414_v21 = vld [vmem:[%s2492_s4 + $0x138] sm:$0xff] }
  0x77   :  { %v559_v12 = vmax.f32 %v461_v3, %v510_v56  ;;  %v267_v13 = vmax.f32 %v169_v5, %v218_v63  ;;  %v121_v15 = vld [vmem:[%s2489_s1 + $0x140] sm:$0xff]  ;;  %v804_v19 = vld [vmem:[%s2496_s8 + $0x128] sm:$0xff]  ;;  %v609_v24 = vld [vmem:[%s2494_s6 + $0x130] sm:$0xff] }
  0x78   :  { %v219_v16 = vld [vmem:[%s2490_s2 + $0x140] sm:$0xff]  ;;  %v754_v17 = vmax.f32 %v656_v6, %v705_v1  ;;  %v462_v20 = vmax.f32 %v364_v8, %v413_v4  ;;  %v170_v22 = vmax.f32 %v72_v14, %v121_v15  ;;  %901 = vst.msk [vmem:[%s2497_s9 + $0x118] sm:$0xff] %vm865_vm0, %v851_v11  ;;  %v512_v26 = vld [vmem:[%s2493_s5 + $0x138] sm:$0xff]  ;;  %v73_v31 = vld [vmem:[%s2488_s0 + $0x148] sm:$0xff] }
  0x79   :  { %v657_v23 = vmax.f32 %v559_v12, %v608_v7  ;;  %v365_v25 = vmax.f32 %v267_v13, %v316_v10  ;;  %v317_v27 = vld [vmem:[%s2491_s3 + $0x140] sm:$0xff]  ;;  %v122_v32 = vld [vmem:[%s2489_s1 + $0x148] sm:$0xff]  ;;  %v707_v35 = vld [vmem:[%s2495_s7 + $0x130] sm:$0xff] }
  0x7a   :  { %v852_v28 = vmax.f32 %v754_v17, %v803_v2  ;;  %v560_v29 = vmax.f32 %v462_v20, %v511_v9  ;;  %v268_v30 = vmax.f32 %v170_v22, %v219_v16  ;;  %v220_v33 = vld [vmem:[%s2490_s2 + $0x148] sm:$0xff]  ;;  %v805_v36 = vld [vmem:[%s2496_s8 + $0x130] sm:$0xff]  ;;  %v415_v38 = vld [vmem:[%s2492_s4 + $0x140] sm:$0xff]  ;;  %v171_v39 = vmax.f32 %v73_v31, %v122_v32 }
  0x7b   :  { %v755_v34 = vmax.f32 %v657_v23, %v706_v18  ;;  %v463_v37 = vmax.f32 %v365_v25, %v414_v21  ;;  %v610_v41 = vld [vmem:[%s2494_s6 + $0x138] sm:$0xff]  ;;  %v513_v43 = vld [vmem:[%s2493_s5 + $0x140] sm:$0xff]  ;;  %v318_v44 = vld [vmem:[%s2491_s3 + $0x148] sm:$0xff] }
  0x7c   :  { %902 = vst.msk [vmem:[%s2497_s9 + $0x120] sm:$0xff] %vm865_vm0, %v852_v28  ;;  %v658_v40 = vmax.f32 %v560_v29, %v609_v24  ;;  %v366_v42 = vmax.f32 %v268_v30, %v317_v27  ;;  %v269_v47 = vmax.f32 %v171_v39, %v220_v33  ;;  %v74_v48 = vld [vmem:[%s2488_s0 + $0x150] sm:$0xff]  ;;  %v708_v52 = vld [vmem:[%s2495_s7 + $0x138] sm:$0xff]  ;;  %v416_v55 = vld [vmem:[%s2492_s4 + $0x148] sm:$0xff] }
  0x7d   :  { %v853_v45 = vmax.f32 %v755_v34, %v804_v19  ;;  %v561_v46 = vmax.f32 %v463_v37, %v512_v26  ;;  %v123_v49 = vld [vmem:[%s2489_s1 + $0x150] sm:$0xff]  ;;  %v806_v53 = vld [vmem:[%s2496_s8 + $0x138] sm:$0xff]  ;;  %v611_v58 = vld [vmem:[%s2494_s6 + $0x140] sm:$0xff] }
  0x7e   :  { %v221_v50 = vld [vmem:[%s2490_s2 + $0x150] sm:$0xff]  ;;  %v756_v51 = vmax.f32 %v658_v40, %v707_v35  ;;  %v464_v54 = vmax.f32 %v366_v42, %v415_v38  ;;  %v172_v56 = vmax.f32 %v74_v48, %v123_v49  ;;  %v367_v59 = vmax.f32 %v269_v47, %v318_v44  ;;  %v514_v60 = vld [vmem:[%s2493_s5 + $0x148] sm:$0xff]  ;;  %v75_v1 = vld [vmem:[%s2488_s0 + $0x158] sm:$0xff] }
  0x7f   :  { %903 = vst.msk [vmem:[%s2497_s9 + $0x128] sm:$0xff] %vm865_vm0, %v853_v45  ;;  %v659_v57 = vmax.f32 %v561_v46, %v610_v41  ;;  %v319_v61 = vld [vmem:[%s2491_s3 + $0x150] sm:$0xff]  ;;  %v124_v2 = vld [vmem:[%s2489_s1 + $0x158] sm:$0xff]  ;;  %v709_v5 = vld [vmem:[%s2495_s7 + $0x140] sm:$0xff] }
  0x80   :  { %v854_v62 = vmax.f32 %v756_v51, %v805_v36  ;;  %v562_v63 = vmax.f32 %v464_v54, %v513_v43  ;;  %v270_v0 = vmax.f32 %v172_v56, %v221_v50  ;;  %v222_v3 = vld [vmem:[%s2490_s2 + $0x158] sm:$0xff]  ;;  %v807_v6 = vld [vmem:[%s2496_s8 + $0x140] sm:$0xff]  ;;  %v465_v7 = vmax.f32 %v367_v59, %v416_v55  ;;  %v417_v8 = vld [vmem:[%s2492_s4 + $0x150] sm:$0xff] }
  0x81   :  { %v757_v4 = vmax.f32 %v659_v57, %v708_v52  ;;  %v173_v9 = vmax.f32 %v75_v1, %v124_v2  ;;  %v612_v11 = vld [vmem:[%s2494_s6 + $0x148] sm:$0xff]  ;;  %v515_v13 = vld [vmem:[%s2493_s5 + $0x150] sm:$0xff]  ;;  %v320_v14 = vld [vmem:[%s2491_s3 + $0x158] sm:$0xff] }
  0x82   :  { %904 = vst.msk [vmem:[%s2497_s9 + $0x130] sm:$0xff] %vm865_vm0, %v854_v62  ;;  %v660_v10 = vmax.f32 %v562_v63, %v611_v58  ;;  %v368_v12 = vmax.f32 %v270_v0, %v319_v61  ;;  %v563_v16 = vmax.f32 %v465_v7, %v514_v60  ;;  %v76_v18 = vld [vmem:[%s2488_s0 + $0x160] sm:$0xff]  ;;  %v710_v22 = vld [vmem:[%s2495_s7 + $0x148] sm:$0xff]  ;;  %v418_v25 = vld [vmem:[%s2492_s4 + $0x158] sm:$0xff] }
  0x83   :  { %v855_v15 = vmax.f32 %v757_v4, %v806_v53  ;;  %v271_v17 = vmax.f32 %v173_v9, %v222_v3  ;;  %v125_v19 = vld [vmem:[%s2489_s1 + $0x160] sm:$0xff]  ;;  %v808_v23 = vld [vmem:[%s2496_s8 + $0x148] sm:$0xff]  ;;  %v613_v28 = vld [vmem:[%s2494_s6 + $0x150] sm:$0xff] }
  0x84   :  { %v223_v20 = vld [vmem:[%s2490_s2 + $0x160] sm:$0xff]  ;;  %v758_v21 = vmax.f32 %v660_v10, %v709_v5  ;;  %v466_v24 = vmax.f32 %v368_v12, %v417_v8  ;;  %v174_v26 = vmax.f32 %v76_v18, %v125_v19  ;;  %v661_v27 = vmax.f32 %v563_v16, %v612_v11  ;;  %v516_v30 = vld [vmem:[%s2493_s5 + $0x158] sm:$0xff]  ;;  %v77_v35 = vld [vmem:[%s2488_s0 + $0x168] sm:$0xff] }
  0x85   :  { %905 = vst.msk [vmem:[%s2497_s9 + $0x138] sm:$0xff] %vm865_vm0, %v855_v15  ;;  %v369_v29 = vmax.f32 %v271_v17, %v320_v14  ;;  %v321_v31 = vld [vmem:[%s2491_s3 + $0x160] sm:$0xff]  ;;  %v126_v36 = vld [vmem:[%s2489_s1 + $0x168] sm:$0xff]  ;;  %v711_v39 = vld [vmem:[%s2495_s7 + $0x150] sm:$0xff] }
  0x86   :  { %v856_v32 = vmax.f32 %v758_v21, %v807_v6  ;;  %v564_v33 = vmax.f32 %v466_v24, %v515_v13  ;;  %v272_v34 = vmax.f32 %v174_v26, %v223_v20  ;;  %v224_v37 = vld [vmem:[%s2490_s2 + $0x168] sm:$0xff]  ;;  %v759_v38 = vmax.f32 %v661_v27, %v710_v22  ;;  %v809_v40 = vld [vmem:[%s2496_s8 + $0x150] sm:$0xff]  ;;  %v419_v42 = vld [vmem:[%s2492_s4 + $0x160] sm:$0xff] }
  0x87   :  { %v467_v41 = vmax.f32 %v369_v29, %v418_v25  ;;  %v175_v43 = vmax.f32 %v77_v35, %v126_v36  ;;  %v614_v45 = vld [vmem:[%s2494_s6 + $0x158] sm:$0xff]  ;;  %v517_v47 = vld [vmem:[%s2493_s5 + $0x160] sm:$0xff]  ;;  %v322_v48 = vld [vmem:[%s2491_s3 + $0x168] sm:$0xff] }
  0x88   :  { %906 = vst.msk [vmem:[%s2497_s9 + $0x140] sm:$0xff] %vm865_vm0, %v856_v32  ;;  %v662_v44 = vmax.f32 %v564_v33, %v613_v28  ;;  %v370_v46 = vmax.f32 %v272_v34, %v321_v31  ;;  %v857_v49 = vmax.f32 %v759_v38, %v808_v23  ;;  %v78_v52 = vld [vmem:[%s2488_s0 + $0x170] sm:$0xff]  ;;  %v712_v56 = vld [vmem:[%s2495_s7 + $0x158] sm:$0xff]  ;;  %v420_v59 = vld [vmem:[%s2492_s4 + $0x168] sm:$0xff] }
  0x89   :  { %v565_v50 = vmax.f32 %v467_v41, %v516_v30  ;;  %v273_v51 = vmax.f32 %v175_v43, %v224_v37  ;;  %v127_v53 = vld [vmem:[%s2489_s1 + $0x170] sm:$0xff]  ;;  %v810_v57 = vld [vmem:[%s2496_s8 + $0x158] sm:$0xff]  ;;  %v615_v62 = vld [vmem:[%s2494_s6 + $0x160] sm:$0xff] }
  0x8a   :  { %v225_v54 = vld [vmem:[%s2490_s2 + $0x170] sm:$0xff]  ;;  %v760_v55 = vmax.f32 %v662_v44, %v711_v39  ;;  %v468_v58 = vmax.f32 %v370_v46, %v419_v42  ;;  %v176_v60 = vmax.f32 %v78_v52, %v127_v53  ;;  %907 = vst.msk [vmem:[%s2497_s9 + $0x148] sm:$0xff] %vm865_vm0, %v857_v49  ;;  %v518_v0 = vld [vmem:[%s2493_s5 + $0x168] sm:$0xff]  ;;  %v79_v5 = vld [vmem:[%s2488_s0 + $0x178] sm:$0xff] }
  0x8b   :  { %v663_v61 = vmax.f32 %v565_v50, %v614_v45  ;;  %v371_v63 = vmax.f32 %v273_v51, %v322_v48  ;;  %v323_v1 = vld [vmem:[%s2491_s3 + $0x170] sm:$0xff]  ;;  %v128_v6 = vld [vmem:[%s2489_s1 + $0x178] sm:$0xff]  ;;  %v713_v9 = vld [vmem:[%s2495_s7 + $0x160] sm:$0xff] }
  0x8c   :  { %v858_v2 = vmax.f32 %v760_v55, %v809_v40  ;;  %v566_v3 = vmax.f32 %v468_v58, %v517_v47  ;;  %v274_v4 = vmax.f32 %v176_v60, %v225_v54  ;;  %v226_v7 = vld [vmem:[%s2490_s2 + $0x178] sm:$0xff]  ;;  %v811_v10 = vld [vmem:[%s2496_s8 + $0x160] sm:$0xff]  ;;  %v421_v12 = vld [vmem:[%s2492_s4 + $0x170] sm:$0xff]  ;;  %v177_v13 = vmax.f32 %v79_v5, %v128_v6 }
  0x8d   :  { %v761_v8 = vmax.f32 %v663_v61, %v712_v56  ;;  %v469_v11 = vmax.f32 %v371_v63, %v420_v59  ;;  %v616_v15 = vld [vmem:[%s2494_s6 + $0x168] sm:$0xff]  ;;  %v519_v17 = vld [vmem:[%s2493_s5 + $0x170] sm:$0xff]  ;;  %v324_v18 = vld [vmem:[%s2491_s3 + $0x178] sm:$0xff] }
  0x8e   :  { %908 = vst.msk [vmem:[%s2497_s9 + $0x150] sm:$0xff] %vm865_vm0, %v858_v2  ;;  %v664_v14 = vmax.f32 %v566_v3, %v615_v62  ;;  %v372_v16 = vmax.f32 %v274_v4, %v323_v1  ;;  %v275_v21 = vmax.f32 %v177_v13, %v226_v7  ;;  %v80_v22 = vld [vmem:[%s2488_s0 + $0x180] sm:$0xff]  ;;  %v714_v26 = vld [vmem:[%s2495_s7 + $0x168] sm:$0xff]  ;;  %v422_v28 = vld [vmem:[%s2492_s4 + $0x178] sm:$0xff] }
  0x8f   :  { %v859_v19 = vmax.f32 %v761_v8, %v810_v57  ;;  %v567_v20 = vmax.f32 %v469_v11, %v518_v0  ;;  %v129_v23 = vld [vmem:[%s2489_s1 + $0x180] sm:$0xff]  ;;  %v617_v31 = vld [vmem:[%s2494_s6 + $0x170] sm:$0xff]  ;;  %v812_v35 = vld [vmem:[%s2496_s8 + $0x168] sm:$0xff] }
  0x90   :  { %v227_v24 = vld [vmem:[%s2490_s2 + $0x180] sm:$0xff]  ;;  %v762_v25 = vmax.f32 %v664_v14, %v713_v9  ;;  %v470_v27 = vmax.f32 %v372_v16, %v421_v12  ;;  %v178_v29 = vmax.f32 %v80_v22, %v129_v23  ;;  %v373_v32 = vmax.f32 %v275_v21, %v324_v18  ;;  %v520_v37 = vld [vmem:[%s2493_s5 + $0x178] sm:$0xff]  ;;  %v715_v40 = vld [vmem:[%s2495_s7 + $0x170] sm:$0xff] }
  0x91   :  { %909 = vst.msk [vmem:[%s2497_s9 + $0x158] sm:$0xff] %vm865_vm0, %v859_v19  ;;  %v665_v30 = vmax.f32 %v567_v20, %v616_v15  ;;  %v325_v33 = vld [vmem:[%s2491_s3 + $0x180] sm:$0xff]  ;;  %v618_v44 = vld [vmem:[%s2494_s6 + $0x178] sm:$0xff]  ;;  %v813_v47 = vld [vmem:[%s2496_s8 + $0x170] sm:$0xff] }
  0x92   :  { %v860_v34 = vmax.f32 %v762_v25, %v811_v10  ;;  %v568_v36 = vmax.f32 %v470_v27, %v519_v17  ;;  %v276_v38 = vmax.f32 %v178_v29, %v227_v24  ;;  %v471_v41 = vmax.f32 %v373_v32, %v422_v28  ;;  %v423_v42 = vld [vmem:[%s2492_s4 + $0x180] sm:$0xff]  ;;  %v716_v51 = vld [vmem:[%s2495_s7 + $0x178] sm:$0xff] }
  0x93   :  { %v763_v39 = vmax.f32 %v665_v30, %v714_v26  ;;  %v521_v49 = vld [vmem:[%s2493_s5 + $0x180] sm:$0xff]  ;;  %v814_v56 = vld [vmem:[%s2496_s8 + $0x178] sm:$0xff] }
  0x94   :  { %910 = vst.msk [vmem:[%s2497_s9 + $0x160] sm:$0xff] %vm865_vm0, %v860_v34  ;;  %v666_v43 = vmax.f32 %v568_v36, %v617_v31  ;;  %v374_v45 = vmax.f32 %v276_v38, %v325_v33  ;;  %v569_v48 = vmax.f32 %v471_v41, %v520_v37  ;;  %v619_v54 = vld [vmem:[%s2494_s6 + $0x180] sm:$0xff] }
  0x95   :  { %v861_v46 = vmax.f32 %v763_v39, %v812_v35  ;;  %v717_v59 = vld [vmem:[%s2495_s7 + $0x180] sm:$0xff] }
  0x96   :  { %v764_v50 = vmax.f32 %v666_v43, %v715_v40  ;;  %v472_v52 = vmax.f32 %v374_v45, %v423_v42  ;;  %v667_v53 = vmax.f32 %v569_v48, %v618_v44  ;;  %v815_v62 = vld [vmem:[%s2496_s8 + $0x180] sm:$0xff] }
  0x97   :  { %911 = vst.msk [vmem:[%s2497_s9 + $0x168] sm:$0xff] %vm865_vm0, %v861_v46 }
  0x98   :  { %v862_v55 = vmax.f32 %v764_v50, %v813_v47  ;;  %v570_v57 = vmax.f32 %v472_v52, %v521_v49  ;;  %v765_v58 = vmax.f32 %v667_v53, %v716_v51 }
  0x9a   :  { %912 = vst.msk [vmem:[%s2497_s9 + $0x170] sm:$0xff] %vm865_vm0, %v862_v55  ;;  %v668_v60 = vmax.f32 %v570_v57, %v619_v54  ;;  %v863_v61 = vmax.f32 %v765_v58, %v814_v56 }
  0x9c   :  { %v766_v63 = vmax.f32 %v668_v60, %v717_v59  ;;  %913 = vst.msk [vmem:[%s2497_s9 + $0x178] sm:$0xff] %vm865_vm0, %v863_v61 }
  0x9e   :  { %v864_v0 = vmax.f32 %v766_v63, %v815_v62 }
  0xa0   :  { %914 = vst.msk [vmem:[%s2497_s9 + $0x180] sm:$0xff] %vm865_vm0, %v864_v0 }

// kernel: sesame_forward.16
= control target key start
LH: loop header
LB: loop body
LE: loop exit
PB: predicated region body
PF: predicated region fallthrough
CT: control target
= control target key end

     0   :  { %vm108_vm0 = vcmask 588800   ;;  %vm121_vm1 = vcmask 582656   ;;  %s359_s0 = inlined_call_operand.vmem [shape: f32[98,72], index: 0, kind: input, shape index: {}]   ;;  %s360_s1 = inlined_call_operand.vmem [shape: f32[98,72], index: 1, kind: input, shape index: {}]   ;;  %s361_s2 = inlined_call_operand.vmem [shape: f32[98,72], index: 2, kind: input, shape index: {}]   ;;  %s362_s3 = inlined_call_operand.vmem [shape: f32[98,72], index: 3, kind: input, shape index: {}]   ;;  %s363_s4 = inlined_call_operand.vmem [shape: f32[98,72], index: 4, kind: output, shape index: {}]  }
   0x1   :  { %v17_v0 = vld [vmem:[%s359_s0] sm:$0xff]  ;;  %v18_v4 = vld [vmem:[%s359_s0 + $0x8] sm:$0xff]  ;;  %v19_v9 = vld [vmem:[%s359_s0 + $0x10] sm:$0xff] }
   0x2   :  { %v30_v1 = vld [vmem:[%s360_s1] sm:$0xff]  ;;  %v31_v5 = vld [vmem:[%s360_s1 + $0x8] sm:$0xff]  ;;  %v32_v12 = vld [vmem:[%s360_s1 + $0x10] sm:$0xff] }
   0x3   :  { %v56_v2 = vld [vmem:[%s361_s2] sm:$0xff]  ;;  %v43_v3 = vmax.f32 %v17_v0, %v30_v1  ;;  %v44_v7 = vmax.f32 %v18_v4, %v31_v5  ;;  %v57_v8 = vld [vmem:[%s361_s2 + $0x8] sm:$0xff]  ;;  %v58_v13 = vld [vmem:[%s361_s2 + $0x10] sm:$0xff]  ;;  %v45_v15 = vmax.f32 %v19_v9, %v32_v12 }
   0x4   :  { %v82_v6 = vld [vmem:[%s362_s3] sm:$0xff]  ;;  %v83_v11 = vld [vmem:[%s362_s3 + $0x8] sm:$0xff]  ;;  %v20_v16 = vld [vmem:[%s359_s0 + $0x18] sm:$0xff] }
   0x5   :  { %v69_v10 = vmax.f32 %v43_v3, %v56_v2  ;;  %v70_v14 = vmax.f32 %v44_v7, %v57_v8  ;;  %v33_v17 = vld [vmem:[%s360_s1 + $0x18] sm:$0xff]  ;;  %v84_v20 = vld [vmem:[%s362_s3 + $0x10] sm:$0xff]  ;;  %v21_v22 = vld [vmem:[%s359_s0 + $0x20] sm:$0xff]  ;;  %v71_v25 = vmax.f32 %v45_v15, %v58_v13 }
   0x6   :  { %v59_v18 = vld [vmem:[%s361_s2 + $0x18] sm:$0xff]  ;;  %v46_v21 = vmax.f32 %v20_v16, %v33_v17  ;;  %v34_v23 = vld [vmem:[%s360_s1 + $0x20] sm:$0xff]  ;;  %v22_v29 = vld [vmem:[%s359_s0 + $0x28] sm:$0xff] }
   0x7   :  { %v95_v19 = vmax.f32 %v69_v10, %v82_v6  ;;  %v96_v24 = vmax.f32 %v70_v14, %v83_v11  ;;  %v85_v26 = vld [vmem:[%s362_s3 + $0x18] sm:$0xff]  ;;  %v47_v27 = vmax.f32 %v21_v22, %v34_v23  ;;  %v60_v28 = vld [vmem:[%s361_s2 + $0x20] sm:$0xff]  ;;  %v35_v32 = vld [vmem:[%s360_s1 + $0x28] sm:$0xff]  ;;  %v97_v34 = vmax.f32 %v71_v25, %v84_v20 }
   0x8   :  { %v72_v30 = vmax.f32 %v46_v21, %v59_v18  ;;  %v86_v31 = vld [vmem:[%s362_s3 + $0x20] sm:$0xff]  ;;  %v61_v33 = vld [vmem:[%s361_s2 + $0x28] sm:$0xff]  ;;  %v48_v36 = vmax.f32 %v22_v29, %v35_v32  ;;  %v23_v37 = vld [vmem:[%s359_s0 + $0x30] sm:$0xff] }
   0x9   :  { %109 = vst.msk [vmem:[%s363_s4] sm:$0xff] %vm108_vm0, %v95_v19  ;;  %110 = vst.msk [vmem:[%s363_s4 + $0x8] sm:$0xff] %vm108_vm0, %v96_v24  ;;  %v73_v35 = vmax.f32 %v47_v27, %v60_v28  ;;  %v36_v38 = vld [vmem:[%s360_s1 + $0x30] sm:$0xff]  ;;  %v87_v41 = vld [vmem:[%s362_s3 + $0x28] sm:$0xff] }
   0xa   :  { %v62_v39 = vld [vmem:[%s361_s2 + $0x30] sm:$0xff]  ;;  %v98_v40 = vmax.f32 %v72_v30, %v85_v26  ;;  %v49_v42 = vmax.f32 %v23_v37, %v36_v38  ;;  %v24_v43 = vld [vmem:[%s359_s0 + $0x38] sm:$0xff]  ;;  %111 = vst.msk [vmem:[%s363_s4 + $0x10] sm:$0xff] %vm108_vm0, %v97_v34  ;;  %v74_v46 = vmax.f32 %v48_v36, %v61_v33  ;;  %v25_v50 = vld [vmem:[%s359_s0 + $0x40] sm:$0xff] }
   0xb   :  { %v37_v44 = vld [vmem:[%s360_s1 + $0x38] sm:$0xff]  ;;  %v99_v45 = vmax.f32 %v73_v35, %v86_v31  ;;  %v88_v47 = vld [vmem:[%s362_s3 + $0x30] sm:$0xff]  ;;  %v38_v53 = vld [vmem:[%s360_s1 + $0x40] sm:$0xff] }
   0xc   :  { %v50_v48 = vmax.f32 %v24_v43, %v37_v44  ;;  %v63_v49 = vld [vmem:[%s361_s2 + $0x38] sm:$0xff]  ;;  %112 = vst.msk [vmem:[%s363_s4 + $0x18] sm:$0xff] %vm108_vm0, %v98_v40  ;;  %v75_v51 = vmax.f32 %v49_v42, %v62_v39  ;;  %v64_v54 = vld [vmem:[%s361_s2 + $0x40] sm:$0xff]  ;;  %v100_v55 = vmax.f32 %v74_v46, %v87_v41  ;;  %v51_v57 = vmax.f32 %v25_v50, %v38_v53  ;;  %v26_v58 = vld [vmem:[%s359_s0 + $0x48] sm:$0xff] }
   0xd   :  { %v89_v52 = vld [vmem:[%s362_s3 + $0x38] sm:$0xff]  ;;  %113 = vst.msk [vmem:[%s363_s4 + $0x20] sm:$0xff] %vm108_vm0, %v99_v45  ;;  %v39_v59 = vld [vmem:[%s360_s1 + $0x48] sm:$0xff]  ;;  %v90_v62 = vld [vmem:[%s362_s3 + $0x40] sm:$0xff] }
   0xe   :  { %v76_v56 = vmax.f32 %v50_v48, %v63_v49  ;;  %v65_v60 = vld [vmem:[%s361_s2 + $0x48] sm:$0xff]  ;;  %v101_v61 = vmax.f32 %v75_v51, %v88_v47  ;;  %v52_v63 = vmax.f32 %v26_v58, %v39_v59  ;;  %v27_v0 = vld [vmem:[%s359_s0 + $0x50] sm:$0xff]  ;;  %114 = vst.msk [vmem:[%s363_s4 + $0x28] sm:$0xff] %vm108_vm0, %v100_v55  ;;  %v77_v3 = vmax.f32 %v51_v57, %v64_v54  ;;  %v28_v7 = vld [vmem:[%s359_s0 + $0x58] sm:$0xff] }
   0xf   :  { %v40_v1 = vld [vmem:[%s360_s1 + $0x50] sm:$0xff]  ;;  %v91_v4 = vld [vmem:[%s362_s3 + $0x48] sm:$0xff]  ;;  %v41_v10 = vld [vmem:[%s360_s1 + $0x58] sm:$0xff] }
  0x10   :  { %v102_v2 = vmax.f32 %v76_v56, %v89_v52  ;;  %v53_v5 = vmax.f32 %v27_v0, %v40_v1  ;;  %v66_v6 = vld [vmem:[%s361_s2 + $0x50] sm:$0xff]  ;;  %115 = vst.msk [vmem:[%s363_s4 + $0x30] sm:$0xff] %vm108_vm0, %v101_v61  ;;  %v78_v8 = vmax.f32 %v52_v63, %v65_v60  ;;  %v67_v11 = vld [vmem:[%s361_s2 + $0x58] sm:$0xff]  ;;  %v103_v12 = vmax.f32 %v77_v3, %v90_v62  ;;  %v29_v15 = vld [vmem:[%s359_s0 + $0x60] sm:$0x3] }
  0x11   :  { %v92_v9 = vld [vmem:[%s362_s3 + $0x50] sm:$0xff]  ;;  %v54_v14 = vmax.f32 %v28_v7, %v41_v10  ;;  %v42_v16 = vld [vmem:[%s360_s1 + $0x60] sm:$0x3]  ;;  %v93_v19 = vld [vmem:[%s362_s3 + $0x58] sm:$0xff] }
  0x12   :  { %116 = vst.msk [vmem:[%s363_s4 + $0x38] sm:$0xff] %vm108_vm0, %v102_v2  ;;  %v79_v13 = vmax.f32 %v53_v5, %v66_v6  ;;  %v68_v17 = vld [vmem:[%s361_s2 + $0x60] sm:$0x3]  ;;  %v104_v18 = vmax.f32 %v78_v8, %v91_v4  ;;  %v55_v20 = vmax.f32 %v29_v15, %v42_v16  ;;  %117 = vst.msk [vmem:[%s363_s4 + $0x40] sm:$0xff] %vm108_vm0, %v103_v12 }
  0x13   :  { %v80_v22 = vmax.f32 %v54_v14, %v67_v11  ;;  %v94_v23 = vld [vmem:[%s362_s3 + $0x60] sm:$0x3] }
  0x14   :  { %v105_v21 = vmax.f32 %v79_v13, %v92_v9  ;;  %118 = vst.msk [vmem:[%s363_s4 + $0x48] sm:$0xff] %vm108_vm0, %v104_v18  ;;  %v81_v24 = vmax.f32 %v55_v20, %v68_v17 }
  0x15   :  { %v106_v25 = vmax.f32 %v80_v22, %v93_v19 }
  0x16   :  { %119 = vst.msk [vmem:[%s363_s4 + $0x50] sm:$0xff] %vm108_vm0, %v105_v21  ;;  %v107_v26 = vmax.f32 %v81_v24, %v94_v23 }
  0x17   :  { %120 = vst.msk [vmem:[%s363_s4 + $0x58] sm:$0xff] %vm108_vm0, %v106_v25 }
  0x18   :  { %122 = vst.msk [vmem:[%s363_s4 + $0x60] sm:$0x3] %vm121_vm1, %v107_v26 }

// kernel: sesame_forward.17
= control target key start
LH: loop header
LB: loop body
LE: loop exit
PB: predicated region body
PF: predicated region fallthrough
CT: control target
= control target key end

     0   :  { %vm1903_vm0 = vcmask 588800   ;;  %vm1907_vm1 = vcmask 1043456   ;;  %vm3439_vm2 = vmmov 0   ;;  %s4246_s1 = inlined_call_operand.vmem [shape: bf16[3528,128], index: 1, kind: input, shape index: {}]   ;;  %s4247_s0 = inlined_call_operand.vmem [shape: bf16[8,3528], index: 0, kind: input, shape index: {}]   ;;  %s4248_s2 = inlined_call_operand.vmem [shape: f32[1,128], index: 2, kind: input, shape index: {}]   ;;  %s4249_s3 = inlined_call_operand.vmem [shape: f32[128,128], index: 3, kind: input, shape index: {}]   ;;  %s4250_s4 = inlined_call_operand.vmem [shape: f32[1,128], index: 4, kind: input, shape index: {}]   ;;  %s4251_s5 = inlined_call_operand.vmem [shape: f32[8,128], index: 5, kind: output, shape index: {}]  }
   0x1   :  { %v3188_v0 = vld [vmem:[%s4246_s1 + $0x40] sm:$0xff]   ;;  %v3192_v4 = vld [vmem:[%s4246_s1 + $0x48] sm:$0xff]   ;;  %v3196_v8 = vld [vmem:[%s4246_s1 + $0x50] sm:$0xff]  }
   0x2   :  { %v3189_v1 = vld [vmem:[%s4246_s1 + $0xc0] sm:$0xff]   ;;  %2822 = vmatprep.subr.bf16.mxu0 %v3188_v0  ;;  %v3193_v5 = vld [vmem:[%s4246_s1 + $0xc8] sm:$0xff]   ;;  %v3197_v9 = vld [vmem:[%s4246_s1 + $0xd0] sm:$0xff]  }
   0x3   :  { %v3190_v2 = vld [vmem:[%s4246_s1] sm:$0xff]   ;;  %2844 = vmatprep.subr.bf16.mxu1 %v3189_v1  ;;  %v3194_v6 = vld [vmem:[%s4246_s1 + $0x8] sm:$0xff]   ;;  %v3198_v10 = vld [vmem:[%s4246_s1 + $0x10] sm:$0xff]  }
   0x4   :  { %v3191_v3 = vld [vmem:[%s4246_s1 + $0x80] sm:$0xff]   ;;  %2823 = vmatpush3.bf16.msra.mxu0 %v3190_v2  ;;  %v3195_v7 = vld [vmem:[%s4246_s1 + $0x88] sm:$0xff]   ;;  %v3199_v11 = vld [vmem:[%s4246_s1 + $0x90] sm:$0xff]  }
   0x5   :  { %2845 = vmatpush3.bf16.msra.mxu1 %v3191_v3  ;;  %2824 = vmatprep.subr.bf16.mxu0 %v3192_v4  ;;  %v3200_v12 = vld [vmem:[%s4246_s1 + $0x58] sm:$0xff]   ;;  %v3204_v16 = vld [vmem:[%s4246_s1 + $0x60] sm:$0xff]   ;;  %v3208_v20 = vld [vmem:[%s4246_s1 + $0x68] sm:$0xff]  }
   0x6   :  { %2846 = vmatprep.subr.bf16.mxu1 %v3193_v5  ;;  %v3201_v13 = vld [vmem:[%s4246_s1 + $0xd8] sm:$0xff]   ;;  %v3205_v17 = vld [vmem:[%s4246_s1 + $0xe0] sm:$0xff]   ;;  %v3209_v21 = vld [vmem:[%s4246_s1 + $0xe8] sm:$0xff]  }
   0x7   :  { %v3202_v14 = vld [vmem:[%s4246_s1 + $0x18] sm:$0xff]   ;;  %v3206_v18 = vld [vmem:[%s4246_s1 + $0x20] sm:$0xff]   ;;  %v3210_v22 = vld [vmem:[%s4246_s1 + $0x28] sm:$0xff]  }
   0x8   :  { %2825 = vmatpush3.bf16.msra.mxu0 %v3194_v6  ;;  %v3203_v15 = vld [vmem:[%s4246_s1 + $0x98] sm:$0xff]   ;;  %v3207_v19 = vld [vmem:[%s4246_s1 + $0xa0] sm:$0xff]   ;;  %v3211_v23 = vld [vmem:[%s4246_s1 + $0xa8] sm:$0xff]  }
   0x9   :  { %2847 = vmatpush3.bf16.msra.mxu1 %v3195_v7  ;;  %2826 = vmatprep.subr.bf16.mxu0 %v3196_v8  ;;  %v3212_v24 = vld [vmem:[%s4246_s1 + $0x70] sm:$0xff]   ;;  %v3216_v28 = vld [vmem:[%s4246_s1 + $0x78] sm:$0xff]   ;;  %v21_v32 = vld [vmem:[%s4247_s0] sm:$0xff] }
   0xa   :  { %2848 = vmatprep.subr.bf16.mxu1 %v3197_v9  ;;  %v3213_v25 = vld [vmem:[%s4246_s1 + $0xf0] sm:$0xff]   ;;  %v3217_v29 = vld [vmem:[%s4246_s1 + $0xf8] sm:$0xff]   ;;  %v22_v33 = vld [vmem:[%s4247_s0 + $0x8] sm:$0xff]  ;;  %v2571_v34 = vcombine.low %v21_v32, %v21_v32  ;;  %v2572_v35 = vcombine.high %v21_v32, %v21_v32 }
   0xb   :  { %v3214_v26 = vld [vmem:[%s4246_s1 + $0x30] sm:$0xff]   ;;  %v3218_v30 = vld [vmem:[%s4246_s1 + $0x38] sm:$0xff]   ;;  %v2573_v36 = vcombine.low %v22_v33, %v22_v33  ;;  %v2574_v37 = vcombine.high %v22_v33, %v22_v33  ;;  %v3224_v38 = vld [vmem:[%s4246_s1 + $0x140] sm:$0xff]  }
   0xc   :  { %2827 = vmatpush3.bf16.msra.mxu0 %v3198_v10  ;;  %v3215_v27 = vld [vmem:[%s4246_s1 + $0xb0] sm:$0xff]   ;;  %v3219_v31 = vld [vmem:[%s4246_s1 + $0xb8] sm:$0xff]   ;;  %v3225_v39 = vld [vmem:[%s4246_s1 + $0x1c0] sm:$0xff]   ;;  %1943 = vmatprep.mubr.bf16.mxu0 %v2572_v35 }
   0xd   :  { %2849 = vmatpush3.bf16.msra.mxu1 %v3199_v11  ;;  %2828 = vmatprep.subr.bf16.mxu0 %v3200_v12  ;;  %v3226_v40 = vld [vmem:[%s4246_s1 + $0x100] sm:$0xff]   ;;  %v3228_v42 = vld [vmem:[%s4246_s1 + $0x148] sm:$0xff]   ;;  %v3232_v46 = vld [vmem:[%s4246_s1 + $0x150] sm:$0xff]  }
   0xe   :  { %2850 = vmatprep.subr.bf16.mxu1 %v3201_v13  ;;  %1983 = vmatprep.mubr.bf16.mxu1 %v2574_v37  ;;  %v3227_v41 = vld [vmem:[%s4246_s1 + $0x180] sm:$0xff]   ;;  %v3229_v43 = vld [vmem:[%s4246_s1 + $0x1c8] sm:$0xff]   ;;  %v3233_v47 = vld [vmem:[%s4246_s1 + $0x1d0] sm:$0xff]  }
   0xf   :  { %v3230_v44 = vld [vmem:[%s4246_s1 + $0x108] sm:$0xff]   ;;  %v3234_v48 = vld [vmem:[%s4246_s1 + $0x110] sm:$0xff]   ;;  %v3236_v50 = vld [vmem:[%s4246_s1 + $0x158] sm:$0xff]  }
  0x10   :  { %2829 = vmatpush3.bf16.msra.mxu0 %v3202_v14  ;;  %v3231_v45 = vld [vmem:[%s4246_s1 + $0x188] sm:$0xff]   ;;  %v3235_v49 = vld [vmem:[%s4246_s1 + $0x190] sm:$0xff]   ;;  %v3237_v51 = vld [vmem:[%s4246_s1 + $0x1d8] sm:$0xff]  }
  0x11   :  { %2851 = vmatpush3.bf16.msra.mxu1 %v3203_v15  ;;  %2830 = vmatprep.subr.bf16.mxu0 %v3204_v16  ;;  %v3238_v52 = vld [vmem:[%s4246_s1 + $0x118] sm:$0xff]   ;;  %v3240_v54 = vld [vmem:[%s4246_s1 + $0x160] sm:$0xff]   ;;  %v3244_v58 = vld [vmem:[%s4246_s1 + $0x168] sm:$0xff]  }
  0x12   :  { %2852 = vmatprep.subr.bf16.mxu1 %v3205_v17  ;;  %v3239_v53 = vld [vmem:[%s4246_s1 + $0x198] sm:$0xff]   ;;  %v3241_v55 = vld [vmem:[%s4246_s1 + $0x1e0] sm:$0xff]   ;;  %v3245_v59 = vld [vmem:[%s4246_s1 + $0x1e8] sm:$0xff]  }
  0x13   :  { %v3242_v56 = vld [vmem:[%s4246_s1 + $0x120] sm:$0xff]   ;;  %v3246_v60 = vld [vmem:[%s4246_s1 + $0x128] sm:$0xff]   ;;  %v3248_v62 = vld [vmem:[%s4246_s1 + $0x170] sm:$0xff]  }
  0x14   :  { %2831 = vmatpush3.bf16.msra.mxu0 %v3206_v18  ;;  %v3243_v57 = vld [vmem:[%s4246_s1 + $0x1a0] sm:$0xff]   ;;  %v3247_v61 = vld [vmem:[%s4246_s1 + $0x1a8] sm:$0xff]   ;;  %v3249_v63 = vld [vmem:[%s4246_s1 + $0x1f0] sm:$0xff]  }
  0x15   :  { %2853 = vmatpush3.bf16.msra.mxu1 %v3207_v19  ;;  %2832 = vmatprep.subr.bf16.mxu0 %v3208_v20  ;;  %v3250_v0 = vld [vmem:[%s4246_s1 + $0x130] sm:$0xff]   ;;  %v3252_v2 = vld [vmem:[%s4246_s1 + $0x178] sm:$0xff]   ;;  %v3260_v12 = vld [vmem:[%s4246_s1 + $0x240] sm:$0xff]  }
  0x16   :  { %2854 = vmatprep.subr.bf16.mxu1 %v3209_v21  ;;  %v3251_v1 = vld [vmem:[%s4246_s1 + $0x1b0] sm:$0xff]   ;;  %v3253_v3 = vld [vmem:[%s4246_s1 + $0x1f8] sm:$0xff]   ;;  %v3261_v13 = vld [vmem:[%s4246_s1 + $0x2c0] sm:$0xff]  }
  0x17   :  { %v3254_v4 = vld [vmem:[%s4246_s1 + $0x138] sm:$0xff]   ;;  %v23_v6 = vld [vmem:[%s4247_s0 + $0x10] sm:$0xff]  ;;  %v3262_v14 = vld [vmem:[%s4246_s1 + $0x200] sm:$0xff]  }
  0x18   :  { %2833 = vmatpush3.bf16.msra.mxu0 %v3210_v22  ;;  %v3255_v5 = vld [vmem:[%s4246_s1 + $0x1b8] sm:$0xff]   ;;  %v2575_v7 = vcombine.low %v23_v6, %v23_v6  ;;  %v2576_v8 = vcombine.high %v23_v6, %v23_v6  ;;  %v3263_v15 = vld [vmem:[%s4246_s1 + $0x280] sm:$0xff]   ;;  %v3264_v16 = vld [vmem:[%s4246_s1 + $0x248] sm:$0xff]  }
  0x19   :  { %2855 = vmatpush3.bf16.msra.mxu1 %v3211_v23  ;;  %2834 = vmatprep.subr.bf16.mxu0 %v3212_v24  ;;  %v24_v9 = vld [vmem:[%s4247_s0 + $0x18] sm:$0xff]  ;;  %v3265_v17 = vld [vmem:[%s4246_s1 + $0x2c8] sm:$0xff]   ;;  %v3268_v20 = vld [vmem:[%s4246_s1 + $0x250] sm:$0xff]  }
  0x1a   :  { %2856 = vmatprep.subr.bf16.mxu1 %v3213_v25  ;;  %v2577_v10 = vcombine.low %v24_v9, %v24_v9  ;;  %v2578_v11 = vcombine.high %v24_v9, %v24_v9  ;;  %v3266_v18 = vld [vmem:[%s4246_s1 + $0x208] sm:$0xff]   ;;  %v3269_v21 = vld [vmem:[%s4246_s1 + $0x2d0] sm:$0xff]   ;;  %v3272_v24 = vld [vmem:[%s4246_s1 + $0x258] sm:$0xff]  }
  0x1b   :  { %v3267_v19 = vld [vmem:[%s4246_s1 + $0x288] sm:$0xff]   ;;  %v3270_v22 = vld [vmem:[%s4246_s1 + $0x210] sm:$0xff]   ;;  %v3273_v25 = vld [vmem:[%s4246_s1 + $0x2d8] sm:$0xff]  }
  0x1c   :  { %2835 = vmatpush3.bf16.msra.mxu0 %v3214_v26  ;;  %v3271_v23 = vld [vmem:[%s4246_s1 + $0x290] sm:$0xff]   ;;  %v3274_v26 = vld [vmem:[%s4246_s1 + $0x218] sm:$0xff]   ;;  %v3280_v32 = vld [vmem:[%s4246_s1 + $0x268] sm:$0xff]  }
  0x1d   :  { %2857 = vmatpush3.bf16.msra.mxu1 %v3215_v27  ;;  %2836 = vmatprep.subr.bf16.mxu0 %v3216_v28  ;;  %v3275_v27 = vld [vmem:[%s4246_s1 + $0x298] sm:$0xff]   ;;  %v3276_v28 = vld [vmem:[%s4246_s1 + $0x260] sm:$0xff]   ;;  %v3281_v33 = vld [vmem:[%s4246_s1 + $0x2e8] sm:$0xff]  }
  0x1e   :  { %2858 = vmatprep.subr.bf16.mxu1 %v3217_v29  ;;  %v3277_v29 = vld [vmem:[%s4246_s1 + $0x2e0] sm:$0xff]   ;;  %v3283_v35 = vld [vmem:[%s4246_s1 + $0x2a8] sm:$0xff]   ;;  %v3285_v37 = vld [vmem:[%s4246_s1 + $0x2f0] sm:$0xff]  }
  0x1f   :  { %v3316_v6 = vld [vmem:[%s4246_s1 + $0x368] sm:$0xff]  }
  0x20   :  { %2837 = vmatpush3.bf16.msra.mxu0 %v3218_v30  ;;  %v3278_v30 = vld [vmem:[%s4246_s1 + $0x220] sm:$0xff]   ;;  %v3319_v9 = vld [vmem:[%s4246_s1 + $0x3a8] sm:$0xff]  }
  0x21   :  { %2859 = vmatpush3.bf16.msra.mxu1 %v3219_v31  ;;  %2866 = vmatprep.subr.bf16.mxu0 %v3224_v38  ;;  %v3279_v31 = vld [vmem:[%s4246_s1 + $0x2a0] sm:$0xff]   ;;  %v3286_v38 = vld [vmem:[%s4246_s1 + $0x230] sm:$0xff]  }
  0x22   :  { %2888 = vmatprep.subr.bf16.mxu1 %v3225_v39  ;;  %v3287_v39 = vld [vmem:[%s4246_s1 + $0x2b0] sm:$0xff]  }
  0x23   :  { %1944 = vmatmul.mubr.bf16.vlgmr.msra.gmra.mrb[0].mxu0 %v2571_v34  ;;  %v3282_v34 = vld [vmem:[%s4246_s1 + $0x228] sm:$0xff]  }
  0x24   :  { %1984 = vmatmul.mubr.bf16.vlgmr.msra.gmra.mrb[0].mxu1 %v2573_v36  ;;  %2867 = vmatpush3.bf16.msra.mxu0 %v3226_v40  ;;  %v3284_v36 = vld [vmem:[%s4246_s1 + $0x270] sm:$0xff]   ;;  %v3288_v40 = vld [vmem:[%s4246_s1 + $0x278] sm:$0xff]  }
  0x25   :  { %2889 = vmatpush3.bf16.msra.mxu1 %v3227_v41  ;;  %2868 = vmatprep.subr.bf16.mxu0 %v3228_v42  ;;  %v3289_v41 = vld [vmem:[%s4246_s1 + $0x2f8] sm:$0xff]  }
  0x26   :  { %2890 = vmatprep.subr.bf16.mxu1 %v3229_v43  ;;  %2023 = vmatprep.mubr.bf16.mxu0 %v2576_v8  ;;  %v3290_v42 = vld [vmem:[%s4246_s1 + $0x238] sm:$0xff]   ;;  %v3318_v8 = vld [vmem:[%s4246_s1 + $0x328] sm:$0xff]  }
  0x27   :  { %2063 = vmatprep.mubr.bf16.mxu1 %v2578_v11  ;;  %v3291_v43 = vld [vmem:[%s4246_s1 + $0x2b8] sm:$0xff]   ;;  %v3321_v11 = vld [vmem:[%s4246_s1 + $0x3f0] sm:$0xff]  }
  0x28   :  { %2869 = vmatpush3.bf16.msra.mxu0 %v3230_v44  ;;  %v25_v44 = vld [vmem:[%s4247_s0 + $0x20] sm:$0xff] }
  0x29   :  { %2891 = vmatpush3.bf16.msra.mxu1 %v3231_v45  ;;  %2870 = vmatprep.subr.bf16.mxu0 %v3232_v46  ;;  %v26_v45 = vld [vmem:[%s4247_s0 + $0x28] sm:$0xff]  ;;  %v2579_v46 = vcombine.low %v25_v44, %v25_v44 }
  0x2a   :  { %2892 = vmatprep.subr.bf16.mxu1 %v3233_v47  ;;  %v2580_v47 = vcombine.high %v25_v44, %v25_v44  ;;  %v3352_v44 = vld [vmem:[%s4246_s1 + $0x468] sm:$0xff]  }
  0x2c   :  { %2871 = vmatpush3.bf16.msra.mxu0 %v3234_v48  ;;  %v2581_v48 = vcombine.low %v26_v45, %v26_v45 }
  0x2d   :  { %2893 = vmatpush3.bf16.msra.mxu1 %v3235_v49  ;;  %2872 = vmatprep.subr.bf16.mxu0 %v3236_v50  ;;  %v2582_v49 = vcombine.high %v26_v45, %v26_v45  ;;  %v3296_v50 = vld [vmem:[%s4246_s1 + $0x340] sm:$0xff]   ;;  %v3353_v45 = vld [vmem:[%s4246_s1 + $0x4e8] sm:$0xff]  }
  0x2e   :  { %2894 = vmatprep.subr.bf16.mxu1 %v3237_v51  ;;  %v3297_v51 = vld [vmem:[%s4246_s1 + $0x3c0] sm:$0xff]  }
  0x30   :  { %2873 = vmatpush3.bf16.msra.mxu0 %v3238_v52  ;;  %v3298_v52 = vld [vmem:[%s4246_s1 + $0x300] sm:$0xff]  }
  0x31   :  { %2895 = vmatpush3.bf16.msra.mxu1 %v3239_v53  ;;  %2874 = vmatprep.subr.bf16.mxu0 %v3240_v54  ;;  %v3299_v53 = vld [vmem:[%s4246_s1 + $0x380] sm:$0xff]   ;;  %v3300_v54 = vld [vmem:[%s4246_s1 + $0x348] sm:$0xff]  }
  0x32   :  { %2896 = vmatprep.subr.bf16.mxu1 %v3241_v55  ;;  %v3301_v55 = vld [vmem:[%s4246_s1 + $0x3c8] sm:$0xff]  }
  0x34   :  { %2875 = vmatpush3.bf16.msra.mxu0 %v3242_v56  ;;  %v3302_v56 = vld [vmem:[%s4246_s1 + $0x308] sm:$0xff]  }
  0x35   :  { %2897 = vmatpush3.bf16.msra.mxu1 %v3243_v57  ;;  %2876 = vmatprep.subr.bf16.mxu0 %v3244_v58  ;;  %v3303_v57 = vld [vmem:[%s4246_s1 + $0x388] sm:$0xff]   ;;  %v3304_v58 = vld [vmem:[%s4246_s1 + $0x350] sm:$0xff]  }
  0x36   :  { %2898 = vmatprep.subr.bf16.mxu1 %v3245_v59  ;;  %v3305_v59 = vld [vmem:[%s4246_s1 + $0x3d0] sm:$0xff]  }
  0x38   :  { %2877 = vmatpush3.bf16.msra.mxu0 %v3246_v60  ;;  %v3306_v60 = vld [vmem:[%s4246_s1 + $0x310] sm:$0xff]  }
  0x39   :  { %2899 = vmatpush3.bf16.msra.mxu1 %v3247_v61  ;;  %2878 = vmatprep.subr.bf16.mxu0 %v3248_v62  ;;  %v3307_v61 = vld [vmem:[%s4246_s1 + $0x390] sm:$0xff]   ;;  %v3308_v62 = vld [vmem:[%s4246_s1 + $0x358] sm:$0xff]  }
  0x3a   :  { %2900 = vmatprep.subr.bf16.mxu1 %v3249_v63  ;;  %v3309_v63 = vld [vmem:[%s4246_s1 + $0x3d8] sm:$0xff]  }
  0x3c   :  { %2879 = vmatpush3.bf16.msra.mxu0 %v3250_v0  ;;  %v3310_v0 = vld [vmem:[%s4246_s1 + $0x318] sm:$0xff]  }
  0x3d   :  { %2901 = vmatpush3.bf16.msra.mxu1 %v3251_v1  ;;  %2880 = vmatprep.subr.bf16.mxu0 %v3252_v2  ;;  %v3311_v1 = vld [vmem:[%s4246_s1 + $0x398] sm:$0xff]   ;;  %v3312_v2 = vld [vmem:[%s4246_s1 + $0x360] sm:$0xff]  }
  0x3e   :  { %2902 = vmatprep.subr.bf16.mxu1 %v3253_v3  ;;  %v3313_v3 = vld [vmem:[%s4246_s1 + $0x3e0] sm:$0xff]  }
  0x40   :  { %2881 = vmatpush3.bf16.msra.mxu0 %v3254_v4  ;;  %v3314_v4 = vld [vmem:[%s4246_s1 + $0x320] sm:$0xff]  }
  0x41   :  { %2903 = vmatpush3.bf16.msra.mxu1 %v3255_v5  ;;  %2910 = vmatprep.subr.bf16.mxu0 %v3260_v12  ;;  %v3315_v5 = vld [vmem:[%s4246_s1 + $0x3a0] sm:$0xff]   ;;  %v3322_v12 = vld [vmem:[%s4246_s1 + $0x330] sm:$0xff]  }
  0x42   :  { %2932 = vmatprep.subr.bf16.mxu1 %v3261_v13  ;;  %v3323_v13 = vld [vmem:[%s4246_s1 + $0x3b0] sm:$0xff]  }
  0x43   :  { %2024 = vmatmul.mubr.bf16.vlgmr.msra.gmra.mrb[4].mxu0 %v2575_v7  ;;  %v3317_v7 = vld [vmem:[%s4246_s1 + $0x3e8] sm:$0xff]  }
  0x44   :  { %2064 = vmatmul.mubr.bf16.vlgmr.msra.gmra.mrb[4].mxu1 %v2577_v10  ;;  %2911 = vmatpush3.bf16.msra.mxu0 %v3262_v14  ;;  %v3320_v10 = vld [vmem:[%s4246_s1 + $0x370] sm:$0xff]   ;;  %v3324_v14 = vld [vmem:[%s4246_s1 + $0x378] sm:$0xff]  }
  0x45   :  { %2933 = vmatpush3.bf16.msra.mxu1 %v3263_v15  ;;  %2912 = vmatprep.subr.bf16.mxu0 %v3264_v16  ;;  %v3325_v15 = vld [vmem:[%s4246_s1 + $0x3f8] sm:$0xff]  }
  0x46   :  { %2934 = vmatprep.subr.bf16.mxu1 %v3265_v17  ;;  %2103 = vmatprep.mubr.bf16.mxu0 %v2580_v47  ;;  %v3326_v16 = vld [vmem:[%s4246_s1 + $0x338] sm:$0xff]   ;;  %v3355_v47 = vld [vmem:[%s4246_s1 + $0x4a8] sm:$0xff]  }
  0x47   :  { %2143 = vmatprep.mubr.bf16.mxu1 %v2582_v49  ;;  %v3327_v17 = vld [vmem:[%s4246_s1 + $0x3b8] sm:$0xff]   ;;  %v3357_v49 = vld [vmem:[%s4246_s1 + $0x4f0] sm:$0xff]  }
  0x48   :  { %2913 = vmatpush3.bf16.msra.mxu0 %v3266_v18  ;;  %v27_v18 = vld [vmem:[%s4247_s0 + $0x30] sm:$0xff] }
  0x49   :  { %2935 = vmatpush3.bf16.msra.mxu1 %v3267_v19  ;;  %2914 = vmatprep.subr.bf16.mxu0 %v3268_v20  ;;  %v28_v19 = vld [vmem:[%s4247_s0 + $0x38] sm:$0xff]  ;;  %v2583_v20 = vcombine.low %v27_v18, %v27_v18 }
  0x4a   :  { %2936 = vmatprep.subr.bf16.mxu1 %v3269_v21  ;;  %v2584_v21 = vcombine.high %v27_v18, %v27_v18  ;;  %v3388_v18 = vld [vmem:[%s4246_s1 + $0x568] sm:$0xff]  }
  0x4c   :  { %2915 = vmatpush3.bf16.msra.mxu0 %v3270_v22  ;;  %v2585_v22 = vcombine.low %v28_v19, %v28_v19 }
  0x4d   :  { %2937 = vmatpush3.bf16.msra.mxu1 %v3271_v23  ;;  %2916 = vmatprep.subr.bf16.mxu0 %v3272_v24  ;;  %v3332_v23 = vld [vmem:[%s4246_s1 + $0x440] sm:$0xff]   ;;  %v2586_v24 = vcombine.high %v28_v19, %v28_v19  ;;  %v3389_v19 = vld [vmem:[%s4246_s1 + $0x5e8] sm:$0xff]  }
  0x4e   :  { %2938 = vmatprep.subr.bf16.mxu1 %v3273_v25  ;;  %v3333_v25 = vld [vmem:[%s4246_s1 + $0x4c0] sm:$0xff]  }
  0x50   :  { %2917 = vmatpush3.bf16.msra.mxu0 %v3274_v26  ;;  %v3334_v26 = vld [vmem:[%s4246_s1 + $0x400] sm:$0xff]  }
  0x51   :  { %2939 = vmatpush3.bf16.msra.mxu1 %v3275_v27  ;;  %2918 = vmatprep.subr.bf16.mxu0 %v3276_v28  ;;  %v3335_v27 = vld [vmem:[%s4246_s1 + $0x480] sm:$0xff]   ;;  %v3336_v28 = vld [vmem:[%s4246_s1 + $0x448] sm:$0xff]  }
  0x52   :  { %2940 = vmatprep.subr.bf16.mxu1 %v3277_v29  ;;  %v3337_v29 = vld [vmem:[%s4246_s1 + $0x4c8] sm:$0xff]  }
  0x54   :  { %2919 = vmatpush3.bf16.msra.mxu0 %v3278_v30  ;;  %v3338_v30 = vld [vmem:[%s4246_s1 + $0x408] sm:$0xff]  }
  0x55   :  { %2941 = vmatpush3.bf16.msra.mxu1 %v3279_v31  ;;  %2920 = vmatprep.subr.bf16.mxu0 %v3280_v32  ;;  %v3339_v31 = vld [vmem:[%s4246_s1 + $0x488] sm:$0xff]   ;;  %v3340_v32 = vld [vmem:[%s4246_s1 + $0x450] sm:$0xff]  }
  0x56   :  { %2942 = vmatprep.subr.bf16.mxu1 %v3281_v33  ;;  %v3341_v33 = vld [vmem:[%s4246_s1 + $0x4d0] sm:$0xff]  }
  0x58   :  { %2921 = vmatpush3.bf16.msra.mxu0 %v3282_v34  ;;  %v3342_v34 = vld [vmem:[%s4246_s1 + $0x410] sm:$0xff]  }
  0x59   :  { %2943 = vmatpush3.bf16.msra.mxu1 %v3283_v35  ;;  %2922 = vmatprep.subr.bf16.mxu0 %v3284_v36  ;;  %v3343_v35 = vld [vmem:[%s4246_s1 + $0x490] sm:$0xff]   ;;  %v3344_v36 = vld [vmem:[%s4246_s1 + $0x458] sm:$0xff]  }
  0x5a   :  { %2944 = vmatprep.subr.bf16.mxu1 %v3285_v37  ;;  %v3345_v37 = vld [vmem:[%s4246_s1 + $0x4d8] sm:$0xff]  }
  0x5c   :  { %2923 = vmatpush3.bf16.msra.mxu0 %v3286_v38  ;;  %v3346_v38 = vld [vmem:[%s4246_s1 + $0x418] sm:$0xff]  }
  0x5d   :  { %2945 = vmatpush3.bf16.msra.mxu1 %v3287_v39  ;;  %2924 = vmatprep.subr.bf16.mxu0 %v3288_v40  ;;  %v3347_v39 = vld [vmem:[%s4246_s1 + $0x498] sm:$0xff]   ;;  %v3348_v40 = vld [vmem:[%s4246_s1 + $0x460] sm:$0xff]  }
  0x5e   :  { %2946 = vmatprep.subr.bf16.mxu1 %v3289_v41  ;;  %v3349_v41 = vld [vmem:[%s4246_s1 + $0x4e0] sm:$0xff]  }
  0x60   :  { %2925 = vmatpush3.bf16.msra.mxu0 %v3290_v42  ;;  %v3350_v42 = vld [vmem:[%s4246_s1 + $0x420] sm:$0xff]  }
  0x61   :  { %2947 = vmatpush3.bf16.msra.mxu1 %v3291_v43  ;;  %2954 = vmatprep.subr.bf16.mxu0 %v3296_v50  ;;  %v3351_v43 = vld [vmem:[%s4246_s1 + $0x4a0] sm:$0xff]   ;;  %v3358_v50 = vld [vmem:[%s4246_s1 + $0x430] sm:$0xff]  }
  0x62   :  { %2976 = vmatprep.subr.bf16.mxu1 %v3297_v51  ;;  %v3359_v51 = vld [vmem:[%s4246_s1 + $0x4b0] sm:$0xff]  }
  0x63   :  { %2104 = vmatmul.mubr.bf16.vlgmr.msra.gmra.mrb[8].mxu0 %v2579_v46  ;;  %v3354_v46 = vld [vmem:[%s4246_s1 + $0x428] sm:$0xff]  }
  0x64   :  { %2144 = vmatmul.mubr.bf16.vlgmr.msra.gmra.mrb[8].mxu1 %v2581_v48  ;;  %2955 = vmatpush3.bf16.msra.mxu0 %v3298_v52  ;;  %v3356_v48 = vld [vmem:[%s4246_s1 + $0x470] sm:$0xff]   ;;  %v3360_v52 = vld [vmem:[%s4246_s1 + $0x478] sm:$0xff]  }
  0x65   :  { %2977 = vmatpush3.bf16.msra.mxu1 %v3299_v53  ;;  %2956 = vmatprep.subr.bf16.mxu0 %v3300_v54  ;;  %v3361_v53 = vld [vmem:[%s4246_s1 + $0x4f8] sm:$0xff]  }
  0x66   :  { %2978 = vmatprep.subr.bf16.mxu1 %v3301_v55  ;;  %2183 = vmatprep.mubr.bf16.mxu0 %v2584_v21  ;;  %v3362_v54 = vld [vmem:[%s4246_s1 + $0x438] sm:$0xff]   ;;  %v3391_v21 = vld [vmem:[%s4246_s1 + $0x5a8] sm:$0xff]  }
  0x67   :  { %2223 = vmatprep.mubr.bf16.mxu1 %v2586_v24  ;;  %v3363_v55 = vld [vmem:[%s4246_s1 + $0x4b8] sm:$0xff]   ;;  %v3394_v24 = vld [vmem:[%s4246_s1 + $0x530] sm:$0xff]  }
  0x68   :  { %2957 = vmatpush3.bf16.msra.mxu0 %v3302_v56  ;;  %v29_v56 = vld [vmem:[%s4247_s0 + $0x40] sm:$0xff] }
  0x69   :  { %2979 = vmatpush3.bf16.msra.mxu1 %v3303_v57  ;;  %2958 = vmatprep.subr.bf16.mxu0 %v3304_v58  ;;  %v2587_v57 = vcombine.low %v29_v56, %v29_v56  ;;  %v2588_v58 = vcombine.high %v29_v56, %v29_v56  ;;  %v3423_v56 = vld [vmem:[%s4246_s1 + $0x630] sm:$0xff]  }
  0x6a   :  { %2980 = vmatprep.subr.bf16.mxu1 %v3305_v59  ;;  %v30_v59 = vld [vmem:[%s4247_s0 + $0x48] sm:$0xff] }
  0x6c   :  { %2959 = vmatpush3.bf16.msra.mxu0 %v3306_v60  ;;  %v2589_v60 = vcombine.low %v30_v59, %v30_v59 }
  0x6d   :  { %2981 = vmatpush3.bf16.msra.mxu1 %v3307_v61  ;;  %2960 = vmatprep.subr.bf16.mxu0 %v3308_v62  ;;  %v2590_v61 = vcombine.high %v30_v59, %v30_v59  ;;  %v3368_v62 = vld [vmem:[%s4246_s1 + $0x540] sm:$0xff]  }
  0x6e   :  { %2982 = vmatprep.subr.bf16.mxu1 %v3309_v63  ;;  %v3369_v63 = vld [vmem:[%s4246_s1 + $0x5c0] sm:$0xff]  }
  0x70   :  { %2961 = vmatpush3.bf16.msra.mxu0 %v3310_v0  ;;  %v3370_v0 = vld [vmem:[%s4246_s1 + $0x500] sm:$0xff]  }
  0x71   :  { %2983 = vmatpush3.bf16.msra.mxu1 %v3311_v1  ;;  %2962 = vmatprep.subr.bf16.mxu0 %v3312_v2  ;;  %v3371_v1 = vld [vmem:[%s4246_s1 + $0x580] sm:$0xff]   ;;  %v3372_v2 = vld [vmem:[%s4246_s1 + $0x548] sm:$0xff]  }
  0x72   :  { %2984 = vmatprep.subr.bf16.mxu1 %v3313_v3  ;;  %v3373_v3 = vld [vmem:[%s4246_s1 + $0x5c8] sm:$0xff]  }
  0x74   :  { %2963 = vmatpush3.bf16.msra.mxu0 %v3314_v4  ;;  %v3374_v4 = vld [vmem:[%s4246_s1 + $0x508] sm:$0xff]  }
  0x75   :  { %2985 = vmatpush3.bf16.msra.mxu1 %v3315_v5  ;;  %2964 = vmatprep.subr.bf16.mxu0 %v3316_v6  ;;  %v3375_v5 = vld [vmem:[%s4246_s1 + $0x588] sm:$0xff]   ;;  %v3376_v6 = vld [vmem:[%s4246_s1 + $0x550] sm:$0xff]  }
  0x76   :  { %2986 = vmatprep.subr.bf16.mxu1 %v3317_v7  ;;  %v3377_v7 = vld [vmem:[%s4246_s1 + $0x5d0] sm:$0xff]  }
  0x78   :  { %2965 = vmatpush3.bf16.msra.mxu0 %v3318_v8  ;;  %v3378_v8 = vld [vmem:[%s4246_s1 + $0x510] sm:$0xff]  }
  0x79   :  { %2987 = vmatpush3.bf16.msra.mxu1 %v3319_v9  ;;  %2966 = vmatprep.subr.bf16.mxu0 %v3320_v10  ;;  %v3379_v9 = vld [vmem:[%s4246_s1 + $0x590] sm:$0xff]   ;;  %v3380_v10 = vld [vmem:[%s4246_s1 + $0x558] sm:$0xff]  }
  0x7a   :  { %2988 = vmatprep.subr.bf16.mxu1 %v3321_v11  ;;  %v3381_v11 = vld [vmem:[%s4246_s1 + $0x5d8] sm:$0xff]  }
  0x7c   :  { %2967 = vmatpush3.bf16.msra.mxu0 %v3322_v12  ;;  %v3382_v12 = vld [vmem:[%s4246_s1 + $0x518] sm:$0xff]  }
  0x7d   :  { %2989 = vmatpush3.bf16.msra.mxu1 %v3323_v13  ;;  %2968 = vmatprep.subr.bf16.mxu0 %v3324_v14  ;;  %v3383_v13 = vld [vmem:[%s4246_s1 + $0x598] sm:$0xff]   ;;  %v3384_v14 = vld [vmem:[%s4246_s1 + $0x560] sm:$0xff]  }
  0x7e   :  { %2990 = vmatprep.subr.bf16.mxu1 %v3325_v15  ;;  %v3385_v15 = vld [vmem:[%s4246_s1 + $0x5e0] sm:$0xff]  }
  0x80   :  { %2969 = vmatpush3.bf16.msra.mxu0 %v3326_v16  ;;  %v3386_v16 = vld [vmem:[%s4246_s1 + $0x520] sm:$0xff]  }
  0x81   :  { %2991 = vmatpush3.bf16.msra.mxu1 %v3327_v17  ;;  %2998 = vmatprep.subr.bf16.mxu0 %v3332_v23  ;;  %v3387_v17 = vld [vmem:[%s4246_s1 + $0x5a0] sm:$0xff]   ;;  %v3393_v23 = vld [vmem:[%s4246_s1 + $0x5f0] sm:$0xff]  }
  0x82   :  { %3020 = vmatprep.subr.bf16.mxu1 %v3333_v25  ;;  %v3395_v25 = vld [vmem:[%s4246_s1 + $0x5b0] sm:$0xff]  }
  0x83   :  { %2184 = vmatmul.mubr.bf16.vlgmr.msra.gmra.mrb[12].mxu0 %v2583_v20  ;;  %v3390_v20 = vld [vmem:[%s4246_s1 + $0x528] sm:$0xff]  }
  0x84   :  { %2224 = vmatmul.mubr.bf16.vlgmr.msra.gmra.mrb[12].mxu1 %v2585_v22  ;;  %2999 = vmatpush3.bf16.msra.mxu0 %v3334_v26  ;;  %v3392_v22 = vld [vmem:[%s4246_s1 + $0x570] sm:$0xff]   ;;  %v3396_v26 = vld [vmem:[%s4246_s1 + $0x578] sm:$0xff]  }
  0x85   :  { %3021 = vmatpush3.bf16.msra.mxu1 %v3335_v27  ;;  %3000 = vmatprep.subr.bf16.mxu0 %v3336_v28  ;;  %v3397_v27 = vld [vmem:[%s4246_s1 + $0x5f8] sm:$0xff]  }
  0x86   :  { %3022 = vmatprep.subr.bf16.mxu1 %v3337_v29  ;;  %2263 = vmatprep.mubr.bf16.mxu0 %v2588_v58  ;;  %v3398_v28 = vld [vmem:[%s4246_s1 + $0x538] sm:$0xff]   ;;  %v3424_v58 = vld [vmem:[%s4246_s1 + $0x6b0] sm:$0xff]  }
  0x87   :  { %2303 = vmatprep.mubr.bf16.mxu1 %v2590_v61  ;;  %v3399_v29 = vld [vmem:[%s4246_s1 + $0x5b8] sm:$0xff]  }
  0x88   :  { %3001 = vmatpush3.bf16.msra.mxu0 %v3338_v30  ;;  %v31_v30 = vld [vmem:[%s4247_s0 + $0x50] sm:$0xff]  ;;  %v3426_v61 = vld [vmem:[%s4246_s1 + $0x638] sm:$0xff]  }
  0x89   :  { %3023 = vmatpush3.bf16.msra.mxu1 %v3339_v31  ;;  %3002 = vmatprep.subr.bf16.mxu0 %v3340_v32  ;;  %v32_v31 = vld [vmem:[%s4247_s0 + $0x58] sm:$0xff]  ;;  %v2591_v32 = vcombine.low %v31_v30, %v31_v30 }
  0x8a   :  { %3024 = vmatprep.subr.bf16.mxu1 %v3341_v33  ;;  %v2592_v33 = vcombine.high %v31_v30, %v31_v30 }
  0x8c   :  { %3003 = vmatpush3.bf16.msra.mxu0 %v3342_v34  ;;  %v2593_v34 = vcombine.low %v32_v31, %v32_v31 }
  0x8d   :  { %3025 = vmatpush3.bf16.msra.mxu1 %v3343_v35  ;;  %3004 = vmatprep.subr.bf16.mxu0 %v3344_v36  ;;  %v2594_v35 = vcombine.high %v32_v31, %v32_v31  ;;  %v3404_v36 = vld [vmem:[%s4246_s1 + $0x640] sm:$0xff]  }
  0x8e   :  { %3026 = vmatprep.subr.bf16.mxu1 %v3345_v37  ;;  %v3405_v37 = vld [vmem:[%s4246_s1 + $0x600] sm:$0xff]  }
  0x90   :  { %3005 = vmatpush3.bf16.msra.mxu0 %v3346_v38  ;;  %v3406_v38 = vld [vmem:[%s4246_s1 + $0x680] sm:$0xff]  }
  0x91   :  { %3027 = vmatpush3.bf16.msra.mxu1 %v3347_v39  ;;  %3006 = vmatprep.subr.bf16.mxu0 %v3348_v40  ;;  %v3407_v39 = vld [vmem:[%s4246_s1 + $0x648] sm:$0xff]   ;;  %v3437_v40 = vmov 0  }
  0x92   :  { %3028 = vmatprep.subr.bf16.mxu1 %v3349_v41  ;;  %v3408_v41 = vld [vmem:[%s4246_s1 + $0x608] sm:$0xff]  }
  0x94   :  { %3007 = vmatpush3.bf16.msra.mxu0 %v3350_v42  ;;  %v3409_v42 = vld [vmem:[%s4246_s1 + $0x688] sm:$0xff]  }
  0x95   :  { %3029 = vmatpush3.bf16.msra.mxu1 %v3351_v43  ;;  %3008 = vmatprep.subr.bf16.mxu0 %v3352_v44  ;;  %v3410_v43 = vld [vmem:[%s4246_s1 + $0x650] sm:$0xff]  }
  0x96   :  { %3030 = vmatprep.subr.bf16.mxu1 %v3353_v45  ;;  %v3411_v44 = vld [vmem:[%s4246_s1 + $0x610] sm:$0xff]  }
  0x97   :  { %v3412_v45 = vld [vmem:[%s4246_s1 + $0x690] sm:$0xff]  }
  0x98   :  { %3009 = vmatpush3.bf16.msra.mxu0 %v3354_v46  ;;  %v3413_v46 = vld [vmem:[%s4246_s1 + $0x658] sm:$0xff]  }
  0x99   :  { %3031 = vmatpush3.bf16.msra.mxu1 %v3355_v47  ;;  %3010 = vmatprep.subr.bf16.mxu0 %v3356_v48  ;;  %v3414_v47 = vld [vmem:[%s4246_s1 + $0x618] sm:$0xff]  }
  0x9a   :  { %3032 = vmatprep.subr.bf16.mxu1 %v3357_v49  ;;  %v3415_v48 = vld [vmem:[%s4246_s1 + $0x698] sm:$0xff]   ;;  %v3416_v49 = vld [vmem:[%s4246_s1 + $0x660] sm:$0xff]  }
  0x9c   :  { %3011 = vmatpush3.bf16.msra.mxu0 %v3358_v50  ;;  %v3417_v50 = vld [vmem:[%s4246_s1 + $0x620] sm:$0xff]  }
  0x9d   :  { %3033 = vmatpush3.bf16.msra.mxu1 %v3359_v51  ;;  %3012 = vmatprep.subr.bf16.mxu0 %v3360_v52  ;;  %v3418_v51 = vld [vmem:[%s4246_s1 + $0x6a0] sm:$0xff]   ;;  %v3419_v52 = vld [vmem:[%s4246_s1 + $0x668] sm:$0xff]  }
  0x9e   :  { %3034 = vmatprep.subr.bf16.mxu1 %v3361_v53  ;;  %v3420_v53 = vld [vmem:[%s4246_s1 + $0x628] sm:$0xff]  }
  0xa0   :  { %3013 = vmatpush3.bf16.msra.mxu0 %v3362_v54  ;;  %v3421_v54 = vld [vmem:[%s4246_s1 + $0x6a8] sm:$0xff]  }
  0xa1   :  { %3035 = vmatpush3.bf16.msra.mxu1 %v3363_v55  ;;  %3042 = vmatprep.subr.bf16.mxu0 %v3368_v62  ;;  %v3422_v55 = vld [vmem:[%s4246_s1 + $0x670] sm:$0xff]   ;;  %v3427_v62 = vld [vmem:[%s4246_s1 + $0x6b8] sm:$0xff]  }
  0xa2   :  { %3064 = vmatprep.subr.bf16.mxu1 %v3369_v63  ;;  %v34_v63 = vld [vmem:[%s4247_s0 + $0x68] sm:$0xff] }
  0xa3   :  { %2264 = vmatmul.mubr.bf16.vlgmr.msra.gmra.mrb[16].mxu0 %v2587_v57  ;;  %v33_v57 = vld [vmem:[%s4247_s0 + $0x60] sm:$0xff] }
  0xa4   :  { %2304 = vmatmul.mubr.bf16.vlgmr.msra.gmra.mrb[16].mxu1 %v2589_v60  ;;  %3043 = vmatpush3.bf16.msra.mxu0 %v3370_v0  ;;  %v2596_v59 = vcombine.high %v33_v57, %v33_v57  ;;  %v3425_v60 = vld [vmem:[%s4246_s1 + $0x678] sm:$0xff]   ;;  %v2598_v0 = vcombine.high %v34_v63, %v34_v63 }
  0xa5   :  { %3065 = vmatpush3.bf16.msra.mxu1 %v3371_v1  ;;  %3044 = vmatprep.subr.bf16.mxu0 %v3372_v2  ;;  %v2595_v1 = vcombine.low %v33_v57, %v33_v57  ;;  %v3430_v2 = vld [vmem:[%s4246_s1 + $0x6c0] sm:$0xff]  }
  0xa6   :  { %3066 = vmatprep.subr.bf16.mxu1 %v3373_v3  ;;  %2343 = vmatprep.mubr.bf16.mxu0 %v2592_v33  ;;  %v3431_v3 = vld [vmem:[%s4246_s1 + $0x6c8] sm:$0xff]  }
  0xa7   :  { %2383 = vmatprep.mubr.bf16.mxu1 %v2594_v35  ;;  %v2472_v35 = vld [vmem:[%s4249_s3] sm:$0xff] }
  0xa8   :  { %3045 = vmatpush3.bf16.msra.mxu0 %v3374_v4  ;;  %v3432_v4 = vld [vmem:[%s4246_s1 + $0x6d0] sm:$0xff]  }
  0xa9   :  { %3067 = vmatpush3.bf16.msra.mxu1 %v3375_v5  ;;  %3046 = vmatprep.subr.bf16.mxu0 %v3376_v6  ;;  %v3433_v5 = vld [vmem:[%s4246_s1 + $0x6d8] sm:$0xff]   ;;  %v3434_v6 = vld [vmem:[%s4246_s1 + $0x6e0] ss:$0 sps:$4 sm:$0xff]  }
  0xaa   :  { %3068 = vmatprep.subr.bf16.mxu1 %v3377_v7  ;;  %v1909_v7 = vsel %vm1907_vm1, %v3434_v6, 0 }
  0xac   :  { %3047 = vmatpush3.bf16.msra.mxu0 %v3378_v8 }
  0xad   :  { %3069 = vmatpush3.bf16.msra.mxu1 %v3379_v9  ;;  %3048 = vmatprep.subr.bf16.mxu0 %v3380_v10  ;;  %v2570_v10 = vld [vmem:[%s4248_s2] ss:$0 sm:$0xff] }
  0xae   :  { %3070 = vmatprep.subr.bf16.mxu1 %v3381_v11 }
  0xb0   :  { %3049 = vmatpush3.bf16.msra.mxu0 %v3382_v12 }
  0xb1   :  { %3071 = vmatpush3.bf16.msra.mxu1 %v3383_v13  ;;  %3050 = vmatprep.subr.bf16.mxu0 %v3384_v14  ;;  %v2597_v13 = vcombine.low %v34_v63, %v34_v63  ;;  %v2483_v63 = vld [vmem:[%s4249_s3 + $0x58] sm:$0xff] }
  0xb2   :  { %3072 = vmatprep.subr.bf16.mxu1 %v3385_v15 }
  0xb4   :  { %3051 = vmatpush3.bf16.msra.mxu0 %v3386_v16 }
  0xb5   :  { %3073 = vmatpush3.bf16.msra.mxu1 %v3387_v17  ;;  %3052 = vmatprep.subr.bf16.mxu0 %v3388_v18 }
  0xb6   :  { %3074 = vmatprep.subr.bf16.mxu1 %v3389_v19 }
  0xb8   :  { %3053 = vmatpush3.bf16.msra.mxu0 %v3390_v20 }
  0xb9   :  { %3075 = vmatpush3.bf16.msra.mxu1 %v3391_v21  ;;  %3054 = vmatprep.subr.bf16.mxu0 %v3392_v22 }
  0xba   :  { %3076 = vmatprep.subr.bf16.mxu1 %v3393_v23 }
  0xbc   :  { %3055 = vmatpush3.bf16.msra.mxu0 %v3394_v24 }
  0xbd   :  { %3077 = vmatpush3.bf16.msra.mxu1 %v3395_v25  ;;  %3056 = vmatprep.subr.bf16.mxu0 %v3396_v26 }
  0xbe   :  { %3078 = vmatprep.subr.bf16.mxu1 %v3397_v27 }
  0xc0   :  { %3057 = vmatpush3.bf16.msra.mxu0 %v3398_v28 }
  0xc1   :  { %3079 = vmatpush3.bf16.msra.mxu1 %v3399_v29  ;;  %3086 = vmatprep.subr.bf16.mxu0 %v3404_v36  ;;  %v2473_v36 = vld [vmem:[%s4249_s3 + $0x8] sm:$0xff] }
  0xc2   :  { %2431 = vmatprep.subr.bf16.mxu1 %v3437_v40 }
  0xc3   :  { %2344 = vmatmul.mubr.bf16.vlgmr.msra.gmra.mrb[20].mxu0 %v2591_v32 }
  0xc4   :  { %2384 = vmatmul.mubr.bf16.vlgmr.msra.gmra.mrb[20].mxu1 %v2593_v34  ;;  %3087 = vmatpush3.bf16.msra.mxu0 %v3405_v37  ;;  %v3438_v34 = vmov 0.0|0.0   ;;  %v2474_v37 = vld [vmem:[%s4249_s3 + $0x10] sm:$0xff] }
  0xc5   :  { %2432 = vmatpush1.bf16.msra.mxu1 %v3406_v38  ;;  %3088 = vmatprep.subr.bf16.mxu0 %v3407_v39  ;;  %v3161_v38 = vpack.c.bf16 %v2473_v36, %v2472_v35  ;;  %v2475_v39 = vld [vmem:[%s4249_s3 + $0x18] sm:$0xff] }
  0xc6   :  { %2433 = vmatprep.subr.bf16.mxu1 %v3437_v40  ;;  %2423 = vmatprep.mubr.bf16.mxu0 %v2596_v59  ;;  %v2480_v59 = vld [vmem:[%s4249_s3 + $0x40] sm:$0xff] }
  0xc7   :  { %2820 = vmatprep.mubr.msk.bf16.mxu1 %vm1903_vm0, %v2598_v0 }
  0xc8   :  { %3089 = vmatpush3.bf16.msra.mxu0 %v3408_v41 }
  0xc9   :  { %2434 = vmatpush1.bf16.msra.mxu1 %v3409_v42  ;;  %3090 = vmatprep.subr.bf16.mxu0 %v3410_v43 }
  0xca   :  { %2435 = vmatprep.subr.bf16.mxu1 %v3437_v40 }
  0xcc   :  { %3091 = vmatpush3.bf16.msra.mxu0 %v3411_v44 }
  0xcd   :  { %2436 = vmatpush1.bf16.msra.mxu1 %v3412_v45  ;;  %3092 = vmatprep.subr.bf16.mxu0 %v3413_v46 }
  0xce   :  { %2437 = vmatprep.subr.bf16.mxu1 %v3437_v40 }
  0xd0   :  { %3093 = vmatpush3.bf16.msra.mxu0 %v3414_v47  ;;  %v2476_v47 = vld [vmem:[%s4249_s3 + $0x20] sm:$0xff] }
  0xd1   :  { %2438 = vmatpush1.bf16.msra.mxu1 %v3415_v48  ;;  %3094 = vmatprep.subr.bf16.mxu0 %v3416_v49  ;;  %v2477_v48 = vld [vmem:[%s4249_s3 + $0x28] sm:$0xff] }
  0xd2   :  { %2439 = vmatprep.subr.bf16.mxu1 %v3437_v40 }
  0xd4   :  { %3095 = vmatpush3.bf16.msra.mxu0 %v3417_v50 }
  0xd5   :  { %2440 = vmatpush1.bf16.msra.mxu1 %v3418_v51  ;;  %3096 = vmatprep.subr.bf16.mxu0 %v3419_v52  ;;  %v3167_v52 = vpack.c.bf16 %v2477_v48, %v2476_v47 }
  0xd6   :  { %2441 = vmatprep.subr.bf16.mxu1 %v3437_v40 }
  0xd8   :  { %3097 = vmatpush3.bf16.msra.mxu0 %v3420_v53 }
  0xd9   :  { %2442 = vmatpush1.bf16.msra.mxu1 %v3421_v54  ;;  %3098 = vmatprep.subr.bf16.mxu0 %v3422_v55  ;;  %v2478_v55 = vld [vmem:[%s4249_s3 + $0x30] sm:$0xff] }
  0xda   :  { %2443 = vmatprep.subr.bf16.mxu1 %v3437_v40 }
  0xdc   :  { %3099 = vmatpush3.bf16.msra.mxu0 %v3423_v56  ;;  %v2479_v56 = vld [vmem:[%s4249_s3 + $0x38] sm:$0xff] }
  0xdd   :  { %2444 = vmatpush1.bf16.msra.mxu1 %v3424_v58  ;;  %3100 = vmatprep.subr.bf16.mxu0 %v3425_v60  ;;  %v3170_v58 = vpack.c.bf16 %v2479_v56, %v2478_v55  ;;  %v2481_v60 = vld [vmem:[%s4249_s3 + $0x48] sm:$0xff]  ;;  %v2821_v56 = vld [vmem:[%s4250_s4] ss:$0 sm:$0xff] }
  0xde   :  { %2445 = vmatprep.subr.bf16.mxu1 %v3437_v40 }
  0xe0   :  { %3101 = vmatpush3.bf16.msra.mxu0 %v3426_v61  ;;  %v3173_v61 = vpack.c.bf16 %v2481_v60, %v2480_v59 }
  0xe1   :  { %2446 = vmatpush1.bf16.msra.mxu1 %v3427_v62  ;;  %3160 = vmatprep.subr.bf16.mxu0 %v3438_v34  ;;  %v2482_v62 = vld [vmem:[%s4249_s3 + $0x50] sm:$0xff] }
  0xe2   :  { %2447 = vmatprep.subr.bf16.mxu1 %v3437_v40  ;;  %v3176_v0 = vpack.c.bf16 %v2483_v63, %v2482_v62 }
  0xe3   :  { %2424 = vmatmul.mubr.bf16.vlgmr.msra.gmra.mrb[24].mxu0 %v2595_v1  ;;  %v2484_v1 = vld [vmem:[%s4249_s3 + $0x60] sm:$0xff] }
  0xe4   :  { %3162 = vmatpush3.bf16.msra.mxu0 %v3161_v38 }
  0xe5   :  { %2448 = vmatpush1.bf16.msra.mxu1 %v3430_v2  ;;  %3163 = vmatprep.subr.bf16.mxu0 %v3438_v34  ;;  %v2485_v2 = vld [vmem:[%s4249_s3 + $0x68] sm:$0xff] }
  0xe6   :  { %2449 = vmatprep.subr.bf16.mxu1 %v3437_v40 }
  0xe9   :  { %2450 = vmatpush1.bf16.msra.mxu1 %v3431_v3  ;;  %v3179_v3 = vpack.c.bf16 %v2485_v2, %v2484_v1 }
  0xea   :  { %2451 = vmatprep.subr.bf16.mxu1 %v3437_v40 }
  0xed   :  { %2452 = vmatpush1.bf16.msra.mxu1 %v3432_v4  ;;  %v2486_v4 = vld [vmem:[%s4249_s3 + $0x70] sm:$0xff] }
  0xee   :  { %2453 = vmatprep.subr.bf16.mxu1 %v3437_v40 }
  0xf1   :  { %2454 = vmatpush1.bf16.msra.mxu1 %v3433_v5  ;;  %v2487_v5 = vld [vmem:[%s4249_s3 + $0x78] sm:$0xff] }
  0xf2   :  { %2455 = vmatprep.subr.bf16.mxu1 %v3437_v40  ;;  %v3164_v40 = vpack.c.bf16 %v2475_v39, %v2474_v37  ;;  %v3182_v6 = vpack.c.bf16 %v2487_v5, %v2486_v4 }
  0xf4   :  { %3165 = vmatpush3.bf16.msra.mxu0 %v3164_v40 }
  0xf5   :  { %2456 = vmatpush1.bf16.msra.mxu1 %v1909_v7  ;;  %3166 = vmatprep.subr.bf16.mxu0 %v3438_v34  ;;  %v3440_v7 = vmov 0.0  }
  0xf6   :  { %v2838_v8 = vpop.f32.mrb[0].mxu0  ;;  %3157 = vmatprep.mubr.msk.f32.mxu0 %vm3439_vm2, %v3440_v7 }
  0xf7   :  { %v2860_v9 = vpop.f32.mrb[0].mxu1  ;;  %v2839_v11 = vpop.f32.mrb[1].mxu0 }
  0xf8   :  { %v2861_v12 = vpop.f32.mrb[1].mxu1  ;;  %v2840_v14 = vadd.f32 %v2839_v11, %v2838_v8  ;;  %v2841_v17 = vpop.f32.mrb[2].mxu0  ;;  %2464 = vmatmul.mubr.bf16.vlgmr.msra.gmra.mrb[24].mxu1 %v2597_v13  ;;  %3168 = vmatpush3.bf16.msra.mxu0 %v3167_v52 }
  0xf9   :  { %v2862_v15 = vadd.f32 %v2861_v12, %v2860_v9  ;;  %v2863_v16 = vpop.f32.mrb[2].mxu1  ;;  %v2842_v19 = vpop.f32.mrb[3].mxu0  ;;  %3169 = vmatprep.subr.bf16.mxu0 %v3438_v34 }
  0xfa   :  { %v2864_v18 = vpop.f32.mrb[3].mxu1  ;;  %v1946_v20 = vadd.f32 %v2840_v14, %v2570_v10 }
  0xfc   :  { %v1986_v21 = vadd.f32 %v2862_v15, %v1946_v20  ;;  %3171 = vmatpush3.bf16.msra.mxu0 %v3170_v58 }
  0xfd   :  { %3172 = vmatprep.subr.bf16.mxu0 %v3438_v34 }
 0x100   :  { %3174 = vmatpush3.bf16.msra.mxu0 %v3173_v61 }
 0x101   :  { %3175 = vmatprep.subr.bf16.mxu0 %v3438_v34 }
 0x104   :  { %3177 = vmatpush3.bf16.msra.mxu0 %v3176_v0 }
 0x105   :  { %3178 = vmatprep.subr.bf16.mxu0 %v3438_v34 }
 0x108   :  { %3180 = vmatpush3.bf16.msra.mxu0 %v3179_v3 }
 0x109   :  { %3181 = vmatprep.subr.bf16.mxu0 %v3438_v34 }
 0x10c   :  { %3183 = vmatpush3.bf16.msra.mxu0 %v3182_v6 }
 0x116   :  { %v2882_v22 = vpop.f32.mrb[4].mxu0 }
 0x117   :  { %v2904_v23 = vpop.f32.mrb[4].mxu1  ;;  %v2883_v24 = vpop.f32.mrb[5].mxu0 }
 0x118   :  { %v2905_v25 = vpop.f32.mrb[5].mxu1  ;;  %v2884_v26 = vadd.f32 %v2883_v24, %v2882_v22  ;;  %v2885_v29 = vpop.f32.mrb[6].mxu0 }
 0x119   :  { %v2906_v27 = vadd.f32 %v2905_v25, %v2904_v23  ;;  %v2907_v28 = vpop.f32.mrb[6].mxu1  ;;  %v2886_v31 = vpop.f32.mrb[7].mxu0 }
 0x11a   :  { %v2908_v30 = vpop.f32.mrb[7].mxu1  ;;  %v2026_v32 = vadd.f32 %v2884_v26, %v1986_v21 }
 0x11c   :  { %v2066_v33 = vadd.f32 %v2906_v27, %v2026_v32 }
 0x136   :  { %v2926_v41 = vpop.f32.mrb[8].mxu0 }
 0x137   :  { %v2948_v42 = vpop.f32.mrb[8].mxu1  ;;  %v2927_v43 = vpop.f32.mrb[9].mxu0 }
 0x138   :  { %v2928_v44 = vadd.f32 %v2927_v43, %v2926_v41  ;;  %v2949_v45 = vpop.f32.mrb[9].mxu1  ;;  %v2929_v46 = vpop.f32.mrb[10].mxu0 }
 0x139   :  { %v2950_v49 = vadd.f32 %v2949_v45, %v2948_v42  ;;  %v2951_v50 = vpop.f32.mrb[10].mxu1  ;;  %v2930_v51 = vpop.f32.mrb[11].mxu0 }
 0x13a   :  { %v2106_v53 = vadd.f32 %v2928_v44, %v2066_v33  ;;  %v2952_v54 = vpop.f32.mrb[11].mxu1 }
 0x13c   :  { %v2146_v57 = vadd.f32 %v2950_v49, %v2106_v53 }
 0x156   :  { %v2970_v8 = vpop.f32.mrb[12].mxu0 }
 0x157   :  { %v2992_v9 = vpop.f32.mrb[12].mxu1  ;;  %v2971_v10 = vpop.f32.mrb[13].mxu0 }
 0x158   :  { %v2972_v11 = vadd.f32 %v2971_v10, %v2970_v8  ;;  %v2993_v12 = vpop.f32.mrb[13].mxu1  ;;  %v2973_v13 = vpop.f32.mrb[14].mxu0 }
 0x159   :  { %v2994_v14 = vadd.f32 %v2993_v12, %v2992_v9  ;;  %v2995_v15 = vpop.f32.mrb[14].mxu1  ;;  %v2974_v16 = vpop.f32.mrb[15].mxu0 }
 0x15a   :  { %v2186_v17 = vadd.f32 %v2972_v11, %v2146_v57  ;;  %v2996_v18 = vpop.f32.mrb[15].mxu1 }
 0x15c   :  { %v2226_v19 = vadd.f32 %v2994_v14, %v2186_v17 }
 0x176   :  { %v3014_v20 = vpop.f32.mrb[16].mxu0 }
 0x177   :  { %v3036_v21 = vpop.f32.mrb[16].mxu1  ;;  %v3015_v22 = vpop.f32.mrb[17].mxu0 }
 0x178   :  { %v3037_v23 = vpop.f32.mrb[17].mxu1  ;;  %v3016_v24 = vadd.f32 %v3015_v22, %v3014_v20  ;;  %v3017_v27 = vpop.f32.mrb[18].mxu0 }
 0x179   :  { %v3038_v25 = vadd.f32 %v3037_v23, %v3036_v21  ;;  %v3039_v26 = vpop.f32.mrb[18].mxu1  ;;  %v3018_v29 = vpop.f32.mrb[19].mxu0 }
 0x17a   :  { %v3040_v28 = vpop.f32.mrb[19].mxu1  ;;  %v2266_v30 = vadd.f32 %v3016_v24, %v2226_v19 }
 0x17c   :  { %v2306_v31 = vadd.f32 %v3038_v25, %v2266_v30 }
 0x196   :  { %v3058_v32 = vpop.f32.mrb[20].mxu0 }
 0x197   :  { %v3080_v33 = vpop.f32.mrb[20].mxu1  ;;  %v3059_v34 = vpop.f32.mrb[21].mxu0 }
 0x198   :  { %v3060_v35 = vadd.f32 %v3059_v34, %v3058_v32  ;;  %v3081_v36 = vpop.f32.mrb[21].mxu1  ;;  %v3061_v37 = vpop.f32.mrb[22].mxu0 }
 0x199   :  { %v3082_v38 = vadd.f32 %v3081_v36, %v3080_v33  ;;  %v3083_v39 = vpop.f32.mrb[22].mxu1  ;;  %v3062_v40 = vpop.f32.mrb[23].mxu0 }
 0x19a   :  { %v2346_v41 = vadd.f32 %v3060_v35, %v2306_v31  ;;  %v3084_v42 = vpop.f32.mrb[23].mxu1 }
 0x19c   :  { %v2386_v43 = vadd.f32 %v3082_v38, %v2346_v41 }
 0x1b6   :  { %v3102_v44 = vpop.f32.mrb[24].mxu0 }
 0x1b7   :  { %v3103_v45 = vpop.f32.mrb[25].mxu0 }
 0x1b8   :  { %v3104_v46 = vadd.f32 %v3103_v45, %v3102_v44  ;;  %v3105_v47 = vpop.f32.mrb[26].mxu0 }
 0x1b9   :  { %v3106_v48 = vpop.f32.mrb[27].mxu0 }
 0x1ba   :  { %v2426_v49 = vadd.f32 %v3104_v46, %v2386_v43 }
 0x1cb   :  { %v2465_v50 = vpop.f32.mrb[24].mxu1 }
 0x1cc   :  { %v2466_v51 = vadd.f32 %v2465_v50, %v2426_v49  ;;  %v2467_v52 = vpop.f32.mrb[25].mxu1 }
 0x1cd   :  { %v2468_v53 = vpop.f32.mrb[26].mxu1 }
 0x1ce   :  { %v2471_v54 = vmax.f32 %v2466_v51, 0.0  ;;  %v2469_v55 = vpop.f32.mrb[27].mxu1 }
 0x1d0   :  { %3158 = vmatmul.mubr.f32.vlgmr.msra.gmra.mrb[28].mxu0 %v2471_v54 }
 0x2a3   :  { %v2561_v57 = vpop.f32.mrb[28].mxu0 }
 0x2a4   :  { %v2562_v58 = vadd.f32 %v2821_v56, %v2561_v57  ;;  %v3159_v59 = vpop.f32.mrb[29].mxu0 }
 0x2a6   :  { %2565 = vst [vmem:[%s4251_s5] sm:$0xff] %v2562_v58 }

</bundles_post_ra>
